<compile_context>
chip_gen: v7x
topology: tpu7x:2x2x1
jax: 0.10.0
libtpu: 0.0.40
codegen_flags: <defaults>
</compile_context>

<pallas_src>
import math
import numpy as np
import jax
import jax.numpy as jnp
from jax.experimental import pallas as pl
from jax.experimental.pallas import tpu as pltpu

EPS = 1e-5
LANE = 128


def _make_textblock_kernel(num_heads, key_dim, d, n_actual, n_pad):
    """One grid step = one batch element; activations kept channel-major (C, N_pad)."""
    nh_kd = num_heads * key_dim

    def kernel(x_ref,
               s1_ref, t1_ref,                 # folded BN1 scale/shift, (C, 1) f32
               wqkv_ref, bqkv_ref,             # fused to_q|to_k|to_v (bf16 W, f32 (out,1) b)
               wp_ref, bp_ref,                 # proj
               s2_ref, t2_ref,                 # folded BN2 scale/shift
               w1_ref, b1_ref,                 # mlp.fc1 (Linear)
               wc_ref, bc_ref,                 # mlp.fc2 (Conv1d, k=1)
               o_ref,
               xx_ref):                        # VMEM scratch (dh, N_pad) bf16
        f32, bf16 = jnp.float32, jnp.bfloat16
        xb = x_ref[0]                          # (C, Np) f32

        # ---- norm1: BatchNorm1d folded to scale/shift on the host -----------------
        y1_bf = (xb * s1_ref[...] + t1_ref[...]).astype(bf16)

        # ---- fused q|k|v projection: one (2*nh_kd+dh, C) @ (C, Np) dot ------------
        qkv = jnp.dot(wqkv_ref[...], y1_bf, preferred_element_type=f32) + bqkv_ref[...]
        qkv_bf = qkv.astype(bf16)              # single cast feeding all head dots
        q_bf = qkv_bf[:nh_kd, :]               # (nh_kd, Np)  q already * sqrt(key_dim)
        k_bf = qkv_bf[nh_kd:2 * nh_kd, :]      # (nh_kd, Np)
        v_bf = qkv_bf[2 * nh_kd:, :]           # (dh,    Np)

        # key-padding mask, only needed when N was padded up to a lane multiple
        if n_pad != n_actual:
            key_ids = jax.lax.broadcasted_iota(jnp.int32, (1, n_pad), 1)
            key_bias = jnp.where(key_ids < n_actual, 0.0, -1e30).astype(f32)
        else:
            key_bias = None

        # ---- attention: per-head, sublane-aligned slices ---------------------------
        for h in range(num_heads):
            qh = q_bf[h * key_dim:(h + 1) * key_dim, :]          # (kd, Np)
            kh = k_bf[h * key_dim:(h + 1) * key_dim, :]          # (kd, Np)
            vh = v_bf[h * d:(h + 1) * d, :]                      # (d,  Np)
            # scores (Nq, Nk): contract the kd (leading) axes.  The module's
            # division by key_dim**-0.5 is folded into the q rows of wqkv/bqkv.
            s = jax.lax.dot_general(qh, kh, (((0,), (0,)), ((), ())),
                                    preferred_element_type=f32)
            if key_bias is not None:
                s = s + key_bias
            s_max = jnp.max(s, axis=-1, keepdims=True)
            p = jnp.exp(s - s_max)
            inv = pl.reciprocal(jnp.sum(p, axis=-1, keepdims=True), approx=True)
            p_bf = (p * inv).astype(bf16)
            # head output (d, Nq), written straight into the (dh, Np) scratch
            oh = jax.lax.dot_general(vh, p_bf, (((1,), (1,)), ((), ())),
                                     preferred_element_type=f32)
            xx_ref[h * d:(h + 1) * d, :] = oh.astype(bf16)

        attn_out = (jnp.dot(wp_ref[...], xx_ref[...], preferred_element_type=f32)
                    + bp_ref[...])             # (C, Np)
        # DropPath(0.0) / attn_drop(0.0) are identities in eval mode.
        x2 = xb + attn_out                     # residual #1 (f32)

        # ---- norm2 + Mlp (Linear -> ReLU6 -> Conv1d k=1); Dropout is eval identity --
        y2_bf = (x2 * s2_ref[...] + t2_ref[...]).astype(bf16)
        hdn = jnp.dot(w1_ref[...], y2_bf, preferred_element_type=f32) + b1_ref[...]
        hdn_bf = jnp.clip(hdn, 0.0, 6.0).astype(bf16)            # ReLU6 in f32
        mlp_out = (jnp.dot(wc_ref[...], hdn_bf, preferred_element_type=f32)
                   + bc_ref[...])              # (C, Np)

        o_ref[0] = x2 + mlp_out                # residual #2

    return kernel


def textblock_forward(x, params, *, num_heads, key_dim, attn_ratio):
    B, C, H, W = x.shape
    N = H * W
    nh_kd = num_heads * key_dim
    d = int(attn_ratio * key_dim)
    dh = d * num_heads
    n_pad = ((N + LANE - 1) // LANE) * LANE          # lane-dense minor dim
    f32, bf16 = jnp.float32, jnp.bfloat16

    x_flat = x.reshape(B, C, N).astype(f32)          # == x.view(B, C, -1)
    if n_pad != N:
        x_flat = jnp.pad(x_flat, ((0, 0), (0, 0), (0, n_pad - N)))

    # Fold each BatchNorm1d (running stats) into a single per-channel scale/shift.
    def fold_bn(g, be, m, v):
        scale = (g * jax.lax.rsqrt(v + EPS)).astype(f32)
        shift = (be - m * scale).astype(f32)
        return scale.reshape(C, 1), shift.reshape(C, 1)

    s1, t1 = fold_bn(params["g1"], params["be1"], params["m1"], params["v1"])
    s2, t2 = fold_bn(params["g2"], params["be2"], params["m2"], params["v2"])

    col = lambda b: jnp.asarray(b, f32).reshape(-1, 1)
    qk_scale = float(key_dim) ** 0.5                 # module divides by key_dim**-0.5

    # Fused q|k|v weight/bias (qk scale folded into the q rows).
    wqkv = jnp.concatenate([params["wq"] * qk_scale, params["wk"], params["wv"]],
                           axis=0).astype(bf16)                       # (2*nh_kd+dh, C)
    bqkv = jnp.concatenate([params["bq"] * qk_scale, params["bk"], params["bv"]],
                           axis=0).astype(f32).reshape(-1, 1)

    weights = [
        s1, t1,
        wqkv, bqkv,
        params["wp"].astype(bf16), col(params["bp"]),
        s2, t2,
        params["w1"].astype(bf16), col(params["b1"]),
        params["wc"].astype(bf16), col(params["bc"]),
    ]

    kernel = _make_textblock_kernel(num_heads, key_dim, d, N, n_pad)

    def full_spec(a):
        nd = a.ndim
        return pl.BlockSpec(a.shape, lambda b, _nd=nd: (0,) * _nd)

    out = pl.pallas_call(
        kernel,
        out_shape=jax.ShapeDtypeStruct((B, C, n_pad), f32),
        grid=(B,),
        in_specs=[pl.BlockSpec((1, C, n_pad), lambda b: (b, 0, 0))]
                 + [full_spec(w) for w in weights],
        out_specs=pl.BlockSpec((1, C, n_pad), lambda b: (b, 0, 0)),
        scratch_shapes=[pltpu.VMEM((dh, n_pad), bf16)],
        compiler_params=pltpu.CompilerParams(dimension_semantics=("parallel",)),
    )(x_flat, *weights)
    return out[:, :, :N].reshape(B, C, H, W)


# ----------------------- pure-JAX reference (for verification) ----------------------
def textblock_reference(x, params, *, num_heads, key_dim, attn_ratio, bf16_matmuls=False):
    """Mirrors the PyTorch module. bf16_matmuls=True mimics the kernel's MXU precision
    policy (bf16 operands, f32 accumulation) at the same cast points."""
    B, C, H, W = x.shape
    N = H * W
    d = int(attn_ratio * key_dim)
    f32 = jnp.float32
    xb = x.reshape(B, C, N).astype(f32)
    cast = (lambda a: a.astype(jnp.bfloat16)) if bf16_matmuls else (lambda a: a)

    def bn(z, g, be, m, v):
        g, be, m, v = (a[None, :, None] for a in (g, be, m, v))
        return (z - m) * jax.lax.rsqrt(v + EPS) * g + be

    def mm(a, b):
        return jnp.matmul(cast(a), cast(b), preferred_element_type=f32)

    y1 = bn(xb, params["g1"], params["be1"], params["m1"], params["v1"])
    xt = jnp.transpose(y1, (0, 2, 1))                                 # (B, N, C)
    q = mm(xt, params["wq"].T) + params["bq"]
    k = mm(xt, params["wk"].T) + params["bk"]
    v = mm(xt, params["wv"].T) + params["bv"]
    qq = q.reshape(B, N, num_heads, key_dim).transpose(0, 2, 1, 3)    # (B,H,N,kd)
    kk = k.reshape(B, N, num_heads, key_dim).transpose(0, 2, 1, 3)    # (B,H,N,kd)
    vv = v.reshape(B, N, num_heads, d).transpose(0, 2, 1, 3)          # (B,H,N,d)
    attn = jnp.einsum("bhnk,bhmk->bhnm", cast(qq), cast(kk),
                      preferred_element_type=f32) / (key_dim ** (-0.5))
    attn = jax.nn.softmax(attn, axis=-1)
    xx = jnp.einsum("bhnm,bhmd->bhnd", cast(attn), cast(vv),
                    preferred_element_type=f32)
    xx = xx.transpose(0, 2, 1, 3).reshape(B, N, num_heads * d)        # head-major
    attn_out = jnp.transpose(mm(xx, params["wp"].T) + params["bp"], (0, 2, 1))
    x2 = xb + attn_out

    y2 = bn(x2, params["g2"], params["be2"], params["m2"], params["v2"])
    hdn = mm(jnp.transpose(y2, (0, 2, 1)), params["w1"].T) + params["b1"]
    hdn = jnp.clip(hdn, 0.0, 6.0)
    mlp_out = jnp.transpose(mm(hdn, params["wc"].T) + params["bc"], (0, 2, 1))
    return (x2 + mlp_out).reshape(B, C, H, W)


def init_params(key, dim, num_heads, key_dim, attn_ratio, mlp_ratio):
    nh_kd = key_dim * num_heads
    d = int(attn_ratio * key_dim)
    dh = d * num_heads
    hidden = int(dim * mlp_ratio)
    ks = jax.random.split(key, 8)

    def lin(k, out_f, in_f):
        bound = 1.0 / math.sqrt(in_f)
        kw, kb = jax.random.split(k)
        w = jax.random.uniform(kw, (out_f, in_f), jnp.float32, -bound, bound)
        b = jax.random.uniform(kb, (out_f,), jnp.float32, -bound, bound)
        return w, b

    wq, bq = lin(ks[0], nh_kd, dim)
    wk, bk = lin(ks[1], nh_kd, dim)
    wv, bv = lin(ks[2], dh, dim)
    wp, bp = lin(ks[3], dim, dh)
    w1, b1 = lin(ks[4], hidden, dim)
    wc, bc = lin(ks[5], dim, hidden)       # Conv1d(hidden, dim, 1) weight squeezed to (dim, hidden)

    def bn_params(k):
        k1, k2, k3, k4 = jax.random.split(k, 4)
        g = 1.0 + 0.1 * jax.random.normal(k1, (dim,), jnp.float32)
        be = 0.1 * jax.random.normal(k2, (dim,), jnp.float32)
        m = 0.1 * jax.random.normal(k3, (dim,), jnp.float32)
        v = jax.random.uniform(k4, (dim,), jnp.float32, 0.5, 1.5)
        return g, be, m, v

    g1, be1, m1, v1 = bn_params(ks[6])
    g2, be2, m2, v2 = bn_params(ks[7])
    return dict(g1=g1, be1=be1, m1=m1, v1=v1,
                wq=wq, bq=bq, wk=wk, bk=bk, wv=wv, bv=bv, wp=wp, bp=bp,
                g2=g2, be2=be2, m2=m2, v2=v2,
                w1=w1, b1=b1, wc=wc, bc=bc)


if __name__ == "__main__":
    # dim=32, num_heads=4, key_dim=16 (TextBlock hard-codes key_dim=16),
    # attn_ratio=4 -> d=64, dh=256; mlp_ratio=4 -> hidden=128.
    B, dim = 2, 32
    num_heads, key_dim, attn_ratio, mlp_ratio = 4, 16, 4, 4.0

    key = jax.random.PRNGKey(0)
    kx1, kx2, kp = jax.random.split(key, 3)
    params = init_params(kp, dim, num_heads, key_dim, attn_ratio, mlp_ratio)

    def check(x):
        out = jax.block_until_ready(
            textblock_forward(x, params, num_heads=num_heads,
                              key_dim=key_dim, attn_ratio=attn_ratio))
        assert out.shape == x.shape
        # Tight check vs. a reference using the kernel's own bf16-operand / f32-accumulate
        # matmul policy (remaining diffs: accumulation order + approx reciprocal).
        ref_pol = textblock_reference(x, params, num_heads=num_heads, key_dim=key_dim,
                                      attn_ratio=attn_ratio, bf16_matmuls=True)
        np.testing.assert_allclose(np.asarray(out), np.asarray(ref_pol),
                                   rtol=1e-2, atol=1e-2)
        # Looser check vs. exact f32 module semantics: bf16 MXU operands are amplified by
        # the module's sharp (x * sqrt(key_dim)) softmax temperature.
        ref_f32 = textblock_reference(x, params, num_heads=num_heads, key_dim=key_dim,
                                      attn_ratio=attn_ratio, bf16_matmuls=False)
        np.testing.assert_allclose(np.asarray(out), np.asarray(ref_f32),
                                   rtol=5e-2, atol=5e-2)

    # Case 1: H=W=16 -> N=256 tokens (already lane-dense, no padding path).
    check(jax.random.normal(kx1, (B, dim, 16, 16), jnp.float32))
    # Case 2: H=W=4 -> N=16 tokens (exercises the pad-to-128 + key-mask path).
    check(jax.random.normal(kx2, (B, dim, 4, 4), jnp.float32))

    print("KERNEL_OK")
</pallas_src>

<mosaic_0001>
module attributes {stable_mosaic.version = 11 : i64} {
  func.func @kernel(%arg0: i32, %arg1: memref<1x32x256xf32, #tpu.memory_space<vmem>>, %arg2: memref<32x1xf32, #tpu.memory_space<vmem>>, %arg3: memref<32x1xf32, #tpu.memory_space<vmem>>, %arg4: memref<384x32xbf16, #tpu.memory_space<vmem>>, %arg5: memref<384x1xf32, #tpu.memory_space<vmem>>, %arg6: memref<32x256xbf16, #tpu.memory_space<vmem>>, %arg7: memref<32x1xf32, #tpu.memory_space<vmem>>, %arg8: memref<32x1xf32, #tpu.memory_space<vmem>>, %arg9: memref<32x1xf32, #tpu.memory_space<vmem>>, %arg10: memref<128x32xbf16, #tpu.memory_space<vmem>>, %arg11: memref<128x1xf32, #tpu.memory_space<vmem>>, %arg12: memref<32x128xbf16, #tpu.memory_space<vmem>>, %arg13: memref<32x1xf32, #tpu.memory_space<vmem>>, %arg14: memref<1x32x256xf32, #tpu.memory_space<vmem>>, %arg15: memref<256x256xbf16, #tpu.memory_space<vmem>>) attributes {dimension_semantics = [#tpu.dimension_semantics<parallel>], iteration_bounds = array<i64: 2>, scalar_prefetch = 0 : i64, scratch_operands = 1 : i64, tpu.core_type = #tpu.core_type<tc>, window_params = [{transform_indices = @transform_0, window_bounds = array<i64: 1, 32, 256>}, {pipeline_mode = #tpu.pipeline_mode<synchronous>, transform_indices = @transform_1, window_bounds = array<i64: 32, 1>}, {pipeline_mode = #tpu.pipeline_mode<synchronous>, transform_indices = @transform_2, window_bounds = array<i64: 32, 1>}, {pipeline_mode = #tpu.pipeline_mode<synchronous>, transform_indices = @transform_3, window_bounds = array<i64: 384, 32>}, {pipeline_mode = #tpu.pipeline_mode<synchronous>, transform_indices = @transform_4, window_bounds = array<i64: 384, 1>}, {pipeline_mode = #tpu.pipeline_mode<synchronous>, transform_indices = @transform_5, window_bounds = array<i64: 32, 256>}, {pipeline_mode = #tpu.pipeline_mode<synchronous>, transform_indices = @transform_6, window_bounds = array<i64: 32, 1>}, {pipeline_mode = #tpu.pipeline_mode<synchronous>, transform_indices = @transform_7, window_bounds = array<i64: 32, 1>}, {pipeline_mode = #tpu.pipeline_mode<synchronous>, transform_indices = @transform_8, window_bounds = array<i64: 32, 1>}, {pipeline_mode = #tpu.pipeline_mode<synchronous>, transform_indices = @transform_9, window_bounds = array<i64: 128, 32>}, {pipeline_mode = #tpu.pipeline_mode<synchronous>, transform_indices = @transform_10, window_bounds = array<i64: 128, 1>}, {pipeline_mode = #tpu.pipeline_mode<synchronous>, transform_indices = @transform_11, window_bounds = array<i64: 32, 128>}, {pipeline_mode = #tpu.pipeline_mode<synchronous>, transform_indices = @transform_12, window_bounds = array<i64: 32, 1>}, {transform_indices = @transform_13, window_bounds = array<i64: 1, 32, 256>}]} {
    %c0 = arith.constant 0 : index
    %c0_0 = arith.constant 0 : index
    %c0_1 = arith.constant 0 : index
    %0 = vector.load %arg1[%c0, %c0_0, %c0_1] : memref<1x32x256xf32, #tpu.memory_space<vmem>>, vector<1x32x256xf32>
    %1 = vector.shape_cast %0 : vector<1x32x256xf32> to vector<32x256xf32>
    %c0_2 = arith.constant 0 : index
    %c0_3 = arith.constant 0 : index
    %2 = vector.load %arg2[%c0_2, %c0_3] : memref<32x1xf32, #tpu.memory_space<vmem>>, vector<32x1xf32>
    %3 = vector.broadcast %2 : vector<32x1xf32> to vector<32x256xf32>
    %4 = arith.mulf %1, %3 : vector<32x256xf32>
    %c0_4 = arith.constant 0 : index
    %c0_5 = arith.constant 0 : index
    %5 = vector.load %arg3[%c0_4, %c0_5] : memref<32x1xf32, #tpu.memory_space<vmem>>, vector<32x1xf32>
    %6 = vector.broadcast %5 : vector<32x1xf32> to vector<32x256xf32>
    %7 = arith.addf %4, %6 : vector<32x256xf32>
    %8 = arith.truncf %7 : vector<32x256xf32> to vector<32x256xbf16>
    %c0_6 = arith.constant 0 : index
    %c0_7 = arith.constant 0 : index
    %9 = vector.load %arg4[%c0_6, %c0_7] : memref<384x32xbf16, #tpu.memory_space<vmem>>, vector<384x32xbf16>
    %cst = arith.constant dense<0.000000e+00> : vector<384x256xf32>
    %10 = tpu.matmul %9, %8, %cst {dimension_numbers = #tpu.dot_dimension_numbers<[1], [0], [0], [1], [0, 0, 1, 1], [], []>} : vector<384x32xbf16>, vector<32x256xbf16>, vector<384x256xf32> -> vector<384x256xf32>
    %c0_8 = arith.constant 0 : index
    %c0_9 = arith.constant 0 : index
    %11 = vector.load %arg5[%c0_8, %c0_9] : memref<384x1xf32, #tpu.memory_space<vmem>>, vector<384x1xf32>
    %12 = vector.broadcast %11 : vector<384x1xf32> to vector<384x256xf32>
    %13 = arith.addf %10, %12 : vector<384x256xf32>
    %14 = arith.truncf %13 : vector<384x256xf32> to vector<384x256xbf16>
    %15 = vector.extract_strided_slice %14 {offsets = [0, 0], sizes = [64, 256], strides = [1, 1]} : vector<384x256xbf16> to vector<64x256xbf16>
    %16 = vector.extract_strided_slice %14 {offsets = [64, 0], sizes = [64, 256], strides = [1, 1]} : vector<384x256xbf16> to vector<64x256xbf16>
    %17 = vector.extract_strided_slice %14 {offsets = [128, 0], sizes = [256, 256], strides = [1, 1]} : vector<384x256xbf16> to vector<256x256xbf16>
    %18 = vector.extract_strided_slice %15 {offsets = [0, 0], sizes = [16, 256], strides = [1, 1]} : vector<64x256xbf16> to vector<16x256xbf16>
    %19 = vector.extract_strided_slice %16 {offsets = [0, 0], sizes = [16, 256], strides = [1, 1]} : vector<64x256xbf16> to vector<16x256xbf16>
    %20 = vector.extract_strided_slice %17 {offsets = [0, 0], sizes = [64, 256], strides = [1, 1]} : vector<256x256xbf16> to vector<64x256xbf16>
    %cst_10 = arith.constant dense<0.000000e+00> : vector<256x256xf32>
    %21 = tpu.matmul %18, %19, %cst_10 {dimension_numbers = #tpu.dot_dimension_numbers<[0], [0], [1], [1], [0, 1, 1, 1], [], []>} : vector<16x256xbf16>, vector<16x256xbf16>, vector<256x256xf32> -> vector<256x256xf32>
    %cst_11 = arith.constant dense<0xFF800000> : vector<256xf32>
    %22 = vector.multi_reduction <maximumf>, %21, %cst_11 [1] : vector<256x256xf32> to vector<256xf32>
    %23 = vector.shape_cast %22 : vector<256xf32> to vector<256x1xf32>
    %24 = vector.broadcast %23 : vector<256x1xf32> to vector<256x256xf32>
    %25 = arith.subf %21, %24 : vector<256x256xf32>
    %26 = math.exp %25 : vector<256x256xf32>
    %cst_12 = arith.constant dense<0.000000e+00> : vector<256xf32>
    %27 = vector.multi_reduction <add>, %26, %cst_12 [1] : vector<256x256xf32> to vector<256xf32>
    %28 = vector.shape_cast %27 : vector<256xf32> to vector<256x1xf32>
    %29 = tpu.reciprocal %28 {approx = true} : vector<256x1xf32> -> vector<256x1xf32>
    %30 = vector.broadcast %29 : vector<256x1xf32> to vector<256x256xf32>
    %31 = arith.mulf %26, %30 : vector<256x256xf32>
    %32 = arith.truncf %31 : vector<256x256xf32> to vector<256x256xbf16>
    %cst_13 = arith.constant dense<0.000000e+00> : vector<64x256xf32>
    %33 = tpu.matmul %20, %32, %cst_13 {dimension_numbers = #tpu.dot_dimension_numbers<[1], [1], [0], [0], [0, 0, 1, 0], [], []>} : vector<64x256xbf16>, vector<256x256xbf16>, vector<64x256xf32> -> vector<64x256xf32>
    %34 = arith.truncf %33 : vector<64x256xf32> to vector<64x256xbf16>
    %c0_14 = arith.constant 0 : index
    %c0_15 = arith.constant 0 : index
    %35 = vector.load %arg15[%c0_14, %c0_15] : memref<256x256xbf16, #tpu.memory_space<vmem>>, vector<64x256xbf16>
    tpu.vector_store %arg15[%c0_14, %c0_15], %34 {strides = array<i32>} : memref<256x256xbf16, #tpu.memory_space<vmem>>, vector<64x256xbf16>,
    %36 = vector.extract_strided_slice %15 {offsets = [16, 0], sizes = [16, 256], strides = [1, 1]} : vector<64x256xbf16> to vector<16x256xbf16>
    %37 = vector.extract_strided_slice %16 {offsets = [16, 0], sizes = [16, 256], strides = [1, 1]} : vector<64x256xbf16> to vector<16x256xbf16>
    %38 = vector.extract_strided_slice %17 {offsets = [64, 0], sizes = [64, 256], strides = [1, 1]} : vector<256x256xbf16> to vector<64x256xbf16>
    %cst_16 = arith.constant dense<0.000000e+00> : vector<256x256xf32>
    %39 = tpu.matmul %36, %37, %cst_16 {dimension_numbers = #tpu.dot_dimension_numbers<[0], [0], [1], [1], [0, 1, 1, 1], [], []>} : vector<16x256xbf16>, vector<16x256xbf16>, vector<256x256xf32> -> vector<256x256xf32>
    %cst_17 = arith.constant dense<0xFF800000> : vector<256xf32>
    %40 = vector.multi_reduction <maximumf>, %39, %cst_17 [1] : vector<256x256xf32> to vector<256xf32>
    %41 = vector.shape_cast %40 : vector<256xf32> to vector<256x1xf32>
    %42 = vector.broadcast %41 : vector<256x1xf32> to vector<256x256xf32>
    %43 = arith.subf %39, %42 : vector<256x256xf32>
    %44 = math.exp %43 : vector<256x256xf32>
    %cst_18 = arith.constant dense<0.000000e+00> : vector<256xf32>
    %45 = vector.multi_reduction <add>, %44, %cst_18 [1] : vector<256x256xf32> to vector<256xf32>
    %46 = vector.shape_cast %45 : vector<256xf32> to vector<256x1xf32>
    %47 = tpu.reciprocal %46 {approx = true} : vector<256x1xf32> -> vector<256x1xf32>
    %48 = vector.broadcast %47 : vector<256x1xf32> to vector<256x256xf32>
    %49 = arith.mulf %44, %48 : vector<256x256xf32>
    %50 = arith.truncf %49 : vector<256x256xf32> to vector<256x256xbf16>
    %cst_19 = arith.constant dense<0.000000e+00> : vector<64x256xf32>
    %51 = tpu.matmul %38, %50, %cst_19 {dimension_numbers = #tpu.dot_dimension_numbers<[1], [1], [0], [0], [0, 0, 1, 0], [], []>} : vector<64x256xbf16>, vector<256x256xbf16>, vector<64x256xf32> -> vector<64x256xf32>
    %52 = arith.truncf %51 : vector<64x256xf32> to vector<64x256xbf16>
    %c64 = arith.constant 64 : index
    %c0_20 = arith.constant 0 : index
    %53 = vector.load %arg15[%c64, %c0_20] : memref<256x256xbf16, #tpu.memory_space<vmem>>, vector<64x256xbf16>
    tpu.vector_store %arg15[%c64, %c0_20], %52 {strides = array<i32>} : memref<256x256xbf16, #tpu.memory_space<vmem>>, vector<64x256xbf16>,
    %54 = vector.extract_strided_slice %15 {offsets = [32, 0], sizes = [16, 256], strides = [1, 1]} : vector<64x256xbf16> to vector<16x256xbf16>
    %55 = vector.extract_strided_slice %16 {offsets = [32, 0], sizes = [16, 256], strides = [1, 1]} : vector<64x256xbf16> to vector<16x256xbf16>
    %56 = vector.extract_strided_slice %17 {offsets = [128, 0], sizes = [64, 256], strides = [1, 1]} : vector<256x256xbf16> to vector<64x256xbf16>
    %cst_21 = arith.constant dense<0.000000e+00> : vector<256x256xf32>
    %57 = tpu.matmul %54, %55, %cst_21 {dimension_numbers = #tpu.dot_dimension_numbers<[0], [0], [1], [1], [0, 1, 1, 1], [], []>} : vector<16x256xbf16>, vector<16x256xbf16>, vector<256x256xf32> -> vector<256x256xf32>
    %cst_22 = arith.constant dense<0xFF800000> : vector<256xf32>
    %58 = vector.multi_reduction <maximumf>, %57, %cst_22 [1] : vector<256x256xf32> to vector<256xf32>
    %59 = vector.shape_cast %58 : vector<256xf32> to vector<256x1xf32>
    %60 = vector.broadcast %59 : vector<256x1xf32> to vector<256x256xf32>
    %61 = arith.subf %57, %60 : vector<256x256xf32>
    %62 = math.exp %61 : vector<256x256xf32>
    %cst_23 = arith.constant dense<0.000000e+00> : vector<256xf32>
    %63 = vector.multi_reduction <add>, %62, %cst_23 [1] : vector<256x256xf32> to vector<256xf32>
    %64 = vector.shape_cast %63 : vector<256xf32> to vector<256x1xf32>
    %65 = tpu.reciprocal %64 {approx = true} : vector<256x1xf32> -> vector<256x1xf32>
    %66 = vector.broadcast %65 : vector<256x1xf32> to vector<256x256xf32>
    %67 = arith.mulf %62, %66 : vector<256x256xf32>
    %68 = arith.truncf %67 : vector<256x256xf32> to vector<256x256xbf16>
    %cst_24 = arith.constant dense<0.000000e+00> : vector<64x256xf32>
    %69 = tpu.matmul %56, %68, %cst_24 {dimension_numbers = #tpu.dot_dimension_numbers<[1], [1], [0], [0], [0, 0, 1, 0], [], []>} : vector<64x256xbf16>, vector<256x256xbf16>, vector<64x256xf32> -> vector<64x256xf32>
    %70 = arith.truncf %69 : vector<64x256xf32> to vector<64x256xbf16>
    %c128 = arith.constant 128 : index
    %c0_25 = arith.constant 0 : index
    %71 = vector.load %arg15[%c128, %c0_25] : memref<256x256xbf16, #tpu.memory_space<vmem>>, vector<64x256xbf16>
    tpu.vector_store %arg15[%c128, %c0_25], %70 {strides = array<i32>} : memref<256x256xbf16, #tpu.memory_space<vmem>>, vector<64x256xbf16>,
    %72 = vector.extract_strided_slice %15 {offsets = [48, 0], sizes = [16, 256], strides = [1, 1]} : vector<64x256xbf16> to vector<16x256xbf16>
    %73 = vector.extract_strided_slice %16 {offsets = [48, 0], sizes = [16, 256], strides = [1, 1]} : vector<64x256xbf16> to vector<16x256xbf16>
    %74 = vector.extract_strided_slice %17 {offsets = [192, 0], sizes = [64, 256], strides = [1, 1]} : vector<256x256xbf16> to vector<64x256xbf16>
    %cst_26 = arith.constant dense<0.000000e+00> : vector<256x256xf32>
    %75 = tpu.matmul %72, %73, %cst_26 {dimension_numbers = #tpu.dot_dimension_numbers<[0], [0], [1], [1], [0, 1, 1, 1], [], []>} : vector<16x256xbf16>, vector<16x256xbf16>, vector<256x256xf32> -> vector<256x256xf32>
    %cst_27 = arith.constant dense<0xFF800000> : vector<256xf32>
    %76 = vector.multi_reduction <maximumf>, %75, %cst_27 [1] : vector<256x256xf32> to vector<256xf32>
    %77 = vector.shape_cast %76 : vector<256xf32> to vector<256x1xf32>
    %78 = vector.broadcast %77 : vector<256x1xf32> to vector<256x256xf32>
    %79 = arith.subf %75, %78 : vector<256x256xf32>
    %80 = math.exp %79 : vector<256x256xf32>
    %cst_28 = arith.constant dense<0.000000e+00> : vector<256xf32>
    %81 = vector.multi_reduction <add>, %80, %cst_28 [1] : vector<256x256xf32> to vector<256xf32>
    %82 = vector.shape_cast %81 : vector<256xf32> to vector<256x1xf32>
    %83 = tpu.reciprocal %82 {approx = true} : vector<256x1xf32> -> vector<256x1xf32>
    %84 = vector.broadcast %83 : vector<256x1xf32> to vector<256x256xf32>
    %85 = arith.mulf %80, %84 : vector<256x256xf32>
    %86 = arith.truncf %85 : vector<256x256xf32> to vector<256x256xbf16>
    %cst_29 = arith.constant dense<0.000000e+00> : vector<64x256xf32>
    %87 = tpu.matmul %74, %86, %cst_29 {dimension_numbers = #tpu.dot_dimension_numbers<[1], [1], [0], [0], [0, 0, 1, 0], [], []>} : vector<64x256xbf16>, vector<256x256xbf16>, vector<64x256xf32> -> vector<64x256xf32>
    %88 = arith.truncf %87 : vector<64x256xf32> to vector<64x256xbf16>
    %c192 = arith.constant 192 : index
    %c0_30 = arith.constant 0 : index
    %89 = vector.load %arg15[%c192, %c0_30] : memref<256x256xbf16, #tpu.memory_space<vmem>>, vector<64x256xbf16>
    tpu.vector_store %arg15[%c192, %c0_30], %88 {strides = array<i32>} : memref<256x256xbf16, #tpu.memory_space<vmem>>, vector<64x256xbf16>,
    %c0_31 = arith.constant 0 : index
    %c0_32 = arith.constant 0 : index
    %90 = vector.load %arg6[%c0_31, %c0_32] : memref<32x256xbf16, #tpu.memory_space<vmem>>, vector<32x256xbf16>
    %c0_33 = arith.constant 0 : index
    %c0_34 = arith.constant 0 : index
    %91 = vector.load %arg15[%c0_33, %c0_34] : memref<256x256xbf16, #tpu.memory_space<vmem>>, vector<256x256xbf16>
    %cst_35 = arith.constant dense<0.000000e+00> : vector<32x256xf32>
    %92 = tpu.matmul %90, %91, %cst_35 {dimension_numbers = #tpu.dot_dimension_numbers<[1], [0], [0], [1], [0, 0, 1, 1], [], []>} : vector<32x256xbf16>, vector<256x256xbf16>, vector<32x256xf32> -> vector<32x256xf32>
    %c0_36 = arith.constant 0 : index
    %c0_37 = arith.constant 0 : index
    %93 = vector.load %arg7[%c0_36, %c0_37] : memref<32x1xf32, #tpu.memory_space<vmem>>, vector<32x1xf32>
    %94 = vector.broadcast %93 : vector<32x1xf32> to vector<32x256xf32>
    %95 = arith.addf %92, %94 : vector<32x256xf32>
    %96 = arith.addf %1, %95 : vector<32x256xf32>
    %c0_38 = arith.constant 0 : index
    %c0_39 = arith.constant 0 : index
    %97 = vector.load %arg8[%c0_38, %c0_39] : memref<32x1xf32, #tpu.memory_space<vmem>>, vector<32x1xf32>
    %98 = vector.broadcast %97 : vector<32x1xf32> to vector<32x256xf32>
    %99 = arith.mulf %96, %98 : vector<32x256xf32>
    %c0_40 = arith.constant 0 : index
    %c0_41 = arith.constant 0 : index
    %100 = vector.load %arg9[%c0_40, %c0_41] : memref<32x1xf32, #tpu.memory_space<vmem>>, vector<32x1xf32>
    %101 = vector.broadcast %100 : vector<32x1xf32> to vector<32x256xf32>
    %102 = arith.addf %99, %101 : vector<32x256xf32>
    %103 = arith.truncf %102 : vector<32x256xf32> to vector<32x256xbf16>
    %c0_42 = arith.constant 0 : index
    %c0_43 = arith.constant 0 : index
    %104 = vector.load %arg10[%c0_42, %c0_43] : memref<128x32xbf16, #tpu.memory_space<vmem>>, vector<128x32xbf16>
    %cst_44 = arith.constant dense<0.000000e+00> : vector<128x256xf32>
    %105 = tpu.matmul %104, %103, %cst_44 {dimension_numbers = #tpu.dot_dimension_numbers<[1], [0], [0], [1], [0, 0, 1, 1], [], []>} : vector<128x32xbf16>, vector<32x256xbf16>, vector<128x256xf32> -> vector<128x256xf32>
    %c0_45 = arith.constant 0 : index
    %c0_46 = arith.constant 0 : index
    %106 = vector.load %arg11[%c0_45, %c0_46] : memref<128x1xf32, #tpu.memory_space<vmem>>, vector<128x1xf32>
    %107 = vector.broadcast %106 : vector<128x1xf32> to vector<128x256xf32>
    %108 = arith.addf %105, %107 : vector<128x256xf32>
    %cst_47 = arith.constant 0.000000e+00 : f32
    %cst_48 = arith.constant 6.000000e+00 : f32
    %109 = vector.broadcast %cst_47 : f32 to vector<128x256xf32>
    %110 = arith.maximumf %109, %108 : vector<128x256xf32>
    %111 = vector.broadcast %cst_48 : f32 to vector<128x256xf32>
    %112 = arith.minimumf %111, %110 : vector<128x256xf32>
    %113 = arith.truncf %112 : vector<128x256xf32> to vector<128x256xbf16>
    %c0_49 = arith.constant 0 : index
    %c0_50 = arith.constant 0 : index
    %114 = vector.load %arg12[%c0_49, %c0_50] : memref<32x128xbf16, #tpu.memory_space<vmem>>, vector<32x128xbf16>
    %cst_51 = arith.constant dense<0.000000e+00> : vector<32x256xf32>
    %115 = tpu.matmul %114, %113, %cst_51 {dimension_numbers = #tpu.dot_dimension_numbers<[1], [0], [0], [1], [0, 0, 1, 1], [], []>} : vector<32x128xbf16>, vector<128x256xbf16>, vector<32x256xf32> -> vector<32x256xf32>
    %c0_52 = arith.constant 0 : index
    %c0_53 = arith.constant 0 : index
    %116 = vector.load %arg13[%c0_52, %c0_53] : memref<32x1xf32, #tpu.memory_space<vmem>>, vector<32x1xf32>
    %117 = vector.broadcast %116 : vector<32x1xf32> to vector<32x256xf32>
    %118 = arith.addf %115, %117 : vector<32x256xf32>
    %119 = arith.addf %96, %118 : vector<32x256xf32>
    %c0_54 = arith.constant 0 : index
    %c0_55 = arith.constant 0 : index
    %c0_56 = arith.constant 0 : index
    %120 = vector.load %arg14[%c0_54, %c0_55, %c0_56] : memref<1x32x256xf32, #tpu.memory_space<vmem>>, vector<1x32x256xf32>
    %121 = vector.shape_cast %120 : vector<1x32x256xf32> to vector<32x256xf32>
    %122 = vector.shape_cast %119 : vector<32x256xf32> to vector<1x32x256xf32>
    tpu.vector_store %arg14[%c0_54, %c0_55, %c0_56], %122 {strides = array<i32>} : memref<1x32x256xf32, #tpu.memory_space<vmem>>, vector<1x32x256xf32>,
    return
  }
  func.func @transform_0(%arg0: i32) -> (i32, i32, i32) {
    %c0_i32 = arith.constant 0 : i32
    %c0_i32_0 = arith.constant 0 : i32
    %c0_i32_1 = arith.constant 0 : i32
    return %arg0, %c0_i32, %c0_i32_0 : i32, i32, i32
  }
  func.func @transform_1(%arg0: i32) -> (i32, i32) {
    %c0_i32 = arith.constant 0 : i32
    %c0_i32_0 = arith.constant 0 : i32
    %c0_i32_1 = arith.constant 0 : i32
    return %c0_i32, %c0_i32_0 : i32, i32
  }
  func.func @transform_2(%arg0: i32) -> (i32, i32) {
    %c0_i32 = arith.constant 0 : i32
    %c0_i32_0 = arith.constant 0 : i32
    %c0_i32_1 = arith.constant 0 : i32
    return %c0_i32, %c0_i32_0 : i32, i32
  }
  func.func @transform_3(%arg0: i32) -> (i32, i32) {
    %c0_i32 = arith.constant 0 : i32
    %c0_i32_0 = arith.constant 0 : i32
    %c0_i32_1 = arith.constant 0 : i32
    return %c0_i32, %c0_i32_0 : i32, i32
  }
  func.func @transform_4(%arg0: i32) -> (i32, i32) {
    %c0_i32 = arith.constant 0 : i32
    %c0_i32_0 = arith.constant 0 : i32
    %c0_i32_1 = arith.constant 0 : i32
    return %c0_i32, %c0_i32_0 : i32, i32
  }
  func.func @transform_5(%arg0: i32) -> (i32, i32) {
    %c0_i32 = arith.constant 0 : i32
    %c0_i32_0 = arith.constant 0 : i32
    %c0_i32_1 = arith.constant 0 : i32
    return %c0_i32, %c0_i32_0 : i32, i32
  }
  func.func @transform_6(%arg0: i32) -> (i32, i32) {
    %c0_i32 = arith.constant 0 : i32
    %c0_i32_0 = arith.constant 0 : i32
    %c0_i32_1 = arith.constant 0 : i32
    return %c0_i32, %c0_i32_0 : i32, i32
  }
  func.func @transform_7(%arg0: i32) -> (i32, i32) {
    %c0_i32 = arith.constant 0 : i32
    %c0_i32_0 = arith.constant 0 : i32
    %c0_i32_1 = arith.constant 0 : i32
    return %c0_i32, %c0_i32_0 : i32, i32
  }
  func.func @transform_8(%arg0: i32) -> (i32, i32) {
    %c0_i32 = arith.constant 0 : i32
    %c0_i32_0 = arith.constant 0 : i32
    %c0_i32_1 = arith.constant 0 : i32
    return %c0_i32, %c0_i32_0 : i32, i32
  }
  func.func @transform_9(%arg0: i32) -> (i32, i32) {
    %c0_i32 = arith.constant 0 : i32
    %c0_i32_0 = arith.constant 0 : i32
    %c0_i32_1 = arith.constant 0 : i32
    return %c0_i32, %c0_i32_0 : i32, i32
  }
  func.func @transform_10(%arg0: i32) -> (i32, i32) {
    %c0_i32 = arith.constant 0 : i32
    %c0_i32_0 = arith.constant 0 : i32
    %c0_i32_1 = arith.constant 0 : i32
    return %c0_i32, %c0_i32_0 : i32, i32
  }
  func.func @transform_11(%arg0: i32) -> (i32, i32) {
    %c0_i32 = arith.constant 0 : i32
    %c0_i32_0 = arith.constant 0 : i32
    %c0_i32_1 = arith.constant 0 : i32
    return %c0_i32, %c0_i32_0 : i32, i32
  }
  func.func @transform_12(%arg0: i32) -> (i32, i32) {
    %c0_i32 = arith.constant 0 : i32
    %c0_i32_0 = arith.constant 0 : i32
    %c0_i32_1 = arith.constant 0 : i32
    return %c0_i32, %c0_i32_0 : i32, i32
  }
  func.func @transform_13(%arg0: i32) -> (i32, i32, i32) {
    %c0_i32 = arith.constant 0 : i32
    %c0_i32_0 = arith.constant 0 : i32
    %c0_i32_1 = arith.constant 0 : i32
    return %arg0, %c0_i32, %c0_i32_0 : i32, i32, i32
  }
}

</mosaic_0001>

<bundles_post_ra>
// kernel: tpu_custom_call.1
= control target key start
LH: loop header
LB: loop body
LE: loop exit
PB: predicated region body
PF: predicated region fallthrough
CT: control target
= control target key end

     0   :  { %s10145_s0 = inlined_call_operand.vmem [shape: f32[2,32,256], index: 0, kind: input, shape index: {}]   ;;  %s10146_s1 = inlined_call_operand.vmem [shape: f32[32,1], index: 1, kind: input, shape index: {}]   ;;  %s10147_s2 = inlined_call_operand.vmem [shape: f32[32,1], index: 2, kind: input, shape index: {}]   ;;  %s10148_s3 = inlined_call_operand.vmem [shape: bf16[384,32], index: 3, kind: input, shape index: {}]   ;;  %s10149_s4 = inlined_call_operand.vmem [shape: f32[384,1], index: 4, kind: input, shape index: {}]   ;;  %s10150_s5 = inlined_call_operand.vmem [shape: bf16[32,256], index: 5, kind: input, shape index: {}]   ;;  %s10151_s6 = inlined_call_operand.vmem [shape: f32[32,1], index: 6, kind: input, shape index: {}]   ;;  %s10152_s7 = inlined_call_operand.vmem [shape: f32[32,1], index: 7, kind: input, shape index: {}]   ;;  %s10153_s8 = inlined_call_operand.vmem [shape: f32[32,1], index: 8, kind: input, shape index: {}]   ;;  %s10154_s9 = inlined_call_operand.vmem [shape: bf16[128,32], index: 9, kind: input, shape index: {}]   ;;  %s10155_s10 = inlined_call_operand.vmem [shape: f32[128,1], index: 10, kind: input, shape index: {}]   ;;  %s10156_s11 = inlined_call_operand.vmem [shape: bf16[32,128], index: 11, kind: input, shape index: {}]   ;;  %s10157_s12 = inlined_call_operand.vmem [shape: f32[32,1], index: 12, kind: input, shape index: {}]   ;;  %s10158_s13 = inlined_call_operand.hbm [shape: f32[2,32,256], index: 13, kind: output, shape index: {}]  }
   0x1   :  { %10319 = sst [smem:[#allocation94_spill]] %s10145_s0 }
   0x2   :  { %18 = vsyncpa [#allocation4], 0 }
   0x3   :  { %20 = vsyncpa [#allocation4 + $0x1], 0  ;;  %s6776_s25 = smov 0   ;;  %s6778_s26 = smov 0  }
   0x4   :  { %s6780_s27 = smov 0   ;;  %s6782_s28 = smov 0  }
   0x5 LB: > { %10320 = sst [smem:[#allocation6_spill]] %s6696_s27  ;;  %s6797_s29 = sadd.s32 4294967295, %s6700_s28   ;;  %s6700_s28 = sphi %s6782_s28, %s10797_s28   ;;  %s6696_s27 = sphi %s6780_s27, %s10794_s27   ;;  %s6692_s26 = sphi %s6778_s26, %s10796_s26   ;;  %s6688_s25 = sphi %s6776_s25, %s10795_s25  }
   0x6   : > { %s5626_s30 = sadd.s32 4294967294, %s6700_s28   ;;  %s6801_s14 = sadd.s32 1, %s6700_s28  }
   0x7   : > { %s311_s15 = sadd.s32 1, %s6696_s27  ;;  %s308_s16 = ssub.s32 %s6700_s28, %s6801_s14 }
   0x8   : > { %p321_p0 = scmp.ne.s32.totalorder %s6696_s27, %s6692_s26  ;;  %p309_p1 = scmp.eq.s32.totalorder %s308_s16, 0 }
   0x9   : > { %p322_p2 = scmp.eq.s32.totalorder %s6797_s29, 1  ;;  %p327_p3 = scmp.ne.s32.totalorder %s6692_s26, %s6688_s25 }
   0xa   : > { %p328_p4 = scmp.eq.s32.totalorder %s5626_s30, 1  ;;  %p5629_p7 = scmp.ge.s32.totalorder %s6700_s28, 1 }
   0xb   : > { %s6812_s17 = scalar_select %p309_p1, %s6696_s27, %s311_s15  }
   0xc   : > { %p6814_p5 = por %p322_p2, %p321_p0  ;;  %p6818_p6 = por %p328_p4, %p327_p3 }
   0xd   : > { %10321 = sst [smem:[#allocation7_spill]] %s6812_s17  ;;  %p390_p8 = scmp.lt.s32.totalorder %s6700_s28, 3 }
   0xf   : > { %p391_p9 = pnand %p5629_p7, %p390_p8 }
  0x11   : > { %394 = sbr.rel (%p391_p9) target bundleno = 4742 (0x1286), region = 72 }
  0x18   : > { %v480_v0 = vld [vmem:[%s10147_s2] sm:$0xff]  ;;  %v10160_v2 = vmov 0   ;;  %v481_v3 = vld [vmem:[%s10147_s2 + $0x8] sm:$0xff]  ;;  %v451_v5 = vld [vmem:[%s10146_s1 + $0x18] sm:$0xff]  ;;  %p434_p10 = scmp.lt.s32.totalorder %s6797_s29, 1  ;;  %s10324_s0 = sld [smem:[#allocation94_spill]] }
  0x19   : > { %v448_v1 = vld [vmem:[%s10146_s1] sm:$0xff]  ;;  %5821 = vset.pattern.permute.xlu1 %v10160_v2  ;;  %5820 = vset.pattern.permute.xlu0 %v10160_v2  ;;  %v449_v4 = vld [vmem:[%s10146_s1 + $0x8] sm:$0xff]  ;;  %v450_v6 = vld [vmem:[%s10146_s1 + $0x10] sm:$0xff]  ;;  %vm972_vm0 = vcmask 261120   ;;  %vm1398_vm1 = vcmask 130048   ;;  %s431_s24 = sand.u32 1, %s6692_s26  }
  0x1a   : > { %486 = vperm.xlu1 %5821, %v480_v0   ;;  %454 = vperm.xlu0 %5820, %v448_v1   ;;  %v483_v7 = vld [vmem:[%s10147_s2 + $0x18] sm:$0xff]  ;;  %v482_v8 = vld [vmem:[%s10147_s2 + $0x10] sm:$0xff]  ;;  %v565_v9 = vld [vmem:[%s10149_s4 + $0x8] sm:$0xff]  ;;  %s435_s27 = scalar_select %p434_p10, %s6797_s29, 1 }
  0x1b   : > { %1077 = vmatprep.mubr.bf16.mxu0 %v10160_v2  ;;  %1297 = vmatprep.mubr.bf16.mxu1 %v10160_v2  ;;  %v564_v10 = vld [vmem:[%s10149_s4] sm:$0xff]  ;;  %v573_v11 = vld [vmem:[%s10149_s4 + $0x48] sm:$0xff]  ;;  %v5824_v51 = vld [vmem:[%s10148_s3 + $0x10] sm:$0xff]   ;;  %s5630_s30 = sshll.u32 %s431_s24, 6  ;;  %s6703_s22 = smov [#allocation3]  }
  0x1c   : > { %v572_v12 = vld [vmem:[%s10149_s4 + $0x40] sm:$0xff]  ;;  %s5772_s17 = sshll.u32 %s435_s27, 6  ;;  %v5823_v50 = vld [vmem:[%s10148_s3 + $0x8] sm:$0xff]   ;;  %v5825_v52 = vld [vmem:[%s10148_s3 + $0x18] sm:$0xff]   ;;  %s5773_s27 = sshll.u32 %s6797_s29, 10 }
  0x1d   : > { %v5822_v49 = vld [vmem:[%s10148_s3] sm:$0xff]   ;;  %v5827_v54 = vld [vmem:[%s10148_s3 + $0xb0] sm:$0xff]   ;;  %v5828_v55 = vld [vmem:[%s10148_s3 + $0xb8] sm:$0xff]   ;;  %s10104_s29 = scalar_lea.sflag [#allocation4], %s431_s24  ;;  %s6642_s23 = sshll.u32 %s6703_s22, 4  ;;  %s6643_s23 = int_to_ptr.vmem [resolvable:$false] %s6642_s23 }
  0x1e   : > { %491 = vperm.xlu1 %5821, %v481_v3   ;;  %459 = vperm.xlu0 %5820, %v449_v4   ;;  %s6869_s20 = scalar_lea.vmem %s10324_s0, %s5772_s17  ;;  %v5826_v53 = vld [vmem:[%s10148_s3 + $0x20] sm:$0xff]   ;;  %s10097_s0 = scalar_lea.hbm %s10158_s13, %s5773_s27 }
  0x1f   : > { %v440_v15 = vld [vmem:[%s6869_s20] sm:$0xff]  ;;  %v441_v16 = vld [vmem:[%s6869_s20 + $0x8] sm:$0xff]  ;;  %v442_v17 = vld [vmem:[%s6869_s20 + $0x10] sm:$0xff] }
  0x20   : > { %v443_v18 = vld [vmem:[%s6869_s20 + $0x18] sm:$0xff]  ;;  %v446_v25 = vld [vmem:[%s6869_s20 + $0x30] sm:$0xff]  ;;  %v444_v31 = vld [vmem:[%s6869_s20 + $0x20] sm:$0xff] }
  0x21   : > { %v447_v29 = vld [vmem:[%s6869_s20 + $0x38] sm:$0xff]  ;;  %v445_v32 = vld [vmem:[%s6869_s20 + $0x28] sm:$0xff] }
  0x22   : > { %469 = vperm.xlu1 %5821, %v451_v5   ;;  %464 = vperm.xlu0 %5820, %v450_v6  }
  0x26   : > { %501 = vperm.xlu1 %5821, %v483_v7   ;;  %496 = vperm.xlu0 %5820, %v482_v8  }
  0x2a   : > { %619 = vperm.xlu1 %5821, %v565_v9   ;;  %614 = vperm.xlu0 %5820, %v564_v10  }
  0x2e   : > { %659 = vperm.xlu1 %5821, %v573_v11   ;;  %654 = vperm.xlu0 %5820, %v572_v12  }
  0x99   : > { %v487_v13 = vpop.permute.xlu1 %486  ;;  %v455_v14 = vpop.permute.xlu0 %454 }
  0x9a   : > { %v472_v19 = vmul.f32 %v455_v14, %v440_v15  ;;  %v473_v20 = vmul.f32 %v455_v14, %v441_v16 }
  0x9c   : > { %v505_v33 = vadd.f32 %v487_v13, %v473_v20  ;;  %v504_v34 = vadd.f32 %v487_v13, %v472_v19 }
  0x9d   : > { %v492_v21 = vpop.permute.xlu1 %491  ;;  %v460_v22 = vpop.permute.xlu0 %459 }
  0x9e   : > { %v474_v23 = vmul.f32 %v460_v22, %v442_v17  ;;  %v475_v24 = vmul.f32 %v460_v22, %v443_v18 }
  0xa0   : > { %v507_v26 = vadd.f32 %v492_v21, %v475_v24  ;;  %v506_v27 = vadd.f32 %v492_v21, %v474_v23 }
  0xa1   : > { %v470_v28 = vpop.permute.xlu1 %469  ;;  %v465_v30 = vpop.permute.xlu0 %464 }
  0xa2   : > { %v513_v35 = vpack.c.bf16 %v507_v26, %v505_v33  ;;  %v512_v36 = vpack.c.bf16 %v506_v27, %v504_v34  ;;  %v478_v37 = vmul.f32 %v470_v28, %v446_v25  ;;  %v479_v38 = vmul.f32 %v470_v28, %v447_v29 }
  0xa3   : > { %v476_v39 = vmul.f32 %v465_v30, %v444_v31  ;;  %v477_v40 = vmul.f32 %v465_v30, %v445_v32 }
  0xa4   : > { %1045 = vmatprep.subr.bf16.mxu0 %v513_v35  ;;  %5774 = vmatprep.subr.bf16.mxu1 %v513_v35 }
  0xa5   : > { %v502_v41 = vpop.permute.xlu1 %501  ;;  %v497_v42 = vpop.permute.xlu0 %496  ;;  %1046 = vmatpush1.bf16.msra.mxu0 %v512_v36  ;;  %5776 = vmatpush1.bf16.msra.mxu1 %v512_v36 }
  0xa6   : > { %v510_v43 = vadd.f32 %v502_v41, %v478_v37  ;;  %v511_v44 = vadd.f32 %v502_v41, %v479_v38  ;;  %v508_v45 = vadd.f32 %v497_v42, %v476_v39  ;;  %v509_v46 = vadd.f32 %v497_v42, %v477_v40 }
  0xa8   : > { %v514_v47 = vpack.c.bf16 %v510_v43, %v508_v45  ;;  %v515_v48 = vpack.c.bf16 %v511_v44, %v509_v46 }
  0xa9   : > { %v620_v57 = vpop.permute.xlu1 %619  ;;  %v615_v59 = vpop.permute.xlu0 %614 }
  0xaa   : > { %1047 = vmatprep.subr.bf16.mxu0 %v515_v48  ;;  %5775 = vmatprep.subr.bf16.mxu1 %v515_v48 }
  0xab   : > { %1048 = vmatpush1.bf16.msra.mxu0 %v514_v47  ;;  %5777 = vmatpush1.bf16.msra.mxu1 %v514_v47 }
  0xad   : > { %v660_v18 = vpop.permute.xlu1 %659  ;;  %v655_v20 = vpop.permute.xlu0 %654 }
  0xae   : > { %5657 = vmatmul.mubr.msk.bf16.vlgmr.msra.gmra.mrb[0].mxu0 %vm972_vm0, %v5822_v49  ;;  %5679 = vmatmul.mubr.msk.bf16.vlgmr.msra.gmra.mrb[0].mxu1 %vm972_vm0, %v5827_v54 }
  0xaf   : > { %1087 = vmatprep.mubr.bf16.mxu0 %v10160_v2  ;;  %1307 = vmatprep.mubr.bf16.mxu1 %v10160_v2 }
  0xb6   : > { %5658 = vmatmul.mubr.msk.bf16.gmra.mrb[4].mxu0 %vm972_vm0, %v5823_v50  ;;  %5680 = vmatmul.mubr.msk.bf16.gmra.mrb[4].mxu1 %vm972_vm0, %v5828_v55 }
  0xb7   : > { %1097 = vmatprep.mubr.bf16.mxu0 %v10160_v2  ;;  %1479 = vmatprep.mubr.bf16.mxu1 %v10160_v2 }
  0xbe   : > { %5659 = vmatmul.mubr.msk.bf16.gmra.mrb[8].mxu0 %vm972_vm0, %v5824_v51 }
  0xbf   : > { %1107 = vmatprep.mubr.bf16.mxu0 %v10160_v2 }
  0xc6   : > { %5660 = vmatmul.mubr.msk.bf16.gmra.mrb[12].mxu0 %vm972_vm0, %v5825_v52 }
  0xc7   : > { %1117 = vmatprep.mubr.bf16.mxu0 %v10160_v2 }
  0xce   : > { %5661 = vmatmul.mubr.msk.bf16.gmra.mrb[16].mxu0 %vm972_vm0, %v5826_v53 }
  0xcf   : > { %1127 = vmatprep.mubr.bf16.mxu0 %v10160_v2 }
 0x181   : > { %v1079_v56 = vpop.f32.mrb[0].mxu0  ;;  %v6942_v32 = vpop.f32.mrb[0].mxu1 }
 0x182   : > { %v1081_v58 = vpop.f32.mrb[1].mxu0  ;;  %v1080_v61 = vadd.f32 %v1079_v56, %v615_v59  ;;  %10337 = vst [vmem:[#allocation20_spill] sm:$0xff] %v6942_v32  ;;  %v6945_v33 = vpop.f32.mrb[1].mxu1 }
 0x183   : > { %v1083_v60 = vpop.f32.mrb[2].mxu0  ;;  %v1082_v0 = vadd.f32 %v1081_v58, %v615_v59  ;;  %10338 = vst [vmem:[#allocation21_spill] sm:$0xff] %v6945_v33  ;;  %v6948_v34 = vpop.f32.mrb[2].mxu1 }
 0x184   : > { %v1084_v62 = vadd.f32 %v1083_v60, %v620_v57  ;;  %v1085_v63 = vpop.f32.mrb[3].mxu0  ;;  %10339 = vst [vmem:[#allocation22_spill] sm:$0xff] %v6948_v34  ;;  %v6950_v35 = vpop.f32.mrb[3].mxu1 }
 0x185   : > { %v1086_v1 = vadd.f32 %v1085_v63, %v620_v57  ;;  %10340 = vst [vmem:[#allocation23_spill] sm:$0xff] %v6950_v35 }
 0x186   : > { %v1318_v3 = vpack.c.bf16 %v1084_v62, %v1080_v61 }
 0x187   : > { %v1319_v4 = vpack.c.bf16 %v1086_v1, %v1082_v0 }
 0x188   : > { %1366 = vxpose.xlu0.c.b16.start.end [1/1] (short) %v1318_v3, 128 }
 0x189   : > { %1382 = vxpose.xlu1.c.b16.start.end [1/1] (short) %v1319_v4, 128  ;;  %v6914_v5 = vpop.f32.mrb[4].mxu0  ;;  %v6952_v37 = vpop.f32.mrb[4].mxu1 }
 0x18a   : > { %10325 = vst [vmem:[#allocation8_spill] sm:$0xff] %v6914_v5  ;;  %v6916_v6 = vpop.f32.mrb[5].mxu0  ;;  %10341 = vst [vmem:[#allocation24_spill] sm:$0xff] %v6952_v37  ;;  %v6955_v38 = vpop.f32.mrb[5].mxu1  ;;  %v10357_v5 = vmov 0  }
 0x18b   : > { %10326 = vst [vmem:[#allocation9_spill] sm:$0xff] %v6916_v6  ;;  %v6918_v7 = vpop.f32.mrb[6].mxu0  ;;  %10342 = vst [vmem:[#allocation25_spill] sm:$0xff] %v6955_v38  ;;  %v6958_v39 = vpop.f32.mrb[6].mxu1 }
 0x18c   : > { %10327 = vst [vmem:[#allocation10_spill] sm:$0xff] %v6918_v7  ;;  %v6920_v8 = vpop.f32.mrb[7].mxu0  ;;  %10343 = vst [vmem:[#allocation26_spill] sm:$0xff] %v6958_v39  ;;  %v6960_v40 = vpop.f32.mrb[7].mxu1  ;;  %v5832_v7 = vld [vmem:[%s10148_s3 + $0x40] sm:$0xff]  }
 0x18d   : > { %10328 = vst [vmem:[#allocation11_spill] sm:$0xff] %v6920_v8  ;;  %10344 = vst [vmem:[#allocation27_spill] sm:$0xff] %v6960_v40 }
 0x191   : > { %v6922_v9 = vpop.f32.mrb[8].mxu0 }
 0x192   : > { %10329 = vst [vmem:[#allocation12_spill] sm:$0xff] %v6922_v9  ;;  %v6924_v10 = vpop.f32.mrb[9].mxu0  ;;  %v5831_v9 = vld [vmem:[%s10148_s3 + $0x38] sm:$0xff]  }
 0x193   : > { %10330 = vst [vmem:[#allocation13_spill] sm:$0xff] %v6924_v10  ;;  %v6926_v11 = vpop.f32.mrb[10].mxu0 }
 0x194   : > { %10331 = vst [vmem:[#allocation14_spill] sm:$0xff] %v6926_v11  ;;  %v6928_v12 = vpop.f32.mrb[11].mxu0 }
 0x195   : > { %10332 = vst [vmem:[#allocation15_spill] sm:$0xff] %v6928_v12 }
 0x199   : > { %v6930_v13 = vpop.f32.mrb[12].mxu0 }
 0x19a   : > { %10333 = vst [vmem:[#allocation16_spill] sm:$0xff] %v6930_v13  ;;  %v6932_v14 = vpop.f32.mrb[13].mxu0  ;;  %v5829_v13 = vld [vmem:[%s10148_s3 + $0x28] sm:$0xff]  }
 0x19b   : > { %10334 = vst [vmem:[#allocation17_spill] sm:$0xff] %v6932_v14  ;;  %v6934_v15 = vpop.f32.mrb[14].mxu0  ;;  %5662 = vmatmul.mubr.msk.bf16.gmra.mrb[20].mxu0 %vm972_vm0, %v5829_v13 }
 0x19c   : > { %10335 = vst [vmem:[#allocation18_spill] sm:$0xff] %v6934_v15  ;;  %v6936_v16 = vpop.f32.mrb[15].mxu0  ;;  %1137 = vmatprep.mubr.bf16.mxu0 %v10357_v5 }
 0x19d   : > { %10336 = vst [vmem:[#allocation19_spill] sm:$0xff] %v6936_v16 }
 0x1a1   : > { %v1119_v17 = vpop.f32.mrb[16].mxu0 }
 0x1a2   : > { %v1121_v19 = vpop.f32.mrb[17].mxu0  ;;  %v1120_v22 = vadd.f32 %v1119_v17, %v655_v20 }
 0x1a3   : > { %v1123_v21 = vpop.f32.mrb[18].mxu0  ;;  %v1122_v25 = vadd.f32 %v1121_v19, %v655_v20 }
 0x1a4   : > { %v1124_v23 = vadd.f32 %v1123_v21, %v660_v18  ;;  %v1125_v24 = vpop.f32.mrb[19].mxu0 }
 0x1a5   : > { %v1126_v26 = vadd.f32 %v1125_v24, %v660_v18 }
 0x1a6   : > { %v1326_v27 = vpack.c.bf16 %v1124_v23, %v1120_v22 }
 0x1a7   : > { %v1327_v28 = vpack.c.bf16 %v1126_v26, %v1122_v25 }
 0x1a9   : > { %1447 = vmatprep.subr.bf16.mxu1 %v1327_v28 }
 0x1aa   : > { %1448 = vmatpush1.bf16.msra.mxu1 %v1326_v27 }
 0x1ee   : > { %v1374_v29 = vpop.trf.xlu0 }
 0x1ef   : > { %5681 = vmatmul.mubr.msk.bf16.vlgmr.msra.gmra.mrb[8].mxu1 %vm1398_vm1, %v1374_v29  ;;  %v1390_v45 = vpop.trf.xlu1 }
 0x1f0   : > { %1489 = vmatprep.mubr.bf16.mxu1 %v10160_v2 }
 0x1f2   : > { %v1375_v30 = vpop.trf.xlu0 }
 0x1f3   : > { %v1391_v46 = vpop.trf.xlu1 }
 0x1f6   : > { %v1376_v31 = vpop.trf.xlu0 }
 0x1f7   : > { %5682 = vmatmul.mubr.msk.bf16.gmra.mrb[12].mxu1 %vm1398_vm1, %v1375_v30  ;;  %v1392_v47 = vpop.trf.xlu1 }
 0x1f8   : > { %1499 = vmatprep.mubr.bf16.mxu1 %v10160_v2 }
 0x1fa   : > { %v1377_v36 = vpop.trf.xlu0 }
 0x1fb   : > { %v1393_v48 = vpop.trf.xlu1 }
 0x1fe   : > { %v1378_v41 = vpop.trf.xlu0 }
 0x1ff   : > { %5683 = vmatmul.mubr.msk.bf16.gmra.mrb[16].mxu1 %vm1398_vm1, %v1376_v31  ;;  %v1394_v49 = vpop.trf.xlu1 }
 0x200   : > { %1509 = vmatprep.mubr.bf16.mxu1 %v10160_v2 }
 0x202   : > { %v1379_v42 = vpop.trf.xlu0 }
 0x203   : > { %v1395_v50 = vpop.trf.xlu1 }
 0x206   : > { %v1380_v43 = vpop.trf.xlu0 }
 0x207   : > { %5684 = vmatmul.mubr.msk.bf16.gmra.mrb[20].mxu1 %vm1398_vm1, %v1377_v36  ;;  %v1396_v51 = vpop.trf.xlu1 }
 0x208   : > { %1519 = vmatprep.mubr.bf16.mxu1 %v10160_v2 }
 0x20a   : > { %v1381_v44 = vpop.trf.xlu0 }
 0x20b   : > { %v1397_v52 = vpop.trf.xlu1 }
 0x20f   : > { %5685 = vmatmul.mubr.msk.bf16.gmra.mrb[24].mxu1 %vm1398_vm1, %v1378_v41 }
 0x210   : > { %1529 = vmatprep.mubr.bf16.mxu1 %v10160_v2 }
 0x217   : > { %5686 = vmatmul.mubr.msk.bf16.gmra.mrb[28].mxu1 %vm1398_vm1, %v1379_v42 }
 0x218   : > { %1539 = vmatprep.mubr.bf16.mxu1 %v10160_v2 }
 0x21f   : > { %5687 = vmatmul.mubr.msk.bf16.gmra.mrb[32].mxu1 %vm1398_vm1, %v1380_v43 }
 0x220   : > { %1549 = vmatprep.mubr.bf16.mxu1 %v10160_v2 }
 0x227   : > { %5688 = vmatmul.mubr.msk.bf16.gmra.mrb[36].mxu1 %vm1398_vm1, %v1381_v44 }
 0x228   : > { %1559 = vmatprep.mubr.bf16.mxu1 %v10160_v2 }
 0x22f   : > { %5689 = vmatmul.mubr.msk.bf16.gmra.mrb[40].mxu1 %vm1398_vm1, %v1390_v45 }
 0x230   : > { %1569 = vmatprep.mubr.bf16.mxu1 %v10160_v2 }
 0x237   : > { %5690 = vmatmul.mubr.msk.bf16.gmra.mrb[44].mxu1 %vm1398_vm1, %v1391_v46 }
 0x238   : > { %1579 = vmatprep.mubr.bf16.mxu1 %v10160_v2 }
 0x23f   : > { %5691 = vmatmul.mubr.msk.bf16.gmra.mrb[48].mxu1 %vm1398_vm1, %v1392_v47 }
 0x240   : > { %1589 = vmatprep.mubr.bf16.mxu1 %v10160_v2 }
 0x247   : > { %5692 = vmatmul.mubr.msk.bf16.gmra.mrb[52].mxu1 %vm1398_vm1, %v1393_v48 }
 0x248   : > { %1599 = vmatprep.mubr.bf16.mxu1 %v10160_v2 }
 0x24f   : > { %5693 = vmatmul.mubr.msk.bf16.gmra.mrb[56].mxu1 %vm1398_vm1, %v1394_v49 }
 0x250   : > { %1609 = vmatprep.mubr.bf16.mxu1 %v10160_v2 }
 0x257   : > { %5694 = vmatmul.mubr.msk.bf16.gmra.mrb[60].mxu1 %vm1398_vm1, %v1395_v50 }
 0x258   : > { %1619 = vmatprep.mubr.bf16.mxu1 %v10160_v2 }
 0x25f   : > { %5695 = vmatmul.mubr.msk.bf16.gmra.mrb[64].mxu1 %vm1398_vm1, %v1396_v51 }
 0x260   : > { %1629 = vmatprep.mubr.bf16.mxu1 %v10160_v2 }
 0x267   : > { %5696 = vmatmul.mubr.msk.bf16.gmra.mrb[68].mxu1 %vm1398_vm1, %v1397_v52 }
 0x2c2   : > { %v6985_v53 = vpop.f32.mrb[8].mxu1 }
 0x2c3   : > { %v6987_v54 = vpop.f32.mrb[9].mxu1 }
 0x2c4   : > { %v6989_v55 = vpop.f32.mrb[10].mxu1  ;;  %v1640_v56 = vmax.f32 %v6985_v53, %v6987_v54 }
 0x2c5   : > { %v6993_v57 = vpop.f32.mrb[11].mxu1 }
 0x2c6   : > { %1641 = vmax.xlane.f32.xlu0 %v1640_v56  ;;  %v1643_v58 = vmax.f32 %v6989_v55, %v6993_v57 }
 0x2c8   : > { %1644 = vmax.xlane.f32.xlu1 %v1643_v58 }
 0x2ca   : > { %v6997_v59 = vpop.f32.mrb[12].mxu1 }
 0x2cb   : > { %v6999_v60 = vpop.f32.mrb[13].mxu1 }
 0x2cc   : > { %v7001_v61 = vpop.f32.mrb[14].mxu1  ;;  %v1646_v62 = vmax.f32 %v6997_v59, %v6999_v60 }
 0x2cd   : > { %v7005_v63 = vpop.f32.mrb[15].mxu1 }
 0x2ce   : > { %1647 = vmax.xlane.f32.xlu0 %v1646_v62  ;;  %v1649_v0 = vmax.f32 %v7001_v61, %v7005_v63 }
 0x2d2   : > { %1650 = vmax.xlane.f32.xlu0 %v1649_v0  ;;  %v7009_v1 = vpop.f32.mrb[16].mxu1 }
 0x2d3   : > { %v7011_v3 = vpop.f32.mrb[17].mxu1 }
 0x2d4   : > { %v7013_v4 = vpop.f32.mrb[18].mxu1  ;;  %v1652_v17 = vmax.f32 %v7009_v1, %v7011_v3 }
 0x2d5   : > { %v7017_v18 = vpop.f32.mrb[19].mxu1 }
 0x2d6   : > { %1653 = vmax.xlane.f32.xlu1 %v1652_v17  ;;  %v1655_v19 = vmax.f32 %v7013_v4, %v7017_v18 }
 0x2d8   : > { %1656 = vmax.xlane.f32.xlu0 %v1655_v19 }
 0x2da   : > { %v7021_v20 = vpop.f32.mrb[20].mxu1 }
 0x2db   : > { %v7023_v21 = vpop.f32.mrb[21].mxu1 }
 0x2dc   : > { %v7025_v22 = vpop.f32.mrb[22].mxu1  ;;  %v1658_v23 = vmax.f32 %v7021_v20, %v7023_v21 }
 0x2dd   : > { %v7029_v24 = vpop.f32.mrb[23].mxu1 }
 0x2de   : > { %1659 = vmax.xlane.f32.xlu1 %v1658_v23  ;;  %v1661_v25 = vmax.f32 %v7025_v22, %v7029_v24 }
 0x2e0   : > { %1662 = vmax.xlane.f32.xlu0 %v1661_v25 }
 0x2e2   : > { %v7033_v26 = vpop.f32.mrb[24].mxu1 }
 0x2e3   : > { %v7035_v27 = vpop.f32.mrb[25].mxu1 }
 0x2e4   : > { %v7037_v28 = vpop.f32.mrb[26].mxu1  ;;  %v1664_v29 = vmax.f32 %v7033_v26, %v7035_v27 }
 0x2e5   : > { %v7041_v30 = vpop.f32.mrb[27].mxu1 }
 0x2e6   : > { %1665 = vmax.xlane.f32.xlu1 %v1664_v29  ;;  %v1667_v31 = vmax.f32 %v7037_v28, %v7041_v30 }
 0x2e8   : > { %1668 = vmax.xlane.f32.xlu0 %v1667_v31 }
 0x2ea   : > { %v7045_v36 = vpop.f32.mrb[28].mxu1 }
 0x2eb   : > { %v7047_v41 = vpop.f32.mrb[29].mxu1 }
 0x2ec   : > { %v7049_v42 = vpop.f32.mrb[30].mxu1  ;;  %v1670_v43 = vmax.f32 %v7045_v36, %v7047_v41 }
 0x2ed   : > { %v7053_v44 = vpop.f32.mrb[31].mxu1 }
 0x2ee   : > { %1671 = vmax.xlane.f32.xlu1 %v1670_v43  ;;  %v1673_v45 = vmax.f32 %v7049_v42, %v7053_v44 }
 0x2f0   : > { %1674 = vmax.xlane.f32.xlu0 %v1673_v45 }
 0x2f2   : > { %v7057_v46 = vpop.f32.mrb[32].mxu1 }
 0x2f3   : > { %v7059_v47 = vpop.f32.mrb[33].mxu1 }
 0x2f4   : > { %v7061_v48 = vpop.f32.mrb[34].mxu1  ;;  %v1676_v49 = vmax.f32 %v7057_v46, %v7059_v47 }
 0x2f5   : > { %v7065_v50 = vpop.f32.mrb[35].mxu1 }
 0x2f6   : > { %1677 = vmax.xlane.f32.xlu1 %v1676_v49  ;;  %v1679_v51 = vmax.f32 %v7061_v48, %v7065_v50 }
 0x2f8   : > { %1680 = vmax.xlane.f32.xlu0 %v1679_v51 }
 0x2fa   : > { %v7069_v52 = vpop.f32.mrb[36].mxu1 }
 0x2fb   : > { %v7071_v56 = vpop.f32.mrb[37].mxu1 }
 0x2fc   : > { %v7073_v58 = vpop.f32.mrb[38].mxu1  ;;  %v1682_v62 = vmax.f32 %v7069_v52, %v7071_v56 }
 0x2fd   : > { %v7077_v0 = vpop.f32.mrb[39].mxu1 }
 0x2fe   : > { %1683 = vmax.xlane.f32.xlu1 %v1682_v62  ;;  %v1685_v17 = vmax.f32 %v7073_v58, %v7077_v0 }
 0x300   : > { %1686 = vmax.xlane.f32.xlu0 %v1685_v17 }
 0x302   : > { %v7081_v19 = vpop.f32.mrb[40].mxu1 }
 0x303   : > { %v7083_v23 = vpop.f32.mrb[41].mxu1 }
 0x304   : > { %v7085_v25 = vpop.f32.mrb[42].mxu1  ;;  %v1688_v29 = vmax.f32 %v7081_v19, %v7083_v23 }
 0x305   : > { %v7089_v31 = vpop.f32.mrb[43].mxu1 }
 0x306   : > { %1689 = vmax.xlane.f32.xlu1 %v1688_v29  ;;  %v1691_v43 = vmax.f32 %v7085_v25, %v7089_v31 }
 0x308   : > { %1692 = vmax.xlane.f32.xlu0 %v1691_v43 }
 0x30a   : > { %v7093_v45 = vpop.f32.mrb[44].mxu1 }
 0x30b   : > { %v7095_v49 = vpop.f32.mrb[45].mxu1 }
 0x30c   : > { %v7097_v51 = vpop.f32.mrb[46].mxu1  ;;  %v1694_v62 = vmax.f32 %v7093_v45, %v7095_v49 }
 0x30d   : > { %10345 = vst [vmem:[#allocation28_spill] sm:$0xff] %v7097_v51  ;;  %v7101_v17 = vpop.f32.mrb[47].mxu1 }
 0x30e   : > { %10346 = vst [vmem:[#allocation29_spill] sm:$0xff] %v7101_v17  ;;  %1695 = vmax.xlane.f32.xlu1 %v1694_v62  ;;  %v1697_v2 = vmax.f32 %v7097_v51, %v7101_v17 }
 0x310   : > { %1698 = vmax.xlane.f32.xlu0 %v1697_v2 }
 0x312   : > { %v7105_v29 = vpop.f32.mrb[48].mxu1 }
 0x313   : > { %10347 = vst [vmem:[#allocation30_spill] sm:$0xff] %v7105_v29  ;;  %v7107_v40 = vpop.f32.mrb[49].mxu1 }
 0x314   : > { %10348 = vst [vmem:[#allocation31_spill] sm:$0xff] %v7107_v40  ;;  %v7109_v43 = vpop.f32.mrb[50].mxu1  ;;  %v1700_v39 = vmax.f32 %v7105_v29, %v7107_v40 }
 0x315   : > { %10349 = vst [vmem:[#allocation32_spill] sm:$0xff] %v7109_v43  ;;  %v7113_v38 = vpop.f32.mrb[51].mxu1 }
 0x316   : > { %10350 = vst [vmem:[#allocation33_spill] sm:$0xff] %v7113_v38  ;;  %1701 = vmax.xlane.f32.xlu1 %v1700_v39  ;;  %v1703_v37 = vmax.f32 %v7109_v43, %v7113_v38 }
 0x318   : > { %1704 = vmax.xlane.f32.xlu0 %v1703_v37 }
 0x31a   : > { %v7117_v62 = vpop.f32.mrb[52].mxu1 }
 0x31b   : > { %10351 = vst [vmem:[#allocation34_spill] sm:$0xff] %v7117_v62  ;;  %v7119_v35 = vpop.f32.mrb[53].mxu1 }
 0x31c   : > { %10352 = vst [vmem:[#allocation35_spill] sm:$0xff] %v7119_v35  ;;  %v7121_v2 = vpop.f32.mrb[54].mxu1  ;;  %v1706_v34 = vmax.f32 %v7117_v62, %v7119_v35 }
 0x31d   : > { %10353 = vst [vmem:[#allocation36_spill] sm:$0xff] %v7121_v2  ;;  %v7125_v33 = vpop.f32.mrb[55].mxu1 }
 0x31e   : > { %10354 = vst [vmem:[#allocation37_spill] sm:$0xff] %v7125_v33  ;;  %1707 = vmax.xlane.f32.xlu1 %v1706_v34  ;;  %v1709_v32 = vmax.f32 %v7121_v2, %v7125_v33 }
 0x320   : > { %1710 = vmax.xlane.f32.xlu0 %v1709_v32 }
 0x322   : > { %v7129_v39 = vpop.f32.mrb[56].mxu1 }
 0x323   : > { %10355 = vst [vmem:[#allocation38_spill] sm:$0xff] %v7129_v39  ;;  %v7131_v16 = vpop.f32.mrb[57].mxu1 }
 0x324   : > { %10356 = vst [vmem:[#allocation39_spill] sm:$0xff] %v7131_v16  ;;  %v1712_v37 = vmax.f32 %v7129_v39, %v7131_v16  ;;  %v7135_v15 = vpop.f32.mrb[58].mxu1  ;;  %v5830_v16 = vld [vmem:[%s10148_s3 + $0x30] sm:$0xff]  }
 0x325   : > { %v7137_v14 = vpop.f32.mrb[59].mxu1  ;;  %5663 = vmatmul.mubr.msk.bf16.gmra.mrb[24].mxu0 %vm972_vm0, %v5830_v16  ;;  %v5833_v16 = vld [vmem:[%s10148_s3 + $0x48] sm:$0xff]  }
 0x326   : > { %1713 = vmax.xlane.f32.xlu1 %v1712_v37  ;;  %1147 = vmatprep.mubr.bf16.mxu0 %v10357_v5 }
 0x32a   : > { %v7141_v34 = vpop.f32.mrb[60].mxu1 }
 0x32b   : > { %v7143_v12 = vpop.f32.mrb[61].mxu1 }
 0x32c   : > { %v7147_v11 = vpop.f32.mrb[62].mxu1 }
 0x32d   : > { %v7149_v10 = vpop.f32.mrb[63].mxu1  ;;  %5664 = vmatmul.mubr.msk.bf16.gmra.mrb[28].mxu0 %vm972_vm0, %v5831_v9 }
 0x32e   : > { %1157 = vmatprep.mubr.bf16.mxu0 %v10357_v5 }
 0x332   : > { %v7153_v8 = vpop.f32.mrb[64].mxu1 }
 0x333   : > { %v7155_v37 = vpop.f32.mrb[65].mxu1 }
 0x334   : > { %v7162_v6 = vpop.f32.mrb[66].mxu1 }
 0x335   : > { %v7164_v32 = vpop.f32.mrb[67].mxu1  ;;  %5665 = vmatmul.mubr.msk.bf16.gmra.mrb[32].mxu0 %vm972_vm0, %v5832_v7 }
 0x336   : > { %1167 = vmatprep.mubr.bf16.mxu0 %v10357_v5 }
 0x33a   : > { %v7173_v39 = vpop.f32.mrb[68].mxu1 }
 0x33b   : > { %v7175_v33 = vpop.f32.mrb[69].mxu1 }
 0x33c   : > { %v7179_v2 = vpop.f32.mrb[70].mxu1 }
 0x33d   : > { %v7181_v35 = vpop.f32.mrb[71].mxu1  ;;  %5666 = vmatmul.mubr.msk.bf16.gmra.mrb[36].mxu0 %vm972_vm0, %v5833_v16 }
 0x33e   : > { %1177 = vmatprep.mubr.bf16.mxu0 %v10357_v5 }
 0x353   : > { %v1642_v13 = vpop.xlane.xlu0 %1641 }
 0x354   : > { %v1736_v62 = vsub.f32 %v6985_v53, %v1642_v13  ;;  %v1737_v38 = vsub.f32 %v6987_v54, %v1642_v13  ;;  %v5834_v53 = vld [vmem:[%s10148_s3 + $0x50] sm:$0xff]  }
 0x355   : > { %v1645_v9 = vpop.xlane.xlu1 %1644  ;;  %5667 = vmatmul.mubr.msk.bf16.gmra.mrb[40].mxu0 %vm972_vm0, %v5834_v53 }
 0x356   : > { %v1800_v43 = vmul.f32 1.442695, %v1736_v62  ;;  %v1802_v40 = vmul.f32 1.442695, %v1737_v38  ;;  %v1738_v29 = vsub.f32 %v6989_v55, %v1645_v9  ;;  %v1739_v7 = vsub.f32 %v6993_v57, %v1645_v9  ;;  %1187 = vmatprep.mubr.bf16.mxu0 %v10357_v5 }
 0x358   : > { %5862 = vpow2.f32 %v1800_v43  ;;  %v1804_v17 = vmul.f32 1.442695, %v1738_v29  ;;  %v1806_v51 = vmul.f32 1.442695, %v1739_v7 }
 0x359   : > { %5864 = vpow2.f32 %v1802_v40 }
 0x35a   : > { %5866 = vpow2.f32 %v1804_v17 }
 0x35b   : > { %5868 = vpow2.f32 %v1806_v51  ;;  %v1648_v54 = vpop.xlane.xlu0 %1647  ;;  %v5835_v51 = vld [vmem:[%s10148_s3 + $0x58] sm:$0xff]  }
 0x35c   : > { %v1740_v62 = vsub.f32 %v6997_v59, %v1648_v54  ;;  %v1741_v38 = vsub.f32 %v6999_v60, %v1648_v54 }
 0x35d   : > { %5668 = vmatmul.mubr.msk.bf16.gmra.mrb[44].mxu0 %vm972_vm0, %v5835_v51 }
 0x35e   : > { %v1808_v55 = vmul.f32 1.442695, %v1740_v62  ;;  %v1810_v57 = vmul.f32 1.442695, %v1741_v38  ;;  %1197 = vmatprep.mubr.bf16.mxu0 %v10357_v5 }
 0x35f   : > { %v1651_v29 = vpop.xlane.xlu0 %1650 }
 0x360   : > { %5870 = vpow2.f32 %v1808_v55  ;;  %v1742_v40 = vsub.f32 %v7001_v61, %v1651_v29  ;;  %v1743_v43 = vsub.f32 %v7005_v63, %v1651_v29 }
 0x361   : > { %5872 = vpow2.f32 %v1810_v57 }
 0x362   : > { %v7218_v59 = vpop.eup %5862  ;;  %v1812_v60 = vmul.f32 1.442695, %v1742_v40  ;;  %v1814_v17 = vmul.f32 1.442695, %v1743_v43  ;;  %v10358_v43 = vmax.f32 %v7141_v34, %v7143_v12 }
 0x363   : > { %v7220_v13 = vpop.eup %5864  ;;  %v1654_v16 = vpop.xlane.xlu1 %1653 }
 0x364   : > { %v7222_v9 = vpop.eup %5866  ;;  %5874 = vpow2.f32 %v1812_v60  ;;  %v1744_v7 = vsub.f32 %v7009_v1, %v1654_v16  ;;  %v1745_v61 = vsub.f32 %v7011_v3, %v1654_v16  ;;  %v1928_v63 = vadd.f32 %v7220_v13, %v7218_v59 }
 0x365   : > { %v7228_v53 = vpop.eup %5868  ;;  %5876 = vpow2.f32 %v1814_v17  ;;  %v1657_v54 = vpop.xlane.xlu0 %1656  ;;  %v10359_v16 = vmax.f32 %v7135_v15, %v7137_v14 }
 0x366   : > { %v1816_v62 = vmul.f32 1.442695, %v1744_v7  ;;  %v1818_v38 = vmul.f32 1.442695, %v1745_v61  ;;  %1929 = vadd.xlane.f32.xlu1 %v1928_v63  ;;  %v1746_v55 = vsub.f32 %v7013_v4, %v1657_v54  ;;  %v1747_v57 = vsub.f32 %v7017_v18, %v1657_v54 }
 0x367   : > { %v1931_v1 = vadd.f32 %v7228_v53, %v7222_v9 }
 0x368   : > { %5878 = vpow2.f32 %v1816_v62  ;;  %v1820_v3 = vmul.f32 1.442695, %v1746_v55  ;;  %v1822_v29 = vmul.f32 1.442695, %v1747_v57 }
 0x369   : > { %5880 = vpow2.f32 %v1818_v38  ;;  %1932 = vadd.xlane.f32.xlu0 %v1931_v1 }
 0x36a   : > { %v7236_v40 = vpop.eup %5870  ;;  %5882 = vpow2.f32 %v1820_v3  ;;  %1719 = vmax.xlane.f32.xlu1 %v10358_v43  ;;  %v10360_v3 = vmax.f32 %v7153_v8, %v7155_v37 }
 0x36b   : > { %v7241_v4 = vpop.eup %5872  ;;  %5884 = vpow2.f32 %v1822_v29  ;;  %v1660_v18 = vpop.xlane.xlu1 %1659 }
 0x36c   : > { %v1748_v51 = vsub.f32 %v7021_v20, %v1660_v18  ;;  %v1749_v60 = vsub.f32 %v7023_v21, %v1660_v18  ;;  %v1934_v17 = vadd.f32 %v7241_v4, %v7236_v40 }
 0x36d   : > { %1716 = vmax.xlane.f32.xlu0 %v10359_v16  ;;  %v1663_v7 = vpop.xlane.xlu0 %1662 }
 0x36e   : > { %v7250_v61 = vpop.eup %5874  ;;  %v1824_v63 = vmul.f32 1.442695, %v1748_v51  ;;  %v1826_v54 = vmul.f32 1.442695, %v1749_v60  ;;  %1935 = vadd.xlane.f32.xlu1 %v1934_v17  ;;  %v1750_v62 = vsub.f32 %v7025_v22, %v1663_v7  ;;  %v1751_v38 = vsub.f32 %v7029_v24, %v1663_v7 }
 0x36f   : > { %v7254_v20 = vpop.eup %5876 }
 0x370   : > { %5886 = vpow2.f32 %v1824_v63  ;;  %v1828_v21 = vmul.f32 1.442695, %v1750_v62  ;;  %v1830_v55 = vmul.f32 1.442695, %v1751_v38  ;;  %v1937_v57 = vadd.f32 %v7254_v20, %v7250_v61 }
 0x371   : > { %5888 = vpow2.f32 %v1826_v54  ;;  %v10361_v63 = vmax.f32 %v7147_v11, %v7149_v10 }
 0x372   : > { %v7258_v1 = vpop.eup %5878  ;;  %5890 = vpow2.f32 %v1828_v21  ;;  %1725 = vmax.xlane.f32.xlu1 %v10360_v3  ;;  %1938 = vadd.xlane.f32.xlu0 %v1937_v57 }
 0x373   : > { %v7263_v22 = vpop.eup %5880  ;;  %5892 = vpow2.f32 %v1830_v55  ;;  %v1666_v24 = vpop.xlane.xlu1 %1665  ;;  %v10362_v55 = vmax.f32 %v7173_v39, %v7175_v33 }
 0x374   : > { %v7265_v29 = vpop.eup %5882  ;;  %v1752_v43 = vsub.f32 %v7033_v26, %v1666_v24  ;;  %v1753_v18 = vsub.f32 %v7035_v27, %v1666_v24  ;;  %v1940_v51 = vadd.f32 %v7263_v22, %v7258_v1 }
 0x375   : > { %v7271_v60 = vpop.eup %5884  ;;  %v1669_v17 = vpop.xlane.xlu0 %1668 }
 0x376   : > { %v1832_v16 = vmul.f32 1.442695, %v1752_v43  ;;  %v1834_v7 = vmul.f32 1.442695, %v1753_v18  ;;  %1941 = vadd.xlane.f32.xlu1 %v1940_v51  ;;  %1722 = vmax.xlane.f32.xlu0 %v10361_v63  ;;  %v1754_v54 = vsub.f32 %v7037_v28, %v1669_v17  ;;  %v1755_v62 = vsub.f32 %v7041_v30, %v1669_v17 }
 0x377   : > { %v1943_v38 = vadd.f32 %v7271_v60, %v7265_v29 }
 0x378   : > { %5894 = vpow2.f32 %v1832_v16  ;;  %v1836_v26 = vmul.f32 1.442695, %v1754_v54  ;;  %v1838_v27 = vmul.f32 1.442695, %v1755_v62 }
 0x379   : > { %5896 = vpow2.f32 %v1834_v7  ;;  %v10363_v7 = vmax.f32 %v7162_v6, %v7164_v32 }
 0x37a   : > { %v7280_v21 = vpop.eup %5886  ;;  %5898 = vpow2.f32 %v1836_v26  ;;  %1731 = vmax.xlane.f32.xlu1 %v10362_v55  ;;  %1944 = vadd.xlane.f32.xlu0 %v1943_v38 }
 0x37b   : > { %v7285_v57 = vpop.eup %5888  ;;  %5900 = vpow2.f32 %v1838_v27  ;;  %v1672_v28 = vpop.xlane.xlu1 %1671 }
 0x37c   : > { %v7287_v30 = vpop.eup %5890  ;;  %v1756_v3 = vsub.f32 %v7045_v36, %v1672_v28  ;;  %v1757_v24 = vsub.f32 %v7047_v41, %v1672_v28  ;;  %v1946_v43 = vadd.f32 %v7285_v57, %v7280_v21 }
 0x37d   : > { %v7293_v18 = vpop.eup %5892  ;;  %v1675_v51 = vpop.xlane.xlu0 %1674 }
 0x37e   : > { %v1840_v17 = vmul.f32 1.442695, %v1756_v3  ;;  %v1842_v16 = vmul.f32 1.442695, %v1757_v24  ;;  %1947 = vadd.xlane.f32.xlu1 %v1946_v43  ;;  %1728 = vmax.xlane.f32.xlu0 %v10363_v7  ;;  %v1758_v63 = vsub.f32 %v7049_v42, %v1675_v51  ;;  %v1759_v54 = vsub.f32 %v7053_v44, %v1675_v51 }
 0x37f   : > { %v1949_v62 = vadd.f32 %v7293_v18, %v7287_v30 }
 0x380   : > { %5902 = vpow2.f32 %v1840_v17  ;;  %v1844_v36 = vmul.f32 1.442695, %v1758_v63  ;;  %v1846_v41 = vmul.f32 1.442695, %v1759_v54  ;;  %v10364_v17 = vmax.f32 %v7179_v2, %v7181_v35 }
 0x381   : > { %5904 = vpow2.f32 %v1842_v16 }
 0x382   : > { %v7302_v26 = vpop.eup %5894  ;;  %5906 = vpow2.f32 %v1844_v36  ;;  %1950 = vadd.xlane.f32.xlu0 %v1949_v62 }
 0x383   : > { %v7304_v27 = vpop.eup %5896  ;;  %5908 = vpow2.f32 %v1846_v41  ;;  %v1678_v38 = vpop.xlane.xlu1 %1677 }
 0x384   : > { %v7306_v55 = vpop.eup %5898  ;;  %v1760_v42 = vsub.f32 %v7057_v46, %v1678_v38  ;;  %v1761_v44 = vsub.f32 %v7059_v47, %v1678_v38  ;;  %v1952_v28 = vadd.f32 %v7304_v27, %v7302_v26 }
 0x385   : > { %v7312_v3 = vpop.eup %5900  ;;  %v1681_v24 = vpop.xlane.xlu0 %1680 }
 0x386   : > { %v1848_v43 = vmul.f32 1.442695, %v1760_v42  ;;  %v1850_v51 = vmul.f32 1.442695, %v1761_v44  ;;  %1953 = vadd.xlane.f32.xlu1 %v1952_v28  ;;  %1734 = vmax.xlane.f32.xlu0 %v10364_v17  ;;  %v1762_v16 = vsub.f32 %v7061_v48, %v1681_v24  ;;  %v1763_v7 = vsub.f32 %v7065_v50, %v1681_v24 }
 0x387   : > { %v1955_v63 = vadd.f32 %v7312_v3, %v7306_v55 }
 0x388   : > { %5910 = vpow2.f32 %v1848_v43  ;;  %v1852_v46 = vmul.f32 1.442695, %v1762_v16  ;;  %v1854_v47 = vmul.f32 1.442695, %v1763_v7 }
 0x389   : > { %5912 = vpow2.f32 %v1850_v51 }
 0x38a   : > { %v7321_v54 = vpop.eup %5902  ;;  %5914 = vpow2.f32 %v1852_v46  ;;  %1956 = vadd.xlane.f32.xlu0 %v1955_v63 }
 0x38b   : > { %v7323_v36 = vpop.eup %5904  ;;  %5916 = vpow2.f32 %v1854_v47  ;;  %v1684_v41 = vpop.xlane.xlu1 %1683 }
 0x38c   : > { %v7325_v62 = vpop.eup %5906  ;;  %v1764_v48 = vsub.f32 %v7069_v52, %v1684_v41  ;;  %v1765_v50 = vsub.f32 %v7071_v56, %v1684_v41  ;;  %v1958_v38 = vadd.f32 %v7323_v36, %v7321_v54 }
 0x38d   : > { %v7331_v42 = vpop.eup %5908  ;;  %v1687_v44 = vpop.xlane.xlu0 %1686 }
 0x38e   : > { %v1856_v28 = vmul.f32 1.442695, %v1764_v48  ;;  %v1858_v24 = vmul.f32 1.442695, %v1765_v50  ;;  %1959 = vadd.xlane.f32.xlu1 %v1958_v38  ;;  %v1766_v43 = vsub.f32 %v7073_v58, %v1687_v44  ;;  %v1767_v51 = vsub.f32 %v7077_v0, %v1687_v44 }
 0x38f   : > { %v1961_v17 = vadd.f32 %v7331_v42, %v7325_v62 }
 0x390   : > { %5918 = vpow2.f32 %v1856_v28  ;;  %v1860_v52 = vmul.f32 1.442695, %v1766_v43  ;;  %v1862_v16 = vmul.f32 1.442695, %v1767_v51 }
 0x391   : > { %5920 = vpow2.f32 %v1858_v24  ;;  %1962 = vadd.xlane.f32.xlu0 %v1961_v17 }
 0x392   : > { %v7337_v56 = vpop.eup %5910  ;;  %5922 = vpow2.f32 %v1860_v52 }
 0x393   : > { %v7339_v7 = vpop.eup %5912  ;;  %5924 = vpow2.f32 %v1862_v16  ;;  %v1690_v46 = vpop.xlane.xlu1 %1689 }
 0x394   : > { %v7341_v47 = vpop.eup %5914  ;;  %v1768_v58 = vsub.f32 %v7081_v19, %v1690_v46  ;;  %v1769_v0 = vsub.f32 %v7083_v23, %v1690_v46  ;;  %v1964_v63 = vadd.f32 %v7339_v7, %v7337_v56 }
 0x395   : > { %v7347_v41 = vpop.eup %5916  ;;  %v1693_v48 = vpop.xlane.xlu0 %1692 }
 0x396   : > { %v1864_v50 = vmul.f32 1.442695, %v1768_v58  ;;  %v1866_v38 = vmul.f32 1.442695, %v1769_v0  ;;  %1965 = vadd.xlane.f32.xlu1 %v1964_v63  ;;  %v1770_v44 = vsub.f32 %v7085_v25, %v1693_v48  ;;  %v1771_v28 = vsub.f32 %v7089_v31, %v1693_v48  ;;  %v10366_v48 = vld [vmem:[#allocation28_spill] sm:$0xff] }
 0x397   : > { %v1967_v24 = vadd.f32 %v7347_v41, %v7341_v47 }
 0x398   : > { %5926 = vpow2.f32 %v1864_v50  ;;  %v1868_v19 = vmul.f32 1.442695, %v1770_v44  ;;  %v1870_v43 = vmul.f32 1.442695, %v1771_v28 }
 0x399   : > { %5928 = vpow2.f32 %v1866_v38  ;;  %1968 = vadd.xlane.f32.xlu0 %v1967_v24  ;;  %v10367_v38 = vld [vmem:[#allocation29_spill] sm:$0xff] }
 0x39a   : > { %v7353_v23 = vpop.eup %5918  ;;  %5930 = vpow2.f32 %v1868_v19 }
 0x39b   : > { %10365 = vst [vmem:[#allocation40_spill] sm:$0xff] %v7353_v23  ;;  %v7355_v51 = vpop.eup %5920  ;;  %5932 = vpow2.f32 %v1870_v43  ;;  %v1696_v17 = vpop.xlane.xlu1 %1695 }
 0x39c   : > { %v7357_v52 = vpop.eup %5922  ;;  %v1772_v25 = vsub.f32 %v7093_v45, %v1696_v17  ;;  %v1773_v31 = vsub.f32 %v7095_v49, %v1696_v17  ;;  %v1970_v16 = vadd.f32 %v7355_v51, %v7353_v23 }
 0x39d   : > { %v7363_v46 = vpop.eup %5924  ;;  %v1699_v58 = vpop.xlane.xlu0 %1698 }
 0x39e   : > { %v1872_v0 = vmul.f32 1.442695, %v1772_v25  ;;  %v1874_v63 = vmul.f32 1.442695, %v1773_v31  ;;  %1971 = vadd.xlane.f32.xlu1 %v1970_v16  ;;  %v1774_v50 = vsub.f32 %v10366_v48, %v1699_v58  ;;  %v1775_v44 = vsub.f32 %v10367_v38, %v1699_v58  ;;  %v10371_v25 = vld [vmem:[#allocation30_spill] sm:$0xff]  ;;  %v10372_v16 = vld [vmem:[#allocation31_spill] sm:$0xff] }
 0x39f   : > { %v1973_v28 = vadd.f32 %v7363_v46, %v7357_v52 }
 0x3a0   : > { %5934 = vpow2.f32 %v1872_v0  ;;  %v1876_v45 = vmul.f32 1.442695, %v1774_v50  ;;  %v1878_v24 = vmul.f32 1.442695, %v1775_v44  ;;  %v10374_v44 = vld [vmem:[#allocation32_spill] sm:$0xff] }
 0x3a1   : > { %5936 = vpow2.f32 %v1874_v63  ;;  %1974 = vadd.xlane.f32.xlu0 %v1973_v28 }
 0x3a2   : > { %v7369_v49 = vpop.eup %5926  ;;  %5938 = vpow2.f32 %v1876_v45  ;;  %v10375_v45 = vld [vmem:[#allocation33_spill] sm:$0xff] }
 0x3a3   : > { %10368 = vst [vmem:[#allocation28_spill] sm:$0xff] %v7369_v49  ;;  %v7371_v19 = vpop.eup %5928  ;;  %5940 = vpow2.f32 %v1878_v24  ;;  %v1702_v43 = vpop.xlane.xlu1 %1701 }
 0x3a4   : > { %10369 = vst [vmem:[#allocation29_spill] sm:$0xff] %v7371_v19  ;;  %v7373_v17 = vpop.eup %5930  ;;  %v1776_v31 = vsub.f32 %v10371_v25, %v1702_v43  ;;  %v1777_v58 = vsub.f32 %v10372_v16, %v1702_v43  ;;  %v1976_v0 = vadd.f32 %v7371_v19, %v7369_v49 }
 0x3a5   : > { %10370 = vst [vmem:[#allocation41_spill] sm:$0xff] %v7373_v17  ;;  %v7379_v48 = vpop.eup %5932  ;;  %v1705_v63 = vpop.xlane.xlu0 %1704 }
 0x3a6   : > { %10373 = vst [vmem:[#allocation30_spill] sm:$0xff] %v7379_v48  ;;  %v1880_v50 = vmul.f32 1.442695, %v1776_v31  ;;  %v1882_v38 = vmul.f32 1.442695, %v1777_v58  ;;  %1977 = vadd.xlane.f32.xlu1 %v1976_v0  ;;  %v1778_v28 = vsub.f32 %v10374_v44, %v1705_v63  ;;  %v1779_v24 = vsub.f32 %v10375_v45, %v1705_v63  ;;  %v10376_v0 = vld [vmem:[#allocation34_spill] sm:$0xff] }
 0x3a7   : > { %v1979_v5 = vadd.f32 %v7379_v48, %v7373_v17  ;;  %v10377_v63 = vld [vmem:[#allocation35_spill] sm:$0xff]  ;;  %v10379_v17 = vld [vmem:[#allocation37_spill] sm:$0xff] }
 0x3a8   : > { %5942 = vpow2.f32 %v1880_v50  ;;  %v1884_v25 = vmul.f32 1.442695, %v1778_v28  ;;  %v1886_v23 = vmul.f32 1.442695, %v1779_v24 }
 0x3a9   : > { %5944 = vpow2.f32 %v1882_v38  ;;  %1980 = vadd.xlane.f32.xlu0 %v1979_v5 }
 0x3aa   : > { %v7385_v43 = vpop.eup %5934  ;;  %5946 = vpow2.f32 %v1884_v25  ;;  %v10378_v25 = vld [vmem:[#allocation36_spill] sm:$0xff] }
 0x3ab   : > { %v7387_v16 = vpop.eup %5936  ;;  %5948 = vpow2.f32 %v1886_v23  ;;  %v1708_v31 = vpop.xlane.xlu1 %1707 }
 0x3ac   : > { %v7389_v58 = vpop.eup %5938  ;;  %v1780_v44 = vsub.f32 %v10376_v0, %v1708_v31  ;;  %v1781_v45 = vsub.f32 %v10377_v63, %v1708_v31  ;;  %v1982_v50 = vadd.f32 %v7387_v16, %v7385_v43 }
 0x3ad   : > { %v7395_v28 = vpop.eup %5940  ;;  %v1711_v38 = vpop.xlane.xlu0 %1710 }
 0x3ae   : > { %v1888_v5 = vmul.f32 1.442695, %v1780_v44  ;;  %v1890_v24 = vmul.f32 1.442695, %v1781_v45  ;;  %1983 = vadd.xlane.f32.xlu1 %v1982_v50  ;;  %v1782_v49 = vsub.f32 %v10378_v25, %v1711_v38  ;;  %v1783_v23 = vsub.f32 %v10379_v17, %v1711_v38  ;;  %v10382_v50 = vld [vmem:[#allocation38_spill] sm:$0xff]  ;;  %v10383_v17 = vld [vmem:[#allocation39_spill] sm:$0xff] }
 0x3af   : > { %v1985_v48 = vadd.f32 %v7395_v28, %v7389_v58 }
 0x3b0   : > { %5950 = vpow2.f32 %v1888_v5  ;;  %v1892_v0 = vmul.f32 1.442695, %v1782_v49  ;;  %v1894_v19 = vmul.f32 1.442695, %v1783_v23 }
 0x3b1   : > { %5952 = vpow2.f32 %v1890_v24  ;;  %1986 = vadd.xlane.f32.xlu0 %v1985_v48 }
 0x3b2   : > { %v7401_v31 = vpop.eup %5942  ;;  %5954 = vpow2.f32 %v1892_v0 }
 0x3b3   : > { %10380 = vst [vmem:[#allocation31_spill] sm:$0xff] %v7401_v31  ;;  %v7403_v63 = vpop.eup %5944  ;;  %5956 = vpow2.f32 %v1894_v19  ;;  %v1714_v44 = vpop.xlane.xlu1 %1713 }
 0x3b4   : > { %v7405_v45 = vpop.eup %5946  ;;  %v1784_v25 = vsub.f32 %v10382_v50, %v1714_v44  ;;  %v1785_v38 = vsub.f32 %v10383_v17, %v1714_v44  ;;  %v1988_v5 = vadd.f32 %v7403_v63, %v7401_v31 }
 0x3b5   : > { %10381 = vst [vmem:[#allocation32_spill] sm:$0xff] %v7405_v45  ;;  %v7411_v49 = vpop.eup %5948 }
 0x3b6   : > { %10384 = vst [vmem:[#allocation33_spill] sm:$0xff] %v7411_v49  ;;  %v1896_v24 = vmul.f32 1.442695, %v1784_v25  ;;  %v1898_v48 = vmul.f32 1.442695, %v1785_v38  ;;  %1989 = vadd.xlane.f32.xlu1 %v1988_v5  ;;  %v1991_v23 = vadd.f32 %v7411_v49, %v7405_v45 }
 0x3b8   : > { %5958 = vpow2.f32 %v1896_v24  ;;  %1992 = vadd.xlane.f32.xlu0 %v1991_v23 }
 0x3b9   : > { %5960 = vpow2.f32 %v1898_v48  ;;  %v566_v48 = vld [vmem:[%s10149_s4 + $0x10] sm:$0xff] }
 0x3ba   : > { %v7415_v19 = vpop.eup %5950 }
 0x3bb   : > { %10385 = vst [vmem:[#allocation34_spill] sm:$0xff] %v7415_v19  ;;  %v7417_v0 = vpop.eup %5952 }
 0x3bc   : > { %10386 = vst [vmem:[#allocation35_spill] sm:$0xff] %v7417_v0  ;;  %v7419_v50 = vpop.eup %5954  ;;  %v1994_v44 = vadd.f32 %v7417_v0, %v7415_v19 }
 0x3bd   : > { %10387 = vst [vmem:[#allocation36_spill] sm:$0xff] %v7419_v50  ;;  %v7423_v17 = vpop.eup %5956 }
 0x3be   : > { %10388 = vst [vmem:[#allocation37_spill] sm:$0xff] %v7423_v17  ;;  %1995 = vadd.xlane.f32.xlu1 %v1994_v44  ;;  %v1997_v25 = vadd.f32 %v7423_v17, %v7419_v50 }
 0x3c0   : > { %1998 = vadd.xlane.f32.xlu0 %v1997_v25 }
 0x3c2   : > { %v7427_v38 = vpop.eup %5958 }
 0x3c3   : > { %10389 = vst [vmem:[#allocation38_spill] sm:$0xff] %v7427_v38  ;;  %v7429_v5 = vpop.eup %5960 }
 0x3c4   : > { %10390 = vst [vmem:[#allocation39_spill] sm:$0xff] %v7429_v5  ;;  %v2000_v24 = vadd.f32 %v7429_v5, %v7427_v38 }
 0x3c6   : > { %2001 = vadd.xlane.f32.xlu1 %v2000_v24 }
 0x3d7   : > { %624 = vperm.xlu1 %5821, %v566_v48  }
 0x3f3   : > { %v1930_v23 = vpop.xlane.xlu1 %1929 }
 0x3f4   : > { %5962 = vrcp.f32 %v1930_v23 }
 0x3f6   : > { %v1933_v44 = vpop.xlane.xlu0 %1932 }
 0x3f7   : > { %5964 = vrcp.f32 %v1933_v44  ;;  %v1720_v19 = vpop.xlane.xlu1 %1719 }
 0x3f8   : > { %v1788_v25 = vsub.f32 %v7141_v34, %v1720_v19  ;;  %v1789_v50 = vsub.f32 %v7143_v12, %v1720_v19 }
 0x3fa   : > { %v1904_v17 = vmul.f32 1.442695, %v1788_v25  ;;  %v1906_v0 = vmul.f32 1.442695, %v1789_v50  ;;  %v1717_v31 = vpop.xlane.xlu0 %1716 }
 0x3fb   : > { %v1786_v38 = vsub.f32 %v7135_v15, %v1717_v31  ;;  %v1787_v24 = vsub.f32 %v7137_v14, %v1717_v31  ;;  %v1936_v5 = vpop.xlane.xlu1 %1935 }
 0x3fc   : > { %5966 = vpow2.f32 %v1904_v17 }
 0x3fd   : > { %5968 = vpow2.f32 %v1906_v0  ;;  %v1900_v48 = vmul.f32 1.442695, %v1786_v38  ;;  %v1902_v45 = vmul.f32 1.442695, %v1787_v24 }
 0x3fe   : > { %v5963_v23 = vpop.eup %5962  ;;  %5970 = vrcp.f32 %v1936_v5 }
 0x3ff   : > { %5972 = vpow2.f32 %v1900_v48  ;;  %v1726_v44 = vpop.xlane.xlu1 %1725  ;;  %v1939_v49 = vpop.xlane.xlu0 %1938  ;;  %v2057_v15 = vmul.f32 %v5963_v23, %v7220_v13  ;;  %v2056_v5 = vmul.f32 %v5963_v23, %v7218_v59 }
 0x400   : > { %5974 = vpow2.f32 %v1902_v45  ;;  %v1792_v12 = vsub.f32 %v7153_v8, %v1726_v44  ;;  %v1793_v34 = vsub.f32 %v7155_v37, %v1726_v44 }
 0x401   : > { %v5965_v19 = vpop.eup %5964  ;;  %5976 = vrcp.f32 %v1939_v49 }
 0x402   : > { %v1912_v14 = vmul.f32 1.442695, %v1792_v12  ;;  %v1914_v31 = vmul.f32 1.442695, %v1793_v34  ;;  %v2059_v0 = vmul.f32 %v5965_v19, %v7228_v53  ;;  %v2058_v50 = vmul.f32 %v5965_v19, %v7222_v9 }
 0x403   : > { %v1942_v17 = vpop.xlane.xlu1 %1941  ;;  %v1723_v38 = vpop.xlane.xlu0 %1722 }
 0x404   : > { %5978 = vpow2.f32 %v1912_v14  ;;  %v1790_v45 = vsub.f32 %v7147_v11, %v1723_v38  ;;  %v1791_v8 = vsub.f32 %v7149_v10, %v1723_v38  ;;  %v2121_v37 = vpack.c.bf16 %v2059_v0, %v2057_v15 }
 0x405   : > { %5980 = vpow2.f32 %v1914_v31  ;;  %v2120_v49 = vpack.c.bf16 %v2058_v50, %v2056_v5 }
 0x406   : > { %v7448_v25 = vpop.eup %5966  ;;  %v1908_v13 = vmul.f32 1.442695, %v1790_v45  ;;  %v1910_v24 = vmul.f32 1.442695, %v1791_v8  ;;  %2152 = vmatprep.subr.bf16.mxu1 %v2121_v37  ;;  %5982 = vrcp.f32 %v1942_v17 }
 0x407   : > { %v7450_v53 = vpop.eup %5968  ;;  %2153 = vmatpush1.bf16.xpose.msra.mxu1 %v2120_v49  ;;  %v1732_v9 = vpop.xlane.xlu1 %1731 }
 0x408   : > { %v1945_v48 = vpop.xlane.xlu0 %1944  ;;  %v5971_v59 = vpop.eup %5970  ;;  %5984 = vpow2.f32 %v1908_v13  ;;  %v1796_v11 = vsub.f32 %v7173_v39, %v1732_v9  ;;  %v1797_v10 = vsub.f32 %v7175_v33, %v1732_v9  ;;  %v2006_v23 = vadd.f32 %v7450_v53, %v7448_v25 }
 0x409   : > { %v7456_v44 = vpop.eup %5972  ;;  %5986 = vpow2.f32 %v1910_v24  ;;  %v2061_v39 = vmul.f32 %v5971_v59, %v7241_v4  ;;  %v2060_v38 = vmul.f32 %v5971_v59, %v7236_v40 }
 0x40a   : > { %v7458_v12 = vpop.eup %5974  ;;  %v1920_v34 = vmul.f32 1.442695, %v1796_v11  ;;  %v1922_v19 = vmul.f32 1.442695, %v1797_v10  ;;  %5988 = vrcp.f32 %v1945_v48  ;;  %2007 = vadd.xlane.f32.xlu1 %v2006_v23 }
 0x40b   : > { %v5977_v15 = vpop.eup %5976  ;;  %v2003_v14 = vadd.f32 %v7458_v12, %v7456_v44  ;;  %v1948_v33 = vpop.xlane.xlu1 %1947 }
 0x40c   : > { %v1729_v31 = vpop.xlane.xlu0 %1728  ;;  %5990 = vpow2.f32 %v1920_v34  ;;  %v2063_v17 = vmul.f32 %v5977_v15, %v7254_v20  ;;  %v2062_v5 = vmul.f32 %v5977_v15, %v7250_v61 }
 0x40d   : > { %v1794_v0 = vsub.f32 %v7162_v6, %v1729_v31  ;;  %v1795_v50 = vsub.f32 %v7164_v32, %v1729_v31  ;;  %5992 = vpow2.f32 %v1922_v19  ;;  %2004 = vadd.xlane.f32.xlu0 %v2003_v14 }
 0x40e   : > { %v7468_v45 = vpop.eup %5978  ;;  %v2123_v49 = vpack.c.bf16 %v2063_v17, %v2061_v39  ;;  %5994 = vrcp.f32 %v1948_v33  ;;  %v2122_v6 = vpack.c.bf16 %v2062_v5, %v2060_v38  ;;  %v7496_v17 = vpop.f32.mrb[20].mxu0 }
 0x40f   : > { %v1916_v8 = vmul.f32 1.442695, %v1794_v0  ;;  %v1918_v37 = vmul.f32 1.442695, %v1795_v50  ;;  %v7470_v4 = vpop.eup %5980 }
 0x410   : > { %v1951_v13 = vpop.xlane.xlu0 %1950  ;;  %2154 = vmatprep.subr.bf16.mxu1 %v2123_v49  ;;  %v2012_v32 = vadd.f32 %v7470_v4, %v7468_v45  ;;  %v5983_v20 = vpop.eup %5982 }
 0x411   : > { %5996 = vpow2.f32 %v1916_v8  ;;  %2155 = vmatpush1.bf16.xpose.msra.mxu1 %v2122_v6  ;;  %v2065_v23 = vmul.f32 %v5983_v20, %v7263_v22  ;;  %v2064_v19 = vmul.f32 %v5983_v20, %v7258_v1 }
 0x412   : > { %5998 = vpow2.f32 %v1918_v37  ;;  %v7474_v40 = vpop.eup %5984  ;;  %2013 = vadd.xlane.f32.xlu1 %v2012_v32  ;;  %v7501_v37 = vpop.f32.mrb[21].mxu0 }
 0x413   : > { %6000 = vrcp.f32 %v1951_v13  ;;  %v7476_v61 = vpop.eup %5986  ;;  %v1954_v48 = vpop.xlane.xlu1 %1953 }
 0x414   : > { %v1735_v24 = vpop.xlane.xlu0 %1734  ;;  %v5989_v9 = vpop.eup %5988  ;;  %v2009_v10 = vadd.f32 %v7476_v61, %v7474_v40  ;;  %6002 = vrcp.f32 %v1954_v48 }
 0x415   : > { %v1798_v59 = vsub.f32 %v7179_v2, %v1735_v24  ;;  %v1799_v11 = vsub.f32 %v7181_v35, %v1735_v24  ;;  %v2067_v34 = vmul.f32 %v5989_v9, %v7271_v60  ;;  %v2066_v15 = vmul.f32 %v5989_v9, %v7265_v29  ;;  %v7506_v9 = vpop.f32.mrb[22].mxu0 }
 0x416   : > { %v7486_v14 = vpop.eup %5990  ;;  %2010 = vadd.xlane.f32.xlu0 %v2009_v10 }
 0x417   : > { %v1924_v31 = vmul.f32 1.442695, %v1798_v59  ;;  %v1926_v39 = vmul.f32 1.442695, %v1799_v11  ;;  %v7488_v33 = vpop.eup %5992  ;;  %v2125_v35 = vpack.c.bf16 %v2067_v34, %v2065_v23  ;;  %v2124_v0 = vpack.c.bf16 %v2066_v15, %v2064_v19  ;;  %v7508_v59 = vpop.f32.mrb[23].mxu0 }
 0x418   : > { %v1957_v2 = vpop.xlane.xlu0 %1956  ;;  %v2018_v22 = vadd.f32 %v7488_v33, %v7486_v14  ;;  %v5995_v60 = vpop.eup %5994 }
 0x419   : > { %6004 = vpow2.f32 %v1924_v31  ;;  %2156 = vmatprep.subr.bf16.mxu1 %v2125_v35  ;;  %v2069_v8 = vmul.f32 %v5995_v60, %v7285_v57  ;;  %v2068_v13 = vmul.f32 %v5995_v60, %v7280_v21  ;;  %v7512_v11 = vpop.f32.mrb[24].mxu0 }
 0x41a   : > { %6006 = vpow2.f32 %v1926_v39  ;;  %2157 = vmatpush1.bf16.xpose.msra.mxu1 %v2124_v0  ;;  %2019 = vadd.xlane.f32.xlu1 %v2018_v22  ;;  %10391 = vst [vmem:[#allocation42_spill] sm:$0xff] %v7512_v11 }
 0x41b   : > { %v7492_v1 = vpop.eup %5996  ;;  %6008 = vrcp.f32 %v1957_v2  ;;  %v1960_v50 = vpop.xlane.xlu1 %1959 }
 0x41c   : > { %v7494_v29 = vpop.eup %5998  ;;  %6010 = vrcp.f32 %v1960_v50 }
 0x41d   : > { %v6001_v38 = vpop.eup %6000  ;;  %v2015_v5 = vadd.f32 %v7494_v29, %v7492_v1 }
 0x41e   : > { %v2071_v49 = vmul.f32 %v6001_v38, %v7293_v18  ;;  %v2070_v6 = vmul.f32 %v6001_v38, %v7287_v30  ;;  %v1963_v32 = vpop.xlane.xlu0 %1962  ;;  %v6003_v48 = vpop.eup %6002 }
 0x41f   : > { %2016 = vadd.xlane.f32.xlu0 %v2015_v5  ;;  %6012 = vrcp.f32 %v1963_v32  ;;  %v7516_v30 = vpop.f32.mrb[25].mxu0  ;;  %v2073_v34 = vmul.f32 %v6003_v48, %v7304_v27  ;;  %v2072_v31 = vmul.f32 %v6003_v48, %v7302_v26 }
 0x420   : > { %v2127_v20 = vpack.c.bf16 %v2071_v49, %v2069_v8  ;;  %v2126_v24 = vpack.c.bf16 %v2070_v6, %v2068_v13  ;;  %10392 = vst [vmem:[#allocation43_spill] sm:$0xff] %v7516_v30  ;;  %v7521_v19 = vpop.f32.mrb[26].mxu0 }
 0x421   : > { %10393 = vst [vmem:[#allocation44_spill] sm:$0xff] %v7521_v19  ;;  %v7526_v35 = vpop.f32.mrb[27].mxu0 }
 0x422   : > { %2158 = vmatprep.subr.bf16.mxu1 %v2127_v20  ;;  %10394 = vst [vmem:[#allocation45_spill] sm:$0xff] %v7526_v35  ;;  %v7528_v0 = vpop.f32.mrb[28].mxu0  ;;  %v581_v20 = vld [vmem:[%s10149_s4 + $0x88] sm:$0xff] }
 0x423   : > { %v7510_v57 = vpop.eup %6004  ;;  %2159 = vmatpush1.bf16.xpose.msra.mxu1 %v2126_v24  ;;  %v1966_v21 = vpop.xlane.xlu1 %1965  ;;  %10395 = vst [vmem:[#allocation46_spill] sm:$0xff] %v7528_v0 }
 0x424   : > { %v7514_v18 = vpop.eup %6006  ;;  %6014 = vrcp.f32 %v1966_v21  ;;  %v7530_v27 = vpop.f32.mrb[29].mxu0 }
 0x425   : > { %v6009_v10 = vpop.eup %6008  ;;  %v2021_v23 = vadd.f32 %v7514_v18, %v7510_v57  ;;  %10396 = vst [vmem:[#allocation47_spill] sm:$0xff] %v7530_v27  ;;  %v7535_v38 = vpop.f32.mrb[30].mxu0 }
 0x426   : > { %v2075_v15 = vmul.f32 %v6009_v10, %v7312_v3  ;;  %v2074_v39 = vmul.f32 %v6009_v10, %v7306_v55  ;;  %v1969_v2 = vpop.xlane.xlu0 %1968  ;;  %v6011_v22 = vpop.eup %6010  ;;  %v580_v3 = vld [vmem:[%s10149_s4 + $0x80] sm:$0xff]  ;;  %10397 = vst [vmem:[#allocation48_spill] sm:$0xff] %v7535_v38 }
 0x427   : > { %2022 = vadd.xlane.f32.xlu0 %v2021_v23  ;;  %6016 = vrcp.f32 %v1969_v2  ;;  %v7537_v55 = vpop.f32.mrb[31].mxu0  ;;  %v2077_v5 = vmul.f32 %v6011_v22, %v7323_v36 }
 0x428   : > { %v2129_v60 = vpack.c.bf16 %v2075_v15, %v2073_v34  ;;  %v2128_v50 = vpack.c.bf16 %v2074_v39, %v2072_v31  ;;  %10398 = vst [vmem:[#allocation49_spill] sm:$0xff] %v7537_v55  ;;  %v7541_v49 = vpop.f32.mrb[32].mxu0  ;;  %v583_v34 = vld [vmem:[%s10149_s4 + $0x98] sm:$0xff] }
 0x429   : > { %v6013_v26 = vpop.eup %6012  ;;  %v7543_v6 = vpop.f32.mrb[33].mxu0 }
 0x42a   : > { %2160 = vmatprep.subr.bf16.mxu1 %v2129_v60  ;;  %v2079_v8 = vmul.f32 %v6013_v26, %v7331_v42  ;;  %v2078_v24 = vmul.f32 %v6013_v26, %v7325_v62  ;;  %v7549_v48 = vpop.f32.mrb[34].mxu0  ;;  %v2076_v42 = vmul.f32 %v6011_v22, %v7321_v54 }
 0x42b   : > { %2161 = vmatpush1.bf16.xpose.msra.mxu1 %v2128_v50  ;;  %694 = vperm.xlu1 %5821, %v580_v3   ;;  %v1972_v13 = vpop.xlane.xlu1 %1971  ;;  %v7551_v21 = vpop.f32.mrb[35].mxu0  ;;  %v585_v50 = vld [vmem:[%s10149_s4 + $0xa8] sm:$0xff] }
 0x42c   : > { %v2131_v32 = vpack.c.bf16 %v2079_v8, %v2077_v5  ;;  %6018 = vrcp.f32 %v1972_v13  ;;  %v2130_v23 = vpack.c.bf16 %v2078_v24, %v2076_v42  ;;  %v7557_v31 = vpop.f32.mrb[36].mxu0  ;;  %v567_v42 = vld [vmem:[%s10149_s4 + $0x18] sm:$0xff] }
 0x42d   : > { %v7561_v2 = vpop.f32.mrb[37].mxu0 }
 0x42e   : > { %2162 = vmatprep.subr.bf16.mxu1 %v2131_v32  ;;  %v1975_v36 = vpop.xlane.xlu0 %1974  ;;  %v6015_v10 = vpop.eup %6014 }
 0x42f   : > { %6020 = vrcp.f32 %v1975_v36  ;;  %699 = vperm.xlu1 %5821, %v581_v20   ;;  %v2081_v62 = vmul.f32 %v6015_v10, %v7339_v7  ;;  %v7563_v22 = vpop.f32.mrb[38].mxu0 }
 0x430   : > { %v7569_v26 = vpop.f32.mrb[39].mxu0 }
 0x431   : > { %v6017_v15 = vpop.eup %6016  ;;  %v7571_v5 = vpop.f32.mrb[40].mxu0 }
 0x432   : > { %v2083_v39 = vmul.f32 %v6017_v15, %v7347_v41  ;;  %v2082_v3 = vmul.f32 %v6017_v15, %v7341_v47  ;;  %v2080_v41 = vmul.f32 %v6015_v10, %v7337_v56  ;;  %v7574_v8 = vpop.f32.mrb[41].mxu0  ;;  %v587_v47 = vld [vmem:[%s10149_s4 + $0xb8] sm:$0xff] }
 0x433   : > { %2163 = vmatpush1.bf16.xpose.msra.mxu1 %v2130_v23  ;;  %709 = vperm.xlu1 %5821, %v583_v34   ;;  %v1978_v54 = vpop.xlane.xlu1 %1977  ;;  %v7576_v32 = vpop.f32.mrb[42].mxu0 }
 0x434   : > { %v2133_v60 = vpack.c.bf16 %v2083_v39, %v2081_v62  ;;  %6022 = vrcp.f32 %v1978_v54  ;;  %v2132_v20 = vpack.c.bf16 %v2082_v3, %v2080_v41  ;;  %v7581_v24 = vpop.f32.mrb[43].mxu0  ;;  %v575_v54 = vld [vmem:[%s10149_s4 + $0x58] sm:$0xff]  ;;  %v10399_v3 = vld [vmem:[#allocation40_spill] sm:$0xff] }
 0x435   : > { %v7586_v56 = vpop.f32.mrb[44].mxu0 }
 0x436   : > { %2164 = vmatprep.subr.bf16.mxu1 %v2133_v60  ;;  %v1981_v7 = vpop.xlane.xlu0 %1980  ;;  %v6019_v13 = vpop.eup %6018 }
 0x437   : > { %6024 = vrcp.f32 %v1981_v7  ;;  %719 = vperm.xlu1 %5821, %v585_v50   ;;  %v2085_v10 = vmul.f32 %v6019_v13, %v7355_v51  ;;  %v7590_v34 = vpop.f32.mrb[45].mxu0  ;;  %v582_v51 = vld [vmem:[%s10149_s4 + $0x90] sm:$0xff]  ;;  %v2084_v7 = vmul.f32 %v6019_v13, %v10399_v3  ;;  %v10402_v13 = vld [vmem:[#allocation41_spill] sm:$0xff] }
 0x438   : > { %v7592_v62 = vpop.f32.mrb[46].mxu0 }
 0x439   : > { %v6021_v36 = vpop.eup %6020  ;;  %v7598_v50 = vpop.f32.mrb[47].mxu0 }
 0x43a   : > { %v2087_v23 = vmul.f32 %v6021_v36, %v7363_v46  ;;  %v2086_v60 = vmul.f32 %v6021_v36, %v7357_v52  ;;  %v584_v52 = vld [vmem:[%s10149_s4 + $0xa0] sm:$0xff]  ;;  %v10400_v36 = vld [vmem:[#allocation29_spill] sm:$0xff] }
 0x43b   : > { %2165 = vmatpush1.bf16.xpose.msra.mxu1 %v2132_v20  ;;  %729 = vperm.xlu1 %5821, %v587_v47   ;;  %v1984_v15 = vpop.xlane.xlu1 %1983 }
 0x43c   : > { %v2135_v39 = vpack.c.bf16 %v2087_v23, %v2085_v10  ;;  %6026 = vrcp.f32 %v1984_v15  ;;  %v2134_v20 = vpack.c.bf16 %v2086_v60, %v2084_v7  ;;  %v10401_v10 = vld [vmem:[#allocation30_spill] sm:$0xff]  ;;  %v10403_v60 = vld [vmem:[#allocation28_spill] sm:$0xff] }
 0x43d   : > { %629 = vperm.xlu0 %5820, %v567_v42  }
 0x43e   : > { %2166 = vmatprep.subr.bf16.mxu1 %v2135_v39  ;;  %v1987_v46 = vpop.xlane.xlu0 %1986  ;;  %v6023_v41 = vpop.eup %6022 }
 0x43f   : > { %6028 = vrcp.f32 %v1987_v46  ;;  %669 = vperm.xlu1 %5821, %v575_v54   ;;  %v2089_v42 = vmul.f32 %v6023_v41, %v10400_v36  ;;  %v586_v54 = vld [vmem:[%s10149_s4 + $0xb0] sm:$0xff] }
 0x441   : > { %704 = vperm.xlu0 %5820, %v582_v51   ;;  %v6025_v47 = vpop.eup %6024  ;;  %v2088_v51 = vmul.f32 %v6023_v41, %v10403_v60  ;;  %v10404_v60 = vld [vmem:[#allocation33_spill] sm:$0xff] }
 0x442   : > { %v2091_v23 = vmul.f32 %v6025_v47, %v10401_v10  ;;  %v2090_v3 = vmul.f32 %v6025_v47, %v10402_v13 }
 0x443   : > { %2167 = vmatpush1.bf16.xpose.msra.mxu1 %v2134_v20  ;;  %v1990_v15 = vpop.xlane.xlu1 %1989 }
 0x444   : > { %6030 = vrcp.f32 %v1990_v15  ;;  %v2137_v39 = vpack.c.bf16 %v2091_v23, %v2089_v42  ;;  %v2136_v20 = vpack.c.bf16 %v2090_v3, %v2088_v51  ;;  %v10405_v51 = vld [vmem:[#allocation32_spill] sm:$0xff] }
 0x445   : > { %714 = vperm.xlu0 %5820, %v584_v52   ;;  %v1993_v46 = vpop.xlane.xlu0 %1992  ;;  %v574_v52 = vld [vmem:[%s10149_s4 + $0x50] sm:$0xff] }
 0x446   : > { %2168 = vmatprep.subr.bf16.mxu1 %v2137_v39  ;;  %6032 = vrcp.f32 %v1993_v46  ;;  %v6027_v7 = vpop.eup %6026 }
 0x447   : > { %v2093_v47 = vmul.f32 %v6027_v7, %v7387_v16  ;;  %v2092_v13 = vmul.f32 %v6027_v7, %v7385_v43 }
 0x449   : > { %724 = vperm.xlu0 %5820, %v586_v54   ;;  %v6029_v36 = vpop.eup %6028 }
 0x44a   : > { %v2095_v42 = vmul.f32 %v6029_v36, %v7395_v28  ;;  %v2094_v15 = vmul.f32 %v6029_v36, %v7389_v58 }
 0x44b   : > { %2169 = vmatpush1.bf16.xpose.msra.mxu1 %v2136_v20  ;;  %v1996_v10 = vpop.xlane.xlu1 %1995 }
 0x44c   : > { %6034 = vrcp.f32 %v1996_v10  ;;  %v2139_v23 = vpack.c.bf16 %v2095_v42, %v2093_v47  ;;  %v2138_v46 = vpack.c.bf16 %v2094_v15, %v2092_v13  ;;  %v10406_v47 = vld [vmem:[#allocation31_spill] sm:$0xff]  ;;  %v10409_v15 = vld [vmem:[#allocation36_spill] sm:$0xff]  ;;  %v10410_v13 = vld [vmem:[#allocation34_spill] sm:$0xff] }
 0x44d   : > { %664 = vperm.xlu0 %5820, %v574_v52   ;;  %v1999_v41 = vpop.xlane.xlu0 %1998  ;;  %v10407_v10 = vld [vmem:[#allocation35_spill] sm:$0xff] }
 0x44e   : > { %v6031_v39 = vpop.eup %6030  ;;  %2170 = vmatprep.subr.bf16.mxu1 %v2139_v23  ;;  %6036 = vrcp.f32 %v1999_v41  ;;  %v10408_v41 = vld [vmem:[#allocation37_spill] sm:$0xff] }
 0x44f   : > { %v2097_v54 = vmul.f32 %v6031_v39, %v7403_v63  ;;  %v2096_v58 = vmul.f32 %v6031_v39, %v10406_v47 }
 0x450   : > { %v6033_v3 = vpop.eup %6032 }
 0x451   : > { %v2099_v16 = vmul.f32 %v6033_v3, %v10404_v60  ;;  %v2098_v20 = vmul.f32 %v6033_v3, %v10405_v51 }
 0x453   : > { %2171 = vmatpush1.bf16.xpose.msra.mxu1 %v2138_v46  ;;  %v2141_v28 = vpack.c.bf16 %v2099_v16, %v2097_v54  ;;  %v2140_v42 = vpack.c.bf16 %v2098_v20, %v2096_v58  ;;  %v2002_v3 = vpop.xlane.xlu1 %2001  ;;  %v10411_v58 = vld [vmem:[#allocation39_spill] sm:$0xff] }
 0x454   : > { %6038 = vrcp.f32 %v2002_v3 }
 0x455   : > { %2172 = vmatprep.subr.bf16.mxu1 %v2141_v28 }
 0x456   : > { %v6035_v52 = vpop.eup %6034 }
 0x457   : > { %v2101_v23 = vmul.f32 %v6035_v52, %v10407_v10  ;;  %v2100_v46 = vmul.f32 %v6035_v52, %v10410_v13  ;;  %v625_v16 = vpop.permute.xlu1 %624  ;;  %v10412_v10 = vld [vmem:[#allocation38_spill] sm:$0xff] }
 0x458   : > { %v6037_v36 = vpop.eup %6036 }
 0x459   : > { %v2103_v43 = vmul.f32 %v6037_v36, %v10408_v41  ;;  %v2102_v63 = vmul.f32 %v6037_v36, %v10409_v15 }
 0x45b   : > { %2173 = vmatpush1.bf16.xpose.msra.mxu1 %v2140_v42  ;;  %v2143_v7 = vpack.c.bf16 %v2103_v43, %v2101_v23  ;;  %v2142_v54 = vpack.c.bf16 %v2102_v63, %v2100_v46 }
 0x45d   : > { %2174 = vmatprep.subr.bf16.mxu1 %v2143_v7 }
 0x45e   : > { %v6039_v28 = vpop.eup %6038 }
 0x45f   : > { %v2105_v42 = vmul.f32 %v6039_v28, %v10411_v58  ;;  %v2104_v52 = vmul.f32 %v6039_v28, %v10412_v10 }
 0x463   : > { %2175 = vmatpush1.bf16.xpose.msra.mxu1 %v2142_v54 }
 0x497   : > { %v2008_v39 = vpop.xlane.xlu1 %2007 }
 0x49a   : > { %v2005_v60 = vpop.xlane.xlu0 %2004 }
 0x49b   : > { %6040 = vrcp.f32 %v2005_v60 }
 0x49c   : > { %6042 = vrcp.f32 %v2008_v39 }
 0x49f   : > { %v2014_v51 = vpop.xlane.xlu1 %2013 }
 0x4a3   : > { %v2011_v20 = vpop.xlane.xlu0 %2010 }
 0x4a4   : > { %6044 = vrcp.f32 %v2011_v20 }
 0x4a5   : > { %v6041_v47 = vpop.eup %6040  ;;  %6046 = vrcp.f32 %v2014_v51 }
 0x4a6   : > { %v2107_v36 = vmul.f32 %v6041_v47, %v7458_v12  ;;  %v2106_v23 = vmul.f32 %v6041_v47, %v7456_v44  ;;  %v6043_v13 = vpop.eup %6042 }
 0x4a7   : > { %v2020_v41 = vpop.xlane.xlu1 %2019  ;;  %v2109_v3 = vmul.f32 %v6043_v13, %v7450_v53  ;;  %v2108_v60 = vmul.f32 %v6043_v13, %v7448_v25  ;;  %v10415_v13 = vld [vmem:[#allocation10_spill] sm:$0xff] }
 0x4a8   : > { %v2145_v43 = vpack.c.bf16 %v2107_v36, %v2105_v42  ;;  %v2144_v7 = vpack.c.bf16 %v2106_v23, %v2104_v52 }
 0x4aa   : > { %2176 = vmatprep.subr.bf16.mxu1 %v2145_v43  ;;  %v10413_v43 = vld [vmem:[#allocation8_spill] sm:$0xff] }
 0x4ab   : > { %2177 = vmatpush1.bf16.xpose.msra.mxu1 %v2144_v7  ;;  %v695_v15 = vpop.permute.xlu1 %694  ;;  %v1090_v7 = vadd.f32 %v10413_v43, %v625_v16 }
 0x4ac   : > { %v2017_v63 = vpop.xlane.xlu0 %2016  ;;  %v7638_v39 = vadd.f32 %v7541_v49, %v695_v15  ;;  %v1162_v28 = vadd.f32 %v7543_v6, %v695_v15  ;;  %v10414_v15 = vld [vmem:[#allocation9_spill] sm:$0xff] }
 0x4ad   : > { %6048 = vrcp.f32 %v2017_v63  ;;  %v1092_v63 = vadd.f32 %v10414_v15, %v625_v16 }
 0x4ae   : > { %v6045_v46 = vpop.eup %6044  ;;  %6050 = vrcp.f32 %v2020_v41 }
 0x4af   : > { %v700_v54 = vpop.permute.xlu1 %699  ;;  %v2111_v12 = vmul.f32 %v6045_v46, %v7476_v61  ;;  %v2110_v44 = vmul.f32 %v6045_v46, %v7474_v40  ;;  %v6047_v40 = vpop.eup %6046 }
 0x4b0   : > { %v7642_v51 = vadd.f32 %v7549_v48, %v700_v54  ;;  %v1166_v20 = vadd.f32 %v7551_v21, %v700_v54  ;;  %v2113_v48 = vmul.f32 %v6047_v40, %v7470_v4  ;;  %v2112_v21 = vmul.f32 %v6047_v40, %v7468_v45  ;;  %v10416_v54 = vld [vmem:[#allocation11_spill] sm:$0xff] }
 0x4b1   : > { %v2147_v47 = vpack.c.bf16 %v2111_v12, %v2109_v3  ;;  %v2146_v58 = vpack.c.bf16 %v2110_v44, %v2108_v60 }
 0x4b2   : > { %v1334_v53 = vpack.c.bf16 %v7642_v51, %v7638_v39  ;;  %v1335_v61 = vpack.c.bf16 %v1166_v20, %v1162_v28 }
 0x4b3   : > { %2178 = vmatprep.subr.bf16.mxu1 %v2147_v47  ;;  %v710_v6 = vpop.permute.xlu1 %709 }
 0x4b4   : > { %v2023_v25 = vpop.xlane.xlu0 %2022  ;;  %2179 = vmatpush1.bf16.xpose.msra.mxu1 %v2146_v58  ;;  %2184 = vmatprep.mubr.bf16.mxu1 %v1335_v61  ;;  %v1174_v16 = vadd.f32 %v7563_v22, %v710_v6  ;;  %v1176_v51 = vadd.f32 %v7569_v26, %v710_v6 }
 0x4b5   : > { %6052 = vrcp.f32 %v2023_v25 }
 0x4b7   : > { %v6049_v49 = vpop.eup %6048  ;;  %v720_v4 = vpop.permute.xlu1 %719 }
 0x4b8   : > { %v2115_v42 = vmul.f32 %v6049_v49, %v7494_v29  ;;  %v2114_v36 = vmul.f32 %v6049_v49, %v7492_v1  ;;  %v6051_v41 = vpop.eup %6050 }
 0x4b9   : > { %v2117_v1 = vmul.f32 %v6051_v41, %v7488_v33  ;;  %v2116_v39 = vmul.f32 %v6051_v41, %v7486_v14  ;;  %v1184_v14 = vadd.f32 %v7576_v32, %v720_v4 }
 0x4ba   : > { %v2149_v10 = vpack.c.bf16 %v2115_v42, %v2113_v48  ;;  %v2148_v52 = vpack.c.bf16 %v2114_v36, %v2112_v21 }
 0x4bb   : > { %v730_v40 = vpop.permute.xlu1 %729 }
 0x4bc   : > { %2180 = vmatprep.subr.bf16.mxu1 %v2149_v10  ;;  %v630_v23 = vpop.permute.xlu0 %629  ;;  %v1194_v6 = vadd.f32 %v7592_v62, %v730_v40  ;;  %v1196_v48 = vadd.f32 %v7598_v50, %v730_v40 }
 0x4bd   : > { %v1094_v46 = vadd.f32 %v10415_v13, %v630_v23  ;;  %v1096_v3 = vadd.f32 %v10416_v54, %v630_v23  ;;  %2181 = vmatpush1.bf16.xpose.msra.mxu1 %v2148_v52 }
 0x4bf   : > { %v6053_v29 = vpop.eup %6052  ;;  %v1320_v12 = vpack.c.bf16 %v1094_v46, %v1090_v7  ;;  %v1321_v45 = vpack.c.bf16 %v1096_v3, %v1092_v63  ;;  %v670_v36 = vpop.permute.xlu1 %669 }
 0x4c0   : > { %v705_v60 = vpop.permute.xlu0 %704  ;;  %v2119_v44 = vmul.f32 %v6053_v29, %v7514_v18  ;;  %v2118_v28 = vmul.f32 %v6053_v29, %v7510_v57  ;;  %v1186_v57 = vadd.f32 %v7581_v24, %v720_v4 }
 0x4c1   : > { %v1170_v20 = vadd.f32 %v7557_v31, %v705_v60  ;;  %v1172_v47 = vadd.f32 %v7561_v2, %v705_v60  ;;  %2257 = vxpose.xlu1.c.b16.start.end [1/1] (short) %v1321_v45, 128  ;;  %2241 = vxpose.xlu0.c.b16.start.end [1/1] (short) %v1320_v12, 128 }
 0x4c2   : > { %v2151_v58 = vpack.c.bf16 %v2119_v44, %v2117_v1  ;;  %v2150_v61 = vpack.c.bf16 %v2118_v28, %v2116_v39 }
 0x4c3   : > { %v1337_v25 = vpack.c.bf16 %v1176_v51, %v1172_v47  ;;  %v1336_v33 = vpack.c.bf16 %v1174_v16, %v1170_v20 }
 0x4c4   : > { %2182 = vmatprep.subr.bf16.mxu1 %v2151_v58  ;;  %v715_v18 = vpop.permute.xlu0 %714 }
 0x4c5   : > { %v1180_v22 = vadd.f32 %v7571_v5, %v715_v18  ;;  %v1182_v26 = vadd.f32 %v7574_v8, %v715_v18  ;;  %2183 = vmatpush1.bf16.xpose.msra.mxu1 %v2150_v61  ;;  %v1134_v5 = vadd.f32 %v7506_v9, %v670_v36  ;;  %v1136_v8 = vadd.f32 %v7508_v59, %v670_v36 }
 0x4c7   : > { %v1338_v31 = vpack.c.bf16 %v1184_v14, %v1180_v22  ;;  %v1339_v2 = vpack.c.bf16 %v1186_v57, %v1182_v26 }
 0x4c8   : > { %v725_v49 = vpop.permute.xlu0 %724 }
 0x4c9   : > { %v1190_v42 = vadd.f32 %v7586_v56, %v725_v49  ;;  %v1192_v21 = vadd.f32 %v7590_v34, %v725_v49  ;;  %v10417_v56 = vmov 0  }
 0x4cb   : > { %v1340_v32 = vpack.c.bf16 %v1194_v6, %v1190_v42  ;;  %v1341_v10 = vpack.c.bf16 %v1196_v48, %v1192_v21 }
 0x4cc   : > { %2185 = vmatmul.mubr.bf16.vlgmr.msra.gmra.mrb[72].mxu1 %v1334_v53  ;;  %v665_v24 = vpop.permute.xlu0 %664 }
 0x4cd   : > { %v1130_v52 = vadd.f32 %v7496_v17, %v665_v24  ;;  %v1132_v23 = vadd.f32 %v7501_v37, %v665_v24  ;;  %2194 = vmatprep.mubr.bf16.mxu1 %v1337_v25 }
 0x4cf   : > { %v1328_v62 = vpack.c.bf16 %v1134_v5, %v1130_v52  ;;  %v1329_v50 = vpack.c.bf16 %v1136_v8, %v1132_v23 }
 0x4d1   : > { %2321 = vmatprep.subr.bf16.mxu1 %v1329_v50 }
 0x4d2   : > { %2322 = vmatpush1.bf16.msra.mxu1 %v1328_v62 }
 0x4d4   : > { %2195 = vmatmul.mubr.bf16.gmra.mrb[76].mxu1 %v1336_v33 }
 0x4d5   : > { %2204 = vmatprep.mubr.bf16.mxu1 %v1339_v2 }
 0x4dc   : > { %2205 = vmatmul.mubr.bf16.gmra.mrb[80].mxu1 %v1338_v31 }
 0x4dd   : > { %2214 = vmatprep.mubr.bf16.mxu1 %v1341_v10 }
 0x4e4   : > { %2215 = vmatmul.mubr.bf16.gmra.mrb[84].mxu1 %v1340_v32 }
 0x4e5   : > { %2353 = vmatprep.mubr.bf16.mxu1 %v10417_v56 }
 0x527   : > { %v2249_v34 = vpop.trf.xlu0  ;;  %v2265_v7 = vpop.trf.xlu1 }
 0x528   : > { %5697 = vmatmul.mubr.msk.bf16.vlgmr.msra.gmra.mrb[88].mxu1 %vm1398_vm1, %v2249_v34 }
 0x529   : > { %2363 = vmatprep.mubr.bf16.mxu1 %v10417_v56 }
 0x52b   : > { %v2250_v17 = vpop.trf.xlu0  ;;  %v2266_v15 = vpop.trf.xlu1 }
 0x52f   : > { %v2251_v37 = vpop.trf.xlu0  ;;  %v2267_v63 = vpop.trf.xlu1 }
 0x530   : > { %5698 = vmatmul.mubr.msk.bf16.gmra.mrb[92].mxu1 %vm1398_vm1, %v2250_v17 }
 0x531   : > { %2373 = vmatprep.mubr.bf16.mxu1 %v10417_v56 }
 0x533   : > { %v2252_v9 = vpop.trf.xlu0  ;;  %v2268_v13 = vpop.trf.xlu1 }
 0x537   : > { %v2253_v59 = vpop.trf.xlu0  ;;  %v2269_v46 = vpop.trf.xlu1 }
 0x538   : > { %5699 = vmatmul.mubr.msk.bf16.gmra.mrb[96].mxu1 %vm1398_vm1, %v2251_v37 }
 0x539   : > { %2383 = vmatprep.mubr.bf16.mxu1 %v10417_v56 }
 0x53b   : > { %v2254_v53 = vpop.trf.xlu0  ;;  %v2270_v54 = vpop.trf.xlu1 }
 0x53f   : > { %v2255_v41 = vpop.trf.xlu0  ;;  %v2271_v3 = vpop.trf.xlu1 }
 0x540   : > { %5700 = vmatmul.mubr.msk.bf16.gmra.mrb[100].mxu1 %vm1398_vm1, %v2252_v9 }
 0x541   : > { %2393 = vmatprep.mubr.bf16.mxu1 %v10417_v56 }
 0x543   : > { %v2256_v43 = vpop.trf.xlu0  ;;  %v2272_v4 = vpop.trf.xlu1 }
 0x548   : > { %5701 = vmatmul.mubr.msk.bf16.gmra.mrb[104].mxu1 %vm1398_vm1, %v2253_v59 }
 0x549   : > { %2403 = vmatprep.mubr.bf16.mxu1 %v10417_v56 }
 0x550   : > { %5702 = vmatmul.mubr.msk.bf16.gmra.mrb[108].mxu1 %vm1398_vm1, %v2254_v53 }
 0x551   : > { %2413 = vmatprep.mubr.bf16.mxu1 %v10417_v56 }
 0x558   : > { %5703 = vmatmul.mubr.msk.bf16.gmra.mrb[112].mxu1 %vm1398_vm1, %v2255_v41 }
 0x559   : > { %2423 = vmatprep.mubr.bf16.mxu1 %v10417_v56 }
 0x560   : > { %5704 = vmatmul.mubr.msk.bf16.gmra.mrb[116].mxu1 %vm1398_vm1, %v2256_v43 }
 0x561   : > { %2433 = vmatprep.mubr.bf16.mxu1 %v10417_v56 }
 0x568   : > { %5705 = vmatmul.mubr.msk.bf16.gmra.mrb[120].mxu1 %vm1398_vm1, %v2265_v7 }
 0x569   : > { %2443 = vmatprep.mubr.bf16.mxu1 %v10417_v56 }
 0x570   : > { %5706 = vmatmul.mubr.msk.bf16.gmra.mrb[124].mxu1 %vm1398_vm1, %v2266_v15 }
 0x571   : > { %2453 = vmatprep.mubr.bf16.mxu1 %v10417_v56 }
 0x578   : > { %5707 = vmatmul.mubr.msk.bf16.gmra.mrb[128].mxu1 %vm1398_vm1, %v2267_v63 }
 0x579   : > { %2463 = vmatprep.mubr.bf16.mxu1 %v10417_v56 }
 0x580   : > { %5708 = vmatmul.mubr.msk.bf16.gmra.mrb[132].mxu1 %vm1398_vm1, %v2268_v13 }
 0x581   : > { %2473 = vmatprep.mubr.bf16.mxu1 %v10417_v56 }
 0x588   : > { %5709 = vmatmul.mubr.msk.bf16.gmra.mrb[136].mxu1 %vm1398_vm1, %v2269_v46 }
 0x589   : > { %2483 = vmatprep.mubr.bf16.mxu1 %v10417_v56 }
 0x590   : > { %5710 = vmatmul.mubr.msk.bf16.gmra.mrb[140].mxu1 %vm1398_vm1, %v2270_v54 }
 0x591   : > { %2493 = vmatprep.mubr.bf16.mxu1 %v10417_v56 }
 0x598   : > { %5711 = vmatmul.mubr.msk.bf16.gmra.mrb[144].mxu1 %vm1398_vm1, %v2271_v3 }
 0x599   : > { %2503 = vmatprep.mubr.bf16.mxu1 %v10417_v56 }
 0x59f   : > { %v7706_v29 = vpop.f32.mrb[72].mxu1 }
 0x5a0   : > { %10418 = vst [vmem:[#allocation40_spill] sm:$0xff] %v7706_v29  ;;  %v7708_v12 = vpop.f32.mrb[73].mxu1  ;;  %5712 = vmatmul.mubr.msk.bf16.gmra.mrb[148].mxu1 %vm1398_vm1, %v2272_v4 }
 0x5a1   : > { %10419 = vst [vmem:[#allocation29_spill] sm:$0xff] %v7708_v12  ;;  %v7710_v45 = vpop.f32.mrb[74].mxu1 }
 0x5a2   : > { %10420 = vst [vmem:[#allocation30_spill] sm:$0xff] %v7710_v45  ;;  %v7715_v1 = vpop.f32.mrb[75].mxu1 }
 0x5a3   : > { %10421 = vst [vmem:[#allocation41_spill] sm:$0xff] %v7715_v1 }
 0x5a7   : > { %v7719_v39 = vpop.f32.mrb[76].mxu1 }
 0x5a8   : > { %10422 = vst [vmem:[#allocation28_spill] sm:$0xff] %v7719_v39  ;;  %v7721_v28 = vpop.f32.mrb[77].mxu1 }
 0x5a9   : > { %10423 = vst [vmem:[#allocation33_spill] sm:$0xff] %v7721_v28  ;;  %v7723_v16 = vpop.f32.mrb[78].mxu1 }
 0x5aa   : > { %10424 = vst [vmem:[#allocation32_spill] sm:$0xff] %v7723_v16  ;;  %v7727_v20 = vpop.f32.mrb[79].mxu1 }
 0x5ab   : > { %10425 = vst [vmem:[#allocation31_spill] sm:$0xff] %v7727_v20 }
 0x5af   : > { %v7731_v58 = vpop.f32.mrb[80].mxu1 }
 0x5b0   : > { %10426 = vst [vmem:[#allocation35_spill] sm:$0xff] %v7731_v58  ;;  %v7733_v61 = vpop.f32.mrb[81].mxu1 }
 0x5b1   : > { %10427 = vst [vmem:[#allocation37_spill] sm:$0xff] %v7733_v61  ;;  %v7735_v25 = vpop.f32.mrb[82].mxu1 }
 0x5b2   : > { %10428 = vst [vmem:[#allocation36_spill] sm:$0xff] %v7735_v25  ;;  %v7739_v40 = vpop.f32.mrb[83].mxu1 }
 0x5b3   : > { %10429 = vst [vmem:[#allocation34_spill] sm:$0xff] %v7739_v40 }
 0x5b7   : > { %v7743_v14 = vpop.f32.mrb[84].mxu1 }
 0x5b8   : > { %10430 = vst [vmem:[#allocation39_spill] sm:$0xff] %v7743_v14  ;;  %v7745_v57 = vpop.f32.mrb[85].mxu1 }
 0x5b9   : > { %10431 = vst [vmem:[#allocation38_spill] sm:$0xff] %v7745_v57  ;;  %v7747_v22 = vpop.f32.mrb[86].mxu1 }
 0x5ba   : > { %10432 = vst [vmem:[#allocation8_spill] sm:$0xff] %v7747_v22  ;;  %v7751_v31 = vpop.f32.mrb[87].mxu1 }
 0x5bb   : > { %10433 = vst [vmem:[#allocation9_spill] sm:$0xff] %v7751_v31 }
 0x5fb   : > { %v7755_v49 = vpop.f32.mrb[88].mxu1 }
 0x5fc   : > { %v7757_v6 = vpop.f32.mrb[89].mxu1 }
 0x5fd   : > { %v2514_v48 = vmax.f32 %v7755_v49, %v7757_v6  ;;  %v7761_v42 = vpop.f32.mrb[90].mxu1 }
 0x5fe   : > { %v7763_v21 = vpop.f32.mrb[91].mxu1 }
 0x5ff   : > { %v2517_v36 = vmax.f32 %v7761_v42, %v7763_v21  ;;  %2515 = vmax.xlane.f32.xlu0 %v2514_v48 }
 0x601   : > { %2518 = vmax.xlane.f32.xlu1 %v2517_v36 }
 0x603   : > { %v7767_v32 = vpop.f32.mrb[92].mxu1 }
 0x604   : > { %v7769_v10 = vpop.f32.mrb[93].mxu1 }
 0x605   : > { %v2520_v24 = vmax.f32 %v7767_v32, %v7769_v10  ;;  %v7773_v5 = vpop.f32.mrb[94].mxu1 }
 0x606   : > { %v7775_v8 = vpop.f32.mrb[95].mxu1 }
 0x607   : > { %v2523_v52 = vmax.f32 %v7773_v5, %v7775_v8  ;;  %2521 = vmax.xlane.f32.xlu0 %v2520_v24 }
 0x60b   : > { %2524 = vmax.xlane.f32.xlu0 %v2523_v52  ;;  %v7779_v23 = vpop.f32.mrb[96].mxu1 }
 0x60c   : > { %v7781_v62 = vpop.f32.mrb[97].mxu1 }
 0x60d   : > { %v2526_v50 = vmax.f32 %v7779_v23, %v7781_v62  ;;  %v7785_v34 = vpop.f32.mrb[98].mxu1 }
 0x60e   : > { %v7787_v17 = vpop.f32.mrb[99].mxu1 }
 0x60f   : > { %v2529_v37 = vmax.f32 %v7785_v34, %v7787_v17  ;;  %2527 = vmax.xlane.f32.xlu1 %v2526_v50 }
 0x611   : > { %2530 = vmax.xlane.f32.xlu0 %v2529_v37 }
 0x613   : > { %v7791_v9 = vpop.f32.mrb[100].mxu1 }
 0x614   : > { %v7793_v59 = vpop.f32.mrb[101].mxu1 }
 0x615   : > { %v2532_v53 = vmax.f32 %v7791_v9, %v7793_v59  ;;  %v7797_v41 = vpop.f32.mrb[102].mxu1 }
 0x616   : > { %v7799_v43 = vpop.f32.mrb[103].mxu1 }
 0x617   : > { %v2535_v7 = vmax.f32 %v7797_v41, %v7799_v43  ;;  %2533 = vmax.xlane.f32.xlu1 %v2532_v53 }
 0x619   : > { %2536 = vmax.xlane.f32.xlu0 %v2535_v7 }
 0x61b   : > { %v7803_v15 = vpop.f32.mrb[104].mxu1 }
 0x61c   : > { %v7805_v63 = vpop.f32.mrb[105].mxu1 }
 0x61d   : > { %v2538_v13 = vmax.f32 %v7803_v15, %v7805_v63  ;;  %v7809_v46 = vpop.f32.mrb[106].mxu1 }
 0x61e   : > { %v7811_v54 = vpop.f32.mrb[107].mxu1 }
 0x61f   : > { %v2541_v3 = vmax.f32 %v7809_v46, %v7811_v54  ;;  %2539 = vmax.xlane.f32.xlu1 %v2538_v13 }
 0x621   : > { %2542 = vmax.xlane.f32.xlu0 %v2541_v3 }
 0x623   : > { %v7815_v4 = vpop.f32.mrb[108].mxu1 }
 0x624   : > { %v7817_v48 = vpop.f32.mrb[109].mxu1 }
 0x625   : > { %v2544_v36 = vmax.f32 %v7815_v4, %v7817_v48  ;;  %v7821_v24 = vpop.f32.mrb[110].mxu1 }
 0x626   : > { %v7823_v52 = vpop.f32.mrb[111].mxu1 }
 0x627   : > { %v2547_v50 = vmax.f32 %v7821_v24, %v7823_v52  ;;  %2545 = vmax.xlane.f32.xlu1 %v2544_v36 }
 0x629   : > { %2548 = vmax.xlane.f32.xlu0 %v2547_v50 }
 0x62b   : > { %v7827_v37 = vpop.f32.mrb[112].mxu1 }
 0x62c   : > { %v7829_v53 = vpop.f32.mrb[113].mxu1 }
 0x62d   : > { %v2550_v7 = vmax.f32 %v7827_v37, %v7829_v53  ;;  %v7833_v13 = vpop.f32.mrb[114].mxu1 }
 0x62e   : > { %v7835_v3 = vpop.f32.mrb[115].mxu1 }
 0x62f   : > { %v2553_v26 = vmax.f32 %v7833_v13, %v7835_v3  ;;  %2551 = vmax.xlane.f32.xlu1 %v2550_v7 }
 0x631   : > { %2554 = vmax.xlane.f32.xlu0 %v2553_v26 }
 0x633   : > { %v7839_v2 = vpop.f32.mrb[116].mxu1 }
 0x634   : > { %v7841_v36 = vpop.f32.mrb[117].mxu1 }
 0x635   : > { %v2556_v50 = vmax.f32 %v7839_v2, %v7841_v36  ;;  %v7845_v33 = vpop.f32.mrb[118].mxu1 }
 0x636   : > { %v7847_v18 = vpop.f32.mrb[119].mxu1 }
 0x637   : > { %v2559_v51 = vmax.f32 %v7845_v33, %v7847_v18  ;;  %2557 = vmax.xlane.f32.xlu1 %v2556_v50 }
 0x639   : > { %2560 = vmax.xlane.f32.xlu0 %v2559_v51 }
 0x63b   : > { %v7851_v47 = vpop.f32.mrb[120].mxu1 }
 0x63c   : > { %v7853_v7 = vpop.f32.mrb[121].mxu1 }
 0x63d   : > { %v2562_v26 = vmax.f32 %v7851_v47, %v7853_v7  ;;  %v7857_v60 = vpop.f32.mrb[122].mxu1 }
 0x63e   : > { %v7859_v44 = vpop.f32.mrb[123].mxu1 }
 0x63f   : > { %v2565_v14 = vmax.f32 %v7857_v60, %v7859_v44  ;;  %2563 = vmax.xlane.f32.xlu1 %v2562_v26 }
 0x641   : > { %2566 = vmax.xlane.f32.xlu0 %v2565_v14 }
 0x643   : > { %v7863_v22 = vpop.f32.mrb[124].mxu1 }
 0x644   : > { %v7865_v50 = vpop.f32.mrb[125].mxu1 }
 0x645   : > { %v2568_v51 = vmax.f32 %v7863_v22, %v7865_v50  ;;  %v7869_v57 = vpop.f32.mrb[126].mxu1 }
 0x646   : > { %10434 = vst [vmem:[#allocation10_spill] sm:$0xff] %v7869_v57  ;;  %v7871_v31 = vpop.f32.mrb[127].mxu1 }
 0x647   : > { %10435 = vst [vmem:[#allocation11_spill] sm:$0xff] %v7871_v31  ;;  %v2571_v58 = vmax.f32 %v7869_v57, %v7871_v31  ;;  %2569 = vmax.xlane.f32.xlu1 %v2568_v51  ;;  %v5838_v31 = vld [vmem:[%s10148_s3 + $0x70] sm:$0xff]  }
 0x649   : > { %2572 = vmax.xlane.f32.xlu0 %v2571_v58 }
 0x64b   : > { %v7875_v25 = vpop.f32.mrb[128].mxu1 }
 0x64c   : > { %10436 = vst [vmem:[#allocation50_spill] sm:$0xff] %v7875_v25  ;;  %v7877_v26 = vpop.f32.mrb[129].mxu1 }
 0x64d   : > { %10437 = vst [vmem:[#allocation51_spill] sm:$0xff] %v7877_v26  ;;  %v2574_v14 = vmax.f32 %v7875_v25, %v7877_v26  ;;  %v7881_v61 = vpop.f32.mrb[130].mxu1 }
 0x64e   : > { %10438 = vst [vmem:[#allocation52_spill] sm:$0xff] %v7881_v61  ;;  %v7883_v40 = vpop.f32.mrb[131].mxu1 }
 0x64f   : > { %10439 = vst [vmem:[#allocation53_spill] sm:$0xff] %v7883_v40  ;;  %v2577_v39 = vmax.f32 %v7881_v61, %v7883_v40  ;;  %2575 = vmax.xlane.f32.xlu1 %v2574_v14 }
 0x651   : > { %2578 = vmax.xlane.f32.xlu0 %v2577_v39 }
 0x653   : > { %v7887_v16 = vpop.f32.mrb[132].mxu1 }
 0x654   : > { %10440 = vst [vmem:[#allocation54_spill] sm:$0xff] %v7887_v16  ;;  %v7889_v51 = vpop.f32.mrb[133].mxu1 }
 0x655   : > { %10441 = vst [vmem:[#allocation55_spill] sm:$0xff] %v7889_v51  ;;  %v2580_v58 = vmax.f32 %v7887_v16, %v7889_v51  ;;  %v7893_v28 = vpop.f32.mrb[134].mxu1  ;;  %v5836_v51 = vld [vmem:[%s10148_s3 + $0x60] sm:$0xff]  }
 0x656   : > { %10442 = vst [vmem:[#allocation56_spill] sm:$0xff] %v7893_v28  ;;  %v7895_v20 = vpop.f32.mrb[135].mxu1  ;;  %5669 = vmatmul.mubr.msk.bf16.gmra.mrb[48].mxu0 %vm972_vm0, %v5836_v51 }
 0x657   : > { %10443 = vst [vmem:[#allocation57_spill] sm:$0xff] %v7895_v20  ;;  %v2583_v29 = vmax.f32 %v7893_v28, %v7895_v20  ;;  %2581 = vmax.xlane.f32.xlu1 %v2580_v58  ;;  %1207 = vmatprep.mubr.bf16.mxu0 %v10417_v56 }
 0x659   : > { %2584 = vmax.xlane.f32.xlu0 %v2583_v29  ;;  %v5837_v29 = vld [vmem:[%s10148_s3 + $0x68] sm:$0xff]  }
 0x65b   : > { %v7899_v45 = vpop.f32.mrb[136].mxu1 }
 0x65c   : > { %10444 = vst [vmem:[#allocation58_spill] sm:$0xff] %v7899_v45  ;;  %v7901_v14 = vpop.f32.mrb[137].mxu1 }
 0x65d   : > { %10445 = vst [vmem:[#allocation59_spill] sm:$0xff] %v7901_v14  ;;  %v2586_v39 = vmax.f32 %v7899_v45, %v7901_v14  ;;  %v7905_v12 = vpop.f32.mrb[138].mxu1 }
 0x65e   : > { %v7907_v1 = vpop.f32.mrb[139].mxu1  ;;  %5670 = vmatmul.mubr.msk.bf16.gmra.mrb[52].mxu0 %vm972_vm0, %v5837_v29 }
 0x65f   : > { %2587 = vmax.xlane.f32.xlu1 %v2586_v39  ;;  %1217 = vmatprep.mubr.bf16.mxu0 %v10417_v56 }
 0x663   : > { %v7911_v0 = vpop.f32.mrb[140].mxu1 }
 0x664   : > { %v7913_v55 = vpop.f32.mrb[141].mxu1 }
 0x665   : > { %v7917_v58 = vpop.f32.mrb[142].mxu1 }
 0x666   : > { %v7919_v38 = vpop.f32.mrb[143].mxu1  ;;  %5671 = vmatmul.mubr.msk.bf16.gmra.mrb[56].mxu0 %vm972_vm0, %v5838_v31 }
 0x667   : > { %1227 = vmatprep.mubr.bf16.mxu0 %v10417_v56 }
 0x66b   : > { %v7923_v11 = vpop.f32.mrb[144].mxu1 }
 0x66c   : > { %v7925_v39 = vpop.f32.mrb[145].mxu1 }
 0x66d   : > { %v7929_v35 = vpop.f32.mrb[146].mxu1 }
 0x66e   : > { %v7931_v19 = vpop.f32.mrb[147].mxu1 }
 0x673   : > { %v7935_v14 = vpop.f32.mrb[148].mxu1 }
 0x674   : > { %v7937_v45 = vpop.f32.mrb[149].mxu1 }
 0x675   : > { %v7941_v20 = vpop.f32.mrb[150].mxu1 }
 0x676   : > { %v7943_v28 = vpop.f32.mrb[151].mxu1 }
 0x68c   : > { %v2516_v30 = vpop.xlane.xlu0 %2515 }
 0x68d   : > { %v2610_v16 = vsub.f32 %v7755_v49, %v2516_v30  ;;  %v2611_v27 = vsub.f32 %v7757_v6, %v2516_v30 }
 0x68e   : > { %v2519_v40 = vpop.xlane.xlu1 %2518 }
 0x68f   : > { %v2674_v61 = vmul.f32 1.442695, %v2610_v16  ;;  %v2676_v26 = vmul.f32 1.442695, %v2611_v27  ;;  %v2612_v51 = vsub.f32 %v7761_v42, %v2519_v40  ;;  %v2613_v25 = vsub.f32 %v7763_v21, %v2519_v40  ;;  %v5839_v40 = vld [vmem:[%s10148_s3 + $0x78] sm:$0xff]  }
 0x690   : > { %5672 = vmatmul.mubr.msk.bf16.gmra.mrb[60].mxu0 %vm972_vm0, %v5839_v40 }
 0x691   : > { %6054 = vpow2.f32 %v2674_v61  ;;  %v2678_v29 = vmul.f32 1.442695, %v2612_v51  ;;  %v2680_v57 = vmul.f32 1.442695, %v2613_v25  ;;  %1237 = vmatprep.mubr.bf16.mxu0 %v10417_v56 }
 0x692   : > { %6056 = vpow2.f32 %v2676_v26 }
 0x693   : > { %6058 = vpow2.f32 %v2678_v29 }
 0x694   : > { %6060 = vpow2.f32 %v2680_v57  ;;  %v2522_v30 = vpop.xlane.xlu0 %2521 }
 0x695   : > { %v2614_v27 = vsub.f32 %v7767_v32, %v2522_v30  ;;  %v2615_v16 = vsub.f32 %v7769_v10, %v2522_v30 }
 0x697   : > { %v2682_v49 = vmul.f32 1.442695, %v2614_v27  ;;  %v2684_v61 = vmul.f32 1.442695, %v2615_v16 }
 0x698   : > { %v2525_v6 = vpop.xlane.xlu0 %2524 }
 0x699   : > { %6062 = vpow2.f32 %v2682_v49  ;;  %v2616_v25 = vsub.f32 %v7773_v5, %v2525_v6  ;;  %v2617_v31 = vsub.f32 %v7775_v8, %v2525_v6 }
 0x69a   : > { %6064 = vpow2.f32 %v2684_v61 }
 0x69b   : > { %v7974_v57 = vpop.eup %6054  ;;  %v2686_v42 = vmul.f32 1.442695, %v2616_v25  ;;  %v2688_v21 = vmul.f32 1.442695, %v2617_v31  ;;  %v10446_v25 = vmax.f32 %v7911_v0, %v7913_v55 }
 0x69c   : > { %v7977_v32 = vpop.eup %6056  ;;  %v2528_v10 = vpop.xlane.xlu1 %2527 }
 0x69d   : > { %v7979_v26 = vpop.eup %6058  ;;  %6066 = vpow2.f32 %v2686_v42  ;;  %v2618_v51 = vsub.f32 %v7779_v23, %v2528_v10  ;;  %v2619_v5 = vsub.f32 %v7781_v62, %v2528_v10  ;;  %v2802_v8 = vadd.f32 %v7977_v32, %v7974_v57 }
 0x69e   : > { %v7985_v29 = vpop.eup %6060  ;;  %6068 = vpow2.f32 %v2688_v21  ;;  %v2531_v30 = vpop.xlane.xlu0 %2530  ;;  %v10447_v10 = vmax.f32 %v7905_v12, %v7907_v1 }
 0x69f   : > { %v2690_v27 = vmul.f32 1.442695, %v2618_v51  ;;  %v2692_v16 = vmul.f32 1.442695, %v2619_v5  ;;  %2803 = vadd.xlane.f32.xlu1 %v2802_v8  ;;  %v2620_v40 = vsub.f32 %v7785_v34, %v2531_v30  ;;  %v2621_v49 = vsub.f32 %v7787_v17, %v2531_v30 }
 0x6a0   : > { %v2805_v61 = vadd.f32 %v7985_v29, %v7979_v26 }
 0x6a1   : > { %6070 = vpow2.f32 %v2690_v27  ;;  %v2694_v23 = vmul.f32 1.442695, %v2620_v40  ;;  %v2696_v62 = vmul.f32 1.442695, %v2621_v49 }
 0x6a2   : > { %6072 = vpow2.f32 %v2692_v16  ;;  %2806 = vadd.xlane.f32.xlu0 %v2805_v61 }
 0x6a3   : > { %v7991_v6 = vpop.eup %6062  ;;  %6074 = vpow2.f32 %v2694_v23  ;;  %2593 = vmax.xlane.f32.xlu1 %v10446_v25  ;;  %v10448_v23 = vmax.f32 %v7923_v11, %v7925_v39 }
 0x6a4   : > { %v7996_v31 = vpop.eup %6064  ;;  %6076 = vpow2.f32 %v2696_v62  ;;  %v2534_v34 = vpop.xlane.xlu1 %2533 }
 0x6a5   : > { %v2622_v17 = vsub.f32 %v7791_v9, %v2534_v34  ;;  %v2623_v42 = vsub.f32 %v7793_v59, %v2534_v34  ;;  %v2808_v21 = vadd.f32 %v7996_v31, %v7991_v6 }
 0x6a6   : > { %2590 = vmax.xlane.f32.xlu0 %v10447_v10  ;;  %v2537_v51 = vpop.xlane.xlu0 %2536 }
 0x6a7   : > { %v8005_v5 = vpop.eup %6066  ;;  %v2698_v8 = vmul.f32 1.442695, %v2622_v17  ;;  %v2700_v30 = vmul.f32 1.442695, %v2623_v42  ;;  %2809 = vadd.xlane.f32.xlu1 %v2808_v21  ;;  %v2624_v27 = vsub.f32 %v7797_v41, %v2537_v51  ;;  %v2625_v16 = vsub.f32 %v7799_v43, %v2537_v51 }
 0x6a8   : > { %v8009_v9 = vpop.eup %6068 }
 0x6a9   : > { %6078 = vpow2.f32 %v2698_v8  ;;  %v2702_v59 = vmul.f32 1.442695, %v2624_v27  ;;  %v2704_v40 = vmul.f32 1.442695, %v2625_v16  ;;  %v2811_v49 = vadd.f32 %v8009_v9, %v8005_v5 }
 0x6aa   : > { %6080 = vpow2.f32 %v2700_v30  ;;  %v10449_v8 = vmax.f32 %v7917_v58, %v7919_v38 }
 0x6ab   : > { %v8013_v61 = vpop.eup %6070  ;;  %6082 = vpow2.f32 %v2702_v59  ;;  %2599 = vmax.xlane.f32.xlu1 %v10448_v23  ;;  %2812 = vadd.xlane.f32.xlu0 %v2811_v49 }
 0x6ac   : > { %v8018_v41 = vpop.eup %6072  ;;  %6084 = vpow2.f32 %v2704_v40  ;;  %v2540_v43 = vpop.xlane.xlu1 %2539  ;;  %v10450_v40 = vmax.f32 %v7935_v14, %v7937_v45 }
 0x6ad   : > { %v8020_v62 = vpop.eup %6074  ;;  %v2626_v25 = vsub.f32 %v7803_v15, %v2540_v43  ;;  %v2627_v34 = vsub.f32 %v7805_v63, %v2540_v43  ;;  %v2814_v17 = vadd.f32 %v8018_v41, %v8013_v61 }
 0x6ae   : > { %v8026_v42 = vpop.eup %6076  ;;  %v2543_v21 = vpop.xlane.xlu0 %2542 }
 0x6af   : > { %v2706_v10 = vmul.f32 1.442695, %v2626_v25  ;;  %v2708_v51 = vmul.f32 1.442695, %v2627_v34  ;;  %2815 = vadd.xlane.f32.xlu1 %v2814_v17  ;;  %2596 = vmax.xlane.f32.xlu0 %v10449_v8  ;;  %v2628_v30 = vsub.f32 %v7809_v46, %v2543_v21  ;;  %v2629_v27 = vsub.f32 %v7811_v54, %v2543_v21 }
 0x6b0   : > { %v2817_v16 = vadd.f32 %v8026_v42, %v8020_v62 }
 0x6b1   : > { %6086 = vpow2.f32 %v2706_v10  ;;  %v2710_v15 = vmul.f32 1.442695, %v2628_v30  ;;  %v2712_v63 = vmul.f32 1.442695, %v2629_v27 }
 0x6b2   : > { %6088 = vpow2.f32 %v2708_v51  ;;  %v10451_v51 = vmax.f32 %v7929_v35, %v7931_v19 }
 0x6b3   : > { %v8035_v59 = vpop.eup %6078  ;;  %6090 = vpow2.f32 %v2710_v15  ;;  %2605 = vmax.xlane.f32.xlu1 %v10450_v40  ;;  %2818 = vadd.xlane.f32.xlu0 %v2817_v16 }
 0x6b4   : > { %v8040_v49 = vpop.eup %6080  ;;  %6092 = vpow2.f32 %v2712_v63  ;;  %v2546_v46 = vpop.xlane.xlu1 %2545 }
 0x6b5   : > { %v8042_v54 = vpop.eup %6082  ;;  %v2630_v23 = vsub.f32 %v7815_v4, %v2546_v46  ;;  %v2631_v43 = vsub.f32 %v7817_v48, %v2546_v46  ;;  %v2820_v25 = vadd.f32 %v8040_v49, %v8035_v59 }
 0x6b6   : > { %v8048_v34 = vpop.eup %6084  ;;  %v2549_v17 = vpop.xlane.xlu0 %2548 }
 0x6b7   : > { %v2714_v21 = vmul.f32 1.442695, %v2630_v23  ;;  %v2716_v10 = vmul.f32 1.442695, %v2631_v43  ;;  %2821 = vadd.xlane.f32.xlu1 %v2820_v25  ;;  %2602 = vmax.xlane.f32.xlu0 %v10451_v51  ;;  %v2632_v8 = vsub.f32 %v7821_v24, %v2549_v17  ;;  %v2633_v30 = vsub.f32 %v7823_v52, %v2549_v17 }
 0x6b8   : > { %v2823_v27 = vadd.f32 %v8048_v34, %v8042_v54 }
 0x6b9   : > { %6094 = vpow2.f32 %v2714_v21  ;;  %v2718_v4 = vmul.f32 1.442695, %v2632_v8  ;;  %v2720_v48 = vmul.f32 1.442695, %v2633_v30  ;;  %v10452_v21 = vmax.f32 %v7941_v20, %v7943_v28 }
 0x6ba   : > { %6096 = vpow2.f32 %v2716_v10 }
 0x6bb   : > { %v8057_v15 = vpop.eup %6086  ;;  %6098 = vpow2.f32 %v2718_v4  ;;  %2824 = vadd.xlane.f32.xlu0 %v2823_v27 }
 0x6bc   : > { %v8059_v63 = vpop.eup %6088  ;;  %6100 = vpow2.f32 %v2720_v48  ;;  %v2552_v16 = vpop.xlane.xlu1 %2551 }
 0x6bd   : > { %v8061_v40 = vpop.eup %6090  ;;  %v2634_v24 = vsub.f32 %v7827_v37, %v2552_v16  ;;  %v2635_v52 = vsub.f32 %v7829_v53, %v2552_v16  ;;  %v2826_v46 = vadd.f32 %v8059_v63, %v8057_v15 }
 0x6be   : > { %v8067_v23 = vpop.eup %6092  ;;  %v2555_v43 = vpop.xlane.xlu0 %2554 }
 0x6bf   : > { %v2722_v25 = vmul.f32 1.442695, %v2634_v24  ;;  %v2724_v17 = vmul.f32 1.442695, %v2635_v52  ;;  %2827 = vadd.xlane.f32.xlu1 %v2826_v46  ;;  %2608 = vmax.xlane.f32.xlu0 %v10452_v21  ;;  %v2636_v10 = vsub.f32 %v7833_v13, %v2555_v43  ;;  %v2637_v51 = vsub.f32 %v7835_v3, %v2555_v43 }
 0x6c0   : > { %v2829_v8 = vadd.f32 %v8067_v23, %v8061_v40 }
 0x6c1   : > { %6102 = vpow2.f32 %v2722_v25  ;;  %v2726_v37 = vmul.f32 1.442695, %v2636_v10  ;;  %v2728_v53 = vmul.f32 1.442695, %v2637_v51 }
 0x6c2   : > { %6104 = vpow2.f32 %v2724_v17 }
 0x6c3   : > { %v8076_v30 = vpop.eup %6094  ;;  %6106 = vpow2.f32 %v2726_v37  ;;  %2830 = vadd.xlane.f32.xlu0 %v2829_v8 }
 0x6c4   : > { %v8078_v4 = vpop.eup %6096  ;;  %6108 = vpow2.f32 %v2728_v53  ;;  %v2558_v48 = vpop.xlane.xlu1 %2557 }
 0x6c5   : > { %v8080_v27 = vpop.eup %6098  ;;  %v2638_v13 = vsub.f32 %v7839_v2, %v2558_v48  ;;  %v2639_v3 = vsub.f32 %v7841_v36, %v2558_v48  ;;  %v2832_v16 = vadd.f32 %v8078_v4, %v8076_v30 }
 0x6c6   : > { %v8086_v24 = vpop.eup %6100  ;;  %v2561_v52 = vpop.xlane.xlu0 %2560 }
 0x6c7   : > { %v2730_v46 = vmul.f32 1.442695, %v2638_v13  ;;  %v2732_v43 = vmul.f32 1.442695, %v2639_v3  ;;  %2833 = vadd.xlane.f32.xlu1 %v2832_v16  ;;  %v2640_v25 = vsub.f32 %v7845_v33, %v2561_v52  ;;  %v2641_v17 = vsub.f32 %v7847_v18, %v2561_v52 }
 0x6c8   : > { %v2835_v21 = vadd.f32 %v8086_v24, %v8080_v27 }
 0x6c9   : > { %6110 = vpow2.f32 %v2730_v46  ;;  %v2734_v2 = vmul.f32 1.442695, %v2640_v25  ;;  %v2736_v10 = vmul.f32 1.442695, %v2641_v17 }
 0x6ca   : > { %6112 = vpow2.f32 %v2732_v43  ;;  %2836 = vadd.xlane.f32.xlu0 %v2835_v21 }
 0x6cb   : > { %v8092_v36 = vpop.eup %6102  ;;  %6114 = vpow2.f32 %v2734_v2 }
 0x6cc   : > { %v8094_v51 = vpop.eup %6104  ;;  %6116 = vpow2.f32 %v2736_v10  ;;  %v2564_v37 = vpop.xlane.xlu1 %2563 }
 0x6cd   : > { %v8096_v53 = vpop.eup %6106  ;;  %v2642_v33 = vsub.f32 %v7851_v47, %v2564_v37  ;;  %v2643_v18 = vsub.f32 %v7853_v7, %v2564_v37  ;;  %v2838_v8 = vadd.f32 %v8094_v51, %v8092_v36 }
 0x6ce   : > { %v8102_v48 = vpop.eup %6108  ;;  %v2567_v13 = vpop.xlane.xlu0 %2566 }
 0x6cf   : > { %v2738_v3 = vmul.f32 1.442695, %v2642_v33  ;;  %v2740_v16 = vmul.f32 1.442695, %v2643_v18  ;;  %2839 = vadd.xlane.f32.xlu1 %v2838_v8  ;;  %v2644_v52 = vsub.f32 %v7857_v60, %v2567_v13  ;;  %v2645_v46 = vsub.f32 %v7859_v44, %v2567_v13  ;;  %v10455_v13 = vld [vmem:[#allocation10_spill] sm:$0xff] }
 0x6d0   : > { %v2841_v43 = vadd.f32 %v8102_v48, %v8096_v53 }
 0x6d1   : > { %6118 = vpow2.f32 %v2738_v3  ;;  %v2742_v47 = vmul.f32 1.442695, %v2644_v52  ;;  %v2744_v25 = vmul.f32 1.442695, %v2645_v46 }
 0x6d2   : > { %6120 = vpow2.f32 %v2740_v16  ;;  %2842 = vadd.xlane.f32.xlu0 %v2841_v43  ;;  %v10456_v16 = vld [vmem:[#allocation11_spill] sm:$0xff] }
 0x6d3   : > { %v8108_v7 = vpop.eup %6110  ;;  %6122 = vpow2.f32 %v2742_v47 }
 0x6d4   : > { %10453 = vst [vmem:[#allocation60_spill] sm:$0xff] %v8108_v7  ;;  %v8110_v17 = vpop.eup %6112  ;;  %6124 = vpow2.f32 %v2744_v25  ;;  %v2570_v21 = vpop.xlane.xlu1 %2569 }
 0x6d5   : > { %v8112_v2 = vpop.eup %6114  ;;  %v2646_v60 = vsub.f32 %v7863_v22, %v2570_v21  ;;  %v2647_v44 = vsub.f32 %v7865_v50, %v2570_v21  ;;  %v2844_v10 = vadd.f32 %v8110_v17, %v8108_v7 }
 0x6d6   : > { %10454 = vst [vmem:[#allocation61_spill] sm:$0xff] %v8112_v2  ;;  %v8118_v37 = vpop.eup %6116  ;;  %v2573_v33 = vpop.xlane.xlu0 %2572 }
 0x6d7   : > { %v2746_v18 = vmul.f32 1.442695, %v2646_v60  ;;  %v2748_v8 = vmul.f32 1.442695, %v2647_v44  ;;  %2845 = vadd.xlane.f32.xlu1 %v2844_v10  ;;  %v2648_v3 = vsub.f32 %v10455_v13, %v2573_v33  ;;  %v2649_v52 = vsub.f32 %v10456_v16, %v2573_v33  ;;  %v10460_v60 = vld [vmem:[#allocation50_spill] sm:$0xff]  ;;  %v10461_v10 = vld [vmem:[#allocation51_spill] sm:$0xff] }
 0x6d8   : > { %v2847_v46 = vadd.f32 %v8118_v37, %v8112_v2 }
 0x6d9   : > { %6126 = vpow2.f32 %v2746_v18  ;;  %v2750_v22 = vmul.f32 1.442695, %v2648_v3  ;;  %v2752_v43 = vmul.f32 1.442695, %v2649_v52  ;;  %v10463_v52 = vld [vmem:[#allocation52_spill] sm:$0xff] }
 0x6da   : > { %6128 = vpow2.f32 %v2748_v8  ;;  %2848 = vadd.xlane.f32.xlu0 %v2847_v46 }
 0x6db   : > { %v8124_v50 = vpop.eup %6118  ;;  %6130 = vpow2.f32 %v2750_v22  ;;  %v10464_v22 = vld [vmem:[#allocation53_spill] sm:$0xff] }
 0x6dc   : > { %10457 = vst [vmem:[#allocation10_spill] sm:$0xff] %v8124_v50  ;;  %v8126_v47 = vpop.eup %6120  ;;  %6132 = vpow2.f32 %v2752_v43  ;;  %v2576_v25 = vpop.xlane.xlu1 %2575 }
 0x6dd   : > { %10458 = vst [vmem:[#allocation11_spill] sm:$0xff] %v8126_v47  ;;  %v8128_v21 = vpop.eup %6122  ;;  %v2650_v44 = vsub.f32 %v10460_v60, %v2576_v25  ;;  %v2651_v33 = vsub.f32 %v10461_v10, %v2576_v25  ;;  %v2850_v18 = vadd.f32 %v8126_v47, %v8124_v50 }
 0x6de   : > { %10459 = vst [vmem:[#allocation62_spill] sm:$0xff] %v8128_v21  ;;  %v8134_v13 = vpop.eup %6124  ;;  %v2579_v8 = vpop.xlane.xlu0 %2578 }
 0x6df   : > { %10462 = vst [vmem:[#allocation50_spill] sm:$0xff] %v8134_v13  ;;  %v2754_v3 = vmul.f32 1.442695, %v2650_v44  ;;  %v2756_v16 = vmul.f32 1.442695, %v2651_v33  ;;  %2851 = vadd.xlane.f32.xlu1 %v2850_v18  ;;  %v2652_v46 = vsub.f32 %v10463_v52, %v2579_v8  ;;  %v2653_v43 = vsub.f32 %v10464_v22, %v2579_v8  ;;  %v10465_v18 = vld [vmem:[#allocation54_spill] sm:$0xff] }
 0x6e0   : > { %v2853_v7 = vadd.f32 %v8134_v13, %v8128_v21  ;;  %v10466_v8 = vld [vmem:[#allocation55_spill] sm:$0xff]  ;;  %v10468_v21 = vld [vmem:[#allocation57_spill] sm:$0xff] }
 0x6e1   : > { %6134 = vpow2.f32 %v2754_v3  ;;  %v2758_v60 = vmul.f32 1.442695, %v2652_v46  ;;  %v2760_v2 = vmul.f32 1.442695, %v2653_v43 }
 0x6e2   : > { %6136 = vpow2.f32 %v2756_v16  ;;  %2854 = vadd.xlane.f32.xlu0 %v2853_v7 }
 0x6e3   : > { %v8140_v25 = vpop.eup %6126  ;;  %6138 = vpow2.f32 %v2758_v60  ;;  %v10467_v60 = vld [vmem:[#allocation56_spill] sm:$0xff] }
 0x6e4   : > { %v8142_v10 = vpop.eup %6128  ;;  %6140 = vpow2.f32 %v2760_v2  ;;  %v2582_v44 = vpop.xlane.xlu1 %2581 }
 0x6e5   : > { %v8144_v33 = vpop.eup %6130  ;;  %v2654_v52 = vsub.f32 %v10465_v18, %v2582_v44  ;;  %v2655_v22 = vsub.f32 %v10466_v8, %v2582_v44  ;;  %v2856_v3 = vadd.f32 %v8142_v10, %v8140_v25 }
 0x6e6   : > { %v8150_v46 = vpop.eup %6132  ;;  %v2585_v16 = vpop.xlane.xlu0 %2584 }
 0x6e7   : > { %v2762_v7 = vmul.f32 1.442695, %v2654_v52  ;;  %v2764_v43 = vmul.f32 1.442695, %v2655_v22  ;;  %2857 = vadd.xlane.f32.xlu1 %v2856_v3  ;;  %v2656_v50 = vsub.f32 %v10467_v60, %v2585_v16  ;;  %v2657_v2 = vsub.f32 %v10468_v21, %v2585_v16  ;;  %v10471_v3 = vld [vmem:[#allocation58_spill] sm:$0xff]  ;;  %v10472_v21 = vld [vmem:[#allocation59_spill] sm:$0xff] }
 0x6e8   : > { %v2859_v13 = vadd.f32 %v8150_v46, %v8144_v33 }
 0x6e9   : > { %6142 = vpow2.f32 %v2762_v7  ;;  %v2766_v18 = vmul.f32 1.442695, %v2656_v50  ;;  %v2768_v47 = vmul.f32 1.442695, %v2657_v2 }
 0x6ea   : > { %6144 = vpow2.f32 %v2764_v43  ;;  %2860 = vadd.xlane.f32.xlu0 %v2859_v13 }
 0x6eb   : > { %v8156_v44 = vpop.eup %6134  ;;  %6146 = vpow2.f32 %v2766_v18 }
 0x6ec   : > { %10469 = vst [vmem:[#allocation51_spill] sm:$0xff] %v8156_v44  ;;  %v8158_v8 = vpop.eup %6136  ;;  %6148 = vpow2.f32 %v2768_v47  ;;  %v2588_v52 = vpop.xlane.xlu1 %2587 }
 0x6ed   : > { %v8160_v22 = vpop.eup %6138  ;;  %v2658_v60 = vsub.f32 %v10471_v3, %v2588_v52  ;;  %v2659_v16 = vsub.f32 %v10472_v21, %v2588_v52  ;;  %v2862_v7 = vadd.f32 %v8158_v8, %v8156_v44 }
 0x6ee   : > { %10470 = vst [vmem:[#allocation52_spill] sm:$0xff] %v8160_v22  ;;  %v8166_v50 = vpop.eup %6140 }
 0x6ef   : > { %10473 = vst [vmem:[#allocation53_spill] sm:$0xff] %v8166_v50  ;;  %v2770_v43 = vmul.f32 1.442695, %v2658_v60  ;;  %v2772_v13 = vmul.f32 1.442695, %v2659_v16  ;;  %2863 = vadd.xlane.f32.xlu1 %v2862_v7  ;;  %v2865_v2 = vadd.f32 %v8166_v50, %v8160_v22 }
 0x6f1   : > { %6150 = vpow2.f32 %v2770_v43  ;;  %2866 = vadd.xlane.f32.xlu0 %v2865_v2  ;;  %v5840_v2 = vld [vmem:[%s10148_s3 + $0x80] sm:$0xff]  }
 0x6f2   : > { %6152 = vpow2.f32 %v2772_v13  ;;  %v568_v13 = vld [vmem:[%s10149_s4 + $0x20] sm:$0xff]  ;;  %5673 = vmatmul.mubr.msk.bf16.gmra.mrb[64].mxu0 %vm972_vm0, %v5840_v2 }
 0x6f3   : > { %v8170_v47 = vpop.eup %6142  ;;  %1247 = vmatprep.mubr.bf16.mxu0 %v10417_v56 }
 0x6f4   : > { %10474 = vst [vmem:[#allocation54_spill] sm:$0xff] %v8170_v47  ;;  %v8172_v18 = vpop.eup %6144 }
 0x6f5   : > { %10475 = vst [vmem:[#allocation55_spill] sm:$0xff] %v8172_v18  ;;  %v8174_v3 = vpop.eup %6146  ;;  %v2868_v52 = vadd.f32 %v8172_v18, %v8170_v47 }
 0x6f6   : > { %10476 = vst [vmem:[#allocation56_spill] sm:$0xff] %v8174_v3  ;;  %v8178_v21 = vpop.eup %6148 }
 0x6f7   : > { %10477 = vst [vmem:[#allocation57_spill] sm:$0xff] %v8178_v21  ;;  %2869 = vadd.xlane.f32.xlu1 %v2868_v52  ;;  %v2871_v60 = vadd.f32 %v8178_v21, %v8174_v3  ;;  %v5841_v52 = vld [vmem:[%s10148_s3 + $0x88] sm:$0xff]  }
 0x6f9   : > { %2872 = vadd.xlane.f32.xlu0 %v2871_v60 }
 0x6fa   : > { %5674 = vmatmul.mubr.msk.bf16.gmra.mrb[68].mxu0 %vm972_vm0, %v5841_v52 }
 0x6fb   : > { %v8182_v16 = vpop.eup %6150  ;;  %1257 = vmatprep.mubr.bf16.mxu0 %v10417_v56 }
 0x6fc   : > { %10478 = vst [vmem:[#allocation58_spill] sm:$0xff] %v8182_v16  ;;  %v8184_v7 = vpop.eup %6152 }
 0x6fd   : > { %10479 = vst [vmem:[#allocation59_spill] sm:$0xff] %v8184_v7  ;;  %v2874_v43 = vadd.f32 %v8184_v7, %v8182_v16 }
 0x6ff   : > { %2875 = vadd.xlane.f32.xlu1 %v2874_v43 }
 0x710   : > { %634 = vperm.xlu1 %5821, %v568_v13  }
 0x72c   : > { %v2804_v60 = vpop.xlane.xlu1 %2803 }
 0x72d   : > { %6154 = vrcp.f32 %v2804_v60 }
 0x72f   : > { %v2807_v43 = vpop.xlane.xlu0 %2806 }
 0x730   : > { %6156 = vrcp.f32 %v2807_v43  ;;  %v2594_v13 = vpop.xlane.xlu1 %2593 }
 0x731   : > { %v2662_v16 = vsub.f32 %v7911_v0, %v2594_v13  ;;  %v2663_v7 = vsub.f32 %v7913_v55, %v2594_v13 }
 0x733   : > { %v2778_v2 = vmul.f32 1.442695, %v2662_v16  ;;  %v2780_v47 = vmul.f32 1.442695, %v2663_v7  ;;  %v2591_v3 = vpop.xlane.xlu0 %2590 }
 0x734   : > { %v2660_v21 = vsub.f32 %v7905_v12, %v2591_v3  ;;  %v2661_v18 = vsub.f32 %v7907_v1, %v2591_v3  ;;  %v2810_v44 = vpop.xlane.xlu1 %2809 }
 0x735   : > { %6158 = vpow2.f32 %v2778_v2 }
 0x736   : > { %6160 = vpow2.f32 %v2780_v47  ;;  %v2774_v52 = vmul.f32 1.442695, %v2660_v21  ;;  %v2776_v22 = vmul.f32 1.442695, %v2661_v18 }
 0x737   : > { %v6155_v60 = vpop.eup %6154  ;;  %6162 = vrcp.f32 %v2810_v44 }
 0x738   : > { %6164 = vpow2.f32 %v2774_v52  ;;  %v2600_v43 = vpop.xlane.xlu1 %2599  ;;  %v2813_v50 = vpop.xlane.xlu0 %2812  ;;  %v2931_v12 = vmul.f32 %v6155_v60, %v7977_v32  ;;  %v2930_v7 = vmul.f32 %v6155_v60, %v7974_v57 }
 0x739   : > { %6166 = vpow2.f32 %v2776_v22  ;;  %v2666_v0 = vsub.f32 %v7923_v11, %v2600_v43  ;;  %v2667_v55 = vsub.f32 %v7925_v39, %v2600_v43 }
 0x73a   : > { %v6157_v16 = vpop.eup %6156  ;;  %6168 = vrcp.f32 %v2813_v50 }
 0x73b   : > { %v2786_v1 = vmul.f32 1.442695, %v2666_v0  ;;  %v2788_v3 = vmul.f32 1.442695, %v2667_v55  ;;  %v2933_v47 = vmul.f32 %v6157_v16, %v7985_v29  ;;  %v2932_v18 = vmul.f32 %v6157_v16, %v7979_v26 }
 0x73c   : > { %v2816_v21 = vpop.xlane.xlu1 %2815  ;;  %v2597_v44 = vpop.xlane.xlu0 %2596 }
 0x73d   : > { %6170 = vpow2.f32 %v2786_v1  ;;  %v2664_v22 = vsub.f32 %v7917_v58, %v2597_v44  ;;  %v2665_v11 = vsub.f32 %v7919_v38, %v2597_v44  ;;  %v2995_v39 = vpack.c.bf16 %v2933_v47, %v2931_v12 }
 0x73e   : > { %6172 = vpow2.f32 %v2788_v3  ;;  %v2994_v50 = vpack.c.bf16 %v2932_v18, %v2930_v7 }
 0x73f   : > { %v8213_v13 = vpop.eup %6158  ;;  %v2782_v32 = vmul.f32 1.442695, %v2664_v22  ;;  %v2784_v2 = vmul.f32 1.442695, %v2665_v11  ;;  %3026 = vmatprep.subr.bf16.mxu0 %v2995_v39  ;;  %6174 = vrcp.f32 %v2816_v21 }
 0x740   : > { %v8215_v29 = vpop.eup %6160  ;;  %3027 = vmatpush1.bf16.xpose.msra.mxu0 %v2994_v50  ;;  %v2606_v26 = vpop.xlane.xlu1 %2605 }
 0x741   : > { %v2819_v52 = vpop.xlane.xlu0 %2818  ;;  %v6163_v57 = vpop.eup %6162  ;;  %6176 = vpow2.f32 %v2782_v32  ;;  %v2670_v58 = vsub.f32 %v7935_v14, %v2606_v26  ;;  %v2671_v38 = vsub.f32 %v7937_v45, %v2606_v26  ;;  %v2880_v60 = vadd.f32 %v8215_v29, %v8213_v13 }
 0x742   : > { %v8221_v43 = vpop.eup %6164  ;;  %6178 = vpow2.f32 %v2784_v2  ;;  %v2935_v14 = vmul.f32 %v6163_v57, %v7996_v31  ;;  %v2934_v44 = vmul.f32 %v6163_v57, %v7991_v6 }
 0x743   : > { %v8223_v0 = vpop.eup %6166  ;;  %v2794_v55 = vmul.f32 1.442695, %v2670_v58  ;;  %v2796_v16 = vmul.f32 1.442695, %v2671_v38  ;;  %6180 = vrcp.f32 %v2819_v52  ;;  %2881 = vadd.xlane.f32.xlu1 %v2880_v60 }
 0x744   : > { %v6169_v12 = vpop.eup %6168  ;;  %v2877_v1 = vadd.f32 %v8223_v0, %v8221_v43  ;;  %v2822_v45 = vpop.xlane.xlu1 %2821 }
 0x745   : > { %v2603_v3 = vpop.xlane.xlu0 %2602  ;;  %6182 = vpow2.f32 %v2794_v55  ;;  %v2937_v21 = vmul.f32 %v6169_v12, %v8009_v9  ;;  %v2936_v7 = vmul.f32 %v6169_v12, %v8005_v5 }
 0x746   : > { %v2668_v47 = vsub.f32 %v7929_v35, %v2603_v3  ;;  %v2669_v18 = vsub.f32 %v7931_v19, %v2603_v3  ;;  %6184 = vpow2.f32 %v2796_v16  ;;  %2878 = vadd.xlane.f32.xlu0 %v2877_v1 }
 0x747   : > { %v8233_v22 = vpop.eup %6170  ;;  %v2997_v50 = vpack.c.bf16 %v2937_v21, %v2935_v14  ;;  %6186 = vrcp.f32 %v2822_v45  ;;  %v2996_v35 = vpack.c.bf16 %v2936_v7, %v2934_v44 }
 0x748   : > { %v2790_v11 = vmul.f32 1.442695, %v2668_v47  ;;  %v2792_v39 = vmul.f32 1.442695, %v2669_v18  ;;  %v8235_v31 = vpop.eup %6172 }
 0x749   : > { %v2825_v32 = vpop.xlane.xlu0 %2824  ;;  %3028 = vmatprep.subr.bf16.mxu0 %v2997_v50  ;;  %v2886_v19 = vadd.f32 %v8235_v31, %v8233_v22  ;;  %v6175_v9 = vpop.eup %6174 }
 0x74a   : > { %6188 = vpow2.f32 %v2790_v11  ;;  %3029 = vmatpush1.bf16.xpose.msra.mxu0 %v2996_v35  ;;  %v2939_v60 = vmul.f32 %v6175_v9, %v8018_v41  ;;  %v2938_v16 = vmul.f32 %v6175_v9, %v8013_v61 }
 0x74b   : > { %6190 = vpow2.f32 %v2792_v39  ;;  %v8239_v6 = vpop.eup %6176  ;;  %2887 = vadd.xlane.f32.xlu1 %v2886_v19 }
 0x74c   : > { %6192 = vrcp.f32 %v2825_v32  ;;  %v8241_v5 = vpop.eup %6178  ;;  %v2828_v52 = vpop.xlane.xlu1 %2827 }
 0x74d   : > { %v2609_v2 = vpop.xlane.xlu0 %2608  ;;  %v6181_v26 = vpop.eup %6180  ;;  %v2883_v38 = vadd.f32 %v8241_v5, %v8239_v6  ;;  %6194 = vrcp.f32 %v2828_v52 }
 0x74e   : > { %v2672_v57 = vsub.f32 %v7941_v20, %v2609_v2  ;;  %v2673_v58 = vsub.f32 %v7943_v28, %v2609_v2  ;;  %v2941_v55 = vmul.f32 %v6181_v26, %v8026_v42  ;;  %v2940_v12 = vmul.f32 %v6181_v26, %v8020_v62  ;;  %v5842_v62 = vld [vmem:[%s10148_s3 + $0x90] sm:$0xff]  }
 0x74f   : > { %v8251_v1 = vpop.eup %6182  ;;  %2884 = vadd.xlane.f32.xlu0 %v2883_v38  ;;  %5675 = vmatmul.mubr.msk.bf16.gmra.mrb[72].mxu0 %vm972_vm0, %v5842_v62 }
 0x750   : > { %v2798_v3 = vmul.f32 1.442695, %v2672_v57  ;;  %v2800_v14 = vmul.f32 1.442695, %v2673_v58  ;;  %v8253_v45 = vpop.eup %6184  ;;  %v2999_v28 = vpack.c.bf16 %v2941_v55, %v2939_v60  ;;  %v2998_v47 = vpack.c.bf16 %v2940_v12, %v2938_v16  ;;  %1267 = vmatprep.mubr.bf16.mxu0 %v10417_v56 }
 0x751   : > { %v2831_v20 = vpop.xlane.xlu0 %2830  ;;  %v2892_v41 = vadd.f32 %v8253_v45, %v8251_v1  ;;  %v6187_v42 = vpop.eup %6186 }
 0x752   : > { %6196 = vpow2.f32 %v2798_v3  ;;  %3030 = vmatprep.subr.bf16.mxu0 %v2999_v28  ;;  %v2943_v11 = vmul.f32 %v6187_v42, %v8040_v49  ;;  %v2942_v50 = vmul.f32 %v6187_v42, %v8035_v59  ;;  %v5843_v49 = vld [vmem:[%s10148_s3 + $0x98] sm:$0xff]   ;;  %v5844_v28 = vld [vmem:[%s10148_s3 + $0xa0] sm:$0xff]   ;;  %v589_v42 = vld [vmem:[%s10149_s4 + $0xc8] sm:$0xff] }
 0x753   : > { %6198 = vpow2.f32 %v2800_v14  ;;  %3031 = vmatpush1.bf16.xpose.msra.mxu0 %v2998_v47  ;;  %2893 = vadd.xlane.f32.xlu1 %v2892_v41 }
 0x754   : > { %v8257_v61 = vpop.eup %6188  ;;  %6200 = vrcp.f32 %v2831_v20  ;;  %v2834_v21 = vpop.xlane.xlu1 %2833 }
 0x755   : > { %v8262_v18 = vpop.eup %6190  ;;  %6202 = vrcp.f32 %v2834_v21 }
 0x756   : > { %v6193_v44 = vpop.eup %6192  ;;  %v2889_v7 = vadd.f32 %v8262_v18, %v8257_v61 }
 0x757   : > { %v2945_v39 = vmul.f32 %v6193_v44, %v8048_v34  ;;  %v2944_v32 = vmul.f32 %v6193_v44, %v8042_v54  ;;  %v2837_v35 = vpop.xlane.xlu0 %2836  ;;  %v6195_v2 = vpop.eup %6194  ;;  %5676 = vmatmul.mubr.msk.bf16.gmra.mrb[76].mxu0 %vm972_vm0, %v5843_v49 }
 0x758   : > { %2890 = vadd.xlane.f32.xlu0 %v2889_v7  ;;  %6204 = vrcp.f32 %v2837_v35  ;;  %v2947_v57 = vmul.f32 %v6195_v2, %v8059_v63  ;;  %v2946_v38 = vmul.f32 %v6195_v2, %v8057_v15  ;;  %1277 = vmatprep.mubr.bf16.mxu0 %v10417_v56  ;;  %v588_v63 = vld [vmem:[%s10149_s4 + $0xc0] sm:$0xff] }
 0x759   : > { %v3001_v19 = vpack.c.bf16 %v2945_v39, %v2943_v11  ;;  %v3000_v9 = vpack.c.bf16 %v2944_v32, %v2942_v50 }
 0x75b   : > { %3032 = vmatprep.subr.bf16.mxu0 %v3001_v19 }
 0x75c   : > { %v8275_v26 = vpop.eup %6196  ;;  %3033 = vmatpush1.bf16.xpose.msra.mxu0 %v3000_v9  ;;  %v2840_v59 = vpop.xlane.xlu1 %2839 }
 0x75d   : > { %v8277_v34 = vpop.eup %6198  ;;  %6206 = vrcp.f32 %v2840_v59  ;;  %v593_v59 = vld [vmem:[%s10149_s4 + $0xe8] sm:$0xff] }
 0x75e   : > { %v6201_v54 = vpop.eup %6200  ;;  %v2895_v52 = vadd.f32 %v8277_v34, %v8275_v26 }
 0x75f   : > { %v2949_v58 = vmul.f32 %v6201_v54, %v8067_v23  ;;  %v2948_v60 = vmul.f32 %v6201_v54, %v8061_v40  ;;  %v2843_v55 = vpop.xlane.xlu0 %2842  ;;  %v6203_v16 = vpop.eup %6202  ;;  %5677 = vmatmul.mubr.msk.bf16.gmra.mrb[80].mxu0 %vm972_vm0, %v5844_v28 }
 0x760   : > { %2896 = vadd.xlane.f32.xlu0 %v2895_v52  ;;  %6208 = vrcp.f32 %v2843_v55  ;;  %v2951_v23 = vmul.f32 %v6203_v16, %v8078_v4  ;;  %v8292_v40 = vpop.f32.mrb[48].mxu0  ;;  %1287 = vmatprep.mubr.bf16.mxu0 %v10417_v56  ;;  %v2950_v44 = vmul.f32 %v6203_v16, %v8076_v30  ;;  %v5845_v30 = vld [vmem:[%s10148_s3 + $0xa8] sm:$0xff]  }
 0x761   : > { %v3003_v12 = vpack.c.bf16 %v2949_v58, %v2947_v57  ;;  %v3002_v3 = vpack.c.bf16 %v2948_v60, %v2946_v38  ;;  %v8297_v47 = vpop.f32.mrb[49].mxu0 }
 0x762   : > { %v6205_v14 = vpop.eup %6204  ;;  %v8304_v4 = vpop.f32.mrb[50].mxu0 }
 0x763   : > { %3034 = vmatprep.subr.bf16.mxu0 %v3003_v12  ;;  %v2953_v15 = vmul.f32 %v6205_v14, %v8086_v24  ;;  %v2952_v62 = vmul.f32 %v6205_v14, %v8080_v27  ;;  %v8306_v24 = vpop.f32.mrb[51].mxu0  ;;  %v591_v27 = vld [vmem:[%s10149_s4 + $0xd8] sm:$0xff] }
 0x764   : > { %3035 = vmatpush1.bf16.xpose.msra.mxu0 %v3002_v3  ;;  %734 = vperm.xlu1 %5821, %v588_v63   ;;  %v2846_v20 = vpop.xlane.xlu1 %2845  ;;  %v8313_v50 = vpop.f32.mrb[52].mxu0  ;;  %v569_v3 = vld [vmem:[%s10149_s4 + $0x28] sm:$0xff] }
 0x765   : > { %v3005_v41 = vpack.c.bf16 %v2953_v15, %v2951_v23  ;;  %6210 = vrcp.f32 %v2846_v20  ;;  %v3004_v11 = vpack.c.bf16 %v2952_v62, %v2950_v44  ;;  %v8317_v19 = vpop.f32.mrb[53].mxu0  ;;  %v10481_v44 = vld [vmem:[#allocation60_spill] sm:$0xff] }
 0x766   : > { %v8322_v49 = vpop.f32.mrb[54].mxu0 }
 0x767   : > { %3036 = vmatprep.subr.bf16.mxu0 %v3005_v41  ;;  %v2849_v21 = vpop.xlane.xlu0 %2848  ;;  %v6207_v7 = vpop.eup %6206  ;;  %5678 = vmatmul.mubr.msk.bf16.gmra.mrb[84].mxu0 %vm972_vm0, %v5845_v30  ;;  %v577_v41 = vld [vmem:[%s10149_s4 + $0x68] sm:$0xff] }
 0x768   : > { %6212 = vrcp.f32 %v2849_v21  ;;  %739 = vperm.xlu1 %5821, %v589_v42   ;;  %v2955_v32 = vmul.f32 %v6207_v7, %v8094_v51  ;;  %v8328_v51 = vpop.f32.mrb[55].mxu0  ;;  %v2954_v57 = vmul.f32 %v6207_v7, %v8092_v36  ;;  %v10480_v42 = vld [vmem:[#allocation61_spill] sm:$0xff] }
 0x76a   : > { %v6209_v39 = vpop.eup %6208 }
 0x76b   : > { %v2957_v35 = vmul.f32 %v6209_v39, %v8102_v48  ;;  %v2956_v54 = vmul.f32 %v6209_v39, %v8096_v53  ;;  %v8331_v48 = vpop.f32.mrb[56].mxu0  ;;  %v595_v53 = vld [vmem:[%s10149_s4 + $0xf8] sm:$0xff] }
 0x76c   : > { %3037 = vmatpush1.bf16.xpose.msra.mxu0 %v3004_v11  ;;  %749 = vperm.xlu1 %5821, %v591_v27   ;;  %v2852_v9 = vpop.xlane.xlu1 %2851  ;;  %v8334_v58 = vpop.f32.mrb[57].mxu0 }
 0x76d   : > { %v3007_v2 = vpack.c.bf16 %v2957_v35, %v2955_v32  ;;  %6214 = vrcp.f32 %v2852_v9  ;;  %v8336_v60 = vpop.f32.mrb[58].mxu0  ;;  %v3006_v55 = vpack.c.bf16 %v2956_v54, %v2954_v57  ;;  %v592_v32 = vld [vmem:[%s10149_s4 + $0xe0] sm:$0xff]  ;;  %v10482_v35 = vld [vmem:[#allocation11_spill] sm:$0xff]  ;;  %v10483_v9 = vld [vmem:[#allocation50_spill] sm:$0xff] }
 0x76e   : > { %v8341_v16 = vpop.f32.mrb[59].mxu0 }
 0x76f   : > { %3038 = vmatprep.subr.bf16.mxu0 %v3007_v2  ;;  %v2855_v52 = vpop.xlane.xlu0 %2854  ;;  %v6211_v38 = vpop.eup %6210 }
 0x770   : > { %6216 = vrcp.f32 %v2855_v52  ;;  %759 = vperm.xlu1 %5821, %v593_v59   ;;  %v8346_v36 = vpop.f32.mrb[60].mxu0  ;;  %v2959_v63 = vmul.f32 %v6211_v38, %v8110_v17  ;;  %v590_v17 = vld [vmem:[%s10149_s4 + $0xd0] sm:$0xff]  ;;  %v2958_v7 = vmul.f32 %v6211_v38, %v10481_v44 }
 0x771   : > { %v8350_v23 = vpop.f32.mrb[61].mxu0  ;;  %v10484_v52 = vld [vmem:[#allocation62_spill] sm:$0xff] }
 0x772   : > { %v6213_v12 = vpop.eup %6212  ;;  %v8352_v28 = vpop.f32.mrb[62].mxu0 }
 0x773   : > { %v2961_v14 = vmul.f32 %v6213_v12, %v8118_v37  ;;  %v2960_v62 = vmul.f32 %v6213_v12, %v10480_v42  ;;  %v8358_v21 = vpop.f32.mrb[63].mxu0 }
 0x774   : > { %3039 = vmatpush1.bf16.xpose.msra.mxu0 %v3006_v55  ;;  %769 = vperm.xlu1 %5821, %v595_v53   ;;  %v2858_v15 = vpop.xlane.xlu1 %2857  ;;  %v594_v55 = vld [vmem:[%s10149_s4 + $0xf0] sm:$0xff] }
 0x775   : > { %v3009_v20 = vpack.c.bf16 %v2961_v14, %v2959_v63  ;;  %6218 = vrcp.f32 %v2858_v15  ;;  %v3008_v27 = vpack.c.bf16 %v2960_v62, %v2958_v7  ;;  %v10485_v53 = vld [vmem:[#allocation10_spill] sm:$0xff]  ;;  %v576_v15 = vld [vmem:[%s10149_s4 + $0x60] sm:$0xff] }
 0x776   : > { %639 = vperm.xlu0 %5820, %v569_v3  }
 0x777   : > { %3040 = vmatprep.subr.bf16.mxu0 %v3009_v20  ;;  %v2861_v37 = vpop.xlane.xlu0 %2860  ;;  %v6215_v11 = vpop.eup %6214 }
 0x778   : > { %6220 = vrcp.f32 %v2861_v37  ;;  %679 = vperm.xlu1 %5821, %v577_v41   ;;  %v2963_v30 = vmul.f32 %v6215_v11, %v10482_v35  ;;  %v2962_v12 = vmul.f32 %v6215_v11, %v10485_v53  ;;  %v10487_v35 = vld [vmem:[#allocation52_spill] sm:$0xff] }
 0x779   : > { %v10491_v53 = vld [vmem:[#allocation56_spill] sm:$0xff] }
 0x77a   : > { %744 = vperm.xlu0 %5820, %v590_v17   ;;  %v6217_v39 = vpop.eup %6216 }
 0x77b   : > { %v2965_v2 = vmul.f32 %v6217_v39, %v10483_v9  ;;  %v2964_v57 = vmul.f32 %v6217_v39, %v10484_v52  ;;  %v10489_v52 = vld [vmem:[#allocation55_spill] sm:$0xff] }
 0x77c   : > { %3041 = vmatpush1.bf16.xpose.msra.mxu0 %v3008_v27  ;;  %v2864_v59 = vpop.xlane.xlu1 %2863 }
 0x77d   : > { %6222 = vrcp.f32 %v2864_v59  ;;  %v3011_v54 = vpack.c.bf16 %v2965_v2, %v2963_v30  ;;  %v3010_v63 = vpack.c.bf16 %v2964_v57, %v2962_v12  ;;  %v10488_v2 = vld [vmem:[#allocation51_spill] sm:$0xff]  ;;  %v10492_v12 = vld [vmem:[#allocation54_spill] sm:$0xff] }
 0x77e   : > { %754 = vperm.xlu0 %5820, %v592_v32   ;;  %v2867_v38 = vpop.xlane.xlu0 %2866  ;;  %v10486_v32 = vld [vmem:[#allocation53_spill] sm:$0xff] }
 0x77f   : > { %3042 = vmatprep.subr.bf16.mxu0 %v3011_v54  ;;  %6224 = vrcp.f32 %v2867_v38  ;;  %v6219_v3 = vpop.eup %6218  ;;  %v10490_v38 = vld [vmem:[#allocation57_spill] sm:$0xff] }
 0x780   : > { %v2967_v20 = vmul.f32 %v6219_v3, %v8142_v10  ;;  %v2966_v7 = vmul.f32 %v6219_v3, %v8140_v25 }
 0x782   : > { %764 = vperm.xlu0 %5820, %v594_v55   ;;  %v6221_v14 = vpop.eup %6220 }
 0x783   : > { %v2969_v41 = vmul.f32 %v6221_v14, %v8150_v46  ;;  %v2968_v17 = vmul.f32 %v6221_v14, %v8144_v33 }
 0x784   : > { %3043 = vmatpush1.bf16.xpose.msra.mxu0 %v3010_v63  ;;  %v2870_v42 = vpop.xlane.xlu1 %2869 }
 0x785   : > { %6226 = vrcp.f32 %v2870_v42  ;;  %v3013_v62 = vpack.c.bf16 %v2969_v41, %v2967_v20  ;;  %v3012_v27 = vpack.c.bf16 %v2968_v17, %v2966_v7 }
 0x786   : > { %674 = vperm.xlu0 %5820, %v576_v15   ;;  %v2873_v37 = vpop.xlane.xlu0 %2872 }
 0x787   : > { %v6223_v44 = vpop.eup %6222  ;;  %3044 = vmatprep.subr.bf16.mxu0 %v3013_v62  ;;  %6228 = vrcp.f32 %v2873_v37 }
 0x788   : > { %v2971_v39 = vmul.f32 %v6223_v44, %v8158_v8  ;;  %v2970_v33 = vmul.f32 %v6223_v44, %v10488_v2  ;;  %v10493_v44 = vld [vmem:[#allocation59_spill] sm:$0xff] }
 0x789   : > { %v6225_v11 = vpop.eup %6224 }
 0x78a   : > { %v2973_v10 = vmul.f32 %v6225_v11, %v10486_v32  ;;  %v2972_v30 = vmul.f32 %v6225_v11, %v10487_v35 }
 0x78c   : > { %3045 = vmatpush1.bf16.xpose.msra.mxu0 %v3012_v27  ;;  %v3015_v46 = vpack.c.bf16 %v2973_v10, %v2971_v39  ;;  %v3014_v54 = vpack.c.bf16 %v2972_v30, %v2970_v33  ;;  %v2876_v14 = vpop.xlane.xlu1 %2875  ;;  %v10494_v27 = vld [vmem:[#allocation58_spill] sm:$0xff] }
 0x78d   : > { %6230 = vrcp.f32 %v2876_v14 }
 0x78e   : > { %3046 = vmatprep.subr.bf16.mxu0 %v3015_v46 }
 0x78f   : > { %v6227_v9 = vpop.eup %6226 }
 0x790   : > { %v2975_v57 = vmul.f32 %v6227_v9, %v10489_v52  ;;  %v2974_v3 = vmul.f32 %v6227_v9, %v10492_v12  ;;  %v635_v20 = vpop.permute.xlu1 %634 }
 0x791   : > { %v6229_v59 = vpop.eup %6228 }
 0x792   : > { %v2977_v25 = vmul.f32 %v6229_v59, %v10490_v38  ;;  %v2976_v8 = vmul.f32 %v6229_v59, %v10491_v53 }
 0x794   : > { %3047 = vmatpush1.bf16.xpose.msra.mxu0 %v3014_v54  ;;  %v3017_v55 = vpack.c.bf16 %v2977_v25, %v2975_v57  ;;  %v3016_v63 = vpack.c.bf16 %v2976_v8, %v2974_v3 }
 0x796   : > { %3048 = vmatprep.subr.bf16.mxu0 %v3017_v55 }
 0x797   : > { %v6231_v42 = vpop.eup %6230 }
 0x798   : > { %v2979_v7 = vmul.f32 %v6231_v42, %v10493_v44  ;;  %v2978_v39 = vmul.f32 %v6231_v42, %v10494_v27  ;;  %v10495_v42 = vld [vmem:[#allocation12_spill] sm:$0xff]  ;;  %v10497_v44 = vld [vmem:[#allocation14_spill] sm:$0xff] }
 0x79c   : > { %3049 = vmatpush1.bf16.xpose.msra.mxu0 %v3016_v63 }
 0x7d0   : > { %v2882_v41 = vpop.xlane.xlu1 %2881 }
 0x7d3   : > { %v2879_v15 = vpop.xlane.xlu0 %2878 }
 0x7d4   : > { %6232 = vrcp.f32 %v2879_v15 }
 0x7d5   : > { %6234 = vrcp.f32 %v2882_v41 }
 0x7d8   : > { %v2888_v62 = vpop.xlane.xlu1 %2887 }
 0x7dc   : > { %v2885_v17 = vpop.xlane.xlu0 %2884 }
 0x7dd   : > { %6236 = vrcp.f32 %v2885_v17  ;;  %v10496_v17 = vld [vmem:[#allocation13_spill] sm:$0xff] }
 0x7de   : > { %v6233_v37 = vpop.eup %6232  ;;  %6238 = vrcp.f32 %v2888_v62  ;;  %v1100_v62 = vadd.f32 %v10495_v42, %v635_v20 }
 0x7df   : > { %v2981_v11 = vmul.f32 %v6233_v37, %v8223_v0  ;;  %v2980_v32 = vmul.f32 %v6233_v37, %v8221_v43  ;;  %v6235_v2 = vpop.eup %6234  ;;  %v1102_v37 = vadd.f32 %v10496_v17, %v635_v20 }
 0x7e0   : > { %v2894_v10 = vpop.xlane.xlu1 %2893  ;;  %v2983_v54 = vmul.f32 %v6235_v2, %v8215_v29  ;;  %v2982_v52 = vmul.f32 %v6235_v2, %v8213_v13 }
 0x7e1   : > { %v3019_v46 = vpack.c.bf16 %v2981_v11, %v2979_v7  ;;  %v3018_v35 = vpack.c.bf16 %v2980_v32, %v2978_v39  ;;  %v10498_v11 = vld [vmem:[#allocation15_spill] sm:$0xff] }
 0x7e3   : > { %3050 = vmatprep.subr.bf16.mxu0 %v3019_v46 }
 0x7e4   : > { %3051 = vmatpush1.bf16.xpose.msra.mxu0 %v3018_v35  ;;  %v735_v30 = vpop.permute.xlu1 %734 }
 0x7e5   : > { %v2891_v9 = vpop.xlane.xlu0 %2890  ;;  %v8398_v57 = vadd.f32 %v8292_v40, %v735_v30  ;;  %v1202_v38 = vadd.f32 %v8297_v47, %v735_v30 }
 0x7e6   : > { %6240 = vrcp.f32 %v2891_v9 }
 0x7e7   : > { %v6237_v33 = vpop.eup %6236  ;;  %6242 = vrcp.f32 %v2894_v10 }
 0x7e8   : > { %v740_v59 = vpop.permute.xlu1 %739  ;;  %v2985_v0 = vmul.f32 %v6237_v33, %v8241_v5  ;;  %v2984_v43 = vmul.f32 %v6237_v33, %v8239_v6  ;;  %v6239_v6 = vpop.eup %6238 }
 0x7e9   : > { %v8402_v25 = vadd.f32 %v8304_v4, %v740_v59  ;;  %v1206_v55 = vadd.f32 %v8306_v24, %v740_v59  ;;  %v2987_v4 = vmul.f32 %v6239_v6, %v8235_v31  ;;  %v2986_v24 = vmul.f32 %v6239_v6, %v8233_v22 }
 0x7ea   : > { %v3021_v53 = vpack.c.bf16 %v2985_v0, %v2983_v54  ;;  %v3020_v8 = vpack.c.bf16 %v2984_v43, %v2982_v52 }
 0x7eb   : > { %v1342_v29 = vpack.c.bf16 %v8402_v25, %v8398_v57  ;;  %v1343_v5 = vpack.c.bf16 %v1206_v55, %v1202_v38 }
 0x7ec   : > { %3052 = vmatprep.subr.bf16.mxu0 %v3021_v53  ;;  %v750_v47 = vpop.permute.xlu1 %749 }
 0x7ed   : > { %v2897_v13 = vpop.xlane.xlu0 %2896  ;;  %3053 = vmatpush1.bf16.xpose.msra.mxu0 %v3020_v8  ;;  %3058 = vmatprep.mubr.bf16.mxu0 %v1343_v5  ;;  %v1214_v20 = vadd.f32 %v8322_v49, %v750_v47  ;;  %v1216_v30 = vadd.f32 %v8328_v51, %v750_v47 }
 0x7ee   : > { %6244 = vrcp.f32 %v2897_v13  ;;  %v10501_v13 = vld [vmem:[#allocation42_spill] sm:$0xff] }
 0x7f0   : > { %v6241_v40 = vpop.eup %6240  ;;  %v760_v31 = vpop.permute.xlu1 %759 }
 0x7f1   : > { %v2989_v12 = vmul.f32 %v6241_v40, %v8262_v18  ;;  %v2988_v3 = vmul.f32 %v6241_v40, %v8257_v61  ;;  %v6243_v41 = vpop.eup %6242  ;;  %v10502_v40 = vld [vmem:[#allocation43_spill] sm:$0xff] }
 0x7f2   : > { %v2991_v61 = vmul.f32 %v6243_v41, %v8253_v45  ;;  %v2990_v46 = vmul.f32 %v6243_v41, %v8251_v1  ;;  %v1224_v1 = vadd.f32 %v8336_v60, %v760_v31 }
 0x7f3   : > { %v3023_v63 = vpack.c.bf16 %v2989_v12, %v2987_v4  ;;  %v3022_v14 = vpack.c.bf16 %v2988_v3, %v2986_v24 }
 0x7f4   : > { %v770_v0 = vpop.permute.xlu1 %769 }
 0x7f5   : > { %3054 = vmatprep.subr.bf16.mxu0 %v3023_v63  ;;  %v640_v15 = vpop.permute.xlu0 %639  ;;  %v1234_v43 = vadd.f32 %v8352_v28, %v770_v0  ;;  %v1236_v57 = vadd.f32 %v8358_v21, %v770_v0 }
 0x7f6   : > { %v1104_v7 = vadd.f32 %v10497_v44, %v640_v15  ;;  %v1106_v27 = vadd.f32 %v10498_v11, %v640_v15  ;;  %3055 = vmatpush1.bf16.xpose.msra.mxu0 %v3022_v14 }
 0x7f8   : > { %v6245_v18 = vpop.eup %6244  ;;  %v1322_v39 = vpack.c.bf16 %v1104_v7, %v1100_v62  ;;  %v1323_v22 = vpack.c.bf16 %v1106_v27, %v1102_v37  ;;  %v680_v55 = vpop.permute.xlu1 %679 }
 0x7f9   : > { %v745_v32 = vpop.permute.xlu0 %744  ;;  %v2993_v10 = vmul.f32 %v6245_v18, %v8277_v34  ;;  %v2992_v35 = vmul.f32 %v6245_v18, %v8275_v26  ;;  %v1226_v26 = vadd.f32 %v8341_v16, %v760_v31 }
 0x7fa   : > { %v1210_v9 = vadd.f32 %v8313_v50, %v745_v32  ;;  %v1212_v2 = vadd.f32 %v8317_v19, %v745_v32  ;;  %3131 = vxpose.xlu1.c.b16.start.end [1/1] (short) %v1323_v22, 128  ;;  %3115 = vxpose.xlu0.c.b16.start.end [1/1] (short) %v1322_v39, 128 }
 0x7fb   : > { %v3025_v33 = vpack.c.bf16 %v2993_v10, %v2991_v61  ;;  %v3024_v59 = vpack.c.bf16 %v2992_v35, %v2990_v46 }
 0x7fc   : > { %v1345_v54 = vpack.c.bf16 %v1216_v30, %v1212_v2  ;;  %v1344_v45 = vpack.c.bf16 %v1214_v20, %v1210_v9 }
 0x7fd   : > { %3056 = vmatprep.subr.bf16.mxu0 %v3025_v33  ;;  %v755_v34 = vpop.permute.xlu0 %754 }
 0x7fe   : > { %v1220_v49 = vadd.f32 %v8331_v48, %v755_v34  ;;  %v1222_v51 = vadd.f32 %v8334_v58, %v755_v34  ;;  %3057 = vmatpush1.bf16.xpose.msra.mxu0 %v3024_v59  ;;  %v10499_v48 = vld [vmem:[#allocation44_spill] sm:$0xff]  ;;  %v10500_v58 = vld [vmem:[#allocation45_spill] sm:$0xff] }
 0x7ff   : > { %v1144_v8 = vadd.f32 %v10499_v48, %v680_v55  ;;  %v1146_v5 = vadd.f32 %v10500_v58, %v680_v55 }
 0x800   : > { %v1346_v50 = vpack.c.bf16 %v1224_v1, %v1220_v49  ;;  %v1347_v19 = vpack.c.bf16 %v1226_v26, %v1222_v51 }
 0x801   : > { %v765_v52 = vpop.permute.xlu0 %764 }
 0x802   : > { %v1230_v38 = vadd.f32 %v8346_v36, %v765_v52  ;;  %v1232_v25 = vadd.f32 %v8350_v23, %v765_v52  ;;  %v8436_v36 = vpop.f32.mrb[64].mxu0 }
 0x803   : > { %10503 = vst [vmem:[#allocation61_spill] sm:$0xff] %v8436_v36  ;;  %v8438_v23 = vpop.f32.mrb[65].mxu0 }
 0x804   : > { %v1348_v60 = vpack.c.bf16 %v1234_v43, %v1230_v38  ;;  %v1349_v53 = vpack.c.bf16 %v1236_v57, %v1232_v25  ;;  %10504 = vst [vmem:[#allocation60_spill] sm:$0xff] %v8438_v23 }
 0x805   : > { %3059 = vmatmul.mubr.bf16.vlgmr.msra.gmra.mrb[88].mxu0 %v1342_v29  ;;  %v675_v16 = vpop.permute.xlu0 %674  ;;  %v8440_v29 = vpop.f32.mrb[66].mxu0 }
 0x806   : > { %v1140_v6 = vadd.f32 %v10501_v13, %v675_v16  ;;  %v1142_v47 = vadd.f32 %v10502_v40, %v675_v16  ;;  %3068 = vmatprep.mubr.bf16.mxu0 %v1345_v54  ;;  %10505 = vst [vmem:[#allocation11_spill] sm:$0xff] %v8440_v29  ;;  %v8442_v4 = vpop.f32.mrb[67].mxu0 }
 0x807   : > { %10506 = vst [vmem:[#allocation50_spill] sm:$0xff] %v8442_v4  ;;  %v8444_v12 = vpop.f32.mrb[68].mxu0 }
 0x808   : > { %v1330_v28 = vpack.c.bf16 %v1144_v8, %v1140_v6  ;;  %v1331_v21 = vpack.c.bf16 %v1146_v5, %v1142_v47  ;;  %10507 = vst [vmem:[#allocation62_spill] sm:$0xff] %v8444_v12  ;;  %v8446_v24 = vpop.f32.mrb[69].mxu0 }
 0x809   : > { %10508 = vst [vmem:[#allocation10_spill] sm:$0xff] %v8446_v24  ;;  %v8448_v3 = vpop.f32.mrb[70].mxu0 }
 0x80a   : > { %3195 = vmatprep.subr.bf16.mxu0 %v1331_v21  ;;  %10509 = vst [vmem:[#allocation53_spill] sm:$0xff] %v8448_v3  ;;  %v8450_v63 = vpop.f32.mrb[71].mxu0 }
 0x80b   : > { %3196 = vmatpush1.bf16.msra.mxu0 %v1330_v28  ;;  %10510 = vst [vmem:[#allocation52_spill] sm:$0xff] %v8450_v63 }
 0x80d   : > { %3069 = vmatmul.mubr.bf16.gmra.mrb[92].mxu0 %v1344_v45 }
 0x80e   : > { %3078 = vmatprep.mubr.bf16.mxu0 %v1347_v19 }
 0x815   : > { %3079 = vmatmul.mubr.bf16.gmra.mrb[96].mxu0 %v1346_v50 }
 0x816   : > { %3088 = vmatprep.mubr.bf16.mxu0 %v1349_v53 }
 0x81d   : > { %3089 = vmatmul.mubr.bf16.gmra.mrb[100].mxu0 %v1348_v60 }
 0x81e   : > { %3227 = vmatprep.mubr.bf16.mxu0 %v10417_v56 }
 0x822   : > { %v8452_v14 = vpop.f32.mrb[72].mxu0 }
 0x823   : > { %10511 = vst [vmem:[#allocation51_spill] sm:$0xff] %v8452_v14  ;;  %v8454_v15 = vpop.f32.mrb[73].mxu0 }
 0x824   : > { %10512 = vst [vmem:[#allocation55_spill] sm:$0xff] %v8454_v15  ;;  %v8456_v41 = vpop.f32.mrb[74].mxu0 }
 0x825   : > { %10513 = vst [vmem:[#allocation57_spill] sm:$0xff] %v8456_v41  ;;  %v8458_v42 = vpop.f32.mrb[75].mxu0 }
 0x826   : > { %10514 = vst [vmem:[#allocation56_spill] sm:$0xff] %v8458_v42 }
 0x82a   : > { %v8460_v62 = vpop.f32.mrb[76].mxu0 }
 0x82b   : > { %10515 = vst [vmem:[#allocation54_spill] sm:$0xff] %v8460_v62  ;;  %v8462_v17 = vpop.f32.mrb[77].mxu0 }
 0x82c   : > { %10516 = vst [vmem:[#allocation59_spill] sm:$0xff] %v8462_v17  ;;  %v8464_v37 = vpop.f32.mrb[78].mxu0 }
 0x82d   : > { %10517 = vst [vmem:[#allocation58_spill] sm:$0xff] %v8464_v37  ;;  %v8466_v44 = vpop.f32.mrb[79].mxu0 }
 0x82e   : > { %10518 = vst [vmem:[#allocation12_spill] sm:$0xff] %v8466_v44 }
 0x832   : > { %v8468_v7 = vpop.f32.mrb[80].mxu0 }
 0x833   : > { %10519 = vst [vmem:[#allocation13_spill] sm:$0xff] %v8468_v7  ;;  %v8470_v11 = vpop.f32.mrb[81].mxu0 }
 0x834   : > { %10520 = vst [vmem:[#allocation14_spill] sm:$0xff] %v8470_v11  ;;  %v8472_v27 = vpop.f32.mrb[82].mxu0 }
 0x835   : > { %10521 = vst [vmem:[#allocation15_spill] sm:$0xff] %v8472_v27  ;;  %v8474_v31 = vpop.f32.mrb[83].mxu0 }
 0x836   : > { %10522 = vst [vmem:[#allocation44_spill] sm:$0xff] %v8474_v31 }
 0x83a   : > { %v8476_v18 = vpop.f32.mrb[84].mxu0 }
 0x83b   : > { %10523 = vst [vmem:[#allocation45_spill] sm:$0xff] %v8476_v18  ;;  %v8478_v39 = vpop.f32.mrb[85].mxu0 }
 0x83c   : > { %10524 = vst [vmem:[#allocation42_spill] sm:$0xff] %v8478_v39  ;;  %v8480_v22 = vpop.f32.mrb[86].mxu0 }
 0x83d   : > { %10525 = vst [vmem:[#allocation43_spill] sm:$0xff] %v8480_v22  ;;  %v8482_v32 = vpop.f32.mrb[87].mxu0 }
 0x83e   : > { %10526 = vst [vmem:[#allocation63_spill] sm:$0xff] %v8482_v32 }
 0x860   : > { %v3123_v61 = vpop.trf.xlu0  ;;  %v3139_v33 = vpop.trf.xlu1 }
 0x861   : > { %5713 = vmatmul.mubr.msk.bf16.vlgmr.msra.gmra.mrb[104].mxu0 %vm1398_vm1, %v3123_v61 }
 0x862   : > { %3237 = vmatprep.mubr.bf16.mxu0 %v10417_v56 }
 0x864   : > { %v3124_v10 = vpop.trf.xlu0  ;;  %v3140_v59 = vpop.trf.xlu1 }
 0x868   : > { %v3125_v46 = vpop.trf.xlu0  ;;  %v3141_v54 = vpop.trf.xlu1 }
 0x869   : > { %5714 = vmatmul.mubr.msk.bf16.gmra.mrb[108].mxu0 %vm1398_vm1, %v3124_v10 }
 0x86a   : > { %3247 = vmatprep.mubr.bf16.mxu0 %v10417_v56 }
 0x86c   : > { %v3126_v35 = vpop.trf.xlu0  ;;  %v3142_v45 = vpop.trf.xlu1 }
 0x870   : > { %v3127_v20 = vpop.trf.xlu0  ;;  %v3143_v0 = vpop.trf.xlu1 }
 0x871   : > { %5715 = vmatmul.mubr.msk.bf16.gmra.mrb[112].mxu0 %vm1398_vm1, %v3125_v46 }
 0x872   : > { %3257 = vmatprep.mubr.bf16.mxu0 %v10417_v56 }
 0x874   : > { %v3128_v30 = vpop.trf.xlu0  ;;  %v3144_v34 = vpop.trf.xlu1 }
 0x878   : > { %v3129_v9 = vpop.trf.xlu0  ;;  %v3145_v1 = vpop.trf.xlu1 }
 0x879   : > { %5716 = vmatmul.mubr.msk.bf16.gmra.mrb[116].mxu0 %vm1398_vm1, %v3126_v35 }
 0x87a   : > { %3267 = vmatprep.mubr.bf16.mxu0 %v10417_v56 }
 0x87c   : > { %v3130_v2 = vpop.trf.xlu0  ;;  %v3146_v26 = vpop.trf.xlu1 }
 0x881   : > { %5717 = vmatmul.mubr.msk.bf16.gmra.mrb[120].mxu0 %vm1398_vm1, %v3127_v20 }
 0x882   : > { %3277 = vmatprep.mubr.bf16.mxu0 %v10417_v56 }
 0x889   : > { %5718 = vmatmul.mubr.msk.bf16.gmra.mrb[124].mxu0 %vm1398_vm1, %v3128_v30 }
 0x88a   : > { %3287 = vmatprep.mubr.bf16.mxu0 %v10417_v56 }
 0x891   : > { %5719 = vmatmul.mubr.msk.bf16.gmra.mrb[128].mxu0 %vm1398_vm1, %v3129_v9 }
 0x892   : > { %3297 = vmatprep.mubr.bf16.mxu0 %v10417_v56 }
 0x899   : > { %5720 = vmatmul.mubr.msk.bf16.gmra.mrb[132].mxu0 %vm1398_vm1, %v3130_v2 }
 0x89a   : > { %3307 = vmatprep.mubr.bf16.mxu0 %v10417_v56 }
 0x8a1   : > { %5721 = vmatmul.mubr.msk.bf16.gmra.mrb[136].mxu0 %vm1398_vm1, %v3139_v33 }
 0x8a2   : > { %3317 = vmatprep.mubr.bf16.mxu0 %v10417_v56 }
 0x8a9   : > { %5722 = vmatmul.mubr.msk.bf16.gmra.mrb[140].mxu0 %vm1398_vm1, %v3140_v59 }
 0x8aa   : > { %3327 = vmatprep.mubr.bf16.mxu0 %v10417_v56 }
 0x8b1   : > { %5723 = vmatmul.mubr.msk.bf16.gmra.mrb[144].mxu0 %vm1398_vm1, %v3141_v54 }
 0x8b2   : > { %3337 = vmatprep.mubr.bf16.mxu0 %v10417_v56 }
 0x8b9   : > { %5724 = vmatmul.mubr.msk.bf16.gmra.mrb[148].mxu0 %vm1398_vm1, %v3142_v45 }
 0x8ba   : > { %3347 = vmatprep.mubr.bf16.mxu0 %v10417_v56 }
 0x8c1   : > { %5725 = vmatmul.mubr.msk.bf16.gmra.mrb[152].mxu0 %vm1398_vm1, %v3143_v0 }
 0x8c2   : > { %3357 = vmatprep.mubr.bf16.mxu0 %v10417_v56 }
 0x8c9   : > { %5726 = vmatmul.mubr.msk.bf16.gmra.mrb[156].mxu0 %vm1398_vm1, %v3144_v34 }
 0x8ca   : > { %3367 = vmatprep.mubr.bf16.mxu0 %v10417_v56 }
 0x8d1   : > { %5727 = vmatmul.mubr.msk.bf16.gmra.mrb[160].mxu0 %vm1398_vm1, %v3145_v1 }
 0x8d2   : > { %3377 = vmatprep.mubr.bf16.mxu0 %v10417_v56 }
 0x8d8   : > { %v8514_v49 = vpop.f32.mrb[88].mxu0 }
 0x8d9   : > { %10527 = vst [vmem:[#allocation64_spill] sm:$0xff] %v8514_v49  ;;  %v8516_v51 = vpop.f32.mrb[89].mxu0  ;;  %5728 = vmatmul.mubr.msk.bf16.gmra.mrb[164].mxu0 %vm1398_vm1, %v3146_v26 }
 0x8da   : > { %10528 = vst [vmem:[#allocation65_spill] sm:$0xff] %v8516_v51  ;;  %v8518_v50 = vpop.f32.mrb[90].mxu0 }
 0x8db   : > { %10529 = vst [vmem:[#allocation66_spill] sm:$0xff] %v8518_v50  ;;  %v8523_v52 = vpop.f32.mrb[91].mxu0 }
 0x8dc   : > { %10530 = vst [vmem:[#allocation67_spill] sm:$0xff] %v8523_v52 }
 0x8e0   : > { %v8527_v57 = vpop.f32.mrb[92].mxu0 }
 0x8e1   : > { %10531 = vst [vmem:[#allocation68_spill] sm:$0xff] %v8527_v57  ;;  %v8529_v38 = vpop.f32.mrb[93].mxu0 }
 0x8e2   : > { %10532 = vst [vmem:[#allocation69_spill] sm:$0xff] %v8529_v38  ;;  %v8531_v25 = vpop.f32.mrb[94].mxu0 }
 0x8e3   : > { %10533 = vst [vmem:[#allocation70_spill] sm:$0xff] %v8531_v25  ;;  %v8535_v60 = vpop.f32.mrb[95].mxu0 }
 0x8e4   : > { %10534 = vst [vmem:[#allocation71_spill] sm:$0xff] %v8535_v60 }
 0x8e8   : > { %v8539_v16 = vpop.f32.mrb[96].mxu0 }
 0x8e9   : > { %10535 = vst [vmem:[#allocation72_spill] sm:$0xff] %v8539_v16  ;;  %v8541_v48 = vpop.f32.mrb[97].mxu0 }
 0x8ea   : > { %10536 = vst [vmem:[#allocation73_spill] sm:$0xff] %v8541_v48  ;;  %v8543_v8 = vpop.f32.mrb[98].mxu0 }
 0x8eb   : > { %10537 = vst [vmem:[#allocation74_spill] sm:$0xff] %v8543_v8  ;;  %v8547_v5 = vpop.f32.mrb[99].mxu0 }
 0x8ec   : > { %10538 = vst [vmem:[#allocation75_spill] sm:$0xff] %v8547_v5 }
 0x8f0   : > { %v8551_v6 = vpop.f32.mrb[100].mxu0 }
 0x8f1   : > { %10539 = vst [vmem:[#allocation76_spill] sm:$0xff] %v8551_v6  ;;  %v8553_v40 = vpop.f32.mrb[101].mxu0 }
 0x8f2   : > { %10540 = vst [vmem:[#allocation77_spill] sm:$0xff] %v8553_v40  ;;  %v8555_v47 = vpop.f32.mrb[102].mxu0 }
 0x8f3   : > { %10541 = vst [vmem:[#allocation78_spill] sm:$0xff] %v8555_v47  ;;  %v8559_v21 = vpop.f32.mrb[103].mxu0 }
 0x8f4   : > { %10542 = vst [vmem:[#allocation79_spill] sm:$0xff] %v8559_v21 }
 0x934   : > { %v8563_v10 = vpop.f32.mrb[104].mxu0 }
 0x935   : > { %v8565_v46 = vpop.f32.mrb[105].mxu0 }
 0x936   : > { %v3388_v35 = vmax.f32 %v8563_v10, %v8565_v46  ;;  %v8569_v20 = vpop.f32.mrb[106].mxu0 }
 0x937   : > { %v8571_v30 = vpop.f32.mrb[107].mxu0 }
 0x938   : > { %v3391_v9 = vmax.f32 %v8569_v20, %v8571_v30  ;;  %3389 = vmax.xlane.f32.xlu0 %v3388_v35 }
 0x93a   : > { %3392 = vmax.xlane.f32.xlu1 %v3391_v9 }
 0x93c   : > { %v8575_v2 = vpop.f32.mrb[108].mxu0 }
 0x93d   : > { %v8577_v33 = vpop.f32.mrb[109].mxu0 }
 0x93e   : > { %v3394_v59 = vmax.f32 %v8575_v2, %v8577_v33  ;;  %v8581_v54 = vpop.f32.mrb[110].mxu0 }
 0x93f   : > { %v8583_v45 = vpop.f32.mrb[111].mxu0 }
 0x940   : > { %v3397_v0 = vmax.f32 %v8581_v54, %v8583_v45  ;;  %3395 = vmax.xlane.f32.xlu0 %v3394_v59 }
 0x944   : > { %3398 = vmax.xlane.f32.xlu0 %v3397_v0  ;;  %v8587_v34 = vpop.f32.mrb[112].mxu0 }
 0x945   : > { %v8589_v1 = vpop.f32.mrb[113].mxu0 }
 0x946   : > { %v3400_v26 = vmax.f32 %v8587_v34, %v8589_v1  ;;  %v8593_v35 = vpop.f32.mrb[114].mxu0 }
 0x947   : > { %v8595_v9 = vpop.f32.mrb[115].mxu0 }
 0x948   : > { %v3403_v28 = vmax.f32 %v8593_v35, %v8595_v9  ;;  %3401 = vmax.xlane.f32.xlu1 %v3400_v26 }
 0x94a   : > { %3404 = vmax.xlane.f32.xlu0 %v3403_v28 }
 0x94c   : > { %v8599_v61 = vpop.f32.mrb[116].mxu0 }
 0x94d   : > { %v8601_v59 = vpop.f32.mrb[117].mxu0 }
 0x94e   : > { %v3406_v0 = vmax.f32 %v8599_v61, %v8601_v59  ;;  %v8605_v58 = vpop.f32.mrb[118].mxu0 }
 0x94f   : > { %v8607_v13 = vpop.f32.mrb[119].mxu0 }
 0x950   : > { %v3409_v55 = vmax.f32 %v8605_v58, %v8607_v13  ;;  %3407 = vmax.xlane.f32.xlu1 %v3406_v0 }
 0x952   : > { %3410 = vmax.xlane.f32.xlu0 %v3409_v55 }
 0x954   : > { %v8611_v53 = vpop.f32.mrb[120].mxu0 }
 0x955   : > { %v8613_v26 = vpop.f32.mrb[121].mxu0 }
 0x956   : > { %v3412_v28 = vmax.f32 %v8611_v53, %v8613_v26  ;;  %v8617_v19 = vpop.f32.mrb[122].mxu0 }
 0x957   : > { %v8619_v43 = vpop.f32.mrb[123].mxu0 }
 0x958   : > { %v3415_v6 = vmax.f32 %v8617_v19, %v8619_v43  ;;  %3413 = vmax.xlane.f32.xlu1 %v3412_v28 }
 0x95a   : > { %3416 = vmax.xlane.f32.xlu0 %v3415_v6 }
 0x95c   : > { %v8623_v47 = vpop.f32.mrb[124].mxu0 }
 0x95d   : > { %v8625_v0 = vpop.f32.mrb[125].mxu0 }
 0x95e   : > { %v3418_v55 = vmax.f32 %v8623_v47, %v8625_v0  ;;  %v8629_v40 = vpop.f32.mrb[126].mxu0 }
 0x95f   : > { %v8631_v21 = vpop.f32.mrb[127].mxu0 }
 0x960   : > { %v3421_v16 = vmax.f32 %v8629_v40, %v8631_v21  ;;  %3419 = vmax.xlane.f32.xlu1 %v3418_v55 }
 0x962   : > { %3422 = vmax.xlane.f32.xlu0 %v3421_v16 }
 0x964   : > { %v8635_v8 = vpop.f32.mrb[128].mxu0 }
 0x965   : > { %v8637_v28 = vpop.f32.mrb[129].mxu0 }
 0x966   : > { %v3424_v6 = vmax.f32 %v8635_v8, %v8637_v28  ;;  %v8641_v48 = vpop.f32.mrb[130].mxu0 }
 0x967   : > { %v8643_v5 = vpop.f32.mrb[131].mxu0 }
 0x968   : > { %v3427_v57 = vmax.f32 %v8641_v48, %v8643_v5  ;;  %3425 = vmax.xlane.f32.xlu1 %v3424_v6 }
 0x96a   : > { %3428 = vmax.xlane.f32.xlu0 %v3427_v57 }
 0x96c   : > { %v8647_v25 = vpop.f32.mrb[132].mxu0 }
 0x96d   : > { %v8649_v55 = vpop.f32.mrb[133].mxu0 }
 0x96e   : > { %v3430_v16 = vmax.f32 %v8647_v25, %v8649_v55  ;;  %v8653_v38 = vpop.f32.mrb[134].mxu0 }
 0x96f   : > { %v8655_v60 = vpop.f32.mrb[135].mxu0 }
 0x970   : > { %v3433_v49 = vmax.f32 %v8653_v38, %v8655_v60  ;;  %3431 = vmax.xlane.f32.xlu1 %v3430_v16 }
 0x972   : > { %3434 = vmax.xlane.f32.xlu0 %v3433_v49 }
 0x974   : > { %v8659_v50 = vpop.f32.mrb[136].mxu0 }
 0x975   : > { %v8661_v6 = vpop.f32.mrb[137].mxu0 }
 0x976   : > { %v3436_v57 = vmax.f32 %v8659_v50, %v8661_v6  ;;  %v8665_v51 = vpop.f32.mrb[138].mxu0 }
 0x977   : > { %v8667_v52 = vpop.f32.mrb[139].mxu0 }
 0x978   : > { %v3439_v32 = vmax.f32 %v8665_v51, %v8667_v52  ;;  %3437 = vmax.xlane.f32.xlu1 %v3436_v57 }
 0x97a   : > { %3440 = vmax.xlane.f32.xlu0 %v3439_v32 }
 0x97c   : > { %v8671_v22 = vpop.f32.mrb[140].mxu0 }
 0x97d   : > { %v8673_v16 = vpop.f32.mrb[141].mxu0 }
 0x97e   : > { %10543 = vst [vmem:[#allocation80_spill] sm:$0xff] %v8673_v16  ;;  %v3442_v49 = vmax.f32 %v8671_v22, %v8673_v16  ;;  %v8677_v39 = vpop.f32.mrb[142].mxu0 }
 0x97f   : > { %10544 = vst [vmem:[#allocation81_spill] sm:$0xff] %v8677_v39  ;;  %v8679_v18 = vpop.f32.mrb[143].mxu0 }
 0x980   : > { %10545 = vst [vmem:[#allocation82_spill] sm:$0xff] %v8679_v18  ;;  %v3445_v31 = vmax.f32 %v8677_v39, %v8679_v18  ;;  %3443 = vmax.xlane.f32.xlu1 %v3442_v49 }
 0x982   : > { %3446 = vmax.xlane.f32.xlu0 %v3445_v31 }
 0x984   : > { %v8683_v27 = vpop.f32.mrb[144].mxu0 }
 0x985   : > { %10546 = vst [vmem:[#allocation83_spill] sm:$0xff] %v8683_v27  ;;  %v8685_v57 = vpop.f32.mrb[145].mxu0 }
 0x986   : > { %10547 = vst [vmem:[#allocation84_spill] sm:$0xff] %v8685_v57  ;;  %v3448_v32 = vmax.f32 %v8683_v27, %v8685_v57  ;;  %v8689_v11 = vpop.f32.mrb[146].mxu0 }
 0x987   : > { %10548 = vst [vmem:[#allocation85_spill] sm:$0xff] %v8689_v11  ;;  %v8691_v7 = vpop.f32.mrb[147].mxu0 }
 0x988   : > { %10549 = vst [vmem:[#allocation86_spill] sm:$0xff] %v8691_v7  ;;  %v3451_v56 = vmax.f32 %v8689_v11, %v8691_v7  ;;  %3449 = vmax.xlane.f32.xlu1 %v3448_v32 }
 0x98a   : > { %3452 = vmax.xlane.f32.xlu0 %v3451_v56 }
 0x98c   : > { %v8695_v17 = vpop.f32.mrb[148].mxu0 }
 0x98d   : > { %10550 = vst [vmem:[#allocation87_spill] sm:$0xff] %v8695_v17  ;;  %v8697_v49 = vpop.f32.mrb[149].mxu0 }
 0x98e   : > { %10551 = vst [vmem:[#allocation88_spill] sm:$0xff] %v8697_v49  ;;  %v3454_v31 = vmax.f32 %v8695_v17, %v8697_v49  ;;  %v8701_v62 = vpop.f32.mrb[150].mxu0 }
 0x98f   : > { %10552 = vst [vmem:[#allocation89_spill] sm:$0xff] %v8701_v62  ;;  %v8703_v44 = vpop.f32.mrb[151].mxu0 }
 0x990   : > { %10553 = vst [vmem:[#allocation90_spill] sm:$0xff] %v8703_v44  ;;  %v3457_v37 = vmax.f32 %v8701_v62, %v8703_v44  ;;  %3455 = vmax.xlane.f32.xlu1 %v3454_v31 }
 0x992   : > { %3458 = vmax.xlane.f32.xlu0 %v3457_v37 }
 0x994   : > { %v8707_v15 = vpop.f32.mrb[152].mxu0 }
 0x995   : > { %10554 = vst [vmem:[#allocation91_spill] sm:$0xff] %v8707_v15  ;;  %v8709_v32 = vpop.f32.mrb[153].mxu0 }
 0x996   : > { %10555 = vst [vmem:[#allocation92_spill] sm:$0xff] %v8709_v32  ;;  %v3460_v56 = vmax.f32 %v8707_v15, %v8709_v32  ;;  %v8713_v14 = vpop.f32.mrb[154].mxu0 }
 0x997   : > { %v8715_v42 = vpop.f32.mrb[155].mxu0 }
 0x998   : > { %3461 = vmax.xlane.f32.xlu1 %v3460_v56 }
 0x99c   : > { %v8719_v24 = vpop.f32.mrb[156].mxu0 }
 0x99d   : > { %v8721_v12 = vpop.f32.mrb[157].mxu0 }
 0x99e   : > { %v8725_v31 = vpop.f32.mrb[158].mxu0 }
 0x99f   : > { %v8727_v63 = vpop.f32.mrb[159].mxu0 }
 0x9a4   : > { %v8731_v4 = vpop.f32.mrb[160].mxu0 }
 0x9a5   : > { %v8733_v56 = vpop.f32.mrb[161].mxu0 }
 0x9a6   : > { %v8737_v29 = vpop.f32.mrb[162].mxu0 }
 0x9a7   : > { %v8739_v23 = vpop.f32.mrb[163].mxu0 }
 0x9ac   : > { %v8743_v36 = vpop.f32.mrb[164].mxu0 }
 0x9ad   : > { %v8745_v32 = vpop.f32.mrb[165].mxu0 }
 0x9ae   : > { %v8749_v15 = vpop.f32.mrb[166].mxu0 }
 0x9af   : > { %v8751_v44 = vpop.f32.mrb[167].mxu0 }
 0x9c5   : > { %v3390_v62 = vpop.xlane.xlu0 %3389 }
 0x9c6   : > { %v3484_v49 = vsub.f32 %v8563_v10, %v3390_v62  ;;  %v3485_v17 = vsub.f32 %v8565_v46, %v3390_v62 }
 0x9c7   : > { %v3393_v37 = vpop.xlane.xlu1 %3392 }
 0x9c8   : > { %v3548_v7 = vmul.f32 1.442695, %v3484_v49  ;;  %v3550_v11 = vmul.f32 1.442695, %v3485_v17  ;;  %v3486_v57 = vsub.f32 %v8569_v20, %v3393_v37  ;;  %v3487_v27 = vsub.f32 %v8571_v30, %v3393_v37 }
 0x9ca   : > { %6246 = vpow2.f32 %v3548_v7  ;;  %v3552_v3 = vmul.f32 1.442695, %v3486_v57  ;;  %v3554_v18 = vmul.f32 1.442695, %v3487_v27 }
 0x9cb   : > { %6248 = vpow2.f32 %v3550_v11 }
 0x9cc   : > { %6250 = vpow2.f32 %v3552_v3 }
 0x9cd   : > { %6252 = vpow2.f32 %v3554_v18  ;;  %v3396_v39 = vpop.xlane.xlu0 %3395 }
 0x9ce   : > { %v3488_v41 = vsub.f32 %v8575_v2, %v3396_v39  ;;  %v3489_v10 = vsub.f32 %v8577_v33, %v3396_v39 }
 0x9d0   : > { %v3556_v16 = vmul.f32 1.442695, %v3488_v41  ;;  %v3558_v62 = vmul.f32 1.442695, %v3489_v10 }
 0x9d1   : > { %v3399_v46 = vpop.xlane.xlu0 %3398 }
 0x9d2   : > { %6254 = vpow2.f32 %v3556_v16  ;;  %v3490_v17 = vsub.f32 %v8581_v54, %v3399_v46  ;;  %v3491_v20 = vsub.f32 %v8583_v45, %v3399_v46 }
 0x9d3   : > { %6256 = vpow2.f32 %v3558_v62  ;;  %v10556_v62 = vmax.f32 %v8719_v24, %v8721_v12 }
 0x9d4   : > { %v8763_v7 = vpop.eup %6246  ;;  %v3560_v27 = vmul.f32 1.442695, %v3490_v17  ;;  %v3562_v11 = vmul.f32 1.442695, %v3491_v20 }
 0x9d5   : > { %v8765_v3 = vpop.eup %6248  ;;  %v3402_v18 = vpop.xlane.xlu1 %3401 }
 0x9d6   : > { %v8767_v30 = vpop.eup %6250  ;;  %6258 = vpow2.f32 %v3560_v27  ;;  %v3492_v41 = vsub.f32 %v8587_v34, %v3402_v18  ;;  %v3493_v39 = vsub.f32 %v8589_v1, %v3402_v18  ;;  %v3676_v2 = vadd.f32 %v8765_v3, %v8763_v7 }
 0x9d7   : > { %v8773_v33 = vpop.eup %6252  ;;  %6260 = vpow2.f32 %v3562_v11  ;;  %v3405_v54 = vpop.xlane.xlu0 %3404  ;;  %v10557_v27 = vmax.f32 %v8713_v14, %v8715_v42 }
 0x9d8   : > { %v3564_v45 = vmul.f32 1.442695, %v3492_v41  ;;  %v3566_v16 = vmul.f32 1.442695, %v3493_v39  ;;  %3677 = vadd.xlane.f32.xlu1 %v3676_v2  ;;  %v3494_v57 = vsub.f32 %v8593_v35, %v3405_v54  ;;  %v3495_v49 = vsub.f32 %v8595_v9, %v3405_v54 }
 0x9d9   : > { %v3679_v37 = vadd.f32 %v8773_v33, %v8767_v30 }
 0x9da   : > { %6262 = vpow2.f32 %v3564_v45  ;;  %v3568_v34 = vmul.f32 1.442695, %v3494_v57  ;;  %v3570_v1 = vmul.f32 1.442695, %v3495_v49  ;;  %v10558_v49 = vmax.f32 %v8731_v4, %v8733_v56 }
 0x9db   : > { %6264 = vpow2.f32 %v3566_v16  ;;  %3680 = vadd.xlane.f32.xlu0 %v3679_v37 }
 0x9dc   : > { %v8779_v10 = vpop.eup %6254  ;;  %6266 = vpow2.f32 %v3568_v34  ;;  %3467 = vmax.xlane.f32.xlu1 %v10556_v62 }
 0x9dd   : > { %v8784_v46 = vpop.eup %6256  ;;  %6268 = vpow2.f32 %v3570_v1  ;;  %v3408_v35 = vpop.xlane.xlu1 %3407 }
 0x9de   : > { %v3496_v9 = vsub.f32 %v8599_v61, %v3408_v35  ;;  %v3497_v17 = vsub.f32 %v8601_v59, %v3408_v35  ;;  %v3682_v20 = vadd.f32 %v8784_v46, %v8779_v10 }
 0x9df   : > { %3464 = vmax.xlane.f32.xlu0 %v10557_v27  ;;  %v3411_v11 = vpop.xlane.xlu0 %3410  ;;  %v10559_v27 = vmax.f32 %v8725_v31, %v8727_v63 }
 0x9e0   : > { %v8793_v18 = vpop.eup %6258  ;;  %v3572_v41 = vmul.f32 1.442695, %v3496_v9  ;;  %v3574_v39 = vmul.f32 1.442695, %v3497_v17  ;;  %3683 = vadd.xlane.f32.xlu1 %v3682_v20  ;;  %v3498_v2 = vsub.f32 %v8605_v58, %v3411_v11  ;;  %v3499_v54 = vsub.f32 %v8607_v13, %v3411_v11 }
 0x9e1   : > { %v8797_v61 = vpop.eup %6260 }
 0x9e2   : > { %6270 = vpow2.f32 %v3572_v41  ;;  %v3576_v59 = vmul.f32 1.442695, %v3498_v2  ;;  %v3578_v45 = vmul.f32 1.442695, %v3499_v54  ;;  %v3685_v16 = vadd.f32 %v8797_v61, %v8793_v18 }
 0x9e3   : > { %6272 = vpow2.f32 %v3574_v39  ;;  %v10560_v54 = vmax.f32 %v8743_v36, %v8745_v32 }
 0x9e4   : > { %v8801_v57 = vpop.eup %6262  ;;  %6274 = vpow2.f32 %v3576_v59  ;;  %3473 = vmax.xlane.f32.xlu1 %v10558_v49  ;;  %3686 = vadd.xlane.f32.xlu0 %v3685_v16 }
 0x9e5   : > { %v8806_v58 = vpop.eup %6264  ;;  %6276 = vpow2.f32 %v3578_v45  ;;  %v3414_v13 = vpop.xlane.xlu1 %3413 }
 0x9e6   : > { %v8808_v37 = vpop.eup %6266  ;;  %v3500_v34 = vsub.f32 %v8611_v53, %v3414_v13  ;;  %v3501_v1 = vsub.f32 %v8613_v26, %v3414_v13  ;;  %v3688_v62 = vadd.f32 %v8806_v58, %v8801_v57 }
 0x9e7   : > { %v8814_v35 = vpop.eup %6268  ;;  %v3417_v9 = vpop.xlane.xlu0 %3416 }
 0x9e8   : > { %v3580_v17 = vmul.f32 1.442695, %v3500_v34  ;;  %v3582_v20 = vmul.f32 1.442695, %v3501_v1  ;;  %3689 = vadd.xlane.f32.xlu1 %v3688_v62  ;;  %3470 = vmax.xlane.f32.xlu0 %v10559_v27  ;;  %v3502_v11 = vsub.f32 %v8617_v19, %v3417_v9  ;;  %v3503_v41 = vsub.f32 %v8619_v43, %v3417_v9 }
 0x9e9   : > { %v3691_v39 = vadd.f32 %v8814_v35, %v8808_v37  ;;  %v10561_v9 = vmax.f32 %v8737_v29, %v8739_v23 }
 0x9ea   : > { %6278 = vpow2.f32 %v3580_v17  ;;  %v3584_v53 = vmul.f32 1.442695, %v3502_v11  ;;  %v3586_v26 = vmul.f32 1.442695, %v3503_v41 }
 0x9eb   : > { %6280 = vpow2.f32 %v3582_v20 }
 0x9ec   : > { %v8823_v2 = vpop.eup %6270  ;;  %6282 = vpow2.f32 %v3584_v53  ;;  %3479 = vmax.xlane.f32.xlu1 %v10560_v54  ;;  %3692 = vadd.xlane.f32.xlu0 %v3691_v39 }
 0x9ed   : > { %v8828_v59 = vpop.eup %6272  ;;  %6284 = vpow2.f32 %v3586_v26  ;;  %v3420_v19 = vpop.xlane.xlu1 %3419 }
 0x9ee   : > { %v8830_v43 = vpop.eup %6274  ;;  %v3504_v45 = vsub.f32 %v8623_v47, %v3420_v19  ;;  %v3505_v16 = vsub.f32 %v8625_v0, %v3420_v19  ;;  %v3694_v49 = vadd.f32 %v8828_v59, %v8823_v2 }
 0x9ef   : > { %v8836_v13 = vpop.eup %6276  ;;  %v3423_v34 = vpop.xlane.xlu0 %3422 }
 0x9f0   : > { %v3588_v1 = vmul.f32 1.442695, %v3504_v45  ;;  %v3590_v62 = vmul.f32 1.442695, %v3505_v16  ;;  %3695 = vadd.xlane.f32.xlu1 %v3694_v49  ;;  %3476 = vmax.xlane.f32.xlu0 %v10561_v9  ;;  %v3506_v17 = vsub.f32 %v8629_v40, %v3423_v34  ;;  %v3507_v20 = vsub.f32 %v8631_v21, %v3423_v34 }
 0x9f1   : > { %v3697_v27 = vadd.f32 %v8836_v13, %v8830_v43  ;;  %v10562_v49 = vmax.f32 %v8749_v15, %v8751_v44 }
 0x9f2   : > { %6286 = vpow2.f32 %v3588_v1  ;;  %v3592_v47 = vmul.f32 1.442695, %v3506_v17  ;;  %v3594_v0 = vmul.f32 1.442695, %v3507_v20 }
 0x9f3   : > { %6288 = vpow2.f32 %v3590_v62 }
 0x9f4   : > { %v8845_v11 = vpop.eup %6278  ;;  %6290 = vpow2.f32 %v3592_v47  ;;  %3698 = vadd.xlane.f32.xlu0 %v3697_v27 }
 0x9f5   : > { %v8847_v41 = vpop.eup %6280  ;;  %6292 = vpow2.f32 %v3594_v0  ;;  %v3426_v53 = vpop.xlane.xlu1 %3425 }
 0x9f6   : > { %v8849_v26 = vpop.eup %6282  ;;  %v3508_v40 = vsub.f32 %v8635_v8, %v3426_v53  ;;  %v3509_v21 = vsub.f32 %v8637_v28, %v3426_v53  ;;  %v3700_v39 = vadd.f32 %v8847_v41, %v8845_v11 }
 0x9f7   : > { %v8855_v54 = vpop.eup %6284  ;;  %v3429_v19 = vpop.xlane.xlu0 %3428 }
 0x9f8   : > { %v3596_v45 = vmul.f32 1.442695, %v3508_v40  ;;  %v3598_v16 = vmul.f32 1.442695, %v3509_v21  ;;  %3701 = vadd.xlane.f32.xlu1 %v3700_v39  ;;  %3482 = vmax.xlane.f32.xlu0 %v10562_v49  ;;  %v3510_v34 = vsub.f32 %v8641_v48, %v3429_v19  ;;  %v3511_v1 = vsub.f32 %v8643_v5, %v3429_v19 }
 0x9f9   : > { %v3703_v62 = vadd.f32 %v8855_v54, %v8849_v26 }
 0x9fa   : > { %6294 = vpow2.f32 %v3596_v45  ;;  %v3600_v8 = vmul.f32 1.442695, %v3510_v34  ;;  %v3602_v28 = vmul.f32 1.442695, %v3511_v1 }
 0x9fb   : > { %6296 = vpow2.f32 %v3598_v16 }
 0x9fc   : > { %v8864_v9 = vpop.eup %6286  ;;  %6298 = vpow2.f32 %v3600_v8  ;;  %3704 = vadd.xlane.f32.xlu0 %v3703_v62 }
 0x9fd   : > { %v8866_v17 = vpop.eup %6288  ;;  %6300 = vpow2.f32 %v3602_v28  ;;  %v3432_v20 = vpop.xlane.xlu1 %3431 }
 0x9fe   : > { %v8868_v47 = vpop.eup %6290  ;;  %v3512_v48 = vsub.f32 %v8647_v25, %v3432_v20  ;;  %v3513_v5 = vsub.f32 %v8649_v55, %v3432_v20  ;;  %v3706_v0 = vadd.f32 %v8866_v17, %v8864_v9 }
 0x9ff   : > { %v8874_v27 = vpop.eup %6292  ;;  %v3435_v53 = vpop.xlane.xlu0 %3434 }
 0xa00   : > { %v3604_v40 = vmul.f32 1.442695, %v3512_v48  ;;  %v3606_v21 = vmul.f32 1.442695, %v3513_v5  ;;  %3707 = vadd.xlane.f32.xlu1 %v3706_v0  ;;  %v3514_v39 = vsub.f32 %v8653_v38, %v3435_v53  ;;  %v3515_v19 = vsub.f32 %v8655_v60, %v3435_v53 }
 0xa01   : > { %v3709_v45 = vadd.f32 %v8874_v27, %v8868_v47 }
 0xa02   : > { %6302 = vpow2.f32 %v3604_v40  ;;  %v3608_v25 = vmul.f32 1.442695, %v3514_v39  ;;  %v3610_v16 = vmul.f32 1.442695, %v3515_v19 }
 0xa03   : > { %6304 = vpow2.f32 %v3606_v21  ;;  %3710 = vadd.xlane.f32.xlu0 %v3709_v45 }
 0xa04   : > { %v8880_v55 = vpop.eup %6294  ;;  %6306 = vpow2.f32 %v3608_v25 }
 0xa05   : > { %v8882_v49 = vpop.eup %6296  ;;  %6308 = vpow2.f32 %v3610_v16  ;;  %v3438_v34 = vpop.xlane.xlu1 %3437 }
 0xa06   : > { %v8884_v1 = vpop.eup %6298  ;;  %v3516_v38 = vsub.f32 %v8659_v50, %v3438_v34  ;;  %v3517_v60 = vsub.f32 %v8661_v6, %v3438_v34  ;;  %v3712_v8 = vadd.f32 %v8882_v49, %v8880_v55 }
 0xa07   : > { %v8890_v28 = vpop.eup %6300  ;;  %v3441_v62 = vpop.xlane.xlu0 %3440 }
 0xa08   : > { %v3612_v20 = vmul.f32 1.442695, %v3516_v38  ;;  %v3614_v48 = vmul.f32 1.442695, %v3517_v60  ;;  %3713 = vadd.xlane.f32.xlu1 %v3712_v8  ;;  %v3518_v5 = vsub.f32 %v8665_v51, %v3441_v62  ;;  %v3519_v0 = vsub.f32 %v8667_v52, %v3441_v62  ;;  %v10564_v52 = vld [vmem:[#allocation80_spill] sm:$0xff]  ;;  %v10565_v8 = vld [vmem:[#allocation81_spill] sm:$0xff] }
 0xa09   : > { %v3715_v53 = vadd.f32 %v8890_v28, %v8884_v1 }
 0xa0a   : > { %6310 = vpow2.f32 %v3612_v20  ;;  %v3616_v50 = vmul.f32 1.442695, %v3518_v5  ;;  %v3618_v40 = vmul.f32 1.442695, %v3519_v0  ;;  %v10566_v20 = vld [vmem:[#allocation82_spill] sm:$0xff] }
 0xa0b   : > { %6312 = vpow2.f32 %v3614_v48  ;;  %3716 = vadd.xlane.f32.xlu0 %v3715_v53 }
 0xa0c   : > { %v8896_v6 = vpop.eup %6302  ;;  %6314 = vpow2.f32 %v3616_v50 }
 0xa0d   : > { %10563 = vst [vmem:[#allocation93_spill] sm:$0xff] %v8896_v6  ;;  %v8898_v21 = vpop.eup %6304  ;;  %6316 = vpow2.f32 %v3618_v40  ;;  %v3444_v39 = vpop.xlane.xlu1 %3443 }
 0xa0e   : > { %v8900_v19 = vpop.eup %6306  ;;  %v3520_v51 = vsub.f32 %v8671_v22, %v3444_v39  ;;  %v3521_v45 = vsub.f32 %v10564_v52, %v3444_v39  ;;  %v3718_v25 = vadd.f32 %v8898_v21, %v8896_v6 }
 0xa0f   : > { %v8906_v16 = vpop.eup %6308  ;;  %v3447_v34 = vpop.xlane.xlu0 %3446 }
 0xa10   : > { %v3620_v38 = vmul.f32 1.442695, %v3520_v51  ;;  %v3622_v60 = vmul.f32 1.442695, %v3521_v45  ;;  %3719 = vadd.xlane.f32.xlu1 %v3718_v25  ;;  %v3522_v62 = vsub.f32 %v10565_v8, %v3447_v34  ;;  %v3523_v48 = vsub.f32 %v10566_v20, %v3447_v34  ;;  %v10570_v51 = vld [vmem:[#allocation83_spill] sm:$0xff]  ;;  %v10571_v45 = vld [vmem:[#allocation84_spill] sm:$0xff] }
 0xa11   : > { %v3721_v5 = vadd.f32 %v8906_v16, %v8900_v19  ;;  %v10573_v20 = vld [vmem:[#allocation85_spill] sm:$0xff] }
 0xa12   : > { %6318 = vpow2.f32 %v3620_v38  ;;  %v3624_v22 = vmul.f32 1.442695, %v3522_v62  ;;  %v3626_v0 = vmul.f32 1.442695, %v3523_v48 }
 0xa13   : > { %6320 = vpow2.f32 %v3622_v60  ;;  %3722 = vadd.xlane.f32.xlu0 %v3721_v5  ;;  %v10574_v5 = vld [vmem:[#allocation86_spill] sm:$0xff] }
 0xa14   : > { %v8912_v53 = vpop.eup %6310  ;;  %6322 = vpow2.f32 %v3624_v22 }
 0xa15   : > { %10567 = vst [vmem:[#allocation80_spill] sm:$0xff] %v8912_v53  ;;  %v8914_v50 = vpop.eup %6312  ;;  %6324 = vpow2.f32 %v3626_v0  ;;  %v3450_v40 = vpop.xlane.xlu1 %3449 }
 0xa16   : > { %10568 = vst [vmem:[#allocation81_spill] sm:$0xff] %v8914_v50  ;;  %v8916_v39 = vpop.eup %6314  ;;  %v3524_v52 = vsub.f32 %v10570_v51, %v3450_v40  ;;  %v3525_v25 = vsub.f32 %v10571_v45, %v3450_v40  ;;  %v3724_v34 = vadd.f32 %v8914_v50, %v8912_v53 }
 0xa17   : > { %10569 = vst [vmem:[#allocation82_spill] sm:$0xff] %v8916_v39  ;;  %v8922_v38 = vpop.eup %6316  ;;  %v3453_v60 = vpop.xlane.xlu0 %3452 }
 0xa18   : > { %10572 = vst [vmem:[#allocation83_spill] sm:$0xff] %v8922_v38  ;;  %v3628_v8 = vmul.f32 1.442695, %v3524_v52  ;;  %v3630_v62 = vmul.f32 1.442695, %v3525_v25  ;;  %3725 = vadd.xlane.f32.xlu1 %v3724_v34  ;;  %v3526_v48 = vsub.f32 %v10573_v20, %v3453_v60  ;;  %v3527_v22 = vsub.f32 %v10574_v5, %v3453_v60  ;;  %v10575_v34 = vld [vmem:[#allocation87_spill] sm:$0xff] }
 0xa19   : > { %v3727_v0 = vadd.f32 %v8922_v38, %v8916_v39  ;;  %v10576_v60 = vld [vmem:[#allocation88_spill] sm:$0xff]  ;;  %v10578_v39 = vld [vmem:[#allocation90_spill] sm:$0xff] }
 0xa1a   : > { %6326 = vpow2.f32 %v3628_v8  ;;  %v3632_v51 = vmul.f32 1.442695, %v3526_v48  ;;  %v3634_v6 = vmul.f32 1.442695, %v3527_v22 }
 0xa1b   : > { %6328 = vpow2.f32 %v3630_v62  ;;  %3728 = vadd.xlane.f32.xlu0 %v3727_v0 }
 0xa1c   : > { %v8928_v40 = vpop.eup %6318  ;;  %6330 = vpow2.f32 %v3632_v51  ;;  %v10577_v51 = vld [vmem:[#allocation89_spill] sm:$0xff] }
 0xa1d   : > { %v8930_v45 = vpop.eup %6320  ;;  %6332 = vpow2.f32 %v3634_v6  ;;  %v3456_v52 = vpop.xlane.xlu1 %3455 }
 0xa1e   : > { %v8932_v25 = vpop.eup %6322  ;;  %v3528_v20 = vsub.f32 %v10575_v34, %v3456_v52  ;;  %v3529_v5 = vsub.f32 %v10576_v60, %v3456_v52  ;;  %v3730_v8 = vadd.f32 %v8930_v45, %v8928_v40 }
 0xa1f   : > { %v8938_v48 = vpop.eup %6324  ;;  %v3459_v62 = vpop.xlane.xlu0 %3458 }
 0xa20   : > { %v3636_v22 = vmul.f32 1.442695, %v3528_v20  ;;  %v3638_v0 = vmul.f32 1.442695, %v3529_v5  ;;  %3731 = vadd.xlane.f32.xlu1 %v3730_v8  ;;  %v3530_v53 = vsub.f32 %v10577_v51, %v3459_v62  ;;  %v3531_v6 = vsub.f32 %v10578_v39, %v3459_v62  ;;  %v10581_v8 = vld [vmem:[#allocation91_spill] sm:$0xff]  ;;  %v10582_v39 = vld [vmem:[#allocation92_spill] sm:$0xff] }
 0xa21   : > { %v3733_v38 = vadd.f32 %v8938_v48, %v8932_v25 }
 0xa22   : > { %6334 = vpow2.f32 %v3636_v22  ;;  %v3640_v34 = vmul.f32 1.442695, %v3530_v53  ;;  %v3642_v50 = vmul.f32 1.442695, %v3531_v6 }
 0xa23   : > { %6336 = vpow2.f32 %v3638_v0  ;;  %3734 = vadd.xlane.f32.xlu0 %v3733_v38 }
 0xa24   : > { %v8944_v52 = vpop.eup %6326  ;;  %6338 = vpow2.f32 %v3640_v34 }
 0xa25   : > { %10579 = vst [vmem:[#allocation84_spill] sm:$0xff] %v8944_v52  ;;  %v8946_v60 = vpop.eup %6328  ;;  %6340 = vpow2.f32 %v3642_v50  ;;  %v3462_v20 = vpop.xlane.xlu1 %3461 }
 0xa26   : > { %v8948_v5 = vpop.eup %6330  ;;  %v3532_v51 = vsub.f32 %v10581_v8, %v3462_v20  ;;  %v3533_v62 = vsub.f32 %v10582_v39, %v3462_v20  ;;  %v3736_v22 = vadd.f32 %v8946_v60, %v8944_v52 }
 0xa27   : > { %10580 = vst [vmem:[#allocation85_spill] sm:$0xff] %v8948_v5  ;;  %v8954_v53 = vpop.eup %6332 }
 0xa28   : > { %10583 = vst [vmem:[#allocation86_spill] sm:$0xff] %v8954_v53  ;;  %v3644_v0 = vmul.f32 1.442695, %v3532_v51  ;;  %v3646_v38 = vmul.f32 1.442695, %v3533_v62  ;;  %3737 = vadd.xlane.f32.xlu1 %v3736_v22  ;;  %v3739_v6 = vadd.f32 %v8954_v53, %v8948_v5 }
 0xa2a   : > { %6342 = vpow2.f32 %v3644_v0  ;;  %3740 = vadd.xlane.f32.xlu0 %v3739_v6 }
 0xa2b   : > { %6344 = vpow2.f32 %v3646_v38  ;;  %v570_v38 = vld [vmem:[%s10149_s4 + $0x30] sm:$0xff] }
 0xa2c   : > { %v8958_v50 = vpop.eup %6334 }
 0xa2d   : > { %10584 = vst [vmem:[#allocation87_spill] sm:$0xff] %v8958_v50  ;;  %v8960_v34 = vpop.eup %6336 }
 0xa2e   : > { %10585 = vst [vmem:[#allocation88_spill] sm:$0xff] %v8960_v34  ;;  %v8962_v8 = vpop.eup %6338  ;;  %v3742_v20 = vadd.f32 %v8960_v34, %v8958_v50 }
 0xa2f   : > { %10586 = vst [vmem:[#allocation89_spill] sm:$0xff] %v8962_v8  ;;  %v8966_v39 = vpop.eup %6340 }
 0xa30   : > { %10587 = vst [vmem:[#allocation90_spill] sm:$0xff] %v8966_v39  ;;  %3743 = vadd.xlane.f32.xlu1 %v3742_v20  ;;  %v3745_v51 = vadd.f32 %v8966_v39, %v8962_v8 }
 0xa32   : > { %3746 = vadd.xlane.f32.xlu0 %v3745_v51 }
 0xa34   : > { %v8970_v62 = vpop.eup %6342 }
 0xa35   : > { %10588 = vst [vmem:[#allocation91_spill] sm:$0xff] %v8970_v62  ;;  %v8972_v22 = vpop.eup %6344 }
 0xa36   : > { %10589 = vst [vmem:[#allocation92_spill] sm:$0xff] %v8972_v22  ;;  %v3748_v0 = vadd.f32 %v8972_v22, %v8970_v62 }
 0xa38   : > { %3749 = vadd.xlane.f32.xlu1 %v3748_v0 }
 0xa49   : > { %644 = vperm.xlu1 %5821, %v570_v38  }
 0xa65   : > { %v3678_v6 = vpop.xlane.xlu1 %3677 }
 0xa66   : > { %6346 = vrcp.f32 %v3678_v6 }
 0xa68   : > { %v3681_v20 = vpop.xlane.xlu0 %3680 }
 0xa69   : > { %6348 = vrcp.f32 %v3681_v20  ;;  %v3468_v50 = vpop.xlane.xlu1 %3467 }
 0xa6a   : > { %v3536_v51 = vsub.f32 %v8719_v24, %v3468_v50  ;;  %v3537_v8 = vsub.f32 %v8721_v12, %v3468_v50 }
 0xa6c   : > { %v3652_v39 = vmul.f32 1.442695, %v3536_v51  ;;  %v3654_v34 = vmul.f32 1.442695, %v3537_v8  ;;  %v3465_v52 = vpop.xlane.xlu0 %3464 }
 0xa6d   : > { %v3534_v62 = vsub.f32 %v8713_v14, %v3465_v52  ;;  %v3535_v0 = vsub.f32 %v8715_v42, %v3465_v52  ;;  %v3684_v22 = vpop.xlane.xlu1 %3683 }
 0xa6e   : > { %6350 = vpow2.f32 %v3652_v39 }
 0xa6f   : > { %6352 = vpow2.f32 %v3654_v34  ;;  %v3648_v38 = vmul.f32 1.442695, %v3534_v62  ;;  %v3650_v5 = vmul.f32 1.442695, %v3535_v0 }
 0xa70   : > { %v6347_v6 = vpop.eup %6346  ;;  %6354 = vrcp.f32 %v3684_v22 }
 0xa71   : > { %6356 = vpow2.f32 %v3648_v38  ;;  %v3474_v20 = vpop.xlane.xlu1 %3473  ;;  %v3687_v53 = vpop.xlane.xlu0 %3686  ;;  %v3805_v14 = vmul.f32 %v6347_v6, %v8765_v3  ;;  %v3804_v22 = vmul.f32 %v6347_v6, %v8763_v7 }
 0xa72   : > { %6358 = vpow2.f32 %v3650_v5  ;;  %v3540_v12 = vsub.f32 %v8731_v4, %v3474_v20  ;;  %v3541_v24 = vsub.f32 %v8733_v56, %v3474_v20 }
 0xa73   : > { %v6349_v50 = vpop.eup %6348  ;;  %6360 = vrcp.f32 %v3687_v53 }
 0xa74   : > { %v3660_v42 = vmul.f32 1.442695, %v3540_v12  ;;  %v3662_v52 = vmul.f32 1.442695, %v3541_v24  ;;  %v3807_v34 = vmul.f32 %v6349_v50, %v8773_v33  ;;  %v3806_v8 = vmul.f32 %v6349_v50, %v8767_v30 }
 0xa75   : > { %v3690_v39 = vpop.xlane.xlu1 %3689  ;;  %v3471_v62 = vpop.xlane.xlu0 %3470 }
 0xa76   : > { %6362 = vpow2.f32 %v3660_v42  ;;  %v3538_v5 = vsub.f32 %v8725_v31, %v3471_v62  ;;  %v3539_v4 = vsub.f32 %v8727_v63, %v3471_v62  ;;  %v3869_v56 = vpack.c.bf16 %v3807_v34, %v3805_v14 }
 0xa77   : > { %6364 = vpow2.f32 %v3662_v52  ;;  %v3868_v53 = vpack.c.bf16 %v3806_v8, %v3804_v22 }
 0xa78   : > { %v8991_v51 = vpop.eup %6350  ;;  %v3656_v3 = vmul.f32 1.442695, %v3538_v5  ;;  %v3658_v0 = vmul.f32 1.442695, %v3539_v4  ;;  %3900 = vmatprep.subr.bf16.mxu1 %v3869_v56  ;;  %6366 = vrcp.f32 %v3690_v39 }
 0xa79   : > { %v8993_v33 = vpop.eup %6352  ;;  %3901 = vmatpush1.bf16.xpose.msra.mxu1 %v3868_v53  ;;  %v3480_v30 = vpop.xlane.xlu1 %3479 }
 0xa7a   : > { %v3693_v38 = vpop.xlane.xlu0 %3692  ;;  %v6355_v7 = vpop.eup %6354  ;;  %6368 = vpow2.f32 %v3656_v3  ;;  %v3544_v31 = vsub.f32 %v8743_v36, %v3480_v30  ;;  %v3545_v63 = vsub.f32 %v8745_v32, %v3480_v30  ;;  %v3754_v6 = vadd.f32 %v8993_v33, %v8991_v51 }
 0xa7b   : > { %v8999_v20 = vpop.eup %6356  ;;  %6370 = vpow2.f32 %v3658_v0  ;;  %v3809_v36 = vmul.f32 %v6355_v7, %v8784_v46  ;;  %v3808_v62 = vmul.f32 %v6355_v7, %v8779_v10 }
 0xa7c   : > { %v9001_v12 = vpop.eup %6358  ;;  %v3668_v24 = vmul.f32 1.442695, %v3544_v31  ;;  %v3670_v50 = vmul.f32 1.442695, %v3545_v63  ;;  %6372 = vrcp.f32 %v3693_v38  ;;  %3755 = vadd.xlane.f32.xlu1 %v3754_v6 }
 0xa7d   : > { %v6361_v14 = vpop.eup %6360  ;;  %v3751_v42 = vadd.f32 %v9001_v12, %v8999_v20  ;;  %v3696_v32 = vpop.xlane.xlu1 %3695 }
 0xa7e   : > { %v3477_v52 = vpop.xlane.xlu0 %3476  ;;  %6374 = vpow2.f32 %v3668_v24  ;;  %v3811_v39 = vmul.f32 %v6361_v14, %v8797_v61  ;;  %v3810_v22 = vmul.f32 %v6361_v14, %v8793_v18 }
 0xa7f   : > { %v3542_v34 = vsub.f32 %v8737_v29, %v3477_v52  ;;  %v3543_v8 = vsub.f32 %v8739_v23, %v3477_v52  ;;  %6376 = vpow2.f32 %v3670_v50  ;;  %3752 = vadd.xlane.f32.xlu0 %v3751_v42 }
 0xa80   : > { %v9011_v5 = vpop.eup %6362  ;;  %v3871_v53 = vpack.c.bf16 %v3811_v39, %v3809_v36  ;;  %6378 = vrcp.f32 %v3696_v32  ;;  %v3870_v29 = vpack.c.bf16 %v3810_v22, %v3808_v62 }
 0xa81   : > { %v3664_v4 = vmul.f32 1.442695, %v3542_v34  ;;  %v3666_v56 = vmul.f32 1.442695, %v3543_v8  ;;  %v9013_v46 = vpop.eup %6364 }
 0xa82   : > { %v3699_v3 = vpop.xlane.xlu0 %3698  ;;  %3902 = vmatprep.subr.bf16.mxu1 %v3871_v53  ;;  %v3760_v23 = vadd.f32 %v9013_v46, %v9011_v5  ;;  %v6367_v61 = vpop.eup %6366 }
 0xa83   : > { %6380 = vpow2.f32 %v3664_v4  ;;  %3903 = vmatpush1.bf16.xpose.msra.mxu1 %v3870_v29  ;;  %v3813_v6 = vmul.f32 %v6367_v61, %v8806_v58  ;;  %v3812_v50 = vmul.f32 %v6367_v61, %v8801_v57 }
 0xa84   : > { %6382 = vpow2.f32 %v3666_v56  ;;  %v9017_v10 = vpop.eup %6368  ;;  %3761 = vadd.xlane.f32.xlu1 %v3760_v23 }
 0xa85   : > { %6384 = vrcp.f32 %v3699_v3  ;;  %v9019_v18 = vpop.eup %6370  ;;  %v3702_v38 = vpop.xlane.xlu1 %3701 }
 0xa86   : > { %v3483_v0 = vpop.xlane.xlu0 %3482  ;;  %v6373_v30 = vpop.eup %6372  ;;  %v3757_v63 = vadd.f32 %v9019_v18, %v9017_v10  ;;  %6386 = vrcp.f32 %v3702_v38 }
 0xa87   : > { %v3546_v7 = vsub.f32 %v8749_v15, %v3483_v0  ;;  %v3547_v31 = vsub.f32 %v8751_v44, %v3483_v0  ;;  %v3815_v24 = vmul.f32 %v6373_v30, %v8814_v35  ;;  %v3814_v14 = vmul.f32 %v6373_v30, %v8808_v37 }
 0xa88   : > { %v9029_v42 = vpop.eup %6374  ;;  %3758 = vadd.xlane.f32.xlu0 %v3757_v63 }
 0xa89   : > { %v3672_v52 = vmul.f32 1.442695, %v3546_v7  ;;  %v3674_v36 = vmul.f32 1.442695, %v3547_v31  ;;  %v9031_v32 = vpop.eup %6376  ;;  %v3873_v15 = vpack.c.bf16 %v3815_v24, %v3813_v6  ;;  %v3872_v34 = vpack.c.bf16 %v3814_v14, %v3812_v50  ;;  %v596_v14 = vld [vmem:[%s10149_s4 + $0x100] sm:$0xff] }
 0xa8a   : > { %v3705_v44 = vpop.xlane.xlu0 %3704  ;;  %v3766_v58 = vadd.f32 %v9031_v32, %v9029_v42  ;;  %v6379_v35 = vpop.eup %6378 }
 0xa8b   : > { %6388 = vpow2.f32 %v3672_v52  ;;  %3904 = vmatprep.subr.bf16.mxu1 %v3873_v15  ;;  %v3817_v22 = vmul.f32 %v6379_v35, %v8828_v59  ;;  %v3816_v56 = vmul.f32 %v6379_v35, %v8823_v2 }
 0xa8c   : > { %6390 = vpow2.f32 %v3674_v36  ;;  %3905 = vmatpush1.bf16.xpose.msra.mxu1 %v3872_v34  ;;  %3767 = vadd.xlane.f32.xlu1 %v3766_v58  ;;  %v597_v36 = vld [vmem:[%s10149_s4 + $0x108] sm:$0xff] }
 0xa8d   : > { %v9035_v57 = vpop.eup %6380  ;;  %6392 = vrcp.f32 %v3705_v44  ;;  %v3708_v8 = vpop.xlane.xlu1 %3707 }
 0xa8e   : > { %v9037_v37 = vpop.eup %6382  ;;  %6394 = vrcp.f32 %v3708_v8 }
 0xa8f   : > { %v6385_v39 = vpop.eup %6384  ;;  %v3763_v62 = vadd.f32 %v9037_v37, %v9035_v57 }
 0xa90   : > { %v3819_v4 = vmul.f32 %v6385_v39, %v8836_v13  ;;  %v3818_v53 = vmul.f32 %v6385_v39, %v8830_v43  ;;  %v3711_v3 = vpop.xlane.xlu0 %3710  ;;  %v6387_v61 = vpop.eup %6386 }
 0xa91   : > { %3764 = vadd.xlane.f32.xlu0 %v3763_v62  ;;  %6396 = vrcp.f32 %v3711_v3  ;;  %v3821_v2 = vmul.f32 %v6387_v61, %v8847_v41  ;;  %v3820_v7 = vmul.f32 %v6387_v61, %v8845_v11 }
 0xa92   : > { %v3875_v29 = vpack.c.bf16 %v3819_v4, %v3817_v22  ;;  %v3874_v23 = vpack.c.bf16 %v3818_v53, %v3816_v56 }
 0xa94   : > { %3906 = vmatprep.subr.bf16.mxu1 %v3875_v29  ;;  %v571_v29 = vld [vmem:[%s10149_s4 + $0x38] sm:$0xff] }
 0xa95   : > { %v9045_v0 = vpop.eup %6388  ;;  %3907 = vmatpush1.bf16.xpose.msra.mxu1 %v3874_v23  ;;  %v3714_v59 = vpop.xlane.xlu1 %3713 }
 0xa96   : > { %v9047_v30 = vpop.eup %6390  ;;  %6398 = vrcp.f32 %v3714_v59  ;;  %v579_v59 = vld [vmem:[%s10149_s4 + $0x78] sm:$0xff] }
 0xa97   : > { %v6393_v38 = vpop.eup %6392  ;;  %v3769_v13 = vadd.f32 %v9047_v30, %v9045_v0 }
 0xa98   : > { %v3823_v43 = vmul.f32 %v6393_v38, %v8855_v54  ;;  %v3822_v31 = vmul.f32 %v6393_v38, %v8849_v26  ;;  %v3717_v63 = vpop.xlane.xlu0 %3716  ;;  %v6395_v6 = vpop.eup %6394 }
 0xa99   : > { %3770 = vadd.xlane.f32.xlu0 %v3769_v13  ;;  %6400 = vrcp.f32 %v3717_v63  ;;  %v3825_v41 = vmul.f32 %v6395_v6, %v8866_v17  ;;  %v3824_v34 = vmul.f32 %v6395_v6, %v8864_v9  ;;  %v601_v9 = vld [vmem:[%s10149_s4 + $0x128] sm:$0xff]  ;;  %v598_v13 = vld [vmem:[%s10149_s4 + $0x110] sm:$0xff]  ;;  %v600_v63 = vld [vmem:[%s10149_s4 + $0x120] sm:$0xff] }
 0xa9a   : > { %v3877_v24 = vpack.c.bf16 %v3823_v43, %v3821_v2  ;;  %v3876_v50 = vpack.c.bf16 %v3822_v31, %v3820_v7 }
 0xa9b   : > { %v6397_v52 = vpop.eup %6396 }
 0xa9c   : > { %3908 = vmatprep.subr.bf16.mxu1 %v3877_v24  ;;  %v3827_v54 = vmul.f32 %v6397_v52, %v8874_v27  ;;  %v3826_v15 = vmul.f32 %v6397_v52, %v8868_v47  ;;  %v599_v27 = vld [vmem:[%s10149_s4 + $0x118] sm:$0xff] }
 0xa9d   : > { %3909 = vmatpush1.bf16.xpose.msra.mxu1 %v3876_v50  ;;  %774 = vperm.xlu1 %5821, %v596_v14   ;;  %v3720_v11 = vpop.xlane.xlu1 %3719  ;;  %v10592_v24 = vld [vmem:[#allocation83_spill] sm:$0xff] }
 0xa9e   : > { %v3879_v26 = vpack.c.bf16 %v3827_v54, %v3825_v41  ;;  %6402 = vrcp.f32 %v3720_v11  ;;  %v3878_v17 = vpack.c.bf16 %v3826_v15, %v3824_v34  ;;  %v10593_v41 = vld [vmem:[#allocation82_spill] sm:$0xff] }
 0xaa0   : > { %3910 = vmatprep.subr.bf16.mxu1 %v3879_v26  ;;  %v3723_v44 = vpop.xlane.xlu0 %3722  ;;  %v6399_v58 = vpop.eup %6398  ;;  %v602_v26 = vld [vmem:[%s10149_s4 + $0x130] sm:$0xff] }
 0xaa1   : > { %6404 = vrcp.f32 %v3723_v44  ;;  %779 = vperm.xlu1 %5821, %v597_v36   ;;  %v3829_v8 = vmul.f32 %v6399_v58, %v8882_v49  ;;  %v3828_v56 = vmul.f32 %v6399_v58, %v8880_v55  ;;  %v10594_v36 = vld [vmem:[#allocation80_spill] sm:$0xff] }
 0xaa3   : > { %v6401_v35 = vpop.eup %6400 }
 0xaa4   : > { %v3831_v39 = vmul.f32 %v6401_v35, %v8890_v28  ;;  %v3830_v22 = vmul.f32 %v6401_v35, %v8884_v1  ;;  %v603_v28 = vld [vmem:[%s10149_s4 + $0x138] sm:$0xff] }
 0xaa5   : > { %3911 = vmatpush1.bf16.xpose.msra.mxu1 %v3878_v17  ;;  %789 = vperm.xlu1 %5821, %v599_v27   ;;  %v3726_v47 = vpop.xlane.xlu1 %3725  ;;  %v578_v17 = vld [vmem:[%s10149_s4 + $0x70] sm:$0xff] }
 0xaa6   : > { %v3881_v62 = vpack.c.bf16 %v3831_v39, %v3829_v8  ;;  %6406 = vrcp.f32 %v3726_v47  ;;  %v3880_v49 = vpack.c.bf16 %v3830_v22, %v3828_v56 }
 0xaa8   : > { %3912 = vmatprep.subr.bf16.mxu1 %v3881_v62  ;;  %v3729_v4 = vpop.xlane.xlu0 %3728  ;;  %v6403_v53 = vpop.eup %6402 }
 0xaa9   : > { %6408 = vrcp.f32 %v3729_v4  ;;  %799 = vperm.xlu1 %5821, %v601_v9   ;;  %v3833_v1 = vmul.f32 %v6403_v53, %v8898_v21  ;;  %v10590_v21 = vld [vmem:[#allocation93_spill] sm:$0xff] }
 0xaaa   : > { %v3832_v43 = vmul.f32 %v6403_v53, %v10590_v21  ;;  %v10601_v21 = vld [vmem:[#allocation87_spill] sm:$0xff] }
 0xaab   : > { %v6405_v3 = vpop.eup %6404 }
 0xaac   : > { %v3835_v23 = vmul.f32 %v6405_v3, %v8906_v16  ;;  %v3834_v38 = vmul.f32 %v6405_v3, %v8900_v19  ;;  %v10591_v19 = vld [vmem:[#allocation81_spill] sm:$0xff] }
 0xaad   : > { %3913 = vmatpush1.bf16.xpose.msra.mxu1 %v3880_v49  ;;  %809 = vperm.xlu1 %5821, %v603_v28   ;;  %v3732_v55 = vpop.xlane.xlu1 %3731  ;;  %v10595_v49 = vld [vmem:[#allocation86_spill] sm:$0xff]  ;;  %v10596_v28 = vld [vmem:[#allocation85_spill] sm:$0xff] }
 0xaae   : > { %v3883_v61 = vpack.c.bf16 %v3835_v23, %v3833_v1  ;;  %6410 = vrcp.f32 %v3732_v55  ;;  %v3882_v7 = vpack.c.bf16 %v3834_v38, %v3832_v43  ;;  %v10597_v1 = vld [vmem:[#allocation84_spill] sm:$0xff]  ;;  %v10599_v38 = vld [vmem:[#allocation90_spill] sm:$0xff] }
 0xaaf   : > { %649 = vperm.xlu0 %5820, %v571_v29  }
 0xab0   : > { %3914 = vmatprep.subr.bf16.mxu1 %v3883_v61  ;;  %v3735_v2 = vpop.xlane.xlu0 %3734  ;;  %v6407_v16 = vpop.eup %6406  ;;  %v10598_v61 = vld [vmem:[#allocation88_spill] sm:$0xff] }
 0xab1   : > { %6412 = vrcp.f32 %v3735_v2  ;;  %689 = vperm.xlu1 %5821, %v579_v59   ;;  %v3837_v6 = vmul.f32 %v6407_v16, %v10591_v19  ;;  %v3836_v15 = vmul.f32 %v6407_v16, %v10594_v36  ;;  %v10600_v2 = vld [vmem:[#allocation89_spill] sm:$0xff] }
 0xab3   : > { %784 = vperm.xlu0 %5820, %v598_v13   ;;  %v6409_v31 = vpop.eup %6408 }
 0xab4   : > { %v3839_v50 = vmul.f32 %v6409_v31, %v10592_v24  ;;  %v3838_v54 = vmul.f32 %v6409_v31, %v10593_v41 }
 0xab5   : > { %3915 = vmatpush1.bf16.xpose.msra.mxu1 %v3882_v7  ;;  %v3738_v14 = vpop.xlane.xlu1 %3737 }
 0xab6   : > { %6414 = vrcp.f32 %v3738_v14  ;;  %v3885_v52 = vpack.c.bf16 %v3839_v50, %v3837_v6  ;;  %v3884_v34 = vpack.c.bf16 %v3838_v54, %v3836_v15 }
 0xab7   : > { %794 = vperm.xlu0 %5820, %v600_v63   ;;  %v3741_v11 = vpop.xlane.xlu0 %3740 }
 0xab8   : > { %3916 = vmatprep.subr.bf16.mxu1 %v3885_v52  ;;  %6416 = vrcp.f32 %v3741_v11  ;;  %v6411_v44 = vpop.eup %6410  ;;  %v10602_v52 = vld [vmem:[#allocation92_spill] sm:$0xff]  ;;  %v10603_v11 = vld [vmem:[#allocation91_spill] sm:$0xff] }
 0xab9   : > { %v3841_v27 = vmul.f32 %v6411_v44, %v8930_v45  ;;  %v3840_v22 = vmul.f32 %v6411_v44, %v8928_v40 }
 0xabb   : > { %804 = vperm.xlu0 %5820, %v602_v26   ;;  %v6413_v58 = vpop.eup %6412 }
 0xabc   : > { %v3843_v35 = vmul.f32 %v6413_v58, %v8938_v48  ;;  %v3842_v47 = vmul.f32 %v6413_v58, %v8932_v25 }
 0xabd   : > { %3917 = vmatpush1.bf16.xpose.msra.mxu1 %v3884_v34  ;;  %v3744_v8 = vpop.xlane.xlu1 %3743 }
 0xabe   : > { %6418 = vrcp.f32 %v3744_v8  ;;  %v3887_v39 = vpack.c.bf16 %v3843_v35, %v3841_v27  ;;  %v3886_v56 = vpack.c.bf16 %v3842_v47, %v3840_v22  ;;  %v10605_v22 = vld [vmem:[#allocation60_spill] sm:$0xff] }
 0xabf   : > { %684 = vperm.xlu0 %5820, %v578_v17   ;;  %v3747_v62 = vpop.xlane.xlu0 %3746 }
 0xac0   : > { %v6415_v9 = vpop.eup %6414  ;;  %3918 = vmatprep.subr.bf16.mxu1 %v3887_v39  ;;  %6420 = vrcp.f32 %v3747_v62  ;;  %v10604_v62 = vld [vmem:[#allocation61_spill] sm:$0xff] }
 0xac1   : > { %v3845_v53 = vmul.f32 %v6415_v9, %v8946_v60  ;;  %v3844_v25 = vmul.f32 %v6415_v9, %v10597_v1 }
 0xac2   : > { %v6417_v4 = vpop.eup %6416 }
 0xac3   : > { %v3847_v45 = vmul.f32 %v6417_v4, %v10595_v49  ;;  %v3846_v3 = vmul.f32 %v6417_v4, %v10596_v28  ;;  %v10607_v49 = vld [vmem:[#allocation50_spill] sm:$0xff] }
 0xac5   : > { %3919 = vmatpush1.bf16.xpose.msra.mxu1 %v3886_v56  ;;  %v3889_v48 = vpack.c.bf16 %v3847_v45, %v3845_v53  ;;  %v3888_v55 = vpack.c.bf16 %v3846_v3, %v3844_v25  ;;  %v3750_v7 = vpop.xlane.xlu1 %3749  ;;  %v10606_v56 = vld [vmem:[#allocation11_spill] sm:$0xff] }
 0xac6   : > { %6422 = vrcp.f32 %v3750_v7  ;;  %v10611_v7 = vld [vmem:[#allocation19_spill] sm:$0xff] }
 0xac7   : > { %3920 = vmatprep.subr.bf16.mxu1 %v3889_v48 }
 0xac8   : > { %v6419_v29 = vpop.eup %6418 }
 0xac9   : > { %v3849_v59 = vmul.f32 %v6419_v29, %v10598_v61  ;;  %v3848_v43 = vmul.f32 %v6419_v29, %v10601_v21  ;;  %v645_v63 = vpop.permute.xlu1 %644 }
 0xaca   : > { %v6421_v23 = vpop.eup %6420 }
 0xacb   : > { %v3851_v40 = vmul.f32 %v6421_v23, %v10599_v38  ;;  %v3850_v60 = vmul.f32 %v6421_v23, %v10600_v2 }
 0xacd   : > { %3921 = vmatpush1.bf16.xpose.msra.mxu1 %v3888_v55  ;;  %v3891_v13 = vpack.c.bf16 %v3851_v40, %v3849_v59  ;;  %v3890_v16 = vpack.c.bf16 %v3850_v60, %v3848_v43  ;;  %v10609_v60 = vld [vmem:[#allocation17_spill] sm:$0xff]  ;;  %v10610_v43 = vld [vmem:[#allocation18_spill] sm:$0xff] }
 0xace   : > { %v1112_v21 = vadd.f32 %v10609_v60, %v645_v63 }
 0xacf   : > { %3922 = vmatprep.subr.bf16.mxu1 %v3891_v13  ;;  %v10608_v13 = vld [vmem:[#allocation16_spill] sm:$0xff] }
 0xad0   : > { %v6423_v6 = vpop.eup %6422  ;;  %v1110_v2 = vadd.f32 %v10608_v13, %v645_v63 }
 0xad1   : > { %v3853_v41 = vmul.f32 %v6423_v6, %v10602_v52  ;;  %v3852_v26 = vmul.f32 %v6423_v6, %v10603_v11  ;;  %v10612_v52 = vld [vmem:[#allocation53_spill] sm:$0xff]  ;;  %v10614_v11 = vld [vmem:[#allocation62_spill] sm:$0xff] }
 0xad5   : > { %3923 = vmatpush1.bf16.xpose.msra.mxu1 %v3890_v16 }
 0xb09   : > { %v3756_v19 = vpop.xlane.xlu1 %3755 }
 0xb0c   : > { %v3753_v31 = vpop.xlane.xlu0 %3752 }
 0xb0d   : > { %6424 = vrcp.f32 %v3753_v31 }
 0xb0e   : > { %6426 = vrcp.f32 %v3756_v19 }
 0xb11   : > { %v3762_v24 = vpop.xlane.xlu1 %3761 }
 0xb15   : > { %v3759_v50 = vpop.xlane.xlu0 %3758 }
 0xb16   : > { %6428 = vrcp.f32 %v3759_v50 }
 0xb17   : > { %v6425_v14 = vpop.eup %6424  ;;  %6430 = vrcp.f32 %v3762_v24 }
 0xb18   : > { %v3855_v54 = vmul.f32 %v6425_v14, %v9001_v12  ;;  %v3854_v36 = vmul.f32 %v6425_v14, %v8999_v20  ;;  %v6427_v27 = vpop.eup %6426 }
 0xb19   : > { %v3768_v15 = vpop.xlane.xlu1 %3767  ;;  %v3857_v39 = vmul.f32 %v6427_v27, %v8993_v33  ;;  %v3856_v47 = vmul.f32 %v6427_v27, %v8991_v51 }
 0xb1a   : > { %v3893_v44 = vpack.c.bf16 %v3855_v54, %v3853_v41  ;;  %v3892_v34 = vpack.c.bf16 %v3854_v36, %v3852_v26  ;;  %v10613_v41 = vld [vmem:[#allocation52_spill] sm:$0xff]  ;;  %v10615_v36 = vld [vmem:[#allocation10_spill] sm:$0xff] }
 0xb1c   : > { %3924 = vmatprep.subr.bf16.mxu1 %v3893_v44 }
 0xb1d   : > { %3925 = vmatpush1.bf16.xpose.msra.mxu1 %v3892_v34  ;;  %v775_v58 = vpop.permute.xlu1 %774 }
 0xb1e   : > { %v3765_v17 = vpop.xlane.xlu0 %3764  ;;  %v9125_v9 = vadd.f32 %v10604_v62, %v775_v58  ;;  %v1242_v4 = vadd.f32 %v10605_v22, %v775_v58  ;;  %v10620_v22 = vld [vmem:[#allocation58_spill] sm:$0xff] }
 0xb1f   : > { %6432 = vrcp.f32 %v3765_v17 }
 0xb20   : > { %v6429_v35 = vpop.eup %6428  ;;  %6434 = vrcp.f32 %v3768_v15 }
 0xb21   : > { %v780_v8 = vpop.permute.xlu1 %779  ;;  %v3859_v12 = vmul.f32 %v6429_v35, %v9019_v18  ;;  %v3858_v20 = vmul.f32 %v6429_v35, %v9017_v10  ;;  %v6431_v10 = vpop.eup %6430 }
 0xb22   : > { %v9129_v53 = vadd.f32 %v10606_v56, %v780_v8  ;;  %v1246_v45 = vadd.f32 %v10607_v49, %v780_v8  ;;  %v3861_v1 = vmul.f32 %v6431_v10, %v9013_v46  ;;  %v3860_v23 = vmul.f32 %v6431_v10, %v9011_v5  ;;  %v10618_v8 = vld [vmem:[#allocation51_spill] sm:$0xff]  ;;  %v10621_v56 = vld [vmem:[#allocation12_spill] sm:$0xff]  ;;  %v10622_v49 = vld [vmem:[#allocation54_spill] sm:$0xff] }
 0xb23   : > { %v3895_v48 = vpack.c.bf16 %v3859_v12, %v3857_v39  ;;  %v3894_v28 = vpack.c.bf16 %v3858_v20, %v3856_v47  ;;  %v10619_v12 = vld [vmem:[#allocation55_spill] sm:$0xff] }
 0xb24   : > { %v1350_v33 = vpack.c.bf16 %v9129_v53, %v9125_v9  ;;  %v1351_v18 = vpack.c.bf16 %v1246_v45, %v1242_v4 }
 0xb25   : > { %3926 = vmatprep.subr.bf16.mxu1 %v3895_v48  ;;  %v790_v29 = vpop.permute.xlu1 %789  ;;  %v10623_v48 = vld [vmem:[#allocation59_spill] sm:$0xff] }
 0xb26   : > { %v3771_v51 = vpop.xlane.xlu0 %3770  ;;  %3927 = vmatpush1.bf16.xpose.msra.mxu1 %v3894_v28  ;;  %3932 = vmatprep.mubr.bf16.mxu1 %v1351_v18  ;;  %v1254_v63 = vadd.f32 %v10612_v52, %v790_v29  ;;  %v1256_v54 = vadd.f32 %v10613_v41, %v790_v29  ;;  %v10624_v29 = vld [vmem:[#allocation48_spill] sm:$0xff] }
 0xb27   : > { %6436 = vrcp.f32 %v3771_v51 }
 0xb29   : > { %v6433_v3 = vpop.eup %6432  ;;  %v800_v46 = vpop.permute.xlu1 %799 }
 0xb2a   : > { %v3863_v25 = vmul.f32 %v6433_v3, %v9037_v37  ;;  %v3862_v55 = vmul.f32 %v6433_v3, %v9035_v57  ;;  %v6435_v40 = vpop.eup %6434 }
 0xb2b   : > { %v3865_v57 = vmul.f32 %v6435_v40, %v9031_v32  ;;  %v3864_v50 = vmul.f32 %v6435_v40, %v9029_v42  ;;  %v10616_v42 = vld [vmem:[#allocation57_spill] sm:$0xff] }
 0xb2c   : > { %v3897_v61 = vpack.c.bf16 %v3863_v25, %v3861_v1  ;;  %v3896_v59 = vpack.c.bf16 %v3862_v55, %v3860_v23  ;;  %v1264_v27 = vadd.f32 %v10616_v42, %v800_v46  ;;  %v10625_v25 = vld [vmem:[#allocation49_spill] sm:$0xff]  ;;  %v10626_v55 = vld [vmem:[#allocation46_spill] sm:$0xff] }
 0xb2d   : > { %v810_v17 = vpop.permute.xlu1 %809 }
 0xb2e   : > { %3928 = vmatprep.subr.bf16.mxu1 %v3897_v61  ;;  %v650_v38 = vpop.permute.xlu0 %649  ;;  %v1274_v4 = vadd.f32 %v10620_v22, %v810_v17  ;;  %v1276_v53 = vadd.f32 %v10621_v56, %v810_v17 }
 0xb2f   : > { %v1114_v16 = vadd.f32 %v10610_v43, %v650_v38  ;;  %v1116_v31 = vadd.f32 %v10611_v7, %v650_v38  ;;  %3929 = vmatpush1.bf16.xpose.msra.mxu1 %v3896_v59  ;;  %v10627_v59 = vld [vmem:[#allocation47_spill] sm:$0xff] }
 0xb31   : > { %v6437_v37 = vpop.eup %6436  ;;  %v1324_v19 = vpack.c.bf16 %v1114_v16, %v1110_v2  ;;  %v1325_v5 = vpack.c.bf16 %v1116_v31, %v1112_v21  ;;  %v690_v18 = vpop.permute.xlu1 %689 }
 0xb32   : > { %v785_v6 = vpop.permute.xlu0 %784  ;;  %v3867_v24 = vmul.f32 %v6437_v37, %v9047_v30  ;;  %v3866_v14 = vmul.f32 %v6437_v37, %v9045_v0  ;;  %v10617_v0 = vld [vmem:[#allocation56_spill] sm:$0xff]  ;;  %v1154_v1 = vadd.f32 %v10624_v29, %v690_v18  ;;  %v1156_v23 = vadd.f32 %v10625_v25, %v690_v18 }
 0xb33   : > { %v1250_v26 = vadd.f32 %v10614_v11, %v785_v6  ;;  %v1252_v15 = vadd.f32 %v10615_v36, %v785_v6  ;;  %4005 = vxpose.xlu1.c.b16.start.end [1/1] (short) %v1325_v5, 128  ;;  %3989 = vxpose.xlu0.c.b16.start.end [1/1] (short) %v1324_v19, 128  ;;  %v1266_v35 = vadd.f32 %v10617_v0, %v800_v46 }
 0xb34   : > { %v3899_v44 = vpack.c.bf16 %v3867_v24, %v3865_v57  ;;  %v3898_v34 = vpack.c.bf16 %v3866_v14, %v3864_v50 }
 0xb35   : > { %v1353_v58 = vpack.c.bf16 %v1256_v54, %v1252_v15  ;;  %v1352_v32 = vpack.c.bf16 %v1254_v63, %v1250_v26 }
 0xb36   : > { %3930 = vmatprep.subr.bf16.mxu1 %v3899_v44  ;;  %v795_v30 = vpop.permute.xlu0 %794 }
 0xb37   : > { %v1260_v39 = vadd.f32 %v10618_v8, %v795_v30  ;;  %v1262_v47 = vadd.f32 %v10619_v12, %v795_v30  ;;  %3931 = vmatpush1.bf16.xpose.msra.mxu1 %v3898_v34 }
 0xb39   : > { %v1355_v20 = vpack.c.bf16 %v1266_v35, %v1262_v47  ;;  %v1354_v62 = vpack.c.bf16 %v1264_v27, %v1260_v39 }
 0xb3a   : > { %v805_v9 = vpop.permute.xlu0 %804 }
 0xb3b   : > { %v1270_v45 = vadd.f32 %v10622_v49, %v805_v9  ;;  %v1272_v28 = vadd.f32 %v10623_v48, %v805_v9 }
 0xb3d   : > { %v1357_v51 = vpack.c.bf16 %v1276_v53, %v1272_v28  ;;  %v1356_v10 = vpack.c.bf16 %v1274_v4, %v1270_v45 }
 0xb3e   : > { %3933 = vmatmul.mubr.bf16.vlgmr.msra.gmra.mrb[152].mxu1 %v1350_v33  ;;  %v685_v3 = vpop.permute.xlu0 %684  ;;  %v10628_v33 = vmov 0  }
 0xb3f   : > { %v1150_v61 = vadd.f32 %v10626_v55, %v685_v3  ;;  %v1152_v38 = vadd.f32 %v10627_v59, %v685_v3  ;;  %3942 = vmatprep.mubr.bf16.mxu1 %v1353_v58 }
 0xb41   : > { %v1332_v40 = vpack.c.bf16 %v1154_v1, %v1150_v61  ;;  %v1333_v13 = vpack.c.bf16 %v1156_v23, %v1152_v38 }
 0xb43   : > { %4069 = vmatprep.subr.bf16.mxu1 %v1333_v13 }
 0xb44   : > { %4070 = vmatpush1.bf16.msra.mxu1 %v1332_v40 }
 0xb46   : > { %3943 = vmatmul.mubr.bf16.gmra.mrb[156].mxu1 %v1352_v32 }
 0xb47   : > { %3952 = vmatprep.mubr.bf16.mxu1 %v1355_v20 }
 0xb4e   : > { %3953 = vmatmul.mubr.bf16.gmra.mrb[160].mxu1 %v1354_v62 }
 0xb4f   : > { %3962 = vmatprep.mubr.bf16.mxu1 %v1357_v51 }
 0xb56   : > { %3963 = vmatmul.mubr.bf16.gmra.mrb[164].mxu1 %v1356_v10 }
 0xb57   : > { %4101 = vmatprep.mubr.bf16.mxu1 %v10628_v33 }
 0xb99   : > { %v3997_v2 = vpop.trf.xlu0  ;;  %v4013_v37 = vpop.trf.xlu1 }
 0xb9a   : > { %5729 = vmatmul.mubr.msk.bf16.vlgmr.msra.gmra.mrb[168].mxu1 %vm1398_vm1, %v3997_v2 }
 0xb9b   : > { %4111 = vmatprep.mubr.bf16.mxu1 %v10628_v33 }
 0xb9d   : > { %v3998_v60 = vpop.trf.xlu0  ;;  %v4014_v19 = vpop.trf.xlu1 }
 0xba1   : > { %v3999_v21 = vpop.trf.xlu0  ;;  %v4015_v5 = vpop.trf.xlu1 }
 0xba2   : > { %5730 = vmatmul.mubr.msk.bf16.gmra.mrb[172].mxu1 %vm1398_vm1, %v3998_v60 }
 0xba3   : > { %4121 = vmatprep.mubr.bf16.mxu1 %v10628_v33 }
 0xba5   : > { %v4000_v43 = vpop.trf.xlu0  ;;  %v4016_v6 = vpop.trf.xlu1 }
 0xba9   : > { %v4001_v16 = vpop.trf.xlu0  ;;  %v4017_v57 = vpop.trf.xlu1 }
 0xbaa   : > { %5731 = vmatmul.mubr.msk.bf16.gmra.mrb[176].mxu1 %vm1398_vm1, %v3999_v21 }
 0xbab   : > { %4131 = vmatprep.mubr.bf16.mxu1 %v10628_v33 }
 0xbad   : > { %v4002_v7 = vpop.trf.xlu0  ;;  %v4018_v24 = vpop.trf.xlu1 }
 0xbb1   : > { %v4003_v31 = vpop.trf.xlu0  ;;  %v4019_v50 = vpop.trf.xlu1 }
 0xbb2   : > { %5732 = vmatmul.mubr.msk.bf16.gmra.mrb[180].mxu1 %vm1398_vm1, %v4000_v43 }
 0xbb3   : > { %4141 = vmatprep.mubr.bf16.mxu1 %v10628_v33 }
 0xbb5   : > { %v4004_v46 = vpop.trf.xlu0  ;;  %v4020_v14 = vpop.trf.xlu1 }
 0xbba   : > { %5733 = vmatmul.mubr.msk.bf16.gmra.mrb[184].mxu1 %vm1398_vm1, %v4001_v16 }
 0xbbb   : > { %4151 = vmatprep.mubr.bf16.mxu1 %v10628_v33 }
 0xbc2   : > { %5734 = vmatmul.mubr.msk.bf16.gmra.mrb[188].mxu1 %vm1398_vm1, %v4002_v7 }
 0xbc3   : > { %4161 = vmatprep.mubr.bf16.mxu1 %v10628_v33 }
 0xbca   : > { %5735 = vmatmul.mubr.msk.bf16.gmra.mrb[192].mxu1 %vm1398_vm1, %v4003_v31 }
 0xbcb   : > { %4171 = vmatprep.mubr.bf16.mxu1 %v10628_v33 }
 0xbd2   : > { %5736 = vmatmul.mubr.msk.bf16.gmra.mrb[196].mxu1 %vm1398_vm1, %v4004_v46 }
 0xbd3   : > { %4181 = vmatprep.mubr.bf16.mxu1 %v10628_v33 }
 0xbda   : > { %5737 = vmatmul.mubr.msk.bf16.gmra.mrb[200].mxu1 %vm1398_vm1, %v4013_v37 }
 0xbdb   : > { %4191 = vmatprep.mubr.bf16.mxu1 %v10628_v33 }
 0xbe2   : > { %5738 = vmatmul.mubr.msk.bf16.gmra.mrb[204].mxu1 %vm1398_vm1, %v4014_v19 }
 0xbe3   : > { %4201 = vmatprep.mubr.bf16.mxu1 %v10628_v33 }
 0xbea   : > { %5739 = vmatmul.mubr.msk.bf16.gmra.mrb[208].mxu1 %vm1398_vm1, %v4015_v5 }
 0xbeb   : > { %4211 = vmatprep.mubr.bf16.mxu1 %v10628_v33 }
 0xbf2   : > { %5740 = vmatmul.mubr.msk.bf16.gmra.mrb[212].mxu1 %vm1398_vm1, %v4016_v6 }
 0xbf3   : > { %4221 = vmatprep.mubr.bf16.mxu1 %v10628_v33 }
 0xbfa   : > { %5741 = vmatmul.mubr.msk.bf16.gmra.mrb[216].mxu1 %vm1398_vm1, %v4017_v57 }
 0xbfb   : > { %4231 = vmatprep.mubr.bf16.mxu1 %v10628_v33 }
 0xc02   : > { %5742 = vmatmul.mubr.msk.bf16.gmra.mrb[220].mxu1 %vm1398_vm1, %v4018_v24 }
 0xc03   : > { %4241 = vmatprep.mubr.bf16.mxu1 %v10628_v33 }
 0xc0a   : > { %5743 = vmatmul.mubr.msk.bf16.gmra.mrb[224].mxu1 %vm1398_vm1, %v4019_v50 }
 0xc0b   : > { %4251 = vmatprep.mubr.bf16.mxu1 %v10628_v33 }
 0xc11   : > { %v9193_v52 = vpop.f32.mrb[152].mxu1 }
 0xc12   : > { %10629 = vst [vmem:[#allocation93_spill] sm:$0xff] %v9193_v52  ;;  %v9195_v63 = vpop.f32.mrb[153].mxu1  ;;  %5744 = vmatmul.mubr.msk.bf16.gmra.mrb[228].mxu1 %vm1398_vm1, %v4020_v14 }
 0xc13   : > { %10630 = vst [vmem:[#allocation81_spill] sm:$0xff] %v9195_v63  ;;  %v9197_v41 = vpop.f32.mrb[154].mxu1  ;;  %5513 = vmatprep.mubr.bf16.mxu1 %v10628_v33 }
 0xc14   : > { %10631 = vst [vmem:[#allocation83_spill] sm:$0xff] %v9197_v41  ;;  %v9202_v11 = vpop.f32.mrb[155].mxu1 }
 0xc15   : > { %10632 = vst [vmem:[#allocation82_spill] sm:$0xff] %v9202_v11 }
 0xc19   : > { %v9207_v36 = vpop.f32.mrb[156].mxu1 }
 0xc1a   : > { %10633 = vst [vmem:[#allocation80_spill] sm:$0xff] %v9207_v36  ;;  %v9209_v15 = vpop.f32.mrb[157].mxu1 }
 0xc1b   : > { %10634 = vst [vmem:[#allocation86_spill] sm:$0xff] %v9209_v15  ;;  %v9211_v44 = vpop.f32.mrb[158].mxu1 }
 0xc1c   : > { %10635 = vst [vmem:[#allocation85_spill] sm:$0xff] %v9211_v44  ;;  %v9215_v58 = vpop.f32.mrb[159].mxu1 }
 0xc1d   : > { %10636 = vst [vmem:[#allocation84_spill] sm:$0xff] %v9215_v58 }
 0xc21   : > { %v9219_v17 = vpop.f32.mrb[160].mxu1 }
 0xc22   : > { %10637 = vst [vmem:[#allocation88_spill] sm:$0xff] %v9219_v17  ;;  %v9221_v30 = vpop.f32.mrb[161].mxu1 }
 0xc23   : > { %10638 = vst [vmem:[#allocation90_spill] sm:$0xff] %v9221_v30  ;;  %v9223_v42 = vpop.f32.mrb[162].mxu1 }
 0xc24   : > { %10639 = vst [vmem:[#allocation89_spill] sm:$0xff] %v9223_v42  ;;  %v9227_v0 = vpop.f32.mrb[163].mxu1 }
 0xc25   : > { %10640 = vst [vmem:[#allocation87_spill] sm:$0xff] %v9227_v0 }
 0xc29   : > { %v9231_v8 = vpop.f32.mrb[164].mxu1 }
 0xc2a   : > { %10641 = vst [vmem:[#allocation92_spill] sm:$0xff] %v9231_v8  ;;  %v9233_v39 = vpop.f32.mrb[165].mxu1 }
 0xc2b   : > { %10642 = vst [vmem:[#allocation91_spill] sm:$0xff] %v9233_v39  ;;  %v9235_v12 = vpop.f32.mrb[166].mxu1 }
 0xc2c   : > { %10643 = vst [vmem:[#allocation61_spill] sm:$0xff] %v9235_v12  ;;  %v9239_v20 = vpop.f32.mrb[167].mxu1 }
 0xc2d   : > { %10644 = vst [vmem:[#allocation60_spill] sm:$0xff] %v9239_v20 }
 0xc6d   : > { %v9243_v9 = vpop.f32.mrb[168].mxu1 }
 0xc6e   : > { %v9245_v22 = vpop.f32.mrb[169].mxu1 }
 0xc6f   : > { %v4262_v4 = vmax.f32 %v9243_v9, %v9245_v22  ;;  %v9249_v56 = vpop.f32.mrb[170].mxu1 }
 0xc70   : > { %v9251_v53 = vpop.f32.mrb[171].mxu1 }
 0xc71   : > { %v4265_v49 = vmax.f32 %v9249_v56, %v9251_v53  ;;  %4263 = vmax.xlane.f32.xlu0 %v4262_v4 }
 0xc73   : > { %4266 = vmax.xlane.f32.xlu1 %v4265_v49 }
 0xc75   : > { %v9255_v45 = vpop.f32.mrb[172].mxu1 }
 0xc76   : > { %v9257_v48 = vpop.f32.mrb[173].mxu1 }
 0xc77   : > { %v4268_v28 = vmax.f32 %v9255_v45, %v9257_v48  ;;  %v9261_v18 = vpop.f32.mrb[174].mxu1 }
 0xc78   : > { %v9263_v51 = vpop.f32.mrb[175].mxu1 }
 0xc79   : > { %4269 = vmax.xlane.f32.xlu0 %v4268_v28  ;;  %v4271_v10 = vmax.f32 %v9261_v18, %v9263_v51 }
 0xc7d   : > { %4272 = vmax.xlane.f32.xlu0 %v4271_v10  ;;  %v9267_v3 = vpop.f32.mrb[176].mxu1 }
 0xc7e   : > { %v9269_v29 = vpop.f32.mrb[177].mxu1 }
 0xc7f   : > { %v4274_v1 = vmax.f32 %v9267_v3, %v9269_v29  ;;  %v9273_v25 = vpop.f32.mrb[178].mxu1 }
 0xc80   : > { %v9275_v23 = vpop.f32.mrb[179].mxu1 }
 0xc81   : > { %v4277_v55 = vmax.f32 %v9273_v25, %v9275_v23  ;;  %4275 = vmax.xlane.f32.xlu1 %v4274_v1 }
 0xc83   : > { %4278 = vmax.xlane.f32.xlu0 %v4277_v55 }
 0xc85   : > { %v9279_v61 = vpop.f32.mrb[180].mxu1 }
 0xc86   : > { %v9281_v59 = vpop.f32.mrb[181].mxu1 }
 0xc87   : > { %v4280_v38 = vmax.f32 %v9279_v61, %v9281_v59  ;;  %v9285_v40 = vpop.f32.mrb[182].mxu1 }
 0xc88   : > { %v9287_v13 = vpop.f32.mrb[183].mxu1 }
 0xc89   : > { %v4283_v2 = vmax.f32 %v9285_v40, %v9287_v13  ;;  %4281 = vmax.xlane.f32.xlu1 %v4280_v38 }
 0xc8b   : > { %4284 = vmax.xlane.f32.xlu0 %v4283_v2 }
 0xc8d   : > { %v9291_v60 = vpop.f32.mrb[184].mxu1 }
 0xc8e   : > { %v9293_v21 = vpop.f32.mrb[185].mxu1 }
 0xc8f   : > { %v4286_v43 = vmax.f32 %v9291_v60, %v9293_v21  ;;  %v9297_v16 = vpop.f32.mrb[186].mxu1 }
 0xc90   : > { %v9299_v7 = vpop.f32.mrb[187].mxu1 }
 0xc91   : > { %v4289_v31 = vmax.f32 %v9297_v16, %v9299_v7  ;;  %4287 = vmax.xlane.f32.xlu1 %v4286_v43 }
 0xc93   : > { %4290 = vmax.xlane.f32.xlu0 %v4289_v31 }
 0xc95   : > { %v9303_v46 = vpop.f32.mrb[188].mxu1 }
 0xc96   : > { %v9305_v37 = vpop.f32.mrb[189].mxu1 }
 0xc97   : > { %v4292_v19 = vmax.f32 %v9303_v46, %v9305_v37  ;;  %v9309_v5 = vpop.f32.mrb[190].mxu1 }
 0xc98   : > { %v9311_v6 = vpop.f32.mrb[191].mxu1 }
 0xc99   : > { %v4295_v57 = vmax.f32 %v9309_v5, %v9311_v6  ;;  %4293 = vmax.xlane.f32.xlu1 %v4292_v19 }
 0xc9b   : > { %4296 = vmax.xlane.f32.xlu0 %v4295_v57 }
 0xc9d   : > { %v9315_v24 = vpop.f32.mrb[192].mxu1 }
 0xc9e   : > { %v9317_v50 = vpop.f32.mrb[193].mxu1 }
 0xc9f   : > { %v4298_v14 = vmax.f32 %v9315_v24, %v9317_v50  ;;  %v9321_v4 = vpop.f32.mrb[194].mxu1 }
 0xca0   : > { %v9323_v49 = vpop.f32.mrb[195].mxu1 }
 0xca1   : > { %v4301_v28 = vmax.f32 %v9321_v4, %v9323_v49  ;;  %4299 = vmax.xlane.f32.xlu1 %v4298_v14 }
 0xca3   : > { %4302 = vmax.xlane.f32.xlu0 %v4301_v28 }
 0xca5   : > { %v9327_v10 = vpop.f32.mrb[196].mxu1 }
 0xca6   : > { %v9329_v1 = vpop.f32.mrb[197].mxu1 }
 0xca7   : > { %v4304_v55 = vmax.f32 %v9327_v10, %v9329_v1  ;;  %v9333_v38 = vpop.f32.mrb[198].mxu1 }
 0xca8   : > { %v9335_v2 = vpop.f32.mrb[199].mxu1 }
 0xca9   : > { %v4307_v43 = vmax.f32 %v9333_v38, %v9335_v2  ;;  %4305 = vmax.xlane.f32.xlu1 %v4304_v55 }
 0xcab   : > { %4308 = vmax.xlane.f32.xlu0 %v4307_v43 }
 0xcad   : > { %v9339_v31 = vpop.f32.mrb[200].mxu1 }
 0xcae   : > { %v9341_v19 = vpop.f32.mrb[201].mxu1 }
 0xcaf   : > { %v4310_v57 = vmax.f32 %v9339_v31, %v9341_v19  ;;  %v9345_v14 = vpop.f32.mrb[202].mxu1 }
 0xcb0   : > { %v9347_v28 = vpop.f32.mrb[203].mxu1 }
 0xcb1   : > { %v4313_v47 = vmax.f32 %v9345_v14, %v9347_v28  ;;  %4311 = vmax.xlane.f32.xlu1 %v4310_v57 }
 0xcb3   : > { %4314 = vmax.xlane.f32.xlu0 %v4313_v47 }
 0xcb5   : > { %v9351_v62 = vpop.f32.mrb[204].mxu1 }
 0xcb6   : > { %v9353_v55 = vpop.f32.mrb[205].mxu1 }
 0xcb7   : > { %10645 = vst [vmem:[#allocation11_spill] sm:$0xff] %v9353_v55  ;;  %v4316_v43 = vmax.f32 %v9351_v62, %v9353_v55  ;;  %v9357_v27 = vpop.f32.mrb[206].mxu1 }
 0xcb8   : > { %10646 = vst [vmem:[#allocation50_spill] sm:$0xff] %v9357_v27  ;;  %v9359_v35 = vpop.f32.mrb[207].mxu1 }
 0xcb9   : > { %10647 = vst [vmem:[#allocation16_spill] sm:$0xff] %v9359_v35  ;;  %v4319_v34 = vmax.f32 %v9357_v27, %v9359_v35  ;;  %4317 = vmax.xlane.f32.xlu1 %v4316_v43 }
 0xcbb   : > { %4320 = vmax.xlane.f32.xlu0 %v4319_v34 }
 0xcbd   : > { %v9363_v32 = vpop.f32.mrb[208].mxu1 }
 0xcbe   : > { %10648 = vst [vmem:[#allocation17_spill] sm:$0xff] %v9363_v32  ;;  %v9365_v57 = vpop.f32.mrb[209].mxu1 }
 0xcbf   : > { %10649 = vst [vmem:[#allocation18_spill] sm:$0xff] %v9365_v57  ;;  %v4322_v47 = vmax.f32 %v9363_v32, %v9365_v57  ;;  %v9369_v54 = vpop.f32.mrb[210].mxu1 }
 0xcc0   : > { %10650 = vst [vmem:[#allocation19_spill] sm:$0xff] %v9369_v54  ;;  %v9371_v26 = vpop.f32.mrb[211].mxu1 }
 0xcc1   : > { %10651 = vst [vmem:[#allocation53_spill] sm:$0xff] %v9371_v26  ;;  %v4325_v33 = vmax.f32 %v9369_v54, %v9371_v26  ;;  %4323 = vmax.xlane.f32.xlu1 %v4322_v47 }
 0xcc3   : > { %4326 = vmax.xlane.f32.xlu0 %v4325_v33 }
 0xcc5   : > { %v9375_v8 = vpop.f32.mrb[212].mxu1 }
 0xcc6   : > { %10652 = vst [vmem:[#allocation52_spill] sm:$0xff] %v9375_v8  ;;  %v9377_v43 = vpop.f32.mrb[213].mxu1 }
 0xcc7   : > { %10653 = vst [vmem:[#allocation62_spill] sm:$0xff] %v9377_v43  ;;  %v4328_v34 = vmax.f32 %v9375_v8, %v9377_v43  ;;  %v9381_v12 = vpop.f32.mrb[214].mxu1 }
 0xcc8   : > { %10654 = vst [vmem:[#allocation10_spill] sm:$0xff] %v9381_v12  ;;  %v9383_v39 = vpop.f32.mrb[215].mxu1 }
 0xcc9   : > { %10655 = vst [vmem:[#allocation57_spill] sm:$0xff] %v9383_v39  ;;  %v4331_v20 = vmax.f32 %v9381_v12, %v9383_v39  ;;  %4329 = vmax.xlane.f32.xlu1 %v4328_v34 }
 0xccb   : > { %4332 = vmax.xlane.f32.xlu0 %v4331_v20 }
 0xccd   : > { %v9387_v17 = vpop.f32.mrb[216].mxu1 }
 0xcce   : > { %10656 = vst [vmem:[#allocation56_spill] sm:$0xff] %v9387_v17  ;;  %v9389_v47 = vpop.f32.mrb[217].mxu1 }
 0xccf   : > { %10657 = vst [vmem:[#allocation51_spill] sm:$0xff] %v9389_v47  ;;  %v4334_v33 = vmax.f32 %v9387_v17, %v9389_v47  ;;  %v9393_v42 = vpop.f32.mrb[218].mxu1 }
 0xcd0   : > { %v9395_v30 = vpop.f32.mrb[219].mxu1 }
 0xcd1   : > { %4335 = vmax.xlane.f32.xlu1 %v4334_v33 }
 0xcd5   : > { %v9399_v36 = vpop.f32.mrb[220].mxu1 }
 0xcd6   : > { %v9401_v44 = vpop.f32.mrb[221].mxu1 }
 0xcd7   : > { %v9405_v34 = vpop.f32.mrb[222].mxu1 }
 0xcd8   : > { %v9407_v15 = vpop.f32.mrb[223].mxu1 }
 0xcdd   : > { %v9411_v52 = vpop.f32.mrb[224].mxu1 }
 0xcde   : > { %v9413_v33 = vpop.f32.mrb[225].mxu1 }
 0xcdf   : > { %v9417_v41 = vpop.f32.mrb[226].mxu1 }
 0xce0   : > { %v9419_v63 = vpop.f32.mrb[227].mxu1 }
 0xce5   : > { %v9423_v11 = vpop.f32.mrb[228].mxu1 }
 0xce6   : > { %v9425_v47 = vpop.f32.mrb[229].mxu1 }
 0xce7   : > { %v9429_v17 = vpop.f32.mrb[230].mxu1 }
 0xce8   : > { %v9431_v39 = vpop.f32.mrb[231].mxu1 }
 0xcfe   : > { %v4264_v12 = vpop.xlane.xlu0 %4263 }
 0xcff   : > { %v4358_v43 = vsub.f32 %v9243_v9, %v4264_v12  ;;  %v4359_v8 = vsub.f32 %v9245_v22, %v4264_v12 }
 0xd00   : > { %v4267_v20 = vpop.xlane.xlu1 %4266 }
 0xd01   : > { %v4422_v26 = vmul.f32 1.442695, %v4358_v43  ;;  %v4424_v54 = vmul.f32 1.442695, %v4359_v8  ;;  %v4360_v57 = vsub.f32 %v9249_v56, %v4267_v20  ;;  %v4361_v32 = vsub.f32 %v9251_v53, %v4267_v20 }
 0xd03   : > { %6438 = vpow2.f32 %v4422_v26  ;;  %v4426_v58 = vmul.f32 1.442695, %v4360_v57  ;;  %v4428_v35 = vmul.f32 1.442695, %v4361_v32 }
 0xd04   : > { %6440 = vpow2.f32 %v4424_v54 }
 0xd05   : > { %6442 = vpow2.f32 %v4426_v58 }
 0xd06   : > { %6444 = vpow2.f32 %v4428_v35  ;;  %v4270_v27 = vpop.xlane.xlu0 %4269 }
 0xd07   : > { %v4362_v0 = vsub.f32 %v9255_v45, %v4270_v27  ;;  %v4363_v9 = vsub.f32 %v9257_v48, %v4270_v27 }
 0xd09   : > { %v4430_v55 = vmul.f32 1.442695, %v4362_v0  ;;  %v4432_v12 = vmul.f32 1.442695, %v4363_v9 }
 0xd0a   : > { %v4273_v22 = vpop.xlane.xlu0 %4272 }
 0xd0b   : > { %6446 = vpow2.f32 %v4430_v55  ;;  %v4364_v8 = vsub.f32 %v9261_v18, %v4273_v22  ;;  %v4365_v56 = vsub.f32 %v9263_v51, %v4273_v22 }
 0xd0c   : > { %6448 = vpow2.f32 %v4432_v12  ;;  %v10658_v12 = vmax.f32 %v9399_v36, %v9401_v44 }
 0xd0d   : > { %v9443_v26 = vpop.eup %6438  ;;  %v4434_v32 = vmul.f32 1.442695, %v4364_v8  ;;  %v4436_v54 = vmul.f32 1.442695, %v4365_v56 }
 0xd0e   : > { %v9445_v58 = vpop.eup %6440  ;;  %v4276_v35 = vpop.xlane.xlu1 %4275 }
 0xd0f   : > { %v9447_v53 = vpop.eup %6442  ;;  %6450 = vpow2.f32 %v4434_v32  ;;  %v4366_v27 = vsub.f32 %v9267_v3, %v4276_v35  ;;  %v4367_v0 = vsub.f32 %v9269_v29, %v4276_v35  ;;  %v4550_v45 = vadd.f32 %v9445_v58, %v9443_v26 }
 0xd10   : > { %v9453_v48 = vpop.eup %6444  ;;  %6452 = vpow2.f32 %v4436_v54  ;;  %v4279_v18 = vpop.xlane.xlu0 %4278  ;;  %v10659_v32 = vmax.f32 %v9393_v42, %v9395_v30 }
 0xd11   : > { %v4438_v51 = vmul.f32 1.442695, %v4366_v27  ;;  %v4440_v55 = vmul.f32 1.442695, %v4367_v0  ;;  %4551 = vadd.xlane.f32.xlu1 %v4550_v45  ;;  %v4368_v57 = vsub.f32 %v9273_v25, %v4279_v18  ;;  %v4369_v43 = vsub.f32 %v9275_v23, %v4279_v18 }
 0xd12   : > { %v4553_v20 = vadd.f32 %v9453_v48, %v9447_v53 }
 0xd13   : > { %6454 = vpow2.f32 %v4438_v51  ;;  %v4442_v3 = vmul.f32 1.442695, %v4368_v57  ;;  %v4444_v29 = vmul.f32 1.442695, %v4369_v43  ;;  %v10660_v43 = vmax.f32 %v9411_v52, %v9413_v33 }
 0xd14   : > { %6456 = vpow2.f32 %v4440_v55  ;;  %4554 = vadd.xlane.f32.xlu0 %v4553_v20 }
 0xd15   : > { %v9459_v9 = vpop.eup %6446  ;;  %6458 = vpow2.f32 %v4442_v3  ;;  %4341 = vmax.xlane.f32.xlu1 %v10658_v12 }
 0xd16   : > { %v9464_v22 = vpop.eup %6448  ;;  %6460 = vpow2.f32 %v4444_v29  ;;  %v4282_v25 = vpop.xlane.xlu1 %4281 }
 0xd17   : > { %v4370_v23 = vsub.f32 %v9279_v61, %v4282_v25  ;;  %v4371_v8 = vsub.f32 %v9281_v59, %v4282_v25  ;;  %v4556_v56 = vadd.f32 %v9464_v22, %v9459_v9 }
 0xd18   : > { %4338 = vmax.xlane.f32.xlu0 %v10659_v32  ;;  %v4285_v54 = vpop.xlane.xlu0 %4284  ;;  %v10661_v32 = vmax.f32 %v9405_v34, %v9407_v15 }
 0xd19   : > { %v9473_v35 = vpop.eup %6450  ;;  %v4446_v27 = vmul.f32 1.442695, %v4370_v23  ;;  %v4448_v0 = vmul.f32 1.442695, %v4371_v8  ;;  %4557 = vadd.xlane.f32.xlu1 %v4556_v56  ;;  %v4372_v45 = vsub.f32 %v9285_v40, %v4285_v54  ;;  %v4373_v18 = vsub.f32 %v9287_v13, %v4285_v54 }
 0xd1a   : > { %v9477_v61 = vpop.eup %6452 }
 0xd1b   : > { %6462 = vpow2.f32 %v4446_v27  ;;  %v4450_v59 = vmul.f32 1.442695, %v4372_v45  ;;  %v4452_v51 = vmul.f32 1.442695, %v4373_v18  ;;  %v4559_v55 = vadd.f32 %v9477_v61, %v9473_v35 }
 0xd1c   : > { %6464 = vpow2.f32 %v4448_v0  ;;  %v10662_v18 = vmax.f32 %v9423_v11, %v9425_v47 }
 0xd1d   : > { %v9481_v57 = vpop.eup %6454  ;;  %6466 = vpow2.f32 %v4450_v59  ;;  %4347 = vmax.xlane.f32.xlu1 %v10660_v43  ;;  %4560 = vadd.xlane.f32.xlu0 %v4559_v55 }
 0xd1e   : > { %v9486_v40 = vpop.eup %6456  ;;  %6468 = vpow2.f32 %v4452_v51  ;;  %v4288_v13 = vpop.xlane.xlu1 %4287 }
 0xd1f   : > { %v9488_v20 = vpop.eup %6458  ;;  %v4374_v3 = vsub.f32 %v9291_v60, %v4288_v13  ;;  %v4375_v29 = vsub.f32 %v9293_v21, %v4288_v13  ;;  %v4562_v12 = vadd.f32 %v9486_v40, %v9481_v57 }
 0xd20   : > { %v9494_v25 = vpop.eup %6460  ;;  %v4291_v23 = vpop.xlane.xlu0 %4290 }
 0xd21   : > { %v4454_v8 = vmul.f32 1.442695, %v4374_v3  ;;  %v4456_v56 = vmul.f32 1.442695, %v4375_v29  ;;  %4563 = vadd.xlane.f32.xlu1 %v4562_v12  ;;  %4344 = vmax.xlane.f32.xlu0 %v10661_v32  ;;  %v4376_v54 = vsub.f32 %v9297_v16, %v4291_v23  ;;  %v4377_v27 = vsub.f32 %v9299_v7, %v4291_v23 }
 0xd22   : > { %v4565_v0 = vadd.f32 %v9494_v25, %v9488_v20  ;;  %v10663_v23 = vmax.f32 %v9417_v41, %v9419_v63 }
 0xd23   : > { %6470 = vpow2.f32 %v4454_v8  ;;  %v4458_v60 = vmul.f32 1.442695, %v4376_v54  ;;  %v4460_v21 = vmul.f32 1.442695, %v4377_v27 }
 0xd24   : > { %6472 = vpow2.f32 %v4456_v56 }
 0xd25   : > { %v9503_v45 = vpop.eup %6462  ;;  %6474 = vpow2.f32 %v4458_v60  ;;  %4353 = vmax.xlane.f32.xlu1 %v10662_v18  ;;  %4566 = vadd.xlane.f32.xlu0 %v4565_v0 }
 0xd26   : > { %v9508_v59 = vpop.eup %6464  ;;  %6476 = vpow2.f32 %v4460_v21  ;;  %v4294_v16 = vpop.xlane.xlu1 %4293 }
 0xd27   : > { %v9510_v7 = vpop.eup %6466  ;;  %v4378_v51 = vsub.f32 %v9303_v46, %v4294_v16  ;;  %v4379_v55 = vsub.f32 %v9305_v37, %v4294_v16  ;;  %v4568_v43 = vadd.f32 %v9508_v59, %v9503_v45 }
 0xd28   : > { %v9516_v13 = vpop.eup %6468  ;;  %v4297_v3 = vpop.xlane.xlu0 %4296 }
 0xd29   : > { %v4462_v29 = vmul.f32 1.442695, %v4378_v51  ;;  %v4464_v12 = vmul.f32 1.442695, %v4379_v55  ;;  %4569 = vadd.xlane.f32.xlu1 %v4568_v43  ;;  %4350 = vmax.xlane.f32.xlu0 %v10663_v23  ;;  %v4380_v8 = vsub.f32 %v9309_v5, %v4297_v3  ;;  %v4381_v56 = vsub.f32 %v9311_v6, %v4297_v3 }
 0xd2a   : > { %v4571_v32 = vadd.f32 %v9516_v13, %v9510_v7  ;;  %v10664_v43 = vmax.f32 %v9429_v17, %v9431_v39 }
 0xd2b   : > { %6478 = vpow2.f32 %v4462_v29  ;;  %v4466_v46 = vmul.f32 1.442695, %v4380_v8  ;;  %v4468_v37 = vmul.f32 1.442695, %v4381_v56 }
 0xd2c   : > { %6480 = vpow2.f32 %v4464_v12 }
 0xd2d   : > { %v9525_v54 = vpop.eup %6470  ;;  %6482 = vpow2.f32 %v4466_v46  ;;  %4572 = vadd.xlane.f32.xlu0 %v4571_v32 }
 0xd2e   : > { %v9527_v27 = vpop.eup %6472  ;;  %6484 = vpow2.f32 %v4468_v37  ;;  %v4300_v60 = vpop.xlane.xlu1 %4299 }
 0xd2f   : > { %v9529_v21 = vpop.eup %6474  ;;  %v4382_v5 = vsub.f32 %v9315_v24, %v4300_v60  ;;  %v4383_v6 = vsub.f32 %v9317_v50, %v4300_v60  ;;  %v4574_v0 = vadd.f32 %v9527_v27, %v9525_v54 }
 0xd30   : > { %v9535_v18 = vpop.eup %6476  ;;  %v4303_v16 = vpop.xlane.xlu0 %4302 }
 0xd31   : > { %v4470_v51 = vmul.f32 1.442695, %v4382_v5  ;;  %v4472_v55 = vmul.f32 1.442695, %v4383_v6  ;;  %4575 = vadd.xlane.f32.xlu1 %v4574_v0  ;;  %4356 = vmax.xlane.f32.xlu0 %v10664_v43  ;;  %v4384_v3 = vsub.f32 %v9321_v4, %v4303_v16  ;;  %v4385_v29 = vsub.f32 %v9323_v49, %v4303_v16 }
 0xd32   : > { %v4577_v12 = vadd.f32 %v9535_v18, %v9529_v21 }
 0xd33   : > { %6486 = vpow2.f32 %v4470_v51  ;;  %v4474_v24 = vmul.f32 1.442695, %v4384_v3  ;;  %v4476_v50 = vmul.f32 1.442695, %v4385_v29 }
 0xd34   : > { %6488 = vpow2.f32 %v4472_v55 }
 0xd35   : > { %v9544_v23 = vpop.eup %6478  ;;  %6490 = vpow2.f32 %v4474_v24  ;;  %4578 = vadd.xlane.f32.xlu0 %v4577_v12 }
 0xd36   : > { %v9546_v8 = vpop.eup %6480  ;;  %6492 = vpow2.f32 %v4476_v50  ;;  %v4306_v56 = vpop.xlane.xlu1 %4305 }
 0xd37   : > { %v9548_v46 = vpop.eup %6482  ;;  %v4386_v4 = vsub.f32 %v9327_v10, %v4306_v56  ;;  %v4387_v49 = vsub.f32 %v9329_v1, %v4306_v56  ;;  %v4580_v37 = vadd.f32 %v9546_v8, %v9544_v23 }
 0xd38   : > { %v9554_v32 = vpop.eup %6484  ;;  %v4309_v60 = vpop.xlane.xlu0 %4308 }
 0xd39   : > { %v4478_v5 = vmul.f32 1.442695, %v4386_v4  ;;  %v4480_v6 = vmul.f32 1.442695, %v4387_v49  ;;  %4581 = vadd.xlane.f32.xlu1 %v4580_v37  ;;  %v4388_v0 = vsub.f32 %v9333_v38, %v4309_v60  ;;  %v4389_v16 = vsub.f32 %v9335_v2, %v4309_v60 }
 0xd3a   : > { %v4583_v51 = vadd.f32 %v9554_v32, %v9548_v46 }
 0xd3b   : > { %6494 = vpow2.f32 %v4478_v5  ;;  %v4482_v10 = vmul.f32 1.442695, %v4388_v0  ;;  %v4484_v55 = vmul.f32 1.442695, %v4389_v16 }
 0xd3c   : > { %6496 = vpow2.f32 %v4480_v6  ;;  %4584 = vadd.xlane.f32.xlu0 %v4583_v51 }
 0xd3d   : > { %v9560_v1 = vpop.eup %6486  ;;  %6498 = vpow2.f32 %v4482_v10 }
 0xd3e   : > { %v9562_v43 = vpop.eup %6488  ;;  %6500 = vpow2.f32 %v4484_v55  ;;  %v4312_v3 = vpop.xlane.xlu1 %4311 }
 0xd3f   : > { %v9564_v29 = vpop.eup %6490  ;;  %v4390_v38 = vsub.f32 %v9339_v31, %v4312_v3  ;;  %v4391_v2 = vsub.f32 %v9341_v19, %v4312_v3  ;;  %v4586_v24 = vadd.f32 %v9562_v43, %v9560_v1 }
 0xd40   : > { %v9570_v50 = vpop.eup %6492  ;;  %v4315_v12 = vpop.xlane.xlu0 %4314 }
 0xd41   : > { %v4486_v56 = vmul.f32 1.442695, %v4390_v38  ;;  %v4488_v4 = vmul.f32 1.442695, %v4391_v2  ;;  %4587 = vadd.xlane.f32.xlu1 %v4586_v24  ;;  %v4392_v49 = vsub.f32 %v9345_v14, %v4315_v12  ;;  %v4393_v37 = vsub.f32 %v9347_v28, %v4315_v12  ;;  %v10666_v28 = vld [vmem:[#allocation11_spill] sm:$0xff]  ;;  %v10667_v24 = vld [vmem:[#allocation50_spill] sm:$0xff] }
 0xd42   : > { %v4589_v60 = vadd.f32 %v9570_v50, %v9564_v29 }
 0xd43   : > { %6502 = vpow2.f32 %v4486_v56  ;;  %v4490_v31 = vmul.f32 1.442695, %v4392_v49  ;;  %v4492_v5 = vmul.f32 1.442695, %v4393_v37  ;;  %v10668_v56 = vld [vmem:[#allocation16_spill] sm:$0xff] }
 0xd44   : > { %6504 = vpow2.f32 %v4488_v4  ;;  %4590 = vadd.xlane.f32.xlu0 %v4589_v60 }
 0xd45   : > { %v9576_v19 = vpop.eup %6494  ;;  %6506 = vpow2.f32 %v4490_v31 }
 0xd46   : > { %10665 = vst [vmem:[#allocation55_spill] sm:$0xff] %v9576_v19  ;;  %v9578_v6 = vpop.eup %6496  ;;  %6508 = vpow2.f32 %v4492_v5  ;;  %v4318_v0 = vpop.xlane.xlu1 %4317 }
 0xd47   : > { %v9580_v16 = vpop.eup %6498  ;;  %v4394_v14 = vsub.f32 %v9351_v62, %v4318_v0  ;;  %v4395_v51 = vsub.f32 %v10666_v28, %v4318_v0  ;;  %v4592_v10 = vadd.f32 %v9578_v6, %v9576_v19 }
 0xd48   : > { %v9586_v55 = vpop.eup %6500  ;;  %v4321_v3 = vpop.xlane.xlu0 %4320 }
 0xd49   : > { %v4494_v38 = vmul.f32 1.442695, %v4394_v14  ;;  %v4496_v2 = vmul.f32 1.442695, %v4395_v51  ;;  %4593 = vadd.xlane.f32.xlu1 %v4592_v10  ;;  %v4396_v12 = vsub.f32 %v10667_v24, %v4321_v3  ;;  %v4397_v4 = vsub.f32 %v10668_v56, %v4321_v3  ;;  %v10672_v14 = vld [vmem:[#allocation17_spill] sm:$0xff]  ;;  %v10673_v51 = vld [vmem:[#allocation18_spill] sm:$0xff] }
 0xd4a   : > { %v4595_v49 = vadd.f32 %v9586_v55, %v9580_v16  ;;  %v10675_v56 = vld [vmem:[#allocation19_spill] sm:$0xff] }
 0xd4b   : > { %6510 = vpow2.f32 %v4494_v38  ;;  %v4498_v62 = vmul.f32 1.442695, %v4396_v12  ;;  %v4500_v37 = vmul.f32 1.442695, %v4397_v4 }
 0xd4c   : > { %6512 = vpow2.f32 %v4496_v2  ;;  %4596 = vadd.xlane.f32.xlu0 %v4595_v49  ;;  %v10676_v49 = vld [vmem:[#allocation53_spill] sm:$0xff] }
 0xd4d   : > { %v9592_v60 = vpop.eup %6502  ;;  %6514 = vpow2.f32 %v4498_v62 }
 0xd4e   : > { %10669 = vst [vmem:[#allocation58_spill] sm:$0xff] %v9592_v60  ;;  %v9594_v31 = vpop.eup %6504  ;;  %6516 = vpow2.f32 %v4500_v37  ;;  %v4324_v5 = vpop.xlane.xlu1 %4323 }
 0xd4f   : > { %10670 = vst [vmem:[#allocation12_spill] sm:$0xff] %v9594_v31  ;;  %v9596_v0 = vpop.eup %6506  ;;  %v4398_v28 = vsub.f32 %v10672_v14, %v4324_v5  ;;  %v4399_v10 = vsub.f32 %v10673_v51, %v4324_v5  ;;  %v4598_v3 = vadd.f32 %v9594_v31, %v9592_v60 }
 0xd50   : > { %10671 = vst [vmem:[#allocation54_spill] sm:$0xff] %v9596_v0  ;;  %v9602_v38 = vpop.eup %6508  ;;  %v4327_v2 = vpop.xlane.xlu0 %4326 }
 0xd51   : > { %10674 = vst [vmem:[#allocation59_spill] sm:$0xff] %v9602_v38  ;;  %v4502_v24 = vmul.f32 1.442695, %v4398_v28  ;;  %v4504_v12 = vmul.f32 1.442695, %v4399_v10  ;;  %4599 = vadd.xlane.f32.xlu1 %v4598_v3  ;;  %v4400_v4 = vsub.f32 %v10675_v56, %v4327_v2  ;;  %v4401_v62 = vsub.f32 %v10676_v49, %v4327_v2  ;;  %v10677_v3 = vld [vmem:[#allocation52_spill] sm:$0xff] }
 0xd52   : > { %v4601_v37 = vadd.f32 %v9602_v38, %v9596_v0  ;;  %v10678_v2 = vld [vmem:[#allocation62_spill] sm:$0xff]  ;;  %v10680_v0 = vld [vmem:[#allocation57_spill] sm:$0xff] }
 0xd53   : > { %6518 = vpow2.f32 %v4502_v24  ;;  %v4506_v14 = vmul.f32 1.442695, %v4400_v4  ;;  %v4508_v19 = vmul.f32 1.442695, %v4401_v62 }
 0xd54   : > { %6520 = vpow2.f32 %v4504_v12  ;;  %4602 = vadd.xlane.f32.xlu0 %v4601_v37 }
 0xd55   : > { %v9608_v5 = vpop.eup %6510  ;;  %6522 = vpow2.f32 %v4506_v14  ;;  %v10679_v14 = vld [vmem:[#allocation10_spill] sm:$0xff] }
 0xd56   : > { %v9610_v51 = vpop.eup %6512  ;;  %6524 = vpow2.f32 %v4508_v19  ;;  %v4330_v28 = vpop.xlane.xlu1 %4329 }
 0xd57   : > { %v9612_v10 = vpop.eup %6514  ;;  %v4402_v56 = vsub.f32 %v10677_v3, %v4330_v28  ;;  %v4403_v49 = vsub.f32 %v10678_v2, %v4330_v28  ;;  %v4604_v24 = vadd.f32 %v9610_v51, %v9608_v5 }
 0xd58   : > { %v9618_v4 = vpop.eup %6516  ;;  %v4333_v12 = vpop.xlane.xlu0 %4332 }
 0xd59   : > { %v4510_v62 = vmul.f32 1.442695, %v4402_v56  ;;  %v4512_v37 = vmul.f32 1.442695, %v4403_v49  ;;  %4605 = vadd.xlane.f32.xlu1 %v4604_v24  ;;  %v4404_v60 = vsub.f32 %v10679_v14, %v4333_v12  ;;  %v4405_v19 = vsub.f32 %v10680_v0, %v4333_v12  ;;  %v10683_v24 = vld [vmem:[#allocation56_spill] sm:$0xff]  ;;  %v10684_v0 = vld [vmem:[#allocation51_spill] sm:$0xff] }
 0xd5a   : > { %v4607_v38 = vadd.f32 %v9618_v4, %v9612_v10 }
 0xd5b   : > { %6526 = vpow2.f32 %v4510_v62  ;;  %v4514_v3 = vmul.f32 1.442695, %v4404_v60  ;;  %v4516_v31 = vmul.f32 1.442695, %v4405_v19 }
 0xd5c   : > { %6528 = vpow2.f32 %v4512_v37  ;;  %4608 = vadd.xlane.f32.xlu0 %v4607_v38 }
 0xd5d   : > { %v9624_v28 = vpop.eup %6518  ;;  %6530 = vpow2.f32 %v4514_v3 }
 0xd5e   : > { %10681 = vst [vmem:[#allocation48_spill] sm:$0xff] %v9624_v28  ;;  %v9626_v2 = vpop.eup %6520  ;;  %6532 = vpow2.f32 %v4516_v31  ;;  %v4336_v56 = vpop.xlane.xlu1 %4335 }
 0xd5f   : > { %v9628_v49 = vpop.eup %6522  ;;  %v4406_v14 = vsub.f32 %v10683_v24, %v4336_v56  ;;  %v4407_v12 = vsub.f32 %v10684_v0, %v4336_v56  ;;  %v4610_v62 = vadd.f32 %v9626_v2, %v9624_v28 }
 0xd60   : > { %10682 = vst [vmem:[#allocation49_spill] sm:$0xff] %v9628_v49  ;;  %v9634_v60 = vpop.eup %6524 }
 0xd61   : > { %10685 = vst [vmem:[#allocation46_spill] sm:$0xff] %v9634_v60  ;;  %v4518_v37 = vmul.f32 1.442695, %v4406_v14  ;;  %v4520_v38 = vmul.f32 1.442695, %v4407_v12  ;;  %4611 = vadd.xlane.f32.xlu1 %v4610_v62  ;;  %v4613_v19 = vadd.f32 %v9634_v60, %v9628_v49 }
 0xd63   : > { %6534 = vpow2.f32 %v4518_v37  ;;  %4614 = vadd.xlane.f32.xlu0 %v4613_v19 }
 0xd64   : > { %6536 = vpow2.f32 %v4520_v38 }
 0xd65   : > { %v9638_v31 = vpop.eup %6526 }
 0xd66   : > { %10686 = vst [vmem:[#allocation47_spill] sm:$0xff] %v9638_v31  ;;  %v9640_v3 = vpop.eup %6528 }
 0xd67   : > { %10687 = vst [vmem:[#allocation11_spill] sm:$0xff] %v9640_v3  ;;  %v9642_v24 = vpop.eup %6530  ;;  %v4616_v56 = vadd.f32 %v9640_v3, %v9638_v31 }
 0xd68   : > { %10688 = vst [vmem:[#allocation50_spill] sm:$0xff] %v9642_v24  ;;  %v9646_v0 = vpop.eup %6532 }
 0xd69   : > { %10689 = vst [vmem:[#allocation16_spill] sm:$0xff] %v9646_v0  ;;  %4617 = vadd.xlane.f32.xlu1 %v4616_v56  ;;  %v4619_v14 = vadd.f32 %v9646_v0, %v9642_v24 }
 0xd6b   : > { %4620 = vadd.xlane.f32.xlu0 %v4619_v14 }
 0xd6d   : > { %v9650_v12 = vpop.eup %6534 }
 0xd6e   : > { %10690 = vst [vmem:[#allocation17_spill] sm:$0xff] %v9650_v12  ;;  %v9652_v62 = vpop.eup %6536 }
 0xd6f   : > { %v4622_v37 = vadd.f32 %v9652_v62, %v9650_v12 }
 0xd71   : > { %4623 = vadd.xlane.f32.xlu1 %v4622_v37 }
 0xd9e   : > { %v4552_v38 = vpop.xlane.xlu1 %4551 }
 0xd9f   : > { %6538 = vrcp.f32 %v4552_v38 }
 0xda1   : > { %v4555_v19 = vpop.xlane.xlu0 %4554 }
 0xda2   : > { %6540 = vrcp.f32 %v4555_v19  ;;  %v4342_v31 = vpop.xlane.xlu1 %4341 }
 0xda3   : > { %v4410_v3 = vsub.f32 %v9399_v36, %v4342_v31  ;;  %v4411_v56 = vsub.f32 %v9401_v44, %v4342_v31 }
 0xda5   : > { %v4526_v28 = vmul.f32 1.442695, %v4410_v3  ;;  %v4528_v24 = vmul.f32 1.442695, %v4411_v56  ;;  %v4339_v14 = vpop.xlane.xlu0 %4338 }
 0xda6   : > { %v4408_v0 = vsub.f32 %v9393_v42, %v4339_v14  ;;  %v4409_v49 = vsub.f32 %v9395_v30, %v4339_v14  ;;  %v4558_v60 = vpop.xlane.xlu1 %4557 }
 0xda7   : > { %6542 = vpow2.f32 %v4526_v28 }
 0xda8   : > { %6544 = vpow2.f32 %v4528_v24  ;;  %v4522_v37 = vmul.f32 1.442695, %v4408_v0  ;;  %v4524_v12 = vmul.f32 1.442695, %v4409_v49 }
 0xda9   : > { %6546 = vrcp.f32 %v4558_v60  ;;  %v6539_v38 = vpop.eup %6538 }
 0xdaa   : > { %6548 = vpow2.f32 %v4522_v37  ;;  %v9660_v19 = vpop.xlane.xlu1 %4347  ;;  %v4561_v36 = vpop.xlane.xlu0 %4560  ;;  %v4679_v31 = vmul.f32 %v6539_v38, %v9445_v58  ;;  %v4678_v24 = vmul.f32 %v6539_v38, %v9443_v26 }
 0xdab   : > { %6550 = vpow2.f32 %v4524_v12 }
 0xdac   : > { %v6541_v44 = vpop.eup %6540  ;;  %6552 = vrcp.f32 %v4561_v36 }
 0xdad   : > { %v4681_v42 = vmul.f32 %v6541_v44, %v9453_v48  ;;  %v4680_v30 = vmul.f32 %v6541_v44, %v9447_v53 }
 0xdae   : > { %v4564_v3 = vpop.xlane.xlu1 %4563  ;;  %v4345_v28 = vpop.xlane.xlu0 %4344 }
 0xdaf   : > { %v4412_v49 = vsub.f32 %v9405_v34, %v4345_v28  ;;  %v4413_v60 = vsub.f32 %v9407_v15, %v4345_v28  ;;  %v4743_v0 = vpack.c.bf16 %v4681_v42, %v4679_v31  ;;  %v4742_v56 = vpack.c.bf16 %v4680_v30, %v4678_v24 }
 0xdb0   : > { %6554 = vrcp.f32 %v4564_v3 }
 0xdb1   : > { %v9668_v14 = vpop.eup %6542  ;;  %v4530_v12 = vmul.f32 1.442695, %v4412_v49  ;;  %v4532_v37 = vmul.f32 1.442695, %v4413_v60  ;;  %4774 = vmatprep.subr.bf16.mxu0 %v4743_v0 }
 0xdb2   : > { %v9670_v58 = vpop.eup %6544  ;;  %4775 = vmatpush1.bf16.xpose.msra.mxu0 %v4742_v56  ;;  %v9672_v53 = vpop.xlane.xlu1 %4353 }
 0xdb3   : > { %v4567_v48 = vpop.xlane.xlu0 %4566  ;;  %v6547_v36 = vpop.eup %6546  ;;  %6556 = vpow2.f32 %v4530_v12  ;;  %v4628_v34 = vadd.f32 %v9670_v58, %v9668_v14 }
 0xdb4   : > { %v9676_v15 = vpop.eup %6548  ;;  %6558 = vpow2.f32 %v4532_v37  ;;  %v4683_v28 = vmul.f32 %v6547_v36, %v9464_v22  ;;  %v4682_v49 = vmul.f32 %v6547_v36, %v9459_v9 }
 0xdb5   : > { %v9678_v26 = vpop.eup %6550  ;;  %6560 = vrcp.f32 %v4567_v48  ;;  %4629 = vadd.xlane.f32.xlu1 %v4628_v34 }
 0xdb6   : > { %v6553_v38 = vpop.eup %6552  ;;  %v4625_v44 = vadd.f32 %v9678_v26, %v9676_v15  ;;  %v4570_v42 = vpop.xlane.xlu1 %4569 }
 0xdb7   : > { %v4351_v31 = vpop.xlane.xlu0 %4350  ;;  %v4685_v24 = vmul.f32 %v6553_v38, %v9477_v61  ;;  %v4684_v60 = vmul.f32 %v6553_v38, %v9473_v35  ;;  %6562 = vrcp.f32 %v4570_v42 }
 0xdb8   : > { %v4416_v30 = vsub.f32 %v9417_v41, %v4351_v31  ;;  %v4417_v3 = vsub.f32 %v9419_v63, %v4351_v31  ;;  %4626 = vadd.xlane.f32.xlu0 %v4625_v44 }
 0xdb9   : > { %v4745_v12 = vpack.c.bf16 %v4685_v24, %v4683_v28  ;;  %v4744_v48 = vpack.c.bf16 %v4684_v60, %v4682_v49 }
 0xdba   : > { %v4538_v0 = vmul.f32 1.442695, %v4416_v30  ;;  %v4540_v56 = vmul.f32 1.442695, %v4417_v3  ;;  %v6555_v41 = vpop.eup %6554 }
 0xdbb   : > { %v4573_v37 = vpop.xlane.xlu0 %4572  ;;  %4776 = vmatprep.subr.bf16.mxu0 %v4745_v12  ;;  %v4687_v44 = vmul.f32 %v6555_v41, %v9486_v40  ;;  %v4686_v42 = vmul.f32 %v6555_v41, %v9481_v57 }
 0xdbc   : > { %6564 = vpow2.f32 %v4538_v0  ;;  %4777 = vmatpush1.bf16.xpose.msra.mxu0 %v4744_v48 }
 0xdbd   : > { %6566 = vpow2.f32 %v4540_v56  ;;  %v9688_v63 = vpop.eup %6556 }
 0xdbe   : > { %6568 = vrcp.f32 %v4573_v37  ;;  %v9690_v22 = vpop.eup %6558  ;;  %v4576_v36 = vpop.xlane.xlu1 %4575 }
 0xdbf   : > { %v4357_v61 = vpop.xlane.xlu0 %4356  ;;  %v6561_v9 = vpop.eup %6560  ;;  %v4631_v38 = vadd.f32 %v9690_v22, %v9688_v63  ;;  %6570 = vrcp.f32 %v4576_v36 }
 0xdc0   : > { %v4420_v35 = vsub.f32 %v9429_v17, %v4357_v61  ;;  %v4421_v34 = vsub.f32 %v9431_v39, %v4357_v61  ;;  %v4689_v31 = vmul.f32 %v6561_v9, %v9494_v25  ;;  %v4688_v30 = vmul.f32 %v6561_v9, %v9488_v20  ;;  %v604_v39 = vld [vmem:[%s10149_s4 + $0x140] sm:$0xff] }
 0xdc1   : > { %4632 = vadd.xlane.f32.xlu0 %v4631_v38  ;;  %v6563_v60 = vpop.eup %6562 }
 0xdc2   : > { %v4546_v3 = vmul.f32 1.442695, %v4420_v35  ;;  %v4548_v28 = vmul.f32 1.442695, %v4421_v34  ;;  %v4747_v24 = vpack.c.bf16 %v4689_v31, %v4687_v44  ;;  %v4746_v17 = vpack.c.bf16 %v4688_v30, %v4686_v42 }
 0xdc3   : > { %v4579_v49 = vpop.xlane.xlu0 %4578  ;;  %v4691_v56 = vmul.f32 %v6563_v60, %v9508_v59  ;;  %v4690_v37 = vmul.f32 %v6563_v60, %v9503_v45  ;;  %v4414_v42 = vsub.f32 %v9411_v52, %v9660_v19  ;;  %v4418_v52 = vsub.f32 %v9423_v11, %v9672_v53 }
 0xdc4   : > { %6572 = vpow2.f32 %v4546_v3  ;;  %4778 = vmatprep.subr.bf16.mxu0 %v4747_v24  ;;  %v4419_v60 = vsub.f32 %v9425_v47, %v9672_v53 }
 0xdc5   : > { %6574 = vpow2.f32 %v4548_v28  ;;  %4779 = vmatpush1.bf16.xpose.msra.mxu0 %v4746_v17  ;;  %v4534_v17 = vmul.f32 1.442695, %v4414_v42 }
 0xdc6   : > { %v9703_v40 = vpop.eup %6564  ;;  %6576 = vrcp.f32 %v4579_v49  ;;  %814 = vperm.xlu1 %5821, %v604_v39   ;;  %v4582_v20 = vpop.xlane.xlu1 %4581  ;;  %v4415_v49 = vsub.f32 %v9413_v33, %v9660_v19 }
 0xdc7   : > { %v9705_v57 = vpop.eup %6566  ;;  %6578 = vrcp.f32 %v4582_v20 }
 0xdc8   : > { %v6569_v25 = vpop.eup %6568  ;;  %v4637_v0 = vadd.f32 %v9705_v57, %v9703_v40  ;;  %v4536_v39 = vmul.f32 1.442695, %v4415_v49  ;;  %v10692_v49 = vld [vmem:[#allocation12_spill] sm:$0xff] }
 0xdc9   : > { %v4693_v12 = vmul.f32 %v6569_v25, %v9516_v13  ;;  %v4692_v48 = vmul.f32 %v6569_v25, %v9510_v7  ;;  %v4585_v41 = vpop.xlane.xlu0 %4584  ;;  %v6571_v36 = vpop.eup %6570 }
 0xdca   : > { %4638 = vadd.xlane.f32.xlu0 %v4637_v0  ;;  %6580 = vrcp.f32 %v4585_v41  ;;  %v4695_v45 = vmul.f32 %v6571_v36, %v9527_v27  ;;  %v4694_v44 = vmul.f32 %v6571_v36, %v9525_v54  ;;  %v4542_v0 = vmul.f32 1.442695, %v4418_v52 }
 0xdcb   : > { %v4749_v61 = vpack.c.bf16 %v4693_v12, %v4691_v56  ;;  %v4748_v9 = vpack.c.bf16 %v4692_v48, %v4690_v37 }
 0xdcd   : > { %4780 = vmatprep.subr.bf16.mxu0 %v4749_v61 }
 0xdce   : > { %v9713_v35 = vpop.eup %6572  ;;  %4781 = vmatpush1.bf16.xpose.msra.mxu0 %v4748_v9  ;;  %v4588_v59 = vpop.xlane.xlu1 %4587 }
 0xdcf   : > { %v9715_v34 = vpop.eup %6574  ;;  %6582 = vrcp.f32 %v4588_v59 }
 0xdd0   : > { %v6577_v38 = vpop.eup %6576  ;;  %v4643_v13 = vadd.f32 %v9715_v34, %v9713_v35 }
 0xdd1   : > { %v4697_v7 = vmul.f32 %v6577_v38, %v9535_v18  ;;  %v4696_v31 = vmul.f32 %v6577_v38, %v9529_v21  ;;  %v4591_v30 = vpop.xlane.xlu0 %4590  ;;  %v6579_v3 = vpop.eup %6578 }
 0xdd2   : > { %4644 = vadd.xlane.f32.xlu0 %v4643_v13  ;;  %6584 = vrcp.f32 %v4591_v30  ;;  %v4699_v54 = vmul.f32 %v6579_v3, %v9546_v8  ;;  %v4698_v19 = vmul.f32 %v6579_v3, %v9544_v23 }
 0xdd3   : > { %v4751_v28 = vpack.c.bf16 %v4697_v7, %v4695_v45  ;;  %v4750_v24 = vpack.c.bf16 %v4696_v31, %v4694_v44  ;;  %v608_v44 = vld [vmem:[%s10149_s4 + $0x160] sm:$0xff] }
 0xdd4   : > { %v6581_v27 = vpop.eup %6580 }
 0xdd5   : > { %4782 = vmatprep.subr.bf16.mxu0 %v4751_v28  ;;  %v4701_v21 = vmul.f32 %v6581_v27, %v9554_v32  ;;  %v4700_v25 = vmul.f32 %v6581_v27, %v9548_v46  ;;  %v4544_v32 = vmul.f32 1.442695, %v4419_v60 }
 0xdd6   : > { %4783 = vmatpush1.bf16.xpose.msra.mxu0 %v4750_v24  ;;  %v4594_v18 = vpop.xlane.xlu1 %4593  ;;  %v610_v24 = vld [vmem:[%s10149_s4 + $0x170] sm:$0xff] }
 0xdd7   : > { %v4753_v20 = vpack.c.bf16 %v4701_v21, %v4699_v54  ;;  %6586 = vrcp.f32 %v4594_v18  ;;  %v4752_v11 = vpack.c.bf16 %v4700_v25, %v4698_v19  ;;  %v10694_v18 = vld [vmem:[#allocation54_spill] sm:$0xff] }
 0xdd8   : > { %6588 = vpow2.f32 %v4534_v17  ;;  %v10693_v17 = vld [vmem:[#allocation59_spill] sm:$0xff]  ;;  %v10695_v25 = vld [vmem:[#allocation58_spill] sm:$0xff] }
 0xdd9   : > { %4784 = vmatprep.subr.bf16.mxu0 %v4753_v20  ;;  %v4597_v33 = vpop.xlane.xlu0 %4596  ;;  %v6583_v8 = vpop.eup %6582  ;;  %v4899_v20 = vld [vmem:[%s10151_s6] sm:$0xff] }
 0xdda   : > { %6590 = vrcp.f32 %v4597_v33  ;;  %v4703_v12 = vmul.f32 %v6583_v8, %v9562_v43  ;;  %v4702_v48 = vmul.f32 %v6583_v8, %v9560_v1  ;;  %v605_v43 = vld [vmem:[%s10149_s4 + $0x148] sm:$0xff] }
 0xddb   : > { %6592 = vpow2.f32 %v4536_v39 }
 0xddc   : > { %v6585_v56 = vpop.eup %6584  ;;  %6594 = vpow2.f32 %v4542_v0 }
 0xddd   : > { %v4705_v47 = vmul.f32 %v6585_v56, %v9570_v50  ;;  %6596 = vpow2.f32 %v4544_v32  ;;  %v4704_v37 = vmul.f32 %v6585_v56, %v9564_v29  ;;  %v4901_v32 = vld [vmem:[%s10151_s6 + $0x10] sm:$0xff] }
 0xdde   : > { %4785 = vmatpush1.bf16.xpose.msra.mxu0 %v4752_v11  ;;  %v4600_v46 = vpop.xlane.xlu1 %4599 }
 0xddf   : > { %v4755_v53 = vpack.c.bf16 %v4705_v47, %v4703_v12  ;;  %6598 = vrcp.f32 %v4600_v46  ;;  %v4754_v9 = vpack.c.bf16 %v4704_v37, %v4702_v48  ;;  %v5004_v37 = vld [vmem:[%s10152_s7] sm:$0xff] }
 0xde1   : > { %4786 = vmatprep.subr.bf16.mxu0 %v4755_v53  ;;  %v4603_v23 = vpop.xlane.xlu0 %4602  ;;  %v6587_v41 = vpop.eup %6586 }
 0xde2   : > { %6600 = vrcp.f32 %v4603_v23  ;;  %v9739_v61 = vpop.eup %6588  ;;  %v4707_v29 = vmul.f32 %v6587_v41, %v9578_v6 }
 0xde4   : > { %v6591_v36 = vpop.eup %6590 }
 0xde5   : > { %v9744_v50 = vpop.eup %6592  ;;  %v4709_v59 = vmul.f32 %v6591_v36, %v9586_v55  ;;  %v4708_v13 = vmul.f32 %v6591_v36, %v9580_v16  ;;  %v10691_v55 = vld [vmem:[#allocation55_spill] sm:$0xff]  ;;  %v10696_v36 = vld [vmem:[#allocation46_spill] sm:$0xff] }
 0xde6   : > { %4787 = vmatpush1.bf16.xpose.msra.mxu0 %v4754_v9  ;;  %v4606_v38 = vpop.xlane.xlu1 %4605  ;;  %v9749_v45 = vpop.eup %6594  ;;  %v4634_v7 = vadd.f32 %v9744_v50, %v9739_v61  ;;  %v4706_v42 = vmul.f32 %v6587_v41, %v10691_v55  ;;  %v609_v55 = vld [vmem:[%s10149_s4 + $0x168] sm:$0xff] }
 0xde7   : > { %v4757_v1 = vpack.c.bf16 %v4709_v59, %v4707_v29  ;;  %6602 = vrcp.f32 %v4606_v38  ;;  %v9756_v31 = vpop.eup %6596  ;;  %v607_v38 = vld [vmem:[%s10149_s4 + $0x158] sm:$0xff] }
 0xde8   : > { %819 = vperm.xlu0 %5820, %v605_v43   ;;  %v4756_v16 = vpack.c.bf16 %v4708_v13, %v4706_v42  ;;  %v4640_v28 = vadd.f32 %v9756_v31, %v9749_v45  ;;  %v5038_v42 = vld [vmem:[%s10153_s8 + $0x10] sm:$0xff] }
 0xde9   : > { %4788 = vmatprep.subr.bf16.mxu0 %v4757_v1  ;;  %v4609_v6 = vpop.xlane.xlu0 %4608  ;;  %v6599_v30 = vpop.eup %6598  ;;  %v5006_v1 = vld [vmem:[%s10152_s7 + $0x10] sm:$0xff] }
 0xdea   : > { %6604 = vrcp.f32 %v4609_v6  ;;  %4635 = vadd.xlane.f32.xlu1 %v4634_v7  ;;  %v4711_v27 = vmul.f32 %v6599_v30, %v10692_v49  ;;  %v4710_v33 = vmul.f32 %v6599_v30, %v10695_v25  ;;  %v10698_v7 = vld [vmem:[#allocation48_spill] sm:$0xff]  ;;  %v10699_v30 = vld [vmem:[#allocation11_spill] sm:$0xff]  ;;  %v10701_v49 = vld [vmem:[#allocation50_spill] sm:$0xff] }
 0xdeb   : > { %v5092_v25 = vld [vmem:[%s10155_s10 + $0x20] sm:$0xff] }
 0xdec   : > { %834 = vperm.xlu0 %5820, %v608_v44   ;;  %v6601_v3 = vpop.eup %6600 }
 0xded   : > { %v4713_v54 = vmul.f32 %v6601_v3, %v10693_v17  ;;  %v4712_v39 = vmul.f32 %v6601_v3, %v10694_v18  ;;  %v10700_v3 = vld [vmem:[#allocation16_spill] sm:$0xff]  ;;  %v611_v17 = vld [vmem:[%s10149_s4 + $0x178] sm:$0xff] }
 0xdee   : > { %4789 = vmatpush1.bf16.xpose.msra.mxu0 %v4756_v16  ;;  %4641 = vadd.xlane.f32.xlu1 %v4640_v28  ;;  %v4612_v21 = vpop.xlane.xlu1 %4611 }
 0xdef   : > { %6606 = vrcp.f32 %v4612_v21  ;;  %v4759_v52 = vpack.c.bf16 %v4713_v54, %v4711_v27  ;;  %v4758_v8 = vpack.c.bf16 %v4712_v39, %v4710_v33  ;;  %v5088_v54 = vld [vmem:[%s10155_s10] sm:$0xff]  ;;  %v10702_v21 = vld [vmem:[#allocation47_spill] sm:$0xff]  ;;  %v4900_v39 = vld [vmem:[%s10151_s6 + $0x8] sm:$0xff] }
 0xdf0   : > { %844 = vperm.xlu0 %5820, %v610_v24   ;;  %v4615_v60 = vpop.xlane.xlu0 %4614  ;;  %v5005_v33 = vld [vmem:[%s10152_s7 + $0x8] sm:$0xff] }
 0xdf1   : > { %4790 = vmatprep.subr.bf16.mxu0 %v4759_v52  ;;  %6608 = vrcp.f32 %v4615_v60  ;;  %v6603_v19 = vpop.eup %6602  ;;  %v5090_v60 = vld [vmem:[%s10155_s10 + $0x10] sm:$0xff] }
 0xdf2   : > { %v4715_v11 = vmul.f32 %v6603_v19, %v9610_v51  ;;  %v4714_v48 = vmul.f32 %v6603_v19, %v9608_v5  ;;  %v10697_v5 = vld [vmem:[#allocation49_spill] sm:$0xff]  ;;  %v5094_v19 = vld [vmem:[%s10155_s10 + $0x30] sm:$0xff] }
 0xdf4   : > { %4905 = vperm.xlu0 %5820, %v4899_v20   ;;  %v6605_v0 = vpop.eup %6604  ;;  %v4902_v20 = vld [vmem:[%s10151_s6 + $0x18] sm:$0xff] }
 0xdf5   : > { %v4717_v56 = vmul.f32 %v6605_v0, %v9618_v4  ;;  %v4716_v46 = vmul.f32 %v6605_v0, %v9612_v10  ;;  %v606_v4 = vld [vmem:[%s10149_s4 + $0x150] sm:$0xff]  ;;  %v5036_v10 = vld [vmem:[%s10153_s8] sm:$0xff] }
 0xdf6   : > { %4791 = vmatpush1.bf16.xpose.msra.mxu0 %v4758_v8  ;;  %v4618_v12 = vpop.xlane.xlu1 %4617  ;;  %v5037_v8 = vld [vmem:[%s10153_s8 + $0x8] sm:$0xff]  ;;  %v5096_v0 = vld [vmem:[%s10155_s10 + $0x40] sm:$0xff] }
 0xdf7   : > { %6610 = vrcp.f32 %v4618_v12  ;;  %v4761_v47 = vpack.c.bf16 %v4717_v56, %v4715_v11  ;;  %v4760_v51 = vpack.c.bf16 %v4716_v46, %v4714_v48  ;;  %v5098_v11 = vld [vmem:[%s10155_s10 + $0x50] sm:$0xff]  ;;  %v5039_v56 = vld [vmem:[%s10153_s8 + $0x18] sm:$0xff]  ;;  %v5100_v12 = vld [vmem:[%s10155_s10 + $0x60] sm:$0xff] }
 0xdf8   : > { %4915 = vperm.xlu0 %5820, %v4901_v32   ;;  %v4621_v53 = vpop.xlane.xlu0 %4620  ;;  %v5007_v32 = vld [vmem:[%s10152_s7 + $0x18] sm:$0xff]  ;;  %v5102_v46 = vld [vmem:[%s10155_s10 + $0x70] sm:$0xff] }
 0xdf9   : > { %v6607_v23 = vpop.eup %6606  ;;  %4792 = vmatprep.subr.bf16.mxu0 %v4761_v47  ;;  %6612 = vrcp.f32 %v4621_v53  ;;  %v5089_v47 = vld [vmem:[%s10155_s10 + $0x8] sm:$0xff]  ;;  %v5091_v53 = vld [vmem:[%s10155_s10 + $0x18] sm:$0xff]  ;;  %v5447_v48 = vld [vmem:[%s10157_s12 + $0x10] sm:$0xff] }
 0xdfa   : > { %v4719_v9 = vmul.f32 %v6607_v23, %v9626_v2  ;;  %v4718_v2 = vmul.f32 %v6607_v23, %v10698_v7  ;;  %v5093_v23 = vld [vmem:[%s10155_s10 + $0x28] sm:$0xff] }
 0xdfb   : > { %v6609_v41 = vpop.eup %6608 }
 0xdfc   : > { %5010 = vperm.xlu0 %5820, %v5004_v37   ;;  %v4721_v43 = vmul.f32 %v6609_v41, %v10696_v36  ;;  %v4720_v59 = vmul.f32 %v6609_v41, %v10697_v5  ;;  %v5445_v37 = vld [vmem:[%s10157_s12] sm:$0xff]  ;;  %v5095_v41 = vld [vmem:[%s10155_s10 + $0x38] sm:$0xff] }
 0xdfd   : > { %v5448_v5 = vld [vmem:[%s10157_s12 + $0x18] sm:$0xff] }
 0xdfe   : > { %4793 = vmatpush1.bf16.xpose.msra.mxu0 %v4760_v51  ;;  %v4763_v29 = vpack.c.bf16 %v4721_v43, %v4719_v9  ;;  %v4762_v6 = vpack.c.bf16 %v4720_v59, %v4718_v2  ;;  %v5097_v51 = vld [vmem:[%s10155_s10 + $0x48] sm:$0xff]  ;;  %v5103_v9 = vld [vmem:[%s10155_s10 + $0x78] sm:$0xff]  ;;  %v4624_v36 = vpop.xlane.xlu1 %4623 }
 0xdff   : > { %824 = vperm.xlu1 %5821, %v606_v4   ;;  %v5099_v4 = vld [vmem:[%s10155_s10 + $0x58] sm:$0xff]  ;;  %6614 = vrcp.f32 %v4624_v36  ;;  %v5446_v43 = vld [vmem:[%s10157_s12 + $0x8] sm:$0xff] }
 0xe00   : > { %5042 = vperm.xlu0 %5820, %v5036_v10   ;;  %4794 = vmatprep.subr.bf16.mxu0 %v4763_v29  ;;  %v5101_v10 = vld [vmem:[%s10155_s10 + $0x68] sm:$0xff] }
 0xe01   : > { %v6611_v13 = vpop.eup %6610 }
 0xe02   : > { %v4723_v16 = vmul.f32 %v6611_v13, %v10699_v30  ;;  %v4722_v52 = vmul.f32 %v6611_v13, %v10702_v21 }
 0xe03   : > { %v6613_v44 = vpop.eup %6612  ;;  %829 = vperm.xlu1 %5821, %v607_v38  }
 0xe04   : > { %5020 = vperm.xlu0 %5820, %v5006_v1   ;;  %v4725_v28 = vmul.f32 %v6613_v44, %v10700_v3  ;;  %v4724_v27 = vmul.f32 %v6613_v44, %v10701_v49  ;;  %v10703_v44 = vld [vmem:[#allocation17_spill] sm:$0xff] }
 0xe06   : > { %4795 = vmatpush1.bf16.xpose.msra.mxu0 %v4762_v6  ;;  %v4765_v24 = vpack.c.bf16 %v4725_v28, %v4723_v16  ;;  %v4764_v18 = vpack.c.bf16 %v4724_v27, %v4722_v52  ;;  %v10704_v52 = vld [vmem:[#allocation13_spill] sm:$0xff] }
 0xe07   : > { %839 = vperm.xlu1 %5821, %v609_v55  }
 0xe08   : > { %5052 = vperm.xlu0 %5820, %v5038_v42   ;;  %4796 = vmatprep.subr.bf16.mxu0 %v4765_v24 }
 0xe09   : > { %v6615_v38 = vpop.eup %6614 }
 0xe0a   : > { %v4727_v7 = vmul.f32 %v6615_v38, %v9652_v62  ;;  %v4726_v6 = vmul.f32 %v6615_v38, %v10703_v44 }
 0xe0b   : > { %849 = vperm.xlu1 %5821, %v611_v17  }
 0xe0c   : > { %5106 = vperm.xlu0 %5820, %v5088_v54  }
 0xe0e   : > { %4797 = vmatpush1.bf16.xpose.msra.mxu0 %v4764_v18 }
 0xe0f   : > { %4910 = vperm.xlu1 %5821, %v4900_v39   ;;  %v10705_v39 = vld [vmem:[#allocation14_spill] sm:$0xff] }
 0xe10   : > { %5116 = vperm.xlu0 %5820, %v5090_v60  }
 0xe13   : > { %4920 = vperm.xlu1 %5821, %v4902_v20   ;;  %v10706_v20 = vld [vmem:[#allocation15_spill] sm:$0xff] }
 0xe14   : > { %5126 = vperm.xlu0 %5820, %v5092_v25   ;;  %v10707_v25 = vld [vmem:[#allocation44_spill] sm:$0xff] }
 0xe17   : > { %5015 = vperm.xlu1 %5821, %v5005_v33  }
 0xe18   : > { %5136 = vperm.xlu0 %5820, %v5094_v19  }
 0xe1b   : > { %5047 = vperm.xlu1 %5821, %v5037_v8  }
 0xe1c   : > { %5146 = vperm.xlu0 %5820, %v5096_v0  }
 0xe1f   : > { %5025 = vperm.xlu1 %5821, %v5007_v32  }
 0xe20   : > { %5156 = vperm.xlu0 %5820, %v5098_v11  }
 0xe23   : > { %5057 = vperm.xlu1 %5821, %v5039_v56  }
 0xe24   : > { %5166 = vperm.xlu0 %5820, %v5100_v12  }
 0xe27   : > { %5111 = vperm.xlu1 %5821, %v5089_v47  }
 0xe28   : > { %5176 = vperm.xlu0 %5820, %v5102_v46  }
 0xe2b   : > { %5121 = vperm.xlu1 %5821, %v5091_v53  }
 0xe2c   : > { %5451 = vperm.xlu0 %5820, %v5445_v37  }
 0xe2f   : > { %5131 = vperm.xlu1 %5821, %v5093_v23   ;;  %v10708_v23 = vld [vmem:[#allocation45_spill] sm:$0xff] }
 0xe30   : > { %5461 = vperm.xlu0 %5820, %v5447_v48  }
 0xe33   : > { %5141 = vperm.xlu1 %5821, %v5095_v41   ;;  %v10709_v41 = vld [vmem:[#allocation42_spill] sm:$0xff] }
 0xe37   : > { %5151 = vperm.xlu1 %5821, %v5097_v51  }
 0xe3b   : > { %5161 = vperm.xlu1 %5821, %v5099_v4   ;;  %v10710_v4 = vld [vmem:[#allocation43_spill] sm:$0xff] }
 0xe3f   : > { %5171 = vperm.xlu1 %5821, %v5101_v10  }
 0xe42   : > { %v4630_v59 = vpop.xlane.xlu1 %4629 }
 0xe43   : > { %5181 = vperm.xlu1 %5821, %v5103_v9   ;;  %v10711_v9 = vld [vmem:[#allocation63_spill] sm:$0xff] }
 0xe45   : > { %v4627_v29 = vpop.xlane.xlu0 %4626 }
 0xe46   : > { %6616 = vrcp.f32 %v4627_v29  ;;  %v815_v54 = vpop.permute.xlu1 %814 }
 0xe47   : > { %5456 = vperm.xlu1 %5821, %v5446_v43   ;;  %6618 = vrcp.f32 %v4630_v59  ;;  %v1280_v18 = vadd.f32 %v10704_v52, %v815_v54  ;;  %v1282_v60 = vadd.f32 %v10705_v39, %v815_v54  ;;  %v10720_v39 = vld [vmem:[#allocation41_spill] sm:$0xff] }
 0xe4b   : > { %5466 = vperm.xlu1 %5821, %v5448_v5  }
 0xe4e   : > { %v4633_v1 = vpop.xlane.xlu0 %4632 }
 0xe4f   : > { %6620 = vrcp.f32 %v4633_v1 }
 0xe50   : > { %v6617_v13 = vpop.eup %6616 }
 0xe51   : > { %v4729_v2 = vmul.f32 %v6617_v13, %v9678_v26  ;;  %v4728_v55 = vmul.f32 %v6617_v13, %v9676_v15  ;;  %v6619_v16 = vpop.eup %6618  ;;  %v10713_v13 = vld [vmem:[#allocation21_spill] sm:$0xff] }
 0xe52   : > { %v4731_v28 = vmul.f32 %v6619_v16, %v9670_v58  ;;  %v4730_v49 = vmul.f32 %v6619_v16, %v9668_v14 }
 0xe53   : > { %v4767_v42 = vpack.c.bf16 %v4729_v2, %v4727_v7  ;;  %v4766_v30 = vpack.c.bf16 %v4728_v55, %v4726_v6  ;;  %v10714_v2 = vld [vmem:[#allocation22_spill] sm:$0xff]  ;;  %v10715_v6 = vld [vmem:[#allocation23_spill] sm:$0xff] }
 0xe55   : > { %4798 = vmatprep.subr.bf16.mxu0 %v4767_v42 }
 0xe56   : > { %4799 = vmatpush1.bf16.xpose.msra.mxu0 %v4766_v30 }
 0xe57   : > { %v4639_v17 = vpop.xlane.xlu0 %4638 }
 0xe58   : > { %6622 = vrcp.f32 %v4639_v17 }
 0xe59   : > { %v6621_v3 = vpop.eup %6620 }
 0xe5a   : > { %v4733_v24 = vmul.f32 %v6621_v3, %v9690_v22  ;;  %v4732_v62 = vmul.f32 %v6621_v3, %v9688_v63 }
 0xe5c   : > { %v4769_v27 = vpack.c.bf16 %v4733_v24, %v4731_v28  ;;  %v4768_v26 = vpack.c.bf16 %v4732_v62, %v4730_v49  ;;  %v10717_v62 = vld [vmem:[#allocation25_spill] sm:$0xff] }
 0xe5e   : > { %4800 = vmatprep.subr.bf16.mxu0 %v4769_v27 }
 0xe5f   : > { %4801 = vmatpush1.bf16.xpose.msra.mxu0 %v4768_v26  ;;  %v4645_v15 = vpop.xlane.xlu0 %4644  ;;  %v10718_v26 = vld [vmem:[#allocation26_spill] sm:$0xff] }
 0xe62   : > { %v6623_v0 = vpop.eup %6622 }
 0xe63   : > { %v4737_v47 = vmul.f32 %v6623_v0, %v9705_v57  ;;  %v4736_v53 = vmul.f32 %v6623_v0, %v9703_v40  ;;  %v10732_v0 = vld [vmem:[#allocation34_spill] sm:$0xff] }
 0xe67   : > { %v820_v21 = vpop.permute.xlu0 %819 }
 0xe68   : > { %v1284_v58 = vadd.f32 %v10706_v20, %v820_v21  ;;  %v1286_v22 = vadd.f32 %v10707_v25, %v820_v21  ;;  %v10726_v25 = vld [vmem:[#allocation31_spill] sm:$0xff] }
 0xe6a   : > { %v1358_v33 = vpack.c.bf16 %v1284_v58, %v1280_v18  ;;  %v1359_v14 = vpack.c.bf16 %v1286_v22, %v1282_v60  ;;  %v10721_v60 = vld [vmem:[#allocation29_spill] sm:$0xff] }
 0xe6b   : > { %v835_v11 = vpop.permute.xlu0 %834  ;;  %v10722_v20 = vpack.c.bf16 %v10720_v39, %v10721_v60  ;;  %v10727_v22 = vld [vmem:[#allocation33_spill] sm:$0xff]  ;;  %v10784_v39 = vld [vmem:[#allocation88_spill] sm:$0xff] }
 0xe6c   : > { %4806 = vmatprep.mubr.bf16.mxu0 %v1359_v14  ;;  %v1302_v7 = vadd.f32 %v10713_v13, %v835_v11  ;;  %v10728_v14 = vpack.c.bf16 %v10726_v25, %v10727_v22  ;;  %v10760_v13 = vld [vmem:[#allocation72_spill] sm:$0xff] }
 0xe6d   : > { %v10790_v25 = vld [vmem:[#allocation92_spill] sm:$0xff] }
 0xe6f   : > { %v845_v42 = vpop.permute.xlu0 %844 }
 0xe70   : > { %v1312_v27 = vadd.f32 %v10717_v62, %v845_v42  ;;  %v10775_v62 = vld [vmem:[#allocation86_spill] sm:$0xff] }
 0xe77   : > { %v4636_v63 = vpop.xlane.xlu1 %4635 }
 0xe78   : > { %6624 = vrcp.f32 %v4636_v63  ;;  %v10729_v63 = vld [vmem:[#allocation32_spill] sm:$0xff] }
 0xe79   : > { %6626 = vrcp.f32 %v4645_v15  ;;  %v10719_v15 = vld [vmem:[#allocation27_spill] sm:$0xff] }
 0xe7b   : > { %v4642_v19 = vpop.xlane.xlu1 %4641 }
 0xe7c   : > { %6628 = vrcp.f32 %v4642_v19  ;;  %v10730_v19 = vld [vmem:[#allocation28_spill] sm:$0xff] }
 0xe7f   : > { %v825_v8 = vpop.permute.xlu1 %824 }
 0xe80   : > { %v1290_v48 = vadd.f32 %v10708_v23, %v825_v8  ;;  %v1292_v51 = vadd.f32 %v10709_v41, %v825_v8  ;;  %v10731_v8 = vpack.c.bf16 %v10729_v63, %v10730_v19  ;;  %v10742_v23 = vld [vmem:[#allocation39_spill] sm:$0xff] }
 0xe81   : > { %v10744_v41 = vld [vmem:[#allocation67_spill] sm:$0xff] }
 0xe82   : > { %v6625_v32 = vpop.eup %6624 }
 0xe83   : > { %v830_v56 = vpop.permute.xlu1 %829  ;;  %v4735_v12 = vmul.f32 %v6625_v32, %v9744_v50  ;;  %v4734_v46 = vmul.f32 %v6625_v32, %v9739_v61  ;;  %v6627_v37 = vpop.eup %6626  ;;  %v10712_v61 = vld [vmem:[#allocation20_spill] sm:$0xff]  ;;  %v10733_v32 = vld [vmem:[#allocation37_spill] sm:$0xff] }
 0xe84   : > { %v1294_v10 = vadd.f32 %v10710_v4, %v830_v56  ;;  %v1296_v36 = vadd.f32 %v10711_v9, %v830_v56  ;;  %v4741_v40 = vmul.f32 %v6627_v37, %v9715_v34  ;;  %v1300_v1 = vadd.f32 %v10712_v61, %v835_v11  ;;  %v10716_v34 = vld [vmem:[#allocation24_spill] sm:$0xff]  ;;  %v10736_v56 = vld [vmem:[#allocation35_spill] sm:$0xff] }
 0xe85   : > { %v4771_v43 = vpack.c.bf16 %v4737_v47, %v4735_v12  ;;  %v4770_v29 = vpack.c.bf16 %v4736_v53, %v4734_v46  ;;  %v1310_v49 = vadd.f32 %v10716_v34, %v845_v42  ;;  %v10734_v11 = vpack.c.bf16 %v10732_v0, %v10733_v32  ;;  %v10738_v47 = vld [vmem:[#allocation9_spill] sm:$0xff]  ;;  %v10739_v46 = vld [vmem:[#allocation38_spill] sm:$0xff]  ;;  %v10748_v9 = vld [vmem:[#allocation64_spill] sm:$0xff] }
 0xe86   : > { %v6629_v5 = vpop.eup %6628  ;;  %v1360_v59 = vpack.c.bf16 %v1294_v10, %v1290_v48  ;;  %v1361_v50 = vpack.c.bf16 %v1296_v36, %v1292_v51  ;;  %v10740_v53 = vpack.c.bf16 %v10738_v47, %v10739_v46  ;;  %v10745_v51 = vld [vmem:[#allocation65_spill] sm:$0xff]  ;;  %v10747_v10 = vld [vmem:[#allocation66_spill] sm:$0xff]  ;;  %v10766_v42 = vld [vmem:[#allocation76_spill] sm:$0xff] }
 0xe87   : > { %v840_v38 = vpop.permute.xlu1 %839  ;;  %4802 = vmatprep.subr.bf16.mxu0 %v4771_v43  ;;  %v4739_v57 = vmul.f32 %v6629_v5, %v9756_v31  ;;  %v4738_v28 = vmul.f32 %v6629_v5, %v9749_v45  ;;  %v4740_v31 = vmul.f32 %v6627_v37, %v9713_v35  ;;  %v10723_v45 = vld [vmem:[#allocation30_spill] sm:$0xff]  ;;  %v10724_v35 = vld [vmem:[#allocation40_spill] sm:$0xff]  ;;  %v10746_v4 = vpack.c.bf16 %v10744_v41, %v10745_v51  ;;  %v10750_v43 = vld [vmem:[#allocation71_spill] sm:$0xff] }
 0xe88   : > { %v1304_v44 = vadd.f32 %v10714_v2, %v840_v38  ;;  %v1306_v55 = vadd.f32 %v10715_v6, %v840_v38  ;;  %4803 = vmatpush1.bf16.xpose.msra.mxu0 %v4770_v29  ;;  %v10725_v58 = vpack.c.bf16 %v10723_v45, %v10724_v35  ;;  %v10741_v37 = vld [vmem:[#allocation8_spill] sm:$0xff]  ;;  %v10749_v36 = vpack.c.bf16 %v10747_v10, %v10748_v9  ;;  %v10751_v29 = vld [vmem:[#allocation69_spill] sm:$0xff]  ;;  %v10762_v2 = vld [vmem:[#allocation79_spill] sm:$0xff] }
 0xe89   : > { %v4773_v30 = vpack.c.bf16 %v4741_v40, %v4739_v57  ;;  %v4772_v18 = vpack.c.bf16 %v4740_v31, %v4738_v28  ;;  %v10743_v48 = vpack.c.bf16 %v10741_v37, %v10742_v23  ;;  %v10752_v5 = vpack.c.bf16 %v10750_v43, %v10751_v29  ;;  %v10756_v57 = vld [vmem:[#allocation75_spill] sm:$0xff]  ;;  %v10757_v40 = vld [vmem:[#allocation73_spill] sm:$0xff] }
 0xe8a   : > { %v1362_v16 = vpack.c.bf16 %v1304_v44, %v1300_v1  ;;  %v1363_v3 = vpack.c.bf16 %v1306_v55, %v1302_v7  ;;  %v10758_v61 = vpack.c.bf16 %v10756_v57, %v10757_v40  ;;  %v10759_v1 = vld [vmem:[#allocation74_spill] sm:$0xff]  ;;  %v10763_v44 = vld [vmem:[#allocation77_spill] sm:$0xff]  ;;  %v10787_v45 = vld [vmem:[#allocation91_spill] sm:$0xff]  ;;  %v10792_v57 = vmov 0  }
 0xe8b   : > { %v850_v24 = vpop.permute.xlu1 %849  ;;  %4804 = vmatprep.subr.bf16.mxu0 %v4773_v30  ;;  %v10761_v7 = vpack.c.bf16 %v10759_v1, %v10760_v13  ;;  %v10764_v6 = vpack.c.bf16 %v10762_v2, %v10763_v44  ;;  %v10765_v55 = vld [vmem:[#allocation78_spill] sm:$0xff]  ;;  %v10772_v31 = vld [vmem:[#allocation93_spill] sm:$0xff] }
 0xe8c   : > { %v1314_v17 = vadd.f32 %v10718_v26, %v850_v24  ;;  %v1316_v54 = vadd.f32 %v10719_v15, %v850_v24  ;;  %v10767_v30 = vpack.c.bf16 %v10765_v55, %v10766_v42  ;;  %v10771_v24 = vld [vmem:[#allocation83_spill] sm:$0xff]  ;;  %v10777_v26 = vld [vmem:[#allocation85_spill] sm:$0xff] }
 0xe8d   : > { %v10773_v34 = vpack.c.bf16 %v10771_v24, %v10772_v31 }
 0xe8e   : > { %v1364_v21 = vpack.c.bf16 %v1314_v17, %v1310_v49  ;;  %v1365_v52 = vpack.c.bf16 %v1316_v54, %v1312_v27  ;;  %v10774_v49 = vld [vmem:[#allocation84_spill] sm:$0xff]  ;;  %v10780_v54 = vld [vmem:[#allocation87_spill] sm:$0xff] }
 0xe8f   : > { %v10776_v27 = vpack.c.bf16 %v10774_v49, %v10775_v62  ;;  %v10778_v17 = vld [vmem:[#allocation80_spill] sm:$0xff]  ;;  %v4911_v40 = vpop.permute.xlu1 %4910 }
 0xe90   : > { %4805 = vmatpush1.bf16.xpose.msra.mxu0 %v4772_v18  ;;  %v10779_v15 = vpack.c.bf16 %v10777_v26, %v10778_v17  ;;  %v10783_v18 = vld [vmem:[#allocation89_spill] sm:$0xff]  ;;  %v6632_v26 = vld [vmem:[%s6869_s20 + $0x10] sm:$0xff] }
 0xe91   : > { %4943 = vmatprep.subr.bf16.mxu0 %v10722_v20  ;;  %v10785_v60 = vpack.c.bf16 %v10783_v18, %v10784_v39  ;;  %v10786_v20 = vld [vmem:[#allocation60_spill] sm:$0xff] }
 0xe92   : > { %v10788_v35 = vpack.c.bf16 %v10786_v20, %v10787_v45 }
 0xe93   : > { %v4921_v1 = vpop.permute.xlu1 %4920 }
 0xe97   : > { %4807 = vmatmul.mubr.bf16.vlgmr.msra.gmra.mrb[168].mxu0 %v1358_v33  ;;  %v10735_v33 = vld [vmem:[#allocation36_spill] sm:$0xff] }
 0xe98   : > { %4816 = vmatprep.mubr.bf16.mxu0 %v1361_v50  ;;  %4944 = vmatpush1.bf16.msra.mxu0 %v10725_v58  ;;  %v10737_v12 = vpack.c.bf16 %v10735_v33, %v10736_v56  ;;  %v10754_v50 = vld [vmem:[#allocation68_spill] sm:$0xff]  ;;  %v10789_v58 = vld [vmem:[#allocation61_spill] sm:$0xff] }
 0xe99   : > { %4945 = vmatprep.subr.bf16.mxu0 %v10728_v14  ;;  %v10791_v22 = vpack.c.bf16 %v10789_v58, %v10790_v25  ;;  %v5848_v14 = vld [vmem:[%s10150_s5 + $0x4] ss:$8 sps:$4 sm:$0xff]  }
 0xe9c   : > { %4946 = vmatpush1.bf16.msra.mxu0 %v10731_v8 }
 0xe9d   : > { %4947 = vmatprep.subr.bf16.mxu0 %v10734_v11 }
 0xe9f   : > { %4817 = vmatmul.mubr.bf16.gmra.mrb[172].mxu0 %v1360_v59  ;;  %v10753_v59 = vld [vmem:[#allocation70_spill] sm:$0xff] }
 0xea0   : > { %4826 = vmatprep.mubr.bf16.mxu0 %v1363_v3  ;;  %4948 = vmatpush1.bf16.msra.mxu0 %v10737_v12  ;;  %v10755_v38 = vpack.c.bf16 %v10753_v59, %v10754_v50  ;;  %v10769_v3 = vld [vmem:[#allocation81_spill] sm:$0xff]  ;;  %v5849_v50 = vld [vmem:[%s10150_s5 + $0x14] ss:$8 sps:$4 sm:$0xff]  }
 0xea1   : > { %4949 = vmatprep.subr.bf16.mxu0 %v10740_v53  ;;  %v5846_v59 = vld [vmem:[%s10150_s5] ss:$8 sps:$4 sm:$0xff]  }
 0xea4   : > { %4950 = vmatpush1.bf16.msra.mxu0 %v10743_v48 }
 0xea5   : > { %4951 = vmatprep.subr.bf16.mxu0 %v10746_v4 }
 0xea7   : > { %4827 = vmatmul.mubr.bf16.gmra.mrb[176].mxu0 %v1362_v16  ;;  %v10768_v16 = vld [vmem:[#allocation82_spill] sm:$0xff] }
 0xea8   : > { %4836 = vmatprep.mubr.bf16.mxu0 %v1365_v52  ;;  %4952 = vmatpush1.bf16.msra.mxu0 %v10749_v36  ;;  %v10770_v28 = vpack.c.bf16 %v10768_v16, %v10769_v3  ;;  %v6630_v16 = vld [vmem:[%s6869_s20] sm:$0xff] }
 0xea9   : > { %4953 = vmatprep.subr.bf16.mxu0 %v10752_v5 }
 0xeac   : > { %4954 = vmatpush1.bf16.msra.mxu0 %v10755_v38  ;;  %v5851_v38 = vld [vmem:[%s10150_s5 + $0x10] ss:$8 sps:$4 sm:$0xff]  }
 0xead   : > { %4955 = vmatprep.subr.bf16.mxu0 %v10758_v61  ;;  %v4906_v61 = vpop.permute.xlu0 %4905 }
 0xeaf   : > { %4837 = vmatmul.mubr.bf16.gmra.mrb[180].mxu0 %v1364_v21  ;;  %v10781_v21 = vld [vmem:[#allocation90_spill] sm:$0xff] }
 0xeb0   : > { %4956 = vmatpush1.bf16.msra.mxu0 %v10761_v7  ;;  %v10782_v52 = vpack.c.bf16 %v10780_v54, %v10781_v21  ;;  %4975 = vmatprep.mubr.bf16.mxu0 %v5848_v14  ;;  %v5016_v7 = vpop.permute.xlu1 %5015  ;;  %v6633_v54 = vld [vmem:[%s6869_s20 + $0x18] sm:$0xff] }
 0xeb1   : > { %4957 = vmatprep.subr.bf16.mxu0 %v10764_v6  ;;  %v4916_v13 = vpop.permute.xlu0 %4915 }
 0xeb4   : > { %4958 = vmatpush1.bf16.msra.mxu0 %v10767_v30  ;;  %v5048_v31 = vpop.permute.xlu1 %5047 }
 0xeb5   : > { %4959 = vmatprep.subr.bf16.mxu0 %v10770_v28  ;;  %v5011_v2 = vpop.permute.xlu0 %5010 }
 0xeb8   : > { %4960 = vmatpush1.bf16.msra.mxu0 %v10773_v34  ;;  %v6631_v34 = vld [vmem:[%s6869_s20 + $0x8] sm:$0xff]  ;;  %v5026_v58 = vpop.permute.xlu1 %5025 }
 0xeb9   : > { %4961 = vmatprep.subr.bf16.mxu0 %v10776_v27  ;;  %v5043_v27 = vpop.permute.xlu0 %5042 }
 0xebc   : > { %4962 = vmatpush1.bf16.msra.mxu0 %v10779_v15 }
 0xebd   : > { %4963 = vmatprep.subr.bf16.mxu0 %v10782_v52 }
 0xec0   : > { %4964 = vmatpush1.bf16.msra.mxu0 %v10785_v60 }
 0xec1   : > { %4965 = vmatprep.subr.bf16.mxu0 %v10788_v35 }
 0xec4   : > { %4966 = vmatpush1.bf16.msra.mxu0 %v10791_v22 }
 0xf6a   : > { %v4808_v63 = vpop.f32.mrb[168].mxu0 }
 0xf6b   : > { %v4810_v19 = vpop.f32.mrb[169].mxu0 }
 0xf6c   : > { %v4812_v8 = vpop.f32.mrb[170].mxu0 }
 0xf6d   : > { %v4847_v0 = vpack.c.bf16 %v4812_v8, %v4808_v63  ;;  %v4814_v32 = vpop.f32.mrb[171].mxu0 }
 0xf6e   : > { %v4848_v11 = vpack.c.bf16 %v4814_v32, %v4810_v19  ;;  %v5021_v19 = vpop.permute.xlu0 %5020 }
 0xf70   : > { %4967 = vmatprep.subr.bf16.mxu0 %v4848_v11 }
 0xf71   : > { %4968 = vmatpush1.bf16.msra.mxu0 %v4847_v0  ;;  %v6634_v0 = vld [vmem:[%s6869_s20 + $0x20] sm:$0xff] }
 0xf72   : > { %v4818_v33 = vpop.f32.mrb[172].mxu0 }
 0xf73   : > { %v4820_v56 = vpop.f32.mrb[173].mxu0 }
 0xf74   : > { %v4822_v12 = vpop.f32.mrb[174].mxu0 }
 0xf75   : > { %v4849_v47 = vpack.c.bf16 %v4822_v12, %v4818_v33  ;;  %v4824_v46 = vpop.f32.mrb[175].mxu0 }
 0xf76   : > { %v4850_v53 = vpack.c.bf16 %v4824_v46, %v4820_v56  ;;  %v6635_v56 = vld [vmem:[%s6869_s20 + $0x28] sm:$0xff] }
 0xf78   : > { %4969 = vmatprep.subr.bf16.mxu0 %v4850_v53  ;;  %v6636_v53 = vld [vmem:[%s6869_s20 + $0x30] sm:$0xff] }
 0xf79   : > { %4970 = vmatpush1.bf16.msra.mxu0 %v4849_v47 }
 0xf7a   : > { %v4828_v37 = vpop.f32.mrb[176].mxu0 }
 0xf7b   : > { %v4830_v23 = vpop.f32.mrb[177].mxu0 }
 0xf7c   : > { %v4832_v48 = vpop.f32.mrb[178].mxu0 }
 0xf7d   : > { %v4851_v41 = vpack.c.bf16 %v4832_v48, %v4828_v37  ;;  %v4834_v51 = vpop.f32.mrb[179].mxu0 }
 0xf7e   : > { %v4852_v4 = vpack.c.bf16 %v4834_v51, %v4830_v23 }
 0xf80   : > { %4971 = vmatprep.subr.bf16.mxu0 %v4852_v4 }
 0xf81   : > { %4972 = vmatpush1.bf16.msra.mxu0 %v4851_v41  ;;  %v6637_v41 = vld [vmem:[%s6869_s20 + $0x38] sm:$0xff]  ;;  %s433_s20 = scalar_lea.vmem [#allocation3], %s5630_s30  ;;  %s6644_s30 = scalar_lea.vmem %s6643_s23, 2048 }
 0xf82   : > { %v4838_v10 = vpop.f32.mrb[180].mxu0  ;;  %s5564_s17 = sshll.u32 %s433_s20, 4  ;;  %s10099_s17 = int_to_ptr.vmem [resolvable:$true] %s5564_s17 }
 0xf83   : > { %v4840_v9 = vpop.f32.mrb[181].mxu0  ;;  %s6638_s21 = scalar_lea.vmem %s10099_s17, 1024  ;;  %p6645_p0 = scmp.lt.s32.totalorder %s10099_s17, %s6643_s23 }
 0xf84   : > { %v4842_v36 = vpop.f32.mrb[182].mxu0  ;;  %p6639_p11 = scmp.ne.s32.totalorder %s10099_s17, %s6638_s21  ;;  %p6646_p1 = scmp.lt.s32.totalorder %s6644_s30, %s6638_s21 }
 0xf85   : > { %v4853_v43 = vpack.c.bf16 %v4842_v36, %v4838_v10  ;;  %v4844_v29 = vpop.f32.mrb[183].mxu0 }
 0xf86   : > { %v4854_v5 = vpack.c.bf16 %v4844_v29, %v4840_v9  ;;  %v5058_v9 = vpop.permute.xlu1 %5057  ;;  %p6640_p12 = pnand %p6639_p11, %p6814_p5  ;;  %p6647_p2 = por %p6646_p1, %p6645_p0 }
 0xf88   : > { %4973 = vmatprep.subr.bf16.mxu0 %v4854_v5  ;;  %p6641_p13 = pneg %p6640_p12 }
 0xf89   : > { %4974 = vmatpush1.bf16.msra.mxu0 %v4853_v43  ;;  %v5053_v43 = vpop.permute.xlu0 %5052 }
 0xf8a   : > { %p6648_p3 = pnand %p6647_p2, %p6641_p13 }
 0xf8c   : > { %4976 = vmatmul.mubr.bf16.vlgmr.msra.gmra.mrb[184].mxu0 %v5846_v59 }
 0xf8d   : > { %4985 = vmatprep.mubr.bf16.mxu0 %v5849_v50 }
 0xf94   : > { %4986 = vmatmul.mubr.bf16.gmra.mrb[188].mxu0 %v5851_v38 }
 0xf95   : > { %5280 = vmatprep.mubr.bf16.mxu0 %v10792_v57 }
0x105f   : > { %v4977_v44 = vpop.f32.mrb[184].mxu0 }
0x1060   : > { %v4978_v6 = vadd.f32 %v4977_v44, %v4906_v61  ;;  %v4979_v55 = vpop.f32.mrb[185].mxu0  ;;  %v5857_v44 = vld [vmem:[%s10154_s9 + $0x28] sm:$0xff]  }
0x1061   : > { %v4980_v42 = vadd.f32 %v4979_v55, %v4906_v61  ;;  %v4981_v30 = vpop.f32.mrb[186].mxu0  ;;  %v5852_v61 = vld [vmem:[%s10154_s9] sm:$0xff]   ;;  %v5859_v55 = vld [vmem:[%s10154_s9 + $0x38] sm:$0xff]  }
0x1062   : > { %v10006_v3 = vadd.f32 %v6630_v16, %v4978_v6  ;;  %v4982_v28 = vadd.f32 %v4981_v30, %v4911_v40  ;;  %v4983_v24 = vpop.f32.mrb[187].mxu0  ;;  %v5858_v6 = vld [vmem:[%s10154_s9 + $0x30] sm:$0xff]  }
0x1063   : > { %v10009_v49 = vadd.f32 %v6631_v34, %v4980_v42  ;;  %v4984_v62 = vadd.f32 %v4983_v24, %v4911_v40  ;;  %v5107_v42 = vpop.permute.xlu0 %5106  ;;  %v5112_v24 = vpop.permute.xlu1 %5111 }
0x1064   : > { %v10012_v17 = vadd.f32 %v6632_v26, %v4982_v28  ;;  %v5028_v52 = vmul.f32 %v5011_v2, %v10006_v3 }
0x1065   : > { %v5029_v15 = vmul.f32 %v5011_v2, %v10009_v49  ;;  %v10016_v21 = vadd.f32 %v6633_v54, %v4984_v62  ;;  %v5856_v2 = vld [vmem:[%s10154_s9 + $0x20] sm:$0xff]  }
0x1066   : > { %v5030_v18 = vmul.f32 %v5016_v7, %v10012_v17  ;;  %v5060_v8 = vadd.f32 %v5043_v27, %v5028_v52 }
0x1067   : > { %v5031_v39 = vmul.f32 %v5016_v7, %v10016_v21  ;;  %v4987_v60 = vpop.f32.mrb[188].mxu0  ;;  %v5061_v14 = vadd.f32 %v5043_v27, %v5029_v15  ;;  %v5855_v7 = vld [vmem:[%s10154_s9 + $0x18] sm:$0xff]  }
0x1068   : > { %v5062_v20 = vadd.f32 %v5048_v31, %v5030_v18  ;;  %v4988_v45 = vadd.f32 %v4987_v60, %v4916_v13  ;;  %v4989_v35 = vpop.f32.mrb[189].mxu0 }
0x1069   : > { %v4990_v25 = vadd.f32 %v4989_v35, %v4916_v13  ;;  %v4991_v22 = vpop.f32.mrb[190].mxu0  ;;  %v5063_v63 = vadd.f32 %v5048_v31, %v5031_v39  ;;  %v5854_v13 = vld [vmem:[%s10154_s9 + $0x10] sm:$0xff]  }
0x106a   : > { %v10022_v32 = vadd.f32 %v6634_v0, %v4988_v45  ;;  %v4992_v11 = vadd.f32 %v4991_v22, %v4921_v1  ;;  %v4993_v33 = vpop.f32.mrb[191].mxu0  ;;  %v5068_v23 = vpack.c.bf16 %v5062_v20, %v5060_v8  ;;  %v5117_v20 = vpop.permute.xlu0 %5116 }
0x106b   : > { %v10025_v12 = vadd.f32 %v6635_v56, %v4990_v25  ;;  %v4994_v47 = vadd.f32 %v4993_v33, %v4921_v1  ;;  %v5069_v46 = vpack.c.bf16 %v5063_v63, %v5061_v14  ;;  %v5853_v1 = vld [vmem:[%s10154_s9 + $0x8] sm:$0xff]   ;;  %v5122_v63 = vpop.permute.xlu1 %5121 }
0x106c   : > { %v10028_v37 = vadd.f32 %v6636_v53, %v4992_v11  ;;  %v5032_v4 = vmul.f32 %v5021_v19, %v10022_v32 }
0x106d   : > { %v5033_v48 = vmul.f32 %v5021_v19, %v10025_v12  ;;  %v10032_v51 = vadd.f32 %v6637_v41, %v4994_v47  ;;  %5248 = vmatprep.subr.bf16.mxu0 %v5069_v46 }
0x106e   : > { %v5034_v10 = vmul.f32 %v5026_v58, %v10028_v37  ;;  %5249 = vmatpush1.bf16.msra.mxu0 %v5068_v23  ;;  %v5064_v50 = vadd.f32 %v5053_v43, %v5032_v4  ;;  %v5127_v4 = vpop.permute.xlu0 %5126 }
0x106f   : > { %v5035_v36 = vmul.f32 %v5026_v58, %v10032_v51  ;;  %v5065_v5 = vadd.f32 %v5053_v43, %v5033_v48 }
0x1070   : > { %v5066_v29 = vadd.f32 %v5058_v9, %v5034_v10 }
0x1071   : > { %v5067_v59 = vadd.f32 %v5058_v9, %v5035_v36 }
0x1072   : > { %v5070_v40 = vpack.c.bf16 %v5066_v29, %v5064_v50 }
0x1073   : > { %v5071_v38 = vpack.c.bf16 %v5067_v59, %v5065_v5  ;;  %v5132_v59 = vpop.permute.xlu1 %5131 }
0x1075   : > { %5250 = vmatprep.subr.bf16.mxu0 %v5071_v38 }
0x1076   : > { %5251 = vmatpush1.bf16.msra.mxu0 %v5070_v40 }
0x1079   : > { %5757 = vmatmul.mubr.msk.bf16.vlgmr.msra.gmra.mrb[192].mxu0 %vm972_vm0, %v5852_v61 }
0x107a   : > { %5290 = vmatprep.mubr.bf16.mxu0 %v10792_v57 }
0x1081   : > { %5758 = vmatmul.mubr.msk.bf16.gmra.mrb[196].mxu0 %vm972_vm0, %v5853_v1 }
0x1082   : > { %5300 = vmatprep.mubr.bf16.mxu0 %v10792_v57 }
0x1089   : > { %5759 = vmatmul.mubr.msk.bf16.gmra.mrb[200].mxu0 %vm972_vm0, %v5854_v13 }
0x108a   : > { %5310 = vmatprep.mubr.bf16.mxu0 %v10792_v57 }
0x1091   : > { %5760 = vmatmul.mubr.msk.bf16.gmra.mrb[204].mxu0 %vm972_vm0, %v5855_v7 }
0x1092   : > { %5320 = vmatprep.mubr.bf16.mxu0 %v10792_v57 }
0x1099   : > { %5761 = vmatmul.mubr.msk.bf16.gmra.mrb[208].mxu0 %vm972_vm0, %v5856_v2 }
0x109a   : > { %5330 = vmatprep.mubr.bf16.mxu0 %v10792_v57 }
0x10a1   : > { %5762 = vmatmul.mubr.msk.bf16.gmra.mrb[212].mxu0 %vm972_vm0, %v5857_v44 }
0x10a2   : > { %5340 = vmatprep.mubr.bf16.mxu0 %v10792_v57 }
0x10a9   : > { %5763 = vmatmul.mubr.msk.bf16.gmra.mrb[216].mxu0 %vm972_vm0, %v5858_v6 }
0x10aa   : > { %5350 = vmatprep.mubr.bf16.mxu0 %v10792_v57 }
0x10b1   : > { %5764 = vmatmul.mubr.msk.bf16.gmra.mrb[220].mxu0 %vm972_vm0, %v5859_v55 }
0x114c   : > { %v5282_v30 = vpop.f32.mrb[192].mxu0 }
0x114d   : > { %v5283_v16 = vadd.f32 %v5282_v30, %v5107_v42  ;;  %v5284_v28 = vpop.f32.mrb[193].mxu0  ;;  %v5137_v30 = vpop.permute.xlu0 %5136 }
0x114e   : > { %v5285_v31 = vadd.f32 %v5284_v28, %v5107_v42  ;;  %v5286_v34 = vpop.f32.mrb[194].mxu0 }
0x114f   : > { %v5361_v62 = vmax.f32 %v5283_v16, 0.0  ;;  %v5287_v27 = vadd.f32 %v5286_v34, %v5112_v24  ;;  %v5288_v26 = vpop.f32.mrb[195].mxu0 }
0x1150   : > { %v5362_v15 = vmax.f32 %v5285_v31, 0.0  ;;  %v5289_v54 = vadd.f32 %v5288_v26, %v5112_v24 }
0x1151   : > { %v5363_v52 = vmax.f32 %v5287_v27, 0.0  ;;  %v5393_v39 = vmin.f32 %v5361_v62, 6.0  ;;  %v5142_v27 = vpop.permute.xlu1 %5141 }
0x1152   : > { %v5364_v18 = vmax.f32 %v5289_v54, 0.0  ;;  %v5394_v45 = vmin.f32 %v5362_v15, 6.0 }
0x1153   : > { %v5395_v60 = vmin.f32 %v5363_v52, 6.0 }
0x1154   : > { %v5396_v35 = vmin.f32 %v5364_v18, 6.0  ;;  %v5292_v58 = vpop.f32.mrb[196].mxu0 }
0x1155   : > { %v5425_v25 = vpack.c.bf16 %v5395_v60, %v5393_v39  ;;  %v5293_v22 = vadd.f32 %v5292_v58, %v5117_v20  ;;  %v5294_v14 = vpop.f32.mrb[197].mxu0 }
0x1156   : > { %v5426_v19 = vpack.c.bf16 %v5396_v35, %v5394_v45  ;;  %v5295_v8 = vadd.f32 %v5294_v14, %v5117_v20  ;;  %v5296_v0 = vpop.f32.mrb[198].mxu0 }
0x1157   : > { %v5365_v11 = vmax.f32 %v5293_v22, 0.0  ;;  %v5297_v33 = vadd.f32 %v5296_v0, %v5122_v63  ;;  %v5298_v56 = vpop.f32.mrb[199].mxu0  ;;  %v5147_v22 = vpop.permute.xlu0 %5146 }
0x1158   : > { %v5366_v47 = vmax.f32 %v5295_v8, 0.0  ;;  %v5299_v46 = vadd.f32 %v5298_v56, %v5122_v63  ;;  %5481 = vmatprep.subr.bf16.mxu1 %v5426_v19 }
0x1159   : > { %v5367_v53 = vmax.f32 %v5297_v33, 0.0  ;;  %5482 = vmatpush1.bf16.msra.mxu1 %v5425_v25  ;;  %v5397_v48 = vmin.f32 %v5365_v11, 6.0  ;;  %v5152_v33 = vpop.permute.xlu1 %5151 }
0x115a   : > { %v5368_v23 = vmax.f32 %v5299_v46, 0.0  ;;  %v5398_v10 = vmin.f32 %v5366_v47, 6.0 }
0x115b   : > { %v5399_v41 = vmin.f32 %v5367_v53, 6.0 }
0x115c   : > { %v5400_v9 = vmin.f32 %v5368_v23, 6.0  ;;  %v5302_v36 = vpop.f32.mrb[200].mxu0 }
0x115d   : > { %v5427_v43 = vpack.c.bf16 %v5399_v41, %v5397_v48  ;;  %v5303_v29 = vadd.f32 %v5302_v36, %v5127_v4  ;;  %v5304_v5 = vpop.f32.mrb[201].mxu0 }
0x115e   : > { %v5428_v50 = vpack.c.bf16 %v5400_v9, %v5398_v10  ;;  %v5305_v38 = vadd.f32 %v5304_v5, %v5127_v4  ;;  %v5306_v40 = vpop.f32.mrb[202].mxu0 }
0x115f   : > { %v5369_v61 = vmax.f32 %v5303_v29, 0.0  ;;  %v5307_v1 = vadd.f32 %v5306_v40, %v5132_v59  ;;  %v5308_v13 = vpop.f32.mrb[203].mxu0  ;;  %v5157_v29 = vpop.permute.xlu0 %5156 }
0x1160   : > { %v5370_v7 = vmax.f32 %v5305_v38, 0.0  ;;  %v5309_v2 = vadd.f32 %v5308_v13, %v5132_v59  ;;  %5483 = vmatprep.subr.bf16.mxu1 %v5428_v50 }
0x1161   : > { %v5371_v44 = vmax.f32 %v5307_v1, 0.0  ;;  %5484 = vmatpush1.bf16.msra.mxu1 %v5427_v43  ;;  %v5401_v55 = vmin.f32 %v5369_v61, 6.0  ;;  %v5162_v1 = vpop.permute.xlu1 %5161 }
0x1162   : > { %v5372_v6 = vmax.f32 %v5309_v2, 0.0  ;;  %v5402_v16 = vmin.f32 %v5370_v7, 6.0 }
0x1163   : > { %v5403_v42 = vmin.f32 %v5371_v44, 6.0 }
0x1164   : > { %v5404_v28 = vmin.f32 %v5372_v6, 6.0  ;;  %v5312_v24 = vpop.f32.mrb[204].mxu0 }
0x1165   : > { %v5429_v31 = vpack.c.bf16 %v5403_v42, %v5401_v55  ;;  %v5313_v34 = vadd.f32 %v5312_v24, %v5137_v30  ;;  %v5314_v62 = vpop.f32.mrb[205].mxu0 }
0x1166   : > { %v5430_v26 = vpack.c.bf16 %v5404_v28, %v5402_v16  ;;  %v5315_v15 = vadd.f32 %v5314_v62, %v5137_v30  ;;  %v5316_v54 = vpop.f32.mrb[206].mxu0 }
0x1167   : > { %v5373_v52 = vmax.f32 %v5313_v34, 0.0  ;;  %v5317_v18 = vadd.f32 %v5316_v54, %v5142_v27  ;;  %v5318_v39 = vpop.f32.mrb[207].mxu0  ;;  %v5167_v34 = vpop.permute.xlu0 %5166 }
0x1168   : > { %v5374_v60 = vmax.f32 %v5315_v15, 0.0  ;;  %v5319_v20 = vadd.f32 %v5318_v39, %v5142_v27  ;;  %5485 = vmatprep.subr.bf16.mxu1 %v5430_v26 }
0x1169   : > { %v5375_v45 = vmax.f32 %v5317_v18, 0.0  ;;  %5486 = vmatpush1.bf16.msra.mxu1 %v5429_v31  ;;  %v5405_v58 = vmin.f32 %v5373_v52, 6.0  ;;  %v5172_v18 = vpop.permute.xlu1 %5171 }
0x116a   : > { %v5376_v35 = vmax.f32 %v5319_v20, 0.0  ;;  %v5406_v14 = vmin.f32 %v5374_v60, 6.0 }
0x116b   : > { %v5407_v25 = vmin.f32 %v5375_v45, 6.0 }
0x116c   : > { %v5408_v63 = vmin.f32 %v5376_v35, 6.0  ;;  %v5322_v19 = vpop.f32.mrb[208].mxu0 }
0x116d   : > { %v5431_v8 = vpack.c.bf16 %v5407_v25, %v5405_v58  ;;  %v5323_v0 = vadd.f32 %v5322_v19, %v5147_v22  ;;  %v5324_v11 = vpop.f32.mrb[209].mxu0 }
0x116e   : > { %v5432_v56 = vpack.c.bf16 %v5408_v63, %v5406_v14  ;;  %v5325_v47 = vadd.f32 %v5324_v11, %v5147_v22  ;;  %v5326_v46 = vpop.f32.mrb[210].mxu0 }
0x116f   : > { %v5377_v53 = vmax.f32 %v5323_v0, 0.0  ;;  %v5327_v23 = vadd.f32 %v5326_v46, %v5152_v33  ;;  %v5328_v48 = vpop.f32.mrb[211].mxu0  ;;  %v5177_v0 = vpop.permute.xlu0 %5176 }
0x1170   : > { %v5378_v41 = vmax.f32 %v5325_v47, 0.0  ;;  %v5329_v4 = vadd.f32 %v5328_v48, %v5152_v33  ;;  %5487 = vmatprep.subr.bf16.mxu1 %v5432_v56 }
0x1171   : > { %v5379_v10 = vmax.f32 %v5327_v23, 0.0  ;;  %5488 = vmatpush1.bf16.msra.mxu1 %v5431_v8  ;;  %v5409_v36 = vmin.f32 %v5377_v53, 6.0  ;;  %v5182_v23 = vpop.permute.xlu1 %5181 }
0x1172   : > { %v5380_v9 = vmax.f32 %v5329_v4, 0.0  ;;  %v5410_v5 = vmin.f32 %v5378_v41, 6.0 }
0x1173   : > { %v5411_v43 = vmin.f32 %v5379_v10, 6.0 }
0x1174   : > { %v5412_v59 = vmin.f32 %v5380_v9, 6.0  ;;  %v5332_v50 = vpop.f32.mrb[212].mxu0 }
0x1175   : > { %v5433_v38 = vpack.c.bf16 %v5411_v43, %v5409_v36  ;;  %v5333_v40 = vadd.f32 %v5332_v50, %v5157_v29  ;;  %v5334_v61 = vpop.f32.mrb[213].mxu0 }
0x1176   : > { %v5434_v13 = vpack.c.bf16 %v5412_v59, %v5410_v5  ;;  %v5335_v7 = vadd.f32 %v5334_v61, %v5157_v29  ;;  %v5336_v2 = vpop.f32.mrb[214].mxu0 }
0x1177   : > { %v5381_v44 = vmax.f32 %v5333_v40, 0.0  ;;  %v5337_v6 = vadd.f32 %v5336_v2, %v5162_v1  ;;  %v5338_v55 = vpop.f32.mrb[215].mxu0  ;;  %v5861_v2 = vld [vmem:[%s10156_s11 + $0x8] sm:$0xff]  }
0x1178   : > { %v5382_v42 = vmax.f32 %v5335_v7, 0.0  ;;  %v5339_v30 = vadd.f32 %v5338_v55, %v5162_v1  ;;  %5489 = vmatprep.subr.bf16.mxu1 %v5434_v13  ;;  %v5860_v7 = vld [vmem:[%s10156_s11] sm:$0xff]  }
0x1179   : > { %v5383_v16 = vmax.f32 %v5337_v6, 0.0  ;;  %5490 = vmatpush1.bf16.msra.mxu1 %v5433_v38  ;;  %v5413_v24 = vmin.f32 %v5381_v44, 6.0  ;;  %v5452_v44 = vpop.permute.xlu0 %5451 }
0x117a   : > { %v5384_v28 = vmax.f32 %v5339_v30, 0.0  ;;  %v5414_v62 = vmin.f32 %v5382_v42, 6.0  ;;  %v5457_v30 = vpop.permute.xlu1 %5456 }
0x117b   : > { %v5415_v31 = vmin.f32 %v5383_v16, 6.0 }
0x117c   : > { %v5416_v27 = vmin.f32 %v5384_v28, 6.0  ;;  %v5342_v26 = vpop.f32.mrb[216].mxu0 }
0x117d   : > { %v5435_v15 = vpack.c.bf16 %v5415_v31, %v5413_v24  ;;  %v5343_v54 = vadd.f32 %v5342_v26, %v5167_v34  ;;  %v5344_v52 = vpop.f32.mrb[217].mxu0 }
0x117e   : > { %v5436_v39 = vpack.c.bf16 %v5416_v27, %v5414_v62  ;;  %v5345_v60 = vadd.f32 %v5344_v52, %v5167_v34  ;;  %v5346_v20 = vpop.f32.mrb[218].mxu0 }
0x117f   : > { %v5385_v45 = vmax.f32 %v5343_v54, 0.0  ;;  %v5347_v35 = vadd.f32 %v5346_v20, %v5172_v18  ;;  %v5348_v58 = vpop.f32.mrb[219].mxu0 }
0x1180   : > { %v5386_v25 = vmax.f32 %v5345_v60, 0.0  ;;  %v5349_v22 = vadd.f32 %v5348_v58, %v5172_v18  ;;  %5491 = vmatprep.subr.bf16.mxu1 %v5436_v39 }
0x1181   : > { %v5387_v14 = vmax.f32 %v5347_v35, 0.0  ;;  %5492 = vmatpush1.bf16.msra.mxu1 %v5435_v15  ;;  %v5417_v19 = vmin.f32 %v5385_v45, 6.0  ;;  %v5462_v15 = vpop.permute.xlu0 %5461 }
0x1182   : > { %v5388_v63 = vmax.f32 %v5349_v22, 0.0  ;;  %v5418_v11 = vmin.f32 %v5386_v25, 6.0 }
0x1183   : > { %v5419_v8 = vmin.f32 %v5387_v14, 6.0 }
0x1184   : > { %v5420_v33 = vmin.f32 %v5388_v63, 6.0  ;;  %v5352_v56 = vpop.f32.mrb[220].mxu0 }
0x1185   : > { %v5437_v47 = vpack.c.bf16 %v5419_v8, %v5417_v19  ;;  %v5353_v46 = vadd.f32 %v5352_v56, %v5177_v0  ;;  %v5354_v53 = vpop.f32.mrb[221].mxu0 }
0x1186   : > { %v5438_v48 = vpack.c.bf16 %v5420_v33, %v5418_v11  ;;  %v5355_v41 = vadd.f32 %v5354_v53, %v5177_v0  ;;  %v5356_v4 = vpop.f32.mrb[222].mxu0 }
0x1187   : > { %v5389_v10 = vmax.f32 %v5353_v46, 0.0  ;;  %v5357_v9 = vadd.f32 %v5356_v4, %v5182_v23  ;;  %v5358_v36 = vpop.f32.mrb[223].mxu0 }
0x1188   : > { %v5390_v43 = vmax.f32 %v5355_v41, 0.0  ;;  %v5359_v29 = vadd.f32 %v5358_v36, %v5182_v23  ;;  %5493 = vmatprep.subr.bf16.mxu1 %v5438_v48 }
0x1189   : > { %v5391_v5 = vmax.f32 %v5357_v9, 0.0  ;;  %5494 = vmatpush1.bf16.msra.mxu1 %v5437_v47  ;;  %v5421_v50 = vmin.f32 %v5389_v10, 6.0 }
0x118a   : > { %v5392_v59 = vmax.f32 %v5359_v29, 0.0  ;;  %v5422_v40 = vmin.f32 %v5390_v43, 6.0 }
0x118b   : > { %v5423_v38 = vmin.f32 %v5391_v5, 6.0 }
0x118c   : > { %v5424_v61 = vmin.f32 %v5392_v59, 6.0 }
0x118d   : > { %v5439_v1 = vpack.c.bf16 %v5423_v38, %v5421_v50 }
0x118e   : > { %v5440_v13 = vpack.c.bf16 %v5424_v61, %v5422_v40 }
0x1190   : > { %5495 = vmatprep.subr.bf16.mxu1 %v5440_v13 }
0x1191   : > { %5496 = vmatpush1.bf16.msra.mxu1 %v5439_v1 }
0x1194   : > { %5514 = vmatmul.mubr.bf16.vlgmr.msra.gmra.mrb[232].mxu1 %v5860_v7 }
0x1195   : > { %5523 = vmatprep.mubr.bf16.mxu1 %v10792_v57 }
0x119c   : > { %5524 = vmatmul.mubr.bf16.gmra.mrb[236].mxu1 %v5861_v2 }
0x1267   : > { %v5515_v6 = vpop.f32.mrb[232].mxu1 }
0x1268   : > { %v5516_v55 = vadd.f32 %v5515_v6, %v5452_v44  ;;  %v5517_v42 = vpop.f32.mrb[233].mxu1 }
0x1269   : > { %v5518_v16 = vadd.f32 %v5517_v42, %v5452_v44  ;;  %v5519_v28 = vpop.f32.mrb[234].mxu1 }
0x126a   : > { %v5534_v24 = vadd.f32 %v5516_v55, %v10006_v3  ;;  %v5520_v31 = vadd.f32 %v5519_v28, %v5457_v30  ;;  %v5521_v34 = vpop.f32.mrb[235].mxu1  ;;  %v5467_v3 = vpop.permute.xlu1 %5466 }
0x126b   : > { %v5535_v57 = vadd.f32 %v5518_v16, %v10009_v49  ;;  %v5522_v62 = vadd.f32 %v5521_v34, %v5457_v30 }
0x126c   : > { %5542 = vst [vmem:[%s433_s20] sm:$0xff] %v5534_v24  ;;  %v5536_v27 = vadd.f32 %v5520_v31, %v10012_v17 }
0x126d   : > { %5543 = vst [vmem:[%s433_s20 + $0x8] sm:$0xff] %v5535_v57  ;;  %v5537_v26 = vadd.f32 %v5522_v62, %v10016_v21 }
0x126e   : > { %5544 = vst [vmem:[%s433_s20 + $0x10] sm:$0xff] %v5536_v27 }
0x126f   : > { %5545 = vst [vmem:[%s433_s20 + $0x18] sm:$0xff] %v5537_v26  ;;  %v5525_v54 = vpop.f32.mrb[236].mxu1 }
0x1270   : > { %v5526_v52 = vadd.f32 %v5525_v54, %v5462_v15  ;;  %v5527_v18 = vpop.f32.mrb[237].mxu1 }
0x1271   : > { %v5528_v39 = vadd.f32 %v5527_v18, %v5462_v15  ;;  %v5529_v60 = vpop.f32.mrb[238].mxu1 }
0x1272   : > { %v5538_v49 = vadd.f32 %v5526_v52, %v10022_v32  ;;  %v5530_v20 = vadd.f32 %v5529_v60, %v5467_v3  ;;  %v5531_v17 = vpop.f32.mrb[239].mxu1 }
0x1273   : > { %v5539_v45 = vadd.f32 %v5528_v39, %v10025_v12  ;;  %v5532_v21 = vadd.f32 %v5531_v17, %v5467_v3 }
0x1274   : > { %5546 = vst [vmem:[%s433_s20 + $0x20] sm:$0xff] %v5538_v49  ;;  %v5540_v35 = vadd.f32 %v5530_v20, %v10028_v37 }
0x1275   : > { %5547 = vst [vmem:[%s433_s20 + $0x28] sm:$0xff] %v5539_v45  ;;  %v5541_v32 = vadd.f32 %v5532_v21, %v10032_v51 }
0x1276   : > { %5548 = vst [vmem:[%s433_s20 + $0x30] sm:$0xff] %v5540_v35 }
0x1277   : > { %5549 = vst [vmem:[%s433_s20 + $0x38] sm:$0xff] %v5541_v32 }
0x1278   : > { %6651 = shalt.err (!%p6648_p3)
}
0x1279   : > { %s6652_s24 = scalar_lea.hbm %s10097_s0, 1024  ;;  %s6656_s15 = scalar_lea.hbm %s10158_s13, 2048 }
0x127a   : > { %p6653_p4 = scmp.ne.s32.totalorder %s10097_s0, %s6652_s24  ;;  %p6657_p9 = scmp.lt.u32.totalorder %s10097_s0, %s10158_s13 }
0x127b   : > { %p6658_p10 = scmp.lt.u32.totalorder %s6656_s15, %s6652_s24  ;;  %p6660_p12 = scmp.lt.u32.totalorder %s6652_s24, %s10097_s0 }
0x127c   : > { %p6654_p7 = pnand %p6653_p4, %p6814_p5 }
0x127d   : > { %p6659_p11 = por %p6658_p10, %p6657_p9 }
0x127e   : > { %p6655_p8 = pneg %p6654_p7 }
0x127f   : > { %p6661_p13 = por %p6660_p12, %p6659_p11 }
0x1281   : > { %p6662_p0 = pnand %p6661_p13, %p6655_p8 }
0x1283   : > { %6665 = shalt.err (!%p6662_p0)
}
0x1284   : > { %s6704_s21 = smov 256   ;;  %s6705_s23 = smov 16  }
0x1285   : > { %5778 = dma.vmem_to_hbm [thread:$0]  (%p6814_p5), %s10099_s17, 1024, %s10097_s0, %s10104_s29, %s6704_s21, %s6704_s21, %s6705_s23  }
0x1286 PF: > { %p5784_p1 = scmp.ge.s32.totalorder %s6700_s28, 2  ;;  %s5579_s30 = sand.u32 1, %s6688_s25  }
0x1287   : > { %s5580_s24 = scalar_lea.sflag [#allocation4], %s5579_s30 }
0x1288   : > { %p5781_p2 = pnand %p5784_p1, %p6818_p6 }
0x128a   : > { %6683 = dma.done.wait (!%p5781_p2), %s5580_s24, 1024  }
0x128b   : > { %6685 = vsyncadd (!%p5781_p2), %s5580_s24, 4294966272  ;;  %s10793_s20 = sld [smem:[#allocation6_spill]]  ;;  %s10794_s27 = sld [smem:[#allocation7_spill]] }
0x128c   : > { %p23_p3 = scmp.ge.s32.totalorder %s6801_s14, 4   ;;  %s10795_s25 = smov %s6692_s26 }
0x128d   : > { %s10797_s28 = smov %s6801_s14 }
0x128e   :  { %25 = sbr.rel (!%p23_p3) target bundleno = 5 (0x5), region = 107 }
0x1291   : > { %s10796_s26 = smov %s10793_s20 }
0x1295   :  { %5585 = vsyncpa [#allocation4], 1 }
0x1296   :  { %5587 = vsyncpa [#allocation4 + $0x1], 1 }

</bundles_post_ra>
